<compile_context>
chip_gen: v6e
topology: v6e:2x2x1
jax: 0.10.0
libtpu: 0.0.40
codegen_flags: <defaults>
</compile_context>

<pallas_src>
import functools

import jax
import jax.numpy as jnp
from jax.experimental import pallas as pl
from jax.experimental.pallas import tpu as pltpu


# ----------------------------------------------------------------------------
# Pallas kernels (single-step, gridless; all operands VMEM resident)
# ----------------------------------------------------------------------------
def _stem_kernel(pe_ref, po_ref, w_ref, b_ref, o_ref, hops_ref, *, n, l2, c1):
    """Fused stem: conv1(K=7, s=2, p=3) + folded BN + ReLU + maxpool(K=3, s=2, p=1).

    pe/po hold im2col patches for the even / odd conv-output positions, so
    maxpool out[l] = max(h[2l-1], h[2l], h[2l+1]) = max(ho[l-1], he[l], ho[l]) only
    needs a one-row shift of ho (the missing ho[-1] can be 0 because of the ReLU).
    """
    for i in range(n):
        he = jnp.maximum(
            jnp.dot(pe_ref[i].astype(jnp.bfloat16), w_ref[...],
                    preferred_element_type=jnp.float32) + b_ref[...], 0.0)
        ho = jnp.maximum(
            jnp.dot(po_ref[i].astype(jnp.bfloat16), w_ref[...],
                    preferred_element_type=jnp.float32) + b_ref[...], 0.0)
        # ho shifted down by one row (row 0 := 0) via a small VMEM scratch.
        hops_ref[i, 0:1, :] = jnp.zeros((1, c1), jnp.float32)
        hops_ref[i, 1:l2 + 1, :] = ho
        o_ref[i] = jnp.maximum(jnp.maximum(he, ho),
                               hops_ref[i, 0:l2, :]).astype(o_ref.dtype)


def _block_kernel(*refs, stride, has_down, cin, cout, lout, n):
    """Fused BasicBlock: relu( bn2(conv2( relu(bn1(conv1(x))) )) + downsample(x) ).

    BN is pre-folded into the (bf16) weights; b*_ref hold the per-channel shifts.
    """
    if stride == 1:
        xp_ref = refs[0]          # (N, L_in+2, C_in)  zero-padded input
        rest = refs[1:]
    else:
        xe_ref, xo_ref = refs[0], refs[1]   # even / odd padded positions
        rest = refs[2:]
    if has_down:
        w1_ref, b1_ref, w2_ref, b2_ref, wd_ref, bd_ref, o_ref, hpad_ref = rest
    else:
        w1_ref, b1_ref, w2_ref, b2_ref, o_ref, hpad_ref = rest

    for i in range(n):
        # ---- conv1 (K=3, stride s) + folded BN1 + ReLU --------------------------
        if stride == 1:
            t0 = xp_ref[i, 0:lout, :]
            t1 = xp_ref[i, 1:lout + 1, :]
            t2 = xp_ref[i, 2:lout + 2, :]
        else:
            t0 = xe_ref[i, 0:lout, :]
            t1 = xo_ref[i, 0:lout, :]
            t2 = xe_ref[i, 1:lout + 1, :]
        acc = jnp.dot(t0.astype(jnp.bfloat16), w1_ref[0:cin, :],
                      preferred_element_type=jnp.float32)
        acc = acc + jnp.dot(t1.astype(jnp.bfloat16), w1_ref[cin:2 * cin, :],
                            preferred_element_type=jnp.float32)
        acc = acc + jnp.dot(t2.astype(jnp.bfloat16), w1_ref[2 * cin:3 * cin, :],
                            preferred_element_type=jnp.float32)
        h = jnp.maximum(acc + b1_ref[...], 0.0)

        # Stash h with one zero row on each side so conv2's taps are plain slices.
        hpad_ref[i, 0:1, :] = jnp.zeros((1, cout), jnp.float32)
        hpad_ref[i, lout + 1:lout + 2, :] = jnp.zeros((1, cout), jnp.float32)
        hpad_ref[i, 1:lout + 1, :] = h

        # ---- identity / 1x1 downsample path --------------------------------------
        if stride == 1:
            x_id = xp_ref[i, 1:lout + 1, :]
        else:
            x_id = xo_ref[i, 0:lout, :]
        if has_down:
            idn = jnp.dot(x_id.astype(jnp.bfloat16), wd_ref[...],
                          preferred_element_type=jnp.float32) + bd_ref[...]
        else:
            idn = x_id                      # stride == 1 and cin == cout

        # ---- conv2 (K=3, stride 1) + folded BN2 + residual add + ReLU -------------
        acc2 = idn + b2_ref[...]
        for k in range(3):
            acc2 = acc2 + jnp.dot(
                hpad_ref[i, k:k + lout, :].astype(jnp.bfloat16),
                w2_ref[k * cout:(k + 1) * cout, :],
                preferred_element_type=jnp.float32)
        o_ref[i] = jnp.maximum(acc2, 0.0).astype(o_ref.dtype)


def _head_kernel(x_ref, w_ref, b_ref, o_ref):
    """AdaptiveAvgPool1d(1) + flatten + Linear, channels-last input (N, L, C)."""
    pooled = jnp.mean(x_ref[...], axis=1)                        # (N, C)
    o_ref[...] = (jnp.dot(pooled, w_ref[...],
                          preferred_element_type=jnp.float32)
                  + b_ref[...]).astype(o_ref.dtype)


# ----------------------------------------------------------------------------
# Wrappers (thin XLA glue: pads / phase slices only — no HBM im2col expansion)
# ----------------------------------------------------------------------------
def stem(x_cl, w, b):
    n, length, _ = x_cl.shape
    l1 = (length + 6 - 7) // 2 + 1          # conv7/s2/p3 output length
    l2 = (l1 + 2 - 3) // 2 + 1              # maxpool3/s2/p1 output length
    assert l1 == 2 * l2, "fused stem assumes even conv-output length (input L % 4 == 0)"
    c1 = w.shape[1]
    xpad = jnp.pad(x_cl, ((0, 0), (3, 3), (0, 0)))
    # conv output j uses padded positions 2j+k; even j=2m -> 4m+k, odd j=2m+1 -> 4m+2+k
    pe = jnp.concatenate(
        [xpad[:, k:k + 4 * (l2 - 1) + 1:4, :] for k in range(7)], axis=-1)
    po = jnp.concatenate(
        [xpad[:, k + 2:k + 2 + 4 * (l2 - 1) + 1:4, :] for k in range(7)], axis=-1)
    kernel = functools.partial(_stem_kernel, n=n, l2=l2, c1=c1)
    return pl.pallas_call(
        kernel,
        out_shape=jax.ShapeDtypeStruct((n, l2, c1), jnp.float32),
        scratch_shapes=[pltpu.VMEM((n, l2 + 1, c1), jnp.float32)],
    )(pe, po, w, b)


def basic_block(x_cl, p, stride):
    n, l_in, c_in = x_cl.shape
    c_out = p["w1"].shape[1]
    l_out = (l_in + 2 - 3) // stride + 1
    has_down = "wd" in p

    xpad = jnp.pad(x_cl, ((0, 0), (1, 1), (0, 0)))
    if stride == 1:
        acts = [xpad]
    else:
        acts = [xpad[:, 0::2, :][:, :l_out + 1, :],      # even padded positions
                xpad[:, 1::2, :][:, :l_out, :]]          # odd  padded positions

    args = acts + [p["w1"], p["b1"], p["w2"], p["b2"]]
    if has_down:
        args += [p["wd"], p["bd"]]

    kernel = functools.partial(_block_kernel, stride=stride, has_down=has_down,
                               cin=c_in, cout=c_out, lout=l_out, n=n)
    return pl.pallas_call(
        kernel,
        out_shape=jax.ShapeDtypeStruct((n, l_out, c_out), jnp.float32),
        scratch_shapes=[pltpu.VMEM((n, l_out + 2, c_out), jnp.float32)],
    )(*args)


def head(x_cl, fc_wt, fc_b):
    n = x_cl.shape[0]
    nc = fc_wt.shape[1]
    return pl.pallas_call(
        _head_kernel,
        out_shape=jax.ShapeDtypeStruct((n, nc), jnp.float32),
    )(x_cl, fc_wt, fc_b)


# ----------------------------------------------------------------------------
# Parameters: raw (PyTorch-like) init + BN folding / layout prep
# ----------------------------------------------------------------------------
def _conv_w(key, c_out, c_in, k):
    return 0.05 * jax.random.normal(key, (c_out, c_in, k), jnp.float32)


def _bn_params(key, c):
    k1, k2, k3 = jax.random.split(key, 3)
    return dict(
        gamma=1.0 + 0.1 * jax.random.normal(k1, (c,), jnp.float32),
        beta=0.1 * jax.random.normal(k2, (c,), jnp.float32),
        mean=0.1 * jax.random.normal(k3, (c,), jnp.float32),
        var=jnp.ones((c,), jnp.float32),
    )


def init_resnet1d_params(key, layers, input_channels=1, num_classes=10):
    keys = iter(jax.random.split(key, 512))
    params = {"conv1_w": _conv_w(next(keys), 64, input_channels, 7),
              "bn1": _bn_params(next(keys), 64)}
    in_c = 64
    layer_params = []
    for i, (out_c, n_blocks) in enumerate(zip([64, 128, 256, 512], layers)):
        layer_stride = 1 if i == 0 else 2
        blocks = []
        for b in range(n_blocks):
            s = layer_stride if b == 0 else 1
            bp = {"stride": s,
                  "conv1_w": _conv_w(next(keys), out_c, in_c, 3),
                  "bn1": _bn_params(next(keys), out_c),
                  "conv2_w": _conv_w(next(keys), out_c, out_c, 3),
                  "bn2": _bn_params(next(keys), out_c)}
            if s != 1 or in_c != out_c:
                bp["down_w"] = _conv_w(next(keys), out_c, in_c, 1)
                bp["down_bn"] = _bn_params(next(keys), out_c)
            blocks.append(bp)
            in_c = out_c
        layer_params.append(blocks)
    params["layers"] = layer_params
    params["fc_w"] = 0.05 * jax.random.normal(next(keys), (num_classes, 512), jnp.float32)
    params["fc_b"] = 0.05 * jax.random.normal(next(keys), (num_classes,), jnp.float32)
    return params


def _fold_conv_bn(w, bn, eps=1e-5):
    # w: (C_out, C_in, K) torch layout -> (K*C_in, C_out) bf16 weight with BN scale
    # folded in, plus a (1, C_out) f32 shift.
    c_out = w.shape[0]
    inv = jax.lax.rsqrt(bn["var"] + eps)
    scale = bn["gamma"] * inv
    shift = bn["beta"] - bn["mean"] * scale
    wkc = jnp.transpose(w, (2, 1, 0)).reshape(-1, c_out)          # row index = k*C_in + c
    return ((wkc * scale[None, :]).astype(jnp.bfloat16),
            shift.reshape(1, c_out).astype(jnp.float32))


def fold_params(raw):
    p = {}
    p["stem_w"], p["stem_b"] = _fold_conv_bn(raw["conv1_w"], raw["bn1"])
    layers = []
    for blocks in raw["layers"]:
        fblocks = []
        for b in blocks:
            fb = {}
            fb["w1"], fb["b1"] = _fold_conv_bn(b["conv1_w"], b["bn1"])
            fb["w2"], fb["b2"] = _fold_conv_bn(b["conv2_w"], b["bn2"])
            if "down_w" in b:
                fb["wd"], fb["bd"] = _fold_conv_bn(b["down_w"], b["down_bn"])
            fblocks.append(fb)
        layers.append(fblocks)
    p["layers"] = layers
    p["fc_wt"] = raw["fc_w"].T.astype(jnp.float32)
    p["fc_b"] = raw["fc_b"].reshape(1, -1).astype(jnp.float32)
    return p


def block_strides(raw):
    # Static (hashable) nested tuple of strides, kept out of the jit-traced pytree.
    return tuple(tuple(int(b["stride"]) for b in blocks) for blocks in raw["layers"])


# ----------------------------------------------------------------------------
# Forward
# ----------------------------------------------------------------------------
def resnet1d_forward(params, x, strides):
    # x: (N, C_in, L) — PyTorch NCL layout.
    x_cl = jnp.transpose(x, (0, 2, 1)).astype(jnp.float32)        # NCL -> NLC
    h = stem(x_cl, params["stem_w"], params["stem_b"])            # conv7+bn+relu+maxpool
    for blocks, blk_strides in zip(params["layers"], strides):
        for bp, s in zip(blocks, blk_strides):
            h = basic_block(h, bp, s)
    return head(h, params["fc_wt"], params["fc_b"])               # avgpool+flatten+fc


# ----------------------------------------------------------------------------
if __name__ == "__main__":
    key = jax.random.PRNGKey(0)
    kx, kp = jax.random.split(key)

    # x layout: (batch=2, channels=1, length=64) == PyTorch NCW for Conv1d
    x = jax.random.normal(kx, (2, 1, 64), jnp.float32)
    raw = init_resnet1d_params(kp, layers=[1, 1, 1, 1],
                               input_channels=1, num_classes=10)
    params = fold_params(raw)
    strides = block_strides(raw)

    fwd = jax.jit(resnet1d_forward, static_argnums=2)
    out = jax.block_until_ready(fwd(params, x, strides))
    assert out.shape == (2, 10), out.shape
    assert out.dtype == jnp.float32
    print("KERNEL_OK")
</pallas_src>

<mosaic_0001>
module attributes {stable_mosaic.version = 11 : i64} {
  func.func @_stem_kernel(%arg0: memref<2x16x7xf32, #tpu.memory_space<vmem>>, %arg1: memref<2x16x7xf32, #tpu.memory_space<vmem>>, %arg2: memref<7x64xbf16, #tpu.memory_space<vmem>>, %arg3: memref<1x64xf32, #tpu.memory_space<vmem>>, %arg4: memref<2x16x64xf32, #tpu.memory_space<vmem>>, %arg5: memref<2x17x64xf32, #tpu.memory_space<vmem>>) attributes {dimension_semantics = [], scalar_prefetch = 0 : i64, scratch_operands = 1 : i64, tpu.core_type = #tpu.core_type<tc>} {
    %c0 = arith.constant 0 : index
    %c0_0 = arith.constant 0 : index
    %c0_1 = arith.constant 0 : index
    %0 = vector.load %arg0[%c0, %c0_0, %c0_1] : memref<2x16x7xf32, #tpu.memory_space<vmem>>, vector<1x16x7xf32>
    %1 = vector.shape_cast %0 : vector<1x16x7xf32> to vector<16x7xf32>
    %2 = arith.truncf %1 : vector<16x7xf32> to vector<16x7xbf16>
    %c0_2 = arith.constant 0 : index
    %c0_3 = arith.constant 0 : index
    %3 = vector.load %arg2[%c0_2, %c0_3] : memref<7x64xbf16, #tpu.memory_space<vmem>>, vector<7x64xbf16>
    %cst = arith.constant dense<0.000000e+00> : vector<16x64xf32>
    %4 = tpu.matmul %2, %3, %cst {dimension_numbers = #tpu.dot_dimension_numbers<[1], [0], [0], [1], [0, 0, 1, 1], [], []>} : vector<16x7xbf16>, vector<7x64xbf16>, vector<16x64xf32> -> vector<16x64xf32>
    %c0_4 = arith.constant 0 : index
    %c0_5 = arith.constant 0 : index
    %5 = vector.load %arg3[%c0_4, %c0_5] : memref<1x64xf32, #tpu.memory_space<vmem>>, vector<1x64xf32>
    %6 = vector.broadcast %5 : vector<1x64xf32> to vector<16x64xf32>
    %7 = arith.addf %4, %6 : vector<16x64xf32>
    %cst_6 = arith.constant 0.000000e+00 : f32
    %8 = vector.broadcast %cst_6 : f32 to vector<16x64xf32>
    %9 = arith.maximumf %7, %8 : vector<16x64xf32>
    %c0_7 = arith.constant 0 : index
    %c0_8 = arith.constant 0 : index
    %c0_9 = arith.constant 0 : index
    %10 = vector.load %arg1[%c0_7, %c0_8, %c0_9] : memref<2x16x7xf32, #tpu.memory_space<vmem>>, vector<1x16x7xf32>
    %11 = vector.shape_cast %10 : vector<1x16x7xf32> to vector<16x7xf32>
    %12 = arith.truncf %11 : vector<16x7xf32> to vector<16x7xbf16>
    %c0_10 = arith.constant 0 : index
    %c0_11 = arith.constant 0 : index
    %13 = vector.load %arg2[%c0_10, %c0_11] : memref<7x64xbf16, #tpu.memory_space<vmem>>, vector<7x64xbf16>
    %cst_12 = arith.constant dense<0.000000e+00> : vector<16x64xf32>
    %14 = tpu.matmul %12, %13, %cst_12 {dimension_numbers = #tpu.dot_dimension_numbers<[1], [0], [0], [1], [0, 0, 1, 1], [], []>} : vector<16x7xbf16>, vector<7x64xbf16>, vector<16x64xf32> -> vector<16x64xf32>
    %c0_13 = arith.constant 0 : index
    %c0_14 = arith.constant 0 : index
    %15 = vector.load %arg3[%c0_13, %c0_14] : memref<1x64xf32, #tpu.memory_space<vmem>>, vector<1x64xf32>
    %16 = vector.broadcast %15 : vector<1x64xf32> to vector<16x64xf32>
    %17 = arith.addf %14, %16 : vector<16x64xf32>
    %cst_15 = arith.constant 0.000000e+00 : f32
    %18 = vector.broadcast %cst_15 : f32 to vector<16x64xf32>
    %19 = arith.maximumf %17, %18 : vector<16x64xf32>
    %cst_16 = arith.constant 0.000000e+00 : f32
    %20 = vector.broadcast %cst_16 : f32 to vector<1x64xf32>
    %c0_17 = arith.constant 0 : index
    %c0_18 = arith.constant 0 : index
    %c0_19 = arith.constant 0 : index
    %21 = vector.load %arg5[%c0_17, %c0_18, %c0_19] : memref<2x17x64xf32, #tpu.memory_space<vmem>>, vector<1x1x64xf32>
    %22 = vector.shape_cast %21 : vector<1x1x64xf32> to vector<1x64xf32>
    %23 = vector.shape_cast %20 : vector<1x64xf32> to vector<1x1x64xf32>
    tpu.vector_store %arg5[%c0_17, %c0_18, %c0_19], %23 {strides = array<i32>} : memref<2x17x64xf32, #tpu.memory_space<vmem>>, vector<1x1x64xf32>,
    %c0_20 = arith.constant 0 : index
    %c1 = arith.constant 1 : index
    %c0_21 = arith.constant 0 : index
    %24 = vector.load %arg5[%c0_20, %c1, %c0_21] : memref<2x17x64xf32, #tpu.memory_space<vmem>>, vector<1x16x64xf32>
    %25 = vector.shape_cast %24 : vector<1x16x64xf32> to vector<16x64xf32>
    %26 = vector.shape_cast %19 : vector<16x64xf32> to vector<1x16x64xf32>
    tpu.vector_store %arg5[%c0_20, %c1, %c0_21], %26 {strides = array<i32>} : memref<2x17x64xf32, #tpu.memory_space<vmem>>, vector<1x16x64xf32>,
    %27 = arith.maximumf %9, %19 : vector<16x64xf32>
    %c0_22 = arith.constant 0 : index
    %c0_23 = arith.constant 0 : index
    %c0_24 = arith.constant 0 : index
    %28 = vector.load %arg5[%c0_22, %c0_23, %c0_24] : memref<2x17x64xf32, #tpu.memory_space<vmem>>, vector<1x16x64xf32>
    %29 = vector.shape_cast %28 : vector<1x16x64xf32> to vector<16x64xf32>
    %30 = arith.maximumf %27, %29 : vector<16x64xf32>
    %c0_25 = arith.constant 0 : index
    %c0_26 = arith.constant 0 : index
    %c0_27 = arith.constant 0 : index
    %31 = vector.load %arg4[%c0_25, %c0_26, %c0_27] : memref<2x16x64xf32, #tpu.memory_space<vmem>>, vector<1x16x64xf32>
    %32 = vector.shape_cast %31 : vector<1x16x64xf32> to vector<16x64xf32>
    %33 = vector.shape_cast %30 : vector<16x64xf32> to vector<1x16x64xf32>
    tpu.vector_store %arg4[%c0_25, %c0_26, %c0_27], %33 {strides = array<i32>} : memref<2x16x64xf32, #tpu.memory_space<vmem>>, vector<1x16x64xf32>,
    %c1_28 = arith.constant 1 : index
    %c0_29 = arith.constant 0 : index
    %c0_30 = arith.constant 0 : index
    %34 = vector.load %arg0[%c1_28, %c0_29, %c0_30] : memref<2x16x7xf32, #tpu.memory_space<vmem>>, vector<1x16x7xf32>
    %35 = vector.shape_cast %34 : vector<1x16x7xf32> to vector<16x7xf32>
    %36 = arith.truncf %35 : vector<16x7xf32> to vector<16x7xbf16>
    %c0_31 = arith.constant 0 : index
    %c0_32 = arith.constant 0 : index
    %37 = vector.load %arg2[%c0_31, %c0_32] : memref<7x64xbf16, #tpu.memory_space<vmem>>, vector<7x64xbf16>
    %cst_33 = arith.constant dense<0.000000e+00> : vector<16x64xf32>
    %38 = tpu.matmul %36, %37, %cst_33 {dimension_numbers = #tpu.dot_dimension_numbers<[1], [0], [0], [1], [0, 0, 1, 1], [], []>} : vector<16x7xbf16>, vector<7x64xbf16>, vector<16x64xf32> -> vector<16x64xf32>
    %c0_34 = arith.constant 0 : index
    %c0_35 = arith.constant 0 : index
    %39 = vector.load %arg3[%c0_34, %c0_35] : memref<1x64xf32, #tpu.memory_space<vmem>>, vector<1x64xf32>
    %40 = vector.broadcast %39 : vector<1x64xf32> to vector<16x64xf32>
    %41 = arith.addf %38, %40 : vector<16x64xf32>
    %cst_36 = arith.constant 0.000000e+00 : f32
    %42 = vector.broadcast %cst_36 : f32 to vector<16x64xf32>
    %43 = arith.maximumf %41, %42 : vector<16x64xf32>
    %c1_37 = arith.constant 1 : index
    %c0_38 = arith.constant 0 : index
    %c0_39 = arith.constant 0 : index
    %44 = vector.load %arg1[%c1_37, %c0_38, %c0_39] : memref<2x16x7xf32, #tpu.memory_space<vmem>>, vector<1x16x7xf32>
    %45 = vector.shape_cast %44 : vector<1x16x7xf32> to vector<16x7xf32>
    %46 = arith.truncf %45 : vector<16x7xf32> to vector<16x7xbf16>
    %c0_40 = arith.constant 0 : index
    %c0_41 = arith.constant 0 : index
    %47 = vector.load %arg2[%c0_40, %c0_41] : memref<7x64xbf16, #tpu.memory_space<vmem>>, vector<7x64xbf16>
    %cst_42 = arith.constant dense<0.000000e+00> : vector<16x64xf32>
    %48 = tpu.matmul %46, %47, %cst_42 {dimension_numbers = #tpu.dot_dimension_numbers<[1], [0], [0], [1], [0, 0, 1, 1], [], []>} : vector<16x7xbf16>, vector<7x64xbf16>, vector<16x64xf32> -> vector<16x64xf32>
    %c0_43 = arith.constant 0 : index
    %c0_44 = arith.constant 0 : index
    %49 = vector.load %arg3[%c0_43, %c0_44] : memref<1x64xf32, #tpu.memory_space<vmem>>, vector<1x64xf32>
    %50 = vector.broadcast %49 : vector<1x64xf32> to vector<16x64xf32>
    %51 = arith.addf %48, %50 : vector<16x64xf32>
    %cst_45 = arith.constant 0.000000e+00 : f32
    %52 = vector.broadcast %cst_45 : f32 to vector<16x64xf32>
    %53 = arith.maximumf %51, %52 : vector<16x64xf32>
    %cst_46 = arith.constant 0.000000e+00 : f32
    %54 = vector.broadcast %cst_46 : f32 to vector<1x64xf32>
    %c1_47 = arith.constant 1 : index
    %c0_48 = arith.constant 0 : index
    %c0_49 = arith.constant 0 : index
    %55 = vector.load %arg5[%c1_47, %c0_48, %c0_49] : memref<2x17x64xf32, #tpu.memory_space<vmem>>, vector<1x1x64xf32>
    %56 = vector.shape_cast %55 : vector<1x1x64xf32> to vector<1x64xf32>
    %57 = vector.shape_cast %54 : vector<1x64xf32> to vector<1x1x64xf32>
    tpu.vector_store %arg5[%c1_47, %c0_48, %c0_49], %57 {strides = array<i32>} : memref<2x17x64xf32, #tpu.memory_space<vmem>>, vector<1x1x64xf32>,
    %c1_50 = arith.constant 1 : index
    %c1_51 = arith.constant 1 : index
    %c0_52 = arith.constant 0 : index
    %58 = vector.load %arg5[%c1_50, %c1_51, %c0_52] : memref<2x17x64xf32, #tpu.memory_space<vmem>>, vector<1x16x64xf32>
    %59 = vector.shape_cast %58 : vector<1x16x64xf32> to vector<16x64xf32>
    %60 = vector.shape_cast %53 : vector<16x64xf32> to vector<1x16x64xf32>
    tpu.vector_store %arg5[%c1_50, %c1_51, %c0_52], %60 {strides = array<i32>} : memref<2x17x64xf32, #tpu.memory_space<vmem>>, vector<1x16x64xf32>,
    %61 = arith.maximumf %43, %53 : vector<16x64xf32>
    %c1_53 = arith.constant 1 : index
    %c0_54 = arith.constant 0 : index
    %c0_55 = arith.constant 0 : index
    %62 = vector.load %arg5[%c1_53, %c0_54, %c0_55] : memref<2x17x64xf32, #tpu.memory_space<vmem>>, vector<1x16x64xf32>
    %63 = vector.shape_cast %62 : vector<1x16x64xf32> to vector<16x64xf32>
    %64 = arith.maximumf %61, %63 : vector<16x64xf32>
    %c1_56 = arith.constant 1 : index
    %c0_57 = arith.constant 0 : index
    %c0_58 = arith.constant 0 : index
    %65 = vector.load %arg4[%c1_56, %c0_57, %c0_58] : memref<2x16x64xf32, #tpu.memory_space<vmem>>, vector<1x16x64xf32>
    %66 = vector.shape_cast %65 : vector<1x16x64xf32> to vector<16x64xf32>
    %67 = vector.shape_cast %64 : vector<16x64xf32> to vector<1x16x64xf32>
    tpu.vector_store %arg4[%c1_56, %c0_57, %c0_58], %67 {strides = array<i32>} : memref<2x16x64xf32, #tpu.memory_space<vmem>>, vector<1x16x64xf32>,
    return
  }
}

module attributes {stable_mosaic.version = 11 : i64} {
  func.func @_block_kernel(%arg0: memref<2x18x64xf32, #tpu.memory_space<vmem>>, %arg1: memref<192x64xbf16, #tpu.memory_space<vmem>>, %arg2: memref<1x64xf32, #tpu.memory_space<vmem>>, %arg3: memref<192x64xbf16, #tpu.memory_space<vmem>>, %arg4: memref<1x64xf32, #tpu.memory_space<vmem>>, %arg5: memref<2x16x64xf32, #tpu.memory_space<vmem>>, %arg6: memref<2x18x64xf32, #tpu.memory_space<vmem>>) attributes {dimension_semantics = [], scalar_prefetch = 0 : i64, scratch_operands = 1 : i64, tpu.core_type = #tpu.core_type<tc>} {
    %c0 = arith.constant 0 : index
    %c0_0 = arith.constant 0 : index
    %c0_1 = arith.constant 0 : index
    %0 = vector.load %arg0[%c0, %c0_0, %c0_1] : memref<2x18x64xf32, #tpu.memory_space<vmem>>, vector<1x16x64xf32>
    %1 = vector.shape_cast %0 : vector<1x16x64xf32> to vector<16x64xf32>
    %c0_2 = arith.constant 0 : index
    %c1 = arith.constant 1 : index
    %c0_3 = arith.constant 0 : index
    %2 = vector.load %arg0[%c0_2, %c1, %c0_3] : memref<2x18x64xf32, #tpu.memory_space<vmem>>, vector<1x16x64xf32>
    %3 = vector.shape_cast %2 : vector<1x16x64xf32> to vector<16x64xf32>
    %c0_4 = arith.constant 0 : index
    %c2 = arith.constant 2 : index
    %c0_5 = arith.constant 0 : index
    %4 = vector.load %arg0[%c0_4, %c2, %c0_5] : memref<2x18x64xf32, #tpu.memory_space<vmem>>, vector<1x16x64xf32>
    %5 = vector.shape_cast %4 : vector<1x16x64xf32> to vector<16x64xf32>
    %6 = arith.truncf %1 : vector<16x64xf32> to vector<16x64xbf16>
    %c0_6 = arith.constant 0 : index
    %c0_7 = arith.constant 0 : index
    %7 = vector.load %arg1[%c0_6, %c0_7] : memref<192x64xbf16, #tpu.memory_space<vmem>>, vector<64x64xbf16>
    %cst = arith.constant dense<0.000000e+00> : vector<16x64xf32>
    %8 = tpu.matmul %6, %7, %cst {dimension_numbers = #tpu.dot_dimension_numbers<[1], [0], [0], [1], [0, 0, 1, 1], [], []>} : vector<16x64xbf16>, vector<64x64xbf16>, vector<16x64xf32> -> vector<16x64xf32>
    %9 = arith.truncf %3 : vector<16x64xf32> to vector<16x64xbf16>
    %c64 = arith.constant 64 : index
    %c0_8 = arith.constant 0 : index
    %10 = vector.load %arg1[%c64, %c0_8] : memref<192x64xbf16, #tpu.memory_space<vmem>>, vector<64x64xbf16>
    %cst_9 = arith.constant dense<0.000000e+00> : vector<16x64xf32>
    %11 = tpu.matmul %9, %10, %cst_9 {dimension_numbers = #tpu.dot_dimension_numbers<[1], [0], [0], [1], [0, 0, 1, 1], [], []>} : vector<16x64xbf16>, vector<64x64xbf16>, vector<16x64xf32> -> vector<16x64xf32>
    %12 = arith.addf %8, %11 : vector<16x64xf32>
    %13 = arith.truncf %5 : vector<16x64xf32> to vector<16x64xbf16>
    %c128 = arith.constant 128 : index
    %c0_10 = arith.constant 0 : index
    %14 = vector.load %arg1[%c128, %c0_10] : memref<192x64xbf16, #tpu.memory_space<vmem>>, vector<64x64xbf16>
    %cst_11 = arith.constant dense<0.000000e+00> : vector<16x64xf32>
    %15 = tpu.matmul %13, %14, %cst_11 {dimension_numbers = #tpu.dot_dimension_numbers<[1], [0], [0], [1], [0, 0, 1, 1], [], []>} : vector<16x64xbf16>, vector<64x64xbf16>, vector<16x64xf32> -> vector<16x64xf32>
    %16 = arith.addf %12, %15 : vector<16x64xf32>
    %c0_12 = arith.constant 0 : index
    %c0_13 = arith.constant 0 : index
    %17 = vector.load %arg2[%c0_12, %c0_13] : memref<1x64xf32, #tpu.memory_space<vmem>>, vector<1x64xf32>
    %18 = vector.broadcast %17 : vector<1x64xf32> to vector<16x64xf32>
    %19 = arith.addf %16, %18 : vector<16x64xf32>
    %cst_14 = arith.constant 0.000000e+00 : f32
    %20 = vector.broadcast %cst_14 : f32 to vector<16x64xf32>
    %21 = arith.maximumf %19, %20 : vector<16x64xf32>
    %cst_15 = arith.constant 0.000000e+00 : f32
    %22 = vector.broadcast %cst_15 : f32 to vector<1x64xf32>
    %c0_16 = arith.constant 0 : index
    %c0_17 = arith.constant 0 : index
    %c0_18 = arith.constant 0 : index
    %23 = vector.load %arg6[%c0_16, %c0_17, %c0_18] : memref<2x18x64xf32, #tpu.memory_space<vmem>>, vector<1x1x64xf32>
    %24 = vector.shape_cast %23 : vector<1x1x64xf32> to vector<1x64xf32>
    %25 = vector.shape_cast %22 : vector<1x64xf32> to vector<1x1x64xf32>
    tpu.vector_store %arg6[%c0_16, %c0_17, %c0_18], %25 {strides = array<i32>} : memref<2x18x64xf32, #tpu.memory_space<vmem>>, vector<1x1x64xf32>,
    %cst_19 = arith.constant 0.000000e+00 : f32
    %26 = vector.broadcast %cst_19 : f32 to vector<1x64xf32>
    %c0_20 = arith.constant 0 : index
    %c17 = arith.constant 17 : index
    %c0_21 = arith.constant 0 : index
    %27 = vector.load %arg6[%c0_20, %c17, %c0_21] : memref<2x18x64xf32, #tpu.memory_space<vmem>>, vector<1x1x64xf32>
    %28 = vector.shape_cast %27 : vector<1x1x64xf32> to vector<1x64xf32>
    %29 = vector.shape_cast %26 : vector<1x64xf32> to vector<1x1x64xf32>
    tpu.vector_store %arg6[%c0_20, %c17, %c0_21], %29 {strides = array<i32>} : memref<2x18x64xf32, #tpu.memory_space<vmem>>, vector<1x1x64xf32>,
    %c0_22 = arith.constant 0 : index
    %c1_23 = arith.constant 1 : index
    %c0_24 = arith.constant 0 : index
    %30 = vector.load %arg6[%c0_22, %c1_23, %c0_24] : memref<2x18x64xf32, #tpu.memory_space<vmem>>, vector<1x16x64xf32>
    %31 = vector.shape_cast %30 : vector<1x16x64xf32> to vector<16x64xf32>
    %32 = vector.shape_cast %21 : vector<16x64xf32> to vector<1x16x64xf32>
    tpu.vector_store %arg6[%c0_22, %c1_23, %c0_24], %32 {strides = array<i32>} : memref<2x18x64xf32, #tpu.memory_space<vmem>>, vector<1x16x64xf32>,
    %c0_25 = arith.constant 0 : index
    %c1_26 = arith.constant 1 : index
    %c0_27 = arith.constant 0 : index
    %33 = vector.load %arg0[%c0_25, %c1_26, %c0_27] : memref<2x18x64xf32, #tpu.memory_space<vmem>>, vector<1x16x64xf32>
    %34 = vector.shape_cast %33 : vector<1x16x64xf32> to vector<16x64xf32>
    %c0_28 = arith.constant 0 : index
    %c0_29 = arith.constant 0 : index
    %35 = vector.load %arg4[%c0_28, %c0_29] : memref<1x64xf32, #tpu.memory_space<vmem>>, vector<1x64xf32>
    %36 = vector.broadcast %35 : vector<1x64xf32> to vector<16x64xf32>
    %37 = arith.addf %34, %36 : vector<16x64xf32>
    %c0_30 = arith.constant 0 : index
    %c0_31 = arith.constant 0 : index
    %c0_32 = arith.constant 0 : index
    %38 = vector.load %arg6[%c0_30, %c0_31, %c0_32] : memref<2x18x64xf32, #tpu.memory_space<vmem>>, vector<1x16x64xf32>
    %39 = vector.shape_cast %38 : vector<1x16x64xf32> to vector<16x64xf32>
    %40 = arith.truncf %39 : vector<16x64xf32> to vector<16x64xbf16>
    %c0_33 = arith.constant 0 : index
    %c0_34 = arith.constant 0 : index
    %41 = vector.load %arg3[%c0_33, %c0_34] : memref<192x64xbf16, #tpu.memory_space<vmem>>, vector<64x64xbf16>
    %cst_35 = arith.constant dense<0.000000e+00> : vector<16x64xf32>
    %42 = tpu.matmul %40, %41, %cst_35 {dimension_numbers = #tpu.dot_dimension_numbers<[1], [0], [0], [1], [0, 0, 1, 1], [], []>} : vector<16x64xbf16>, vector<64x64xbf16>, vector<16x64xf32> -> vector<16x64xf32>
    %43 = arith.addf %37, %42 : vector<16x64xf32>
    %c0_36 = arith.constant 0 : index
    %c1_37 = arith.constant 1 : index
    %c0_38 = arith.constant 0 : index
    %44 = vector.load %arg6[%c0_36, %c1_37, %c0_38] : memref<2x18x64xf32, #tpu.memory_space<vmem>>, vector<1x16x64xf32>
    %45 = vector.shape_cast %44 : vector<1x16x64xf32> to vector<16x64xf32>
    %46 = arith.truncf %45 : vector<16x64xf32> to vector<16x64xbf16>
    %c64_39 = arith.constant 64 : index
    %c0_40 = arith.constant 0 : index
    %47 = vector.load %arg3[%c64_39, %c0_40] : memref<192x64xbf16, #tpu.memory_space<vmem>>, vector<64x64xbf16>
    %cst_41 = arith.constant dense<0.000000e+00> : vector<16x64xf32>
    %48 = tpu.matmul %46, %47, %cst_41 {dimension_numbers = #tpu.dot_dimension_numbers<[1], [0], [0], [1], [0, 0, 1, 1], [], []>} : vector<16x64xbf16>, vector<64x64xbf16>, vector<16x64xf32> -> vector<16x64xf32>
    %49 = arith.addf %43, %48 : vector<16x64xf32>
    %c0_42 = arith.constant 0 : index
    %c2_43 = arith.constant 2 : index
    %c0_44 = arith.constant 0 : index
    %50 = vector.load %arg6[%c0_42, %c2_43, %c0_44] : memref<2x18x64xf32, #tpu.memory_space<vmem>>, vector<1x16x64xf32>
    %51 = vector.shape_cast %50 : vector<1x16x64xf32> to vector<16x64xf32>
    %52 = arith.truncf %51 : vector<16x64xf32> to vector<16x64xbf16>
    %c128_45 = arith.constant 128 : index
    %c0_46 = arith.constant 0 : index
    %53 = vector.load %arg3[%c128_45, %c0_46] : memref<192x64xbf16, #tpu.memory_space<vmem>>, vector<64x64xbf16>
    %cst_47 = arith.constant dense<0.000000e+00> : vector<16x64xf32>
    %54 = tpu.matmul %52, %53, %cst_47 {dimension_numbers = #tpu.dot_dimension_numbers<[1], [0], [0], [1], [0, 0, 1, 1], [], []>} : vector<16x64xbf16>, vector<64x64xbf16>, vector<16x64xf32> -> vector<16x64xf32>
    %55 = arith.addf %49, %54 : vector<16x64xf32>
    %cst_48 = arith.constant 0.000000e+00 : f32
    %56 = vector.broadcast %cst_48 : f32 to vector<16x64xf32>
    %57 = arith.maximumf %55, %56 : vector<16x64xf32>
    %c0_49 = arith.constant 0 : index
    %c0_50 = arith.constant 0 : index
    %c0_51 = arith.constant 0 : index
    %58 = vector.load %arg5[%c0_49, %c0_50, %c0_51] : memref<2x16x64xf32, #tpu.memory_space<vmem>>, vector<1x16x64xf32>
    %59 = vector.shape_cast %58 : vector<1x16x64xf32> to vector<16x64xf32>
    %60 = vector.shape_cast %57 : vector<16x64xf32> to vector<1x16x64xf32>
    tpu.vector_store %arg5[%c0_49, %c0_50, %c0_51], %60 {strides = array<i32>} : memref<2x16x64xf32, #tpu.memory_space<vmem>>, vector<1x16x64xf32>,
    %c1_52 = arith.constant 1 : index
    %c0_53 = arith.constant 0 : index
    %c0_54 = arith.constant 0 : index
    %61 = vector.load %arg0[%c1_52, %c0_53, %c0_54] : memref<2x18x64xf32, #tpu.memory_space<vmem>>, vector<1x16x64xf32>
    %62 = vector.shape_cast %61 : vector<1x16x64xf32> to vector<16x64xf32>
    %c1_55 = arith.constant 1 : index
    %c1_56 = arith.constant 1 : index
    %c0_57 = arith.constant 0 : index
    %63 = vector.load %arg0[%c1_55, %c1_56, %c0_57] : memref<2x18x64xf32, #tpu.memory_space<vmem>>, vector<1x16x64xf32>
    %64 = vector.shape_cast %63 : vector<1x16x64xf32> to vector<16x64xf32>
    %c1_58 = arith.constant 1 : index
    %c2_59 = arith.constant 2 : index
    %c0_60 = arith.constant 0 : index
    %65 = vector.load %arg0[%c1_58, %c2_59, %c0_60] : memref<2x18x64xf32, #tpu.memory_space<vmem>>, vector<1x16x64xf32>
    %66 = vector.shape_cast %65 : vector<1x16x64xf32> to vector<16x64xf32>
    %67 = arith.truncf %62 : vector<16x64xf32> to vector<16x64xbf16>
    %c0_61 = arith.constant 0 : index
    %c0_62 = arith.constant 0 : index
    %68 = vector.load %arg1[%c0_61, %c0_62] : memref<192x64xbf16, #tpu.memory_space<vmem>>, vector<64x64xbf16>
    %cst_63 = arith.constant dense<0.000000e+00> : vector<16x64xf32>
    %69 = tpu.matmul %67, %68, %cst_63 {dimension_numbers = #tpu.dot_dimension_numbers<[1], [0], [0], [1], [0, 0, 1, 1], [], []>} : vector<16x64xbf16>, vector<64x64xbf16>, vector<16x64xf32> -> vector<16x64xf32>
    %70 = arith.truncf %64 : vector<16x64xf32> to vector<16x64xbf16>
    %c64_64 = arith.constant 64 : index
    %c0_65 = arith.constant 0 : index
    %71 = vector.load %arg1[%c64_64, %c0_65] : memref<192x64xbf16, #tpu.memory_space<vmem>>, vector<64x64xbf16>
    %cst_66 = arith.constant dense<0.000000e+00> : vector<16x64xf32>
    %72 = tpu.matmul %70, %71, %cst_66 {dimension_numbers = #tpu.dot_dimension_numbers<[1], [0], [0], [1], [0, 0, 1, 1], [], []>} : vector<16x64xbf16>, vector<64x64xbf16>, vector<16x64xf32> -> vector<16x64xf32>
    %73 = arith.addf %69, %72 : vector<16x64xf32>
    %74 = arith.truncf %66 : vector<16x64xf32> to vector<16x64xbf16>
    %c128_67 = arith.constant 128 : index
    %c0_68 = arith.constant 0 : index
    %75 = vector.load %arg1[%c128_67, %c0_68] : memref<192x64xbf16, #tpu.memory_space<vmem>>, vector<64x64xbf16>
    %cst_69 = arith.constant dense<0.000000e+00> : vector<16x64xf32>
    %76 = tpu.matmul %74, %75, %cst_69 {dimension_numbers = #tpu.dot_dimension_numbers<[1], [0], [0], [1], [0, 0, 1, 1], [], []>} : vector<16x64xbf16>, vector<64x64xbf16>, vector<16x64xf32> -> vector<16x64xf32>
    %77 = arith.addf %73, %76 : vector<16x64xf32>
    %c0_70 = arith.constant 0 : index
    %c0_71 = arith.constant 0 : index
    %78 = vector.load %arg2[%c0_70, %c0_71] : memref<1x64xf32, #tpu.memory_space<vmem>>, vector<1x64xf32>
    %79 = vector.broadcast %78 : vector<1x64xf32> to vector<16x64xf32>
    %80 = arith.addf %77, %79 : vector<16x64xf32>
    %cst_72 = arith.constant 0.000000e+00 : f32
    %81 = vector.broadcast %cst_72 : f32 to vector<16x64xf32>
    %82 = arith.maximumf %80, %81 : vector<16x64xf32>
    %cst_73 = arith.constant 0.000000e+00 : f32
    %83 = vector.broadcast %cst_73 : f32 to vector<1x64xf32>
    %c1_74 = arith.constant 1 : index
    %c0_75 = arith.constant 0 : index
    %c0_76 = arith.constant 0 : index
    %84 = vector.load %arg6[%c1_74, %c0_75, %c0_76] : memref<2x18x64xf32, #tpu.memory_space<vmem>>, vector<1x1x64xf32>
    %85 = vector.shape_cast %84 : vector<1x1x64xf32> to vector<1x64xf32>
    %86 = vector.shape_cast %83 : vector<1x64xf32> to vector<1x1x64xf32>
    tpu.vector_store %arg6[%c1_74, %c0_75, %c0_76], %86 {strides = array<i32>} : memref<2x18x64xf32, #tpu.memory_space<vmem>>, vector<1x1x64xf32>,
    %cst_77 = arith.constant 0.000000e+00 : f32
    %87 = vector.broadcast %cst_77 : f32 to vector<1x64xf32>
    %c1_78 = arith.constant 1 : index
    %c17_79 = arith.constant 17 : index
    %c0_80 = arith.constant 0 : index
    %88 = vector.load %arg6[%c1_78, %c17_79, %c0_80] : memref<2x18x64xf32, #tpu.memory_space<vmem>>, vector<1x1x64xf32>
    %89 = vector.shape_cast %88 : vector<1x1x64xf32> to vector<1x64xf32>
    %90 = vector.shape_cast %87 : vector<1x64xf32> to vector<1x1x64xf32>
    tpu.vector_store %arg6[%c1_78, %c17_79, %c0_80], %90 {strides = array<i32>} : memref<2x18x64xf32, #tpu.memory_space<vmem>>, vector<1x1x64xf32>,
    %c1_81 = arith.constant 1 : index
    %c1_82 = arith.constant 1 : index
    %c0_83 = arith.constant 0 : index
    %91 = vector.load %arg6[%c1_81, %c1_82, %c0_83] : memref<2x18x64xf32, #tpu.memory_space<vmem>>, vector<1x16x64xf32>
    %92 = vector.shape_cast %91 : vector<1x16x64xf32> to vector<16x64xf32>
    %93 = vector.shape_cast %82 : vector<16x64xf32> to vector<1x16x64xf32>
    tpu.vector_store %arg6[%c1_81, %c1_82, %c0_83], %93 {strides = array<i32>} : memref<2x18x64xf32, #tpu.memory_space<vmem>>, vector<1x16x64xf32>,
    %c1_84 = arith.constant 1 : index
    %c1_85 = arith.constant 1 : index
    %c0_86 = arith.constant 0 : index
    %94 = vector.load %arg0[%c1_84, %c1_85, %c0_86] : memref<2x18x64xf32, #tpu.memory_space<vmem>>, vector<1x16x64xf32>
    %95 = vector.shape_cast %94 : vector<1x16x64xf32> to vector<16x64xf32>
    %c0_87 = arith.constant 0 : index
    %c0_88 = arith.constant 0 : index
    %96 = vector.load %arg4[%c0_87, %c0_88] : memref<1x64xf32, #tpu.memory_space<vmem>>, vector<1x64xf32>
    %97 = vector.broadcast %96 : vector<1x64xf32> to vector<16x64xf32>
    %98 = arith.addf %95, %97 : vector<16x64xf32>
    %c1_89 = arith.constant 1 : index
    %c0_90 = arith.constant 0 : index
    %c0_91 = arith.constant 0 : index
    %99 = vector.load %arg6[%c1_89, %c0_90, %c0_91] : memref<2x18x64xf32, #tpu.memory_space<vmem>>, vector<1x16x64xf32>
    %100 = vector.shape_cast %99 : vector<1x16x64xf32> to vector<16x64xf32>
    %101 = arith.truncf %100 : vector<16x64xf32> to vector<16x64xbf16>
    %c0_92 = arith.constant 0 : index
    %c0_93 = arith.constant 0 : index
    %102 = vector.load %arg3[%c0_92, %c0_93] : memref<192x64xbf16, #tpu.memory_space<vmem>>, vector<64x64xbf16>
    %cst_94 = arith.constant dense<0.000000e+00> : vector<16x64xf32>
    %103 = tpu.matmul %101, %102, %cst_94 {dimension_numbers = #tpu.dot_dimension_numbers<[1], [0], [0], [1], [0, 0, 1, 1], [], []>} : vector<16x64xbf16>, vector<64x64xbf16>, vector<16x64xf32> -> vector<16x64xf32>
    %104 = arith.addf %98, %103 : vector<16x64xf32>
    %c1_95 = arith.constant 1 : index
    %c1_96 = arith.constant 1 : index
    %c0_97 = arith.constant 0 : index
    %105 = vector.load %arg6[%c1_95, %c1_96, %c0_97] : memref<2x18x64xf32, #tpu.memory_space<vmem>>, vector<1x16x64xf32>
    %106 = vector.shape_cast %105 : vector<1x16x64xf32> to vector<16x64xf32>
    %107 = arith.truncf %106 : vector<16x64xf32> to vector<16x64xbf16>
    %c64_98 = arith.constant 64 : index
    %c0_99 = arith.constant 0 : index
    %108 = vector.load %arg3[%c64_98, %c0_99] : memref<192x64xbf16, #tpu.memory_space<vmem>>, vector<64x64xbf16>
    %cst_100 = arith.constant dense<0.000000e+00> : vector<16x64xf32>
    %109 = tpu.matmul %107, %108, %cst_100 {dimension_numbers = #tpu.dot_dimension_numbers<[1], [0], [0], [1], [0, 0, 1, 1], [], []>} : vector<16x64xbf16>, vector<64x64xbf16>, vector<16x64xf32> -> vector<16x64xf32>
    %110 = arith.addf %104, %109 : vector<16x64xf32>
    %c1_101 = arith.constant 1 : index
    %c2_102 = arith.constant 2 : index
    %c0_103 = arith.constant 0 : index
    %111 = vector.load %arg6[%c1_101, %c2_102, %c0_103] : memref<2x18x64xf32, #tpu.memory_space<vmem>>, vector<1x16x64xf32>
    %112 = vector.shape_cast %111 : vector<1x16x64xf32> to vector<16x64xf32>
    %113 = arith.truncf %112 : vector<16x64xf32> to vector<16x64xbf16>
    %c128_104 = arith.constant 128 : index
    %c0_105 = arith.constant 0 : index
    %114 = vector.load %arg3[%c128_104, %c0_105] : memref<192x64xbf16, #tpu.memory_space<vmem>>, vector<64x64xbf16>
    %cst_106 = arith.constant dense<0.000000e+00> : vector<16x64xf32>
    %115 = tpu.matmul %113, %114, %cst_106 {dimension_numbers = #tpu.dot_dimension_numbers<[1], [0], [0], [1], [0, 0, 1, 1], [], []>} : vector<16x64xbf16>, vector<64x64xbf16>, vector<16x64xf32> -> vector<16x64xf32>
    %116 = arith.addf %110, %115 : vector<16x64xf32>
    %cst_107 = arith.constant 0.000000e+00 : f32
    %117 = vector.broadcast %cst_107 : f32 to vector<16x64xf32>
    %118 = arith.maximumf %116, %117 : vector<16x64xf32>
    %c1_108 = arith.constant 1 : index
    %c0_109 = arith.constant 0 : index
    %c0_110 = arith.constant 0 : index
    %119 = vector.load %arg5[%c1_108, %c0_109, %c0_110] : memref<2x16x64xf32, #tpu.memory_space<vmem>>, vector<1x16x64xf32>
    %120 = vector.shape_cast %119 : vector<1x16x64xf32> to vector<16x64xf32>
    %121 = vector.shape_cast %118 : vector<16x64xf32> to vector<1x16x64xf32>
    tpu.vector_store %arg5[%c1_108, %c0_109, %c0_110], %121 {strides = array<i32>} : memref<2x16x64xf32, #tpu.memory_space<vmem>>, vector<1x16x64xf32>,
    return
  }
}

module attributes {stable_mosaic.version = 11 : i64} {
  func.func @_block_kernel(%arg0: memref<2x9x64xf32, #tpu.memory_space<vmem>>, %arg1: memref<2x8x64xf32, #tpu.memory_space<vmem>>, %arg2: memref<192x128xbf16, #tpu.memory_space<vmem>>, %arg3: memref<1x128xf32, #tpu.memory_space<vmem>>, %arg4: memref<384x128xbf16, #tpu.memory_space<vmem>>, %arg5: memref<1x128xf32, #tpu.memory_space<vmem>>, %arg6: memref<64x128xbf16, #tpu.memory_space<vmem>>, %arg7: memref<1x128xf32, #tpu.memory_space<vmem>>, %arg8: memref<2x8x128xf32, #tpu.memory_space<vmem>>, %arg9: memref<2x10x128xf32, #tpu.memory_space<vmem>>) attributes {dimension_semantics = [], scalar_prefetch = 0 : i64, scratch_operands = 1 : i64, tpu.core_type = #tpu.core_type<tc>} {
    %c0 = arith.constant 0 : index
    %c0_0 = arith.constant 0 : index
    %c0_1 = arith.constant 0 : index
    %0 = vector.load %arg0[%c0, %c0_0, %c0_1] : memref<2x9x64xf32, #tpu.memory_space<vmem>>, vector<1x8x64xf32>
    %1 = vector.shape_cast %0 : vector<1x8x64xf32> to vector<8x64xf32>
    %c0_2 = arith.constant 0 : index
    %c0_3 = arith.constant 0 : index
    %c0_4 = arith.constant 0 : index
    %2 = vector.load %arg1[%c0_2, %c0_3, %c0_4] : memref<2x8x64xf32, #tpu.memory_space<vmem>>, vector<1x8x64xf32>
    %3 = vector.shape_cast %2 : vector<1x8x64xf32> to vector<8x64xf32>
    %c0_5 = arith.constant 0 : index
    %c1 = arith.constant 1 : index
    %c0_6 = arith.constant 0 : index
    %4 = vector.load %arg0[%c0_5, %c1, %c0_6] : memref<2x9x64xf32, #tpu.memory_space<vmem>>, vector<1x8x64xf32>
    %5 = vector.shape_cast %4 : vector<1x8x64xf32> to vector<8x64xf32>
    %6 = arith.truncf %1 : vector<8x64xf32> to vector<8x64xbf16>
    %c0_7 = arith.constant 0 : index
    %c0_8 = arith.constant 0 : index
    %7 = vector.load %arg2[%c0_7, %c0_8] : memref<192x128xbf16, #tpu.memory_space<vmem>>, vector<64x128xbf16>
    %cst = arith.constant dense<0.000000e+00> : vector<8x128xf32>
    %8 = tpu.matmul %6, %7, %cst {dimension_numbers = #tpu.dot_dimension_numbers<[1], [0], [0], [1], [0, 0, 1, 1], [], []>} : vector<8x64xbf16>, vector<64x128xbf16>, vector<8x128xf32> -> vector<8x128xf32>
    %9 = arith.truncf %3 : vector<8x64xf32> to vector<8x64xbf16>
    %c64 = arith.constant 64 : index
    %c0_9 = arith.constant 0 : index
    %10 = vector.load %arg2[%c64, %c0_9] : memref<192x128xbf16, #tpu.memory_space<vmem>>, vector<64x128xbf16>
    %cst_10 = arith.constant dense<0.000000e+00> : vector<8x128xf32>
    %11 = tpu.matmul %9, %10, %cst_10 {dimension_numbers = #tpu.dot_dimension_numbers<[1], [0], [0], [1], [0, 0, 1, 1], [], []>} : vector<8x64xbf16>, vector<64x128xbf16>, vector<8x128xf32> -> vector<8x128xf32>
    %12 = arith.addf %8, %11 : vector<8x128xf32>
    %13 = arith.truncf %5 : vector<8x64xf32> to vector<8x64xbf16>
    %c128 = arith.constant 128 : index
    %c0_11 = arith.constant 0 : index
    %14 = vector.load %arg2[%c128, %c0_11] : memref<192x128xbf16, #tpu.memory_space<vmem>>, vector<64x128xbf16>
    %cst_12 = arith.constant dense<0.000000e+00> : vector<8x128xf32>
    %15 = tpu.matmul %13, %14, %cst_12 {dimension_numbers = #tpu.dot_dimension_numbers<[1], [0], [0], [1], [0, 0, 1, 1], [], []>} : vector<8x64xbf16>, vector<64x128xbf16>, vector<8x128xf32> -> vector<8x128xf32>
    %16 = arith.addf %12, %15 : vector<8x128xf32>
    %c0_13 = arith.constant 0 : index
    %c0_14 = arith.constant 0 : index
    %17 = vector.load %arg3[%c0_13, %c0_14] : memref<1x128xf32, #tpu.memory_space<vmem>>, vector<1x128xf32>
    %18 = vector.broadcast %17 : vector<1x128xf32> to vector<8x128xf32>
    %19 = arith.addf %16, %18 : vector<8x128xf32>
    %cst_15 = arith.constant 0.000000e+00 : f32
    %20 = vector.broadcast %cst_15 : f32 to vector<8x128xf32>
    %21 = arith.maximumf %19, %20 : vector<8x128xf32>
    %cst_16 = arith.constant 0.000000e+00 : f32
    %22 = vector.broadcast %cst_16 : f32 to vector<1x128xf32>
    %c0_17 = arith.constant 0 : index
    %c0_18 = arith.constant 0 : index
    %c0_19 = arith.constant 0 : index
    %23 = vector.load %arg9[%c0_17, %c0_18, %c0_19] : memref<2x10x128xf32, #tpu.memory_space<vmem>>, vector<1x1x128xf32>
    %24 = vector.shape_cast %23 : vector<1x1x128xf32> to vector<1x128xf32>
    %25 = vector.shape_cast %22 : vector<1x128xf32> to vector<1x1x128xf32>
    tpu.vector_store %arg9[%c0_17, %c0_18, %c0_19], %25 {strides = array<i32>} : memref<2x10x128xf32, #tpu.memory_space<vmem>>, vector<1x1x128xf32>,
    %cst_20 = arith.constant 0.000000e+00 : f32
    %26 = vector.broadcast %cst_20 : f32 to vector<1x128xf32>
    %c0_21 = arith.constant 0 : index
    %c9 = arith.constant 9 : index
    %c0_22 = arith.constant 0 : index
    %27 = vector.load %arg9[%c0_21, %c9, %c0_22] : memref<2x10x128xf32, #tpu.memory_space<vmem>>, vector<1x1x128xf32>
    %28 = vector.shape_cast %27 : vector<1x1x128xf32> to vector<1x128xf32>
    %29 = vector.shape_cast %26 : vector<1x128xf32> to vector<1x1x128xf32>
    tpu.vector_store %arg9[%c0_21, %c9, %c0_22], %29 {strides = array<i32>} : memref<2x10x128xf32, #tpu.memory_space<vmem>>, vector<1x1x128xf32>,
    %c0_23 = arith.constant 0 : index
    %c1_24 = arith.constant 1 : index
    %c0_25 = arith.constant 0 : index
    %30 = vector.load %arg9[%c0_23, %c1_24, %c0_25] : memref<2x10x128xf32, #tpu.memory_space<vmem>>, vector<1x8x128xf32>
    %31 = vector.shape_cast %30 : vector<1x8x128xf32> to vector<8x128xf32>
    %32 = vector.shape_cast %21 : vector<8x128xf32> to vector<1x8x128xf32>
    tpu.vector_store %arg9[%c0_23, %c1_24, %c0_25], %32 {strides = array<i32>} : memref<2x10x128xf32, #tpu.memory_space<vmem>>, vector<1x8x128xf32>,
    %c0_26 = arith.constant 0 : index
    %c0_27 = arith.constant 0 : index
    %c0_28 = arith.constant 0 : index
    %33 = vector.load %arg1[%c0_26, %c0_27, %c0_28] : memref<2x8x64xf32, #tpu.memory_space<vmem>>, vector<1x8x64xf32>
    %34 = vector.shape_cast %33 : vector<1x8x64xf32> to vector<8x64xf32>
    %35 = arith.truncf %34 : vector<8x64xf32> to vector<8x64xbf16>
    %c0_29 = arith.constant 0 : index
    %c0_30 = arith.constant 0 : index
    %36 = vector.load %arg6[%c0_29, %c0_30] : memref<64x128xbf16, #tpu.memory_space<vmem>>, vector<64x128xbf16>
    %cst_31 = arith.constant dense<0.000000e+00> : vector<8x128xf32>
    %37 = tpu.matmul %35, %36, %cst_31 {dimension_numbers = #tpu.dot_dimension_numbers<[1], [0], [0], [1], [0, 0, 1, 1], [], []>} : vector<8x64xbf16>, vector<64x128xbf16>, vector<8x128xf32> -> vector<8x128xf32>
    %c0_32 = arith.constant 0 : index
    %c0_33 = arith.constant 0 : index
    %38 = vector.load %arg7[%c0_32, %c0_33] : memref<1x128xf32, #tpu.memory_space<vmem>>, vector<1x128xf32>
    %39 = vector.broadcast %38 : vector<1x128xf32> to vector<8x128xf32>
    %40 = arith.addf %37, %39 : vector<8x128xf32>
    %c0_34 = arith.constant 0 : index
    %c0_35 = arith.constant 0 : index
    %41 = vector.load %arg5[%c0_34, %c0_35] : memref<1x128xf32, #tpu.memory_space<vmem>>, vector<1x128xf32>
    %42 = vector.broadcast %41 : vector<1x128xf32> to vector<8x128xf32>
    %43 = arith.addf %40, %42 : vector<8x128xf32>
    %c0_36 = arith.constant 0 : index
    %c0_37 = arith.constant 0 : index
    %c0_38 = arith.constant 0 : index
    %44 = vector.load %arg9[%c0_36, %c0_37, %c0_38] : memref<2x10x128xf32, #tpu.memory_space<vmem>>, vector<1x8x128xf32>
    %45 = vector.shape_cast %44 : vector<1x8x128xf32> to vector<8x128xf32>
    %46 = arith.truncf %45 : vector<8x128xf32> to vector<8x128xbf16>
    %c0_39 = arith.constant 0 : index
    %c0_40 = arith.constant 0 : index
    %47 = vector.load %arg4[%c0_39, %c0_40] : memref<384x128xbf16, #tpu.memory_space<vmem>>, vector<128x128xbf16>
    %cst_41 = arith.constant dense<0.000000e+00> : vector<8x128xf32>
    %48 = tpu.matmul %46, %47, %cst_41 {dimension_numbers = #tpu.dot_dimension_numbers<[1], [0], [0], [1], [0, 0, 1, 1], [], []>} : vector<8x128xbf16>, vector<128x128xbf16>, vector<8x128xf32> -> vector<8x128xf32>
    %49 = arith.addf %43, %48 : vector<8x128xf32>
    %c0_42 = arith.constant 0 : index
    %c1_43 = arith.constant 1 : index
    %c0_44 = arith.constant 0 : index
    %50 = vector.load %arg9[%c0_42, %c1_43, %c0_44] : memref<2x10x128xf32, #tpu.memory_space<vmem>>, vector<1x8x128xf32>
    %51 = vector.shape_cast %50 : vector<1x8x128xf32> to vector<8x128xf32>
    %52 = arith.truncf %51 : vector<8x128xf32> to vector<8x128xbf16>
    %c128_45 = arith.constant 128 : index
    %c0_46 = arith.constant 0 : index
    %53 = vector.load %arg4[%c128_45, %c0_46] : memref<384x128xbf16, #tpu.memory_space<vmem>>, vector<128x128xbf16>
    %cst_47 = arith.constant dense<0.000000e+00> : vector<8x128xf32>
    %54 = tpu.matmul %52, %53, %cst_47 {dimension_numbers = #tpu.dot_dimension_numbers<[1], [0], [0], [1], [0, 0, 1, 1], [], []>} : vector<8x128xbf16>, vector<128x128xbf16>, vector<8x128xf32> -> vector<8x128xf32>
    %55 = arith.addf %49, %54 : vector<8x128xf32>
    %c0_48 = arith.constant 0 : index
    %c2 = arith.constant 2 : index
    %c0_49 = arith.constant 0 : index
    %56 = vector.load %arg9[%c0_48, %c2, %c0_49] : memref<2x10x128xf32, #tpu.memory_space<vmem>>, vector<1x8x128xf32>
    %57 = vector.shape_cast %56 : vector<1x8x128xf32> to vector<8x128xf32>
    %58 = arith.truncf %57 : vector<8x128xf32> to vector<8x128xbf16>
    %c256 = arith.constant 256 : index
    %c0_50 = arith.constant 0 : index
    %59 = vector.load %arg4[%c256, %c0_50] : memref<384x128xbf16, #tpu.memory_space<vmem>>, vector<128x128xbf16>
    %cst_51 = arith.constant dense<0.000000e+00> : vector<8x128xf32>
    %60 = tpu.matmul %58, %59, %cst_51 {dimension_numbers = #tpu.dot_dimension_numbers<[1], [0], [0], [1], [0, 0, 1, 1], [], []>} : vector<8x128xbf16>, vector<128x128xbf16>, vector<8x128xf32> -> vector<8x128xf32>
    %61 = arith.addf %55, %60 : vector<8x128xf32>
    %cst_52 = arith.constant 0.000000e+00 : f32
    %62 = vector.broadcast %cst_52 : f32 to vector<8x128xf32>
    %63 = arith.maximumf %61, %62 : vector<8x128xf32>
    %c0_53 = arith.constant 0 : index
    %c0_54 = arith.constant 0 : index
    %c0_55 = arith.constant 0 : index
    %64 = vector.load %arg8[%c0_53, %c0_54, %c0_55] : memref<2x8x128xf32, #tpu.memory_space<vmem>>, vector<1x8x128xf32>
    %65 = vector.shape_cast %64 : vector<1x8x128xf32> to vector<8x128xf32>
    %66 = vector.shape_cast %63 : vector<8x128xf32> to vector<1x8x128xf32>
    tpu.vector_store %arg8[%c0_53, %c0_54, %c0_55], %66 {strides = array<i32>} : memref<2x8x128xf32, #tpu.memory_space<vmem>>, vector<1x8x128xf32>,
    %c1_56 = arith.constant 1 : index
    %c0_57 = arith.constant 0 : index
    %c0_58 = arith.constant 0 : index
    %67 = vector.load %arg0[%c1_56, %c0_57, %c0_58] : memref<2x9x64xf32, #tpu.memory_space<vmem>>, vector<1x8x64xf32>
    %68 = vector.shape_cast %67 : vector<1x8x64xf32> to vector<8x64xf32>
    %c1_59 = arith.constant 1 : index
    %c0_60 = arith.constant 0 : index
    %c0_61 = arith.constant 0 : index
    %69 = vector.load %arg1[%c1_59, %c0_60, %c0_61] : memref<2x8x64xf32, #tpu.memory_space<vmem>>, vector<1x8x64xf32>
    %70 = vector.shape_cast %69 : vector<1x8x64xf32> to vector<8x64xf32>
    %c1_62 = arith.constant 1 : index
    %c1_63 = arith.constant 1 : index
    %c0_64 = arith.constant 0 : index
    %71 = vector.load %arg0[%c1_62, %c1_63, %c0_64] : memref<2x9x64xf32, #tpu.memory_space<vmem>>, vector<1x8x64xf32>
    %72 = vector.shape_cast %71 : vector<1x8x64xf32> to vector<8x64xf32>
    %73 = arith.truncf %68 : vector<8x64xf32> to vector<8x64xbf16>
    %c0_65 = arith.constant 0 : index
    %c0_66 = arith.constant 0 : index
    %74 = vector.load %arg2[%c0_65, %c0_66] : memref<192x128xbf16, #tpu.memory_space<vmem>>, vector<64x128xbf16>
    %cst_67 = arith.constant dense<0.000000e+00> : vector<8x128xf32>
    %75 = tpu.matmul %73, %74, %cst_67 {dimension_numbers = #tpu.dot_dimension_numbers<[1], [0], [0], [1], [0, 0, 1, 1], [], []>} : vector<8x64xbf16>, vector<64x128xbf16>, vector<8x128xf32> -> vector<8x128xf32>
    %76 = arith.truncf %70 : vector<8x64xf32> to vector<8x64xbf16>
    %c64_68 = arith.constant 64 : index
    %c0_69 = arith.constant 0 : index
    %77 = vector.load %arg2[%c64_68, %c0_69] : memref<192x128xbf16, #tpu.memory_space<vmem>>, vector<64x128xbf16>
    %cst_70 = arith.constant dense<0.000000e+00> : vector<8x128xf32>
    %78 = tpu.matmul %76, %77, %cst_70 {dimension_numbers = #tpu.dot_dimension_numbers<[1], [0], [0], [1], [0, 0, 1, 1], [], []>} : vector<8x64xbf16>, vector<64x128xbf16>, vector<8x128xf32> -> vector<8x128xf32>
    %79 = arith.addf %75, %78 : vector<8x128xf32>
    %80 = arith.truncf %72 : vector<8x64xf32> to vector<8x64xbf16>
    %c128_71 = arith.constant 128 : index
    %c0_72 = arith.constant 0 : index
    %81 = vector.load %arg2[%c128_71, %c0_72] : memref<192x128xbf16, #tpu.memory_space<vmem>>, vector<64x128xbf16>
    %cst_73 = arith.constant dense<0.000000e+00> : vector<8x128xf32>
    %82 = tpu.matmul %80, %81, %cst_73 {dimension_numbers = #tpu.dot_dimension_numbers<[1], [0], [0], [1], [0, 0, 1, 1], [], []>} : vector<8x64xbf16>, vector<64x128xbf16>, vector<8x128xf32> -> vector<8x128xf32>
    %83 = arith.addf %79, %82 : vector<8x128xf32>
    %c0_74 = arith.constant 0 : index
    %c0_75 = arith.constant 0 : index
    %84 = vector.load %arg3[%c0_74, %c0_75] : memref<1x128xf32, #tpu.memory_space<vmem>>, vector<1x128xf32>
    %85 = vector.broadcast %84 : vector<1x128xf32> to vector<8x128xf32>
    %86 = arith.addf %83, %85 : vector<8x128xf32>
    %cst_76 = arith.constant 0.000000e+00 : f32
    %87 = vector.broadcast %cst_76 : f32 to vector<8x128xf32>
    %88 = arith.maximumf %86, %87 : vector<8x128xf32>
    %cst_77 = arith.constant 0.000000e+00 : f32
    %89 = vector.broadcast %cst_77 : f32 to vector<1x128xf32>
    %c1_78 = arith.constant 1 : index
    %c0_79 = arith.constant 0 : index
    %c0_80 = arith.constant 0 : index
    %90 = vector.load %arg9[%c1_78, %c0_79, %c0_80] : memref<2x10x128xf32, #tpu.memory_space<vmem>>, vector<1x1x128xf32>
    %91 = vector.shape_cast %90 : vector<1x1x128xf32> to vector<1x128xf32>
    %92 = vector.shape_cast %89 : vector<1x128xf32> to vector<1x1x128xf32>
    tpu.vector_store %arg9[%c1_78, %c0_79, %c0_80], %92 {strides = array<i32>} : memref<2x10x128xf32, #tpu.memory_space<vmem>>, vector<1x1x128xf32>,
    %cst_81 = arith.constant 0.000000e+00 : f32
    %93 = vector.broadcast %cst_81 : f32 to vector<1x128xf32>
    %c1_82 = arith.constant 1 : index
    %c9_83 = arith.constant 9 : index
    %c0_84 = arith.constant 0 : index
    %94 = vector.load %arg9[%c1_82, %c9_83, %c0_84] : memref<2x10x128xf32, #tpu.memory_space<vmem>>, vector<1x1x128xf32>
    %95 = vector.shape_cast %94 : vector<1x1x128xf32> to vector<1x128xf32>
    %96 = vector.shape_cast %93 : vector<1x128xf32> to vector<1x1x128xf32>
    tpu.vector_store %arg9[%c1_82, %c9_83, %c0_84], %96 {strides = array<i32>} : memref<2x10x128xf32, #tpu.memory_space<vmem>>, vector<1x1x128xf32>,
    %c1_85 = arith.constant 1 : index
    %c1_86 = arith.constant 1 : index
    %c0_87 = arith.constant 0 : index
    %97 = vector.load %arg9[%c1_85, %c1_86, %c0_87] : memref<2x10x128xf32, #tpu.memory_space<vmem>>, vector<1x8x128xf32>
    %98 = vector.shape_cast %97 : vector<1x8x128xf32> to vector<8x128xf32>
    %99 = vector.shape_cast %88 : vector<8x128xf32> to vector<1x8x128xf32>
    tpu.vector_store %arg9[%c1_85, %c1_86, %c0_87], %99 {strides = array<i32>} : memref<2x10x128xf32, #tpu.memory_space<vmem>>, vector<1x8x128xf32>,
    %c1_88 = arith.constant 1 : index
    %c0_89 = arith.constant 0 : index
    %c0_90 = arith.constant 0 : index
    %100 = vector.load %arg1[%c1_88, %c0_89, %c0_90] : memref<2x8x64xf32, #tpu.memory_space<vmem>>, vector<1x8x64xf32>
    %101 = vector.shape_cast %100 : vector<1x8x64xf32> to vector<8x64xf32>
    %102 = arith.truncf %101 : vector<8x64xf32> to vector<8x64xbf16>
    %c0_91 = arith.constant 0 : index
    %c0_92 = arith.constant 0 : index
    %103 = vector.load %arg6[%c0_91, %c0_92] : memref<64x128xbf16, #tpu.memory_space<vmem>>, vector<64x128xbf16>
    %cst_93 = arith.constant dense<0.000000e+00> : vector<8x128xf32>
    %104 = tpu.matmul %102, %103, %cst_93 {dimension_numbers = #tpu.dot_dimension_numbers<[1], [0], [0], [1], [0, 0, 1, 1], [], []>} : vector<8x64xbf16>, vector<64x128xbf16>, vector<8x128xf32> -> vector<8x128xf32>
    %c0_94 = arith.constant 0 : index
    %c0_95 = arith.constant 0 : index
    %105 = vector.load %arg7[%c0_94, %c0_95] : memref<1x128xf32, #tpu.memory_space<vmem>>, vector<1x128xf32>
    %106 = vector.broadcast %105 : vector<1x128xf32> to vector<8x128xf32>
    %107 = arith.addf %104, %106 : vector<8x128xf32>
    %c0_96 = arith.constant 0 : index
    %c0_97 = arith.constant 0 : index
    %108 = vector.load %arg5[%c0_96, %c0_97] : memref<1x128xf32, #tpu.memory_space<vmem>>, vector<1x128xf32>
    %109 = vector.broadcast %108 : vector<1x128xf32> to vector<8x128xf32>
    %110 = arith.addf %107, %109 : vector<8x128xf32>
    %c1_98 = arith.constant 1 : index
    %c0_99 = arith.constant 0 : index
    %c0_100 = arith.constant 0 : index
    %111 = vector.load %arg9[%c1_98, %c0_99, %c0_100] : memref<2x10x128xf32, #tpu.memory_space<vmem>>, vector<1x8x128xf32>
    %112 = vector.shape_cast %111 : vector<1x8x128xf32> to vector<8x128xf32>
    %113 = arith.truncf %112 : vector<8x128xf32> to vector<8x128xbf16>
    %c0_101 = arith.constant 0 : index
    %c0_102 = arith.constant 0 : index
    %114 = vector.load %arg4[%c0_101, %c0_102] : memref<384x128xbf16, #tpu.memory_space<vmem>>, vector<128x128xbf16>
    %cst_103 = arith.constant dense<0.000000e+00> : vector<8x128xf32>
    %115 = tpu.matmul %113, %114, %cst_103 {dimension_numbers = #tpu.dot_dimension_numbers<[1], [0], [0], [1], [0, 0, 1, 1], [], []>} : vector<8x128xbf16>, vector<128x128xbf16>, vector<8x128xf32> -> vector<8x128xf32>
    %116 = arith.addf %110, %115 : vector<8x128xf32>
    %c1_104 = arith.constant 1 : index
    %c1_105 = arith.constant 1 : index
    %c0_106 = arith.constant 0 : index
    %117 = vector.load %arg9[%c1_104, %c1_105, %c0_106] : memref<2x10x128xf32, #tpu.memory_space<vmem>>, vector<1x8x128xf32>
    %118 = vector.shape_cast %117 : vector<1x8x128xf32> to vector<8x128xf32>
    %119 = arith.truncf %118 : vector<8x128xf32> to vector<8x128xbf16>
    %c128_107 = arith.constant 128 : index
    %c0_108 = arith.constant 0 : index
    %120 = vector.load %arg4[%c128_107, %c0_108] : memref<384x128xbf16, #tpu.memory_space<vmem>>, vector<128x128xbf16>
    %cst_109 = arith.constant dense<0.000000e+00> : vector<8x128xf32>
    %121 = tpu.matmul %119, %120, %cst_109 {dimension_numbers = #tpu.dot_dimension_numbers<[1], [0], [0], [1], [0, 0, 1, 1], [], []>} : vector<8x128xbf16>, vector<128x128xbf16>, vector<8x128xf32> -> vector<8x128xf32>
    %122 = arith.addf %116, %121 : vector<8x128xf32>
    %c1_110 = arith.constant 1 : index
    %c2_111 = arith.constant 2 : index
    %c0_112 = arith.constant 0 : index
    %123 = vector.load %arg9[%c1_110, %c2_111, %c0_112] : memref<2x10x128xf32, #tpu.memory_space<vmem>>, vector<1x8x128xf32>
    %124 = vector.shape_cast %123 : vector<1x8x128xf32> to vector<8x128xf32>
    %125 = arith.truncf %124 : vector<8x128xf32> to vector<8x128xbf16>
    %c256_113 = arith.constant 256 : index
    %c0_114 = arith.constant 0 : index
    %126 = vector.load %arg4[%c256_113, %c0_114] : memref<384x128xbf16, #tpu.memory_space<vmem>>, vector<128x128xbf16>
    %cst_115 = arith.constant dense<0.000000e+00> : vector<8x128xf32>
    %127 = tpu.matmul %125, %126, %cst_115 {dimension_numbers = #tpu.dot_dimension_numbers<[1], [0], [0], [1], [0, 0, 1, 1], [], []>} : vector<8x128xbf16>, vector<128x128xbf16>, vector<8x128xf32> -> vector<8x128xf32>
    %128 = arith.addf %122, %127 : vector<8x128xf32>
    %cst_116 = arith.constant 0.000000e+00 : f32
    %129 = vector.broadcast %cst_116 : f32 to vector<8x128xf32>
    %130 = arith.maximumf %128, %129 : vector<8x128xf32>
    %c1_117 = arith.constant 1 : index
    %c0_118 = arith.constant 0 : index
    %c0_119 = arith.constant 0 : index
    %131 = vector.load %arg8[%c1_117, %c0_118, %c0_119] : memref<2x8x128xf32, #tpu.memory_space<vmem>>, vector<1x8x128xf32>
    %132 = vector.shape_cast %131 : vector<1x8x128xf32> to vector<8x128xf32>
    %133 = vector.shape_cast %130 : vector<8x128xf32> to vector<1x8x128xf32>
    tpu.vector_store %arg8[%c1_117, %c0_118, %c0_119], %133 {strides = array<i32>} : memref<2x8x128xf32, #tpu.memory_space<vmem>>, vector<1x8x128xf32>,
    return
  }
}

module attributes {stable_mosaic.version = 11 : i64} {
  func.func @_block_kernel(%arg0: memref<2x5x128xf32, #tpu.memory_space<vmem>>, %arg1: memref<2x4x128xf32, #tpu.memory_space<vmem>>, %arg2: memref<384x256xbf16, #tpu.memory_space<vmem>>, %arg3: memref<1x256xf32, #tpu.memory_space<vmem>>, %arg4: memref<768x256xbf16, #tpu.memory_space<vmem>>, %arg5: memref<1x256xf32, #tpu.memory_space<vmem>>, %arg6: memref<128x256xbf16, #tpu.memory_space<vmem>>, %arg7: memref<1x256xf32, #tpu.memory_space<vmem>>, %arg8: memref<2x4x256xf32, #tpu.memory_space<vmem>>, %arg9: memref<2x6x256xf32, #tpu.memory_space<vmem>>) attributes {dimension_semantics = [], scalar_prefetch = 0 : i64, scratch_operands = 1 : i64, tpu.core_type = #tpu.core_type<tc>} {
    %c0 = arith.constant 0 : index
    %c0_0 = arith.constant 0 : index
    %c0_1 = arith.constant 0 : index
    %0 = vector.load %arg0[%c0, %c0_0, %c0_1] : memref<2x5x128xf32, #tpu.memory_space<vmem>>, vector<1x4x128xf32>
    %1 = vector.shape_cast %0 : vector<1x4x128xf32> to vector<4x128xf32>
    %c0_2 = arith.constant 0 : index
    %c0_3 = arith.constant 0 : index
    %c0_4 = arith.constant 0 : index
    %2 = vector.load %arg1[%c0_2, %c0_3, %c0_4] : memref<2x4x128xf32, #tpu.memory_space<vmem>>, vector<1x4x128xf32>
    %3 = vector.shape_cast %2 : vector<1x4x128xf32> to vector<4x128xf32>
    %c0_5 = arith.constant 0 : index
    %c1 = arith.constant 1 : index
    %c0_6 = arith.constant 0 : index
    %4 = vector.load %arg0[%c0_5, %c1, %c0_6] : memref<2x5x128xf32, #tpu.memory_space<vmem>>, vector<1x4x128xf32>
    %5 = vector.shape_cast %4 : vector<1x4x128xf32> to vector<4x128xf32>
    %6 = arith.truncf %1 : vector<4x128xf32> to vector<4x128xbf16>
    %c0_7 = arith.constant 0 : index
    %c0_8 = arith.constant 0 : index
    %7 = vector.load %arg2[%c0_7, %c0_8] : memref<384x256xbf16, #tpu.memory_space<vmem>>, vector<128x256xbf16>
    %cst = arith.constant dense<0.000000e+00> : vector<4x256xf32>
    %8 = tpu.matmul %6, %7, %cst {dimension_numbers = #tpu.dot_dimension_numbers<[1], [0], [0], [1], [0, 0, 1, 1], [], []>} : vector<4x128xbf16>, vector<128x256xbf16>, vector<4x256xf32> -> vector<4x256xf32>
    %9 = arith.truncf %3 : vector<4x128xf32> to vector<4x128xbf16>
    %c128 = arith.constant 128 : index
    %c0_9 = arith.constant 0 : index
    %10 = vector.load %arg2[%c128, %c0_9] : memref<384x256xbf16, #tpu.memory_space<vmem>>, vector<128x256xbf16>
    %cst_10 = arith.constant dense<0.000000e+00> : vector<4x256xf32>
    %11 = tpu.matmul %9, %10, %cst_10 {dimension_numbers = #tpu.dot_dimension_numbers<[1], [0], [0], [1], [0, 0, 1, 1], [], []>} : vector<4x128xbf16>, vector<128x256xbf16>, vector<4x256xf32> -> vector<4x256xf32>
    %12 = arith.addf %8, %11 : vector<4x256xf32>
    %13 = arith.truncf %5 : vector<4x128xf32> to vector<4x128xbf16>
    %c256 = arith.constant 256 : index
    %c0_11 = arith.constant 0 : index
    %14 = vector.load %arg2[%c256, %c0_11] : memref<384x256xbf16, #tpu.memory_space<vmem>>, vector<128x256xbf16>
    %cst_12 = arith.constant dense<0.000000e+00> : vector<4x256xf32>
    %15 = tpu.matmul %13, %14, %cst_12 {dimension_numbers = #tpu.dot_dimension_numbers<[1], [0], [0], [1], [0, 0, 1, 1], [], []>} : vector<4x128xbf16>, vector<128x256xbf16>, vector<4x256xf32> -> vector<4x256xf32>
    %16 = arith.addf %12, %15 : vector<4x256xf32>
    %c0_13 = arith.constant 0 : index
    %c0_14 = arith.constant 0 : index
    %17 = vector.load %arg3[%c0_13, %c0_14] : memref<1x256xf32, #tpu.memory_space<vmem>>, vector<1x256xf32>
    %18 = vector.broadcast %17 : vector<1x256xf32> to vector<4x256xf32>
    %19 = arith.addf %16, %18 : vector<4x256xf32>
    %cst_15 = arith.constant 0.000000e+00 : f32
    %20 = vector.broadcast %cst_15 : f32 to vector<4x256xf32>
    %21 = arith.maximumf %19, %20 : vector<4x256xf32>
    %cst_16 = arith.constant 0.000000e+00 : f32
    %22 = vector.broadcast %cst_16 : f32 to vector<1x256xf32>
    %c0_17 = arith.constant 0 : index
    %c0_18 = arith.constant 0 : index
    %c0_19 = arith.constant 0 : index
    %23 = vector.load %arg9[%c0_17, %c0_18, %c0_19] : memref<2x6x256xf32, #tpu.memory_space<vmem>>, vector<1x1x256xf32>
    %24 = vector.shape_cast %23 : vector<1x1x256xf32> to vector<1x256xf32>
    %25 = vector.shape_cast %22 : vector<1x256xf32> to vector<1x1x256xf32>
    tpu.vector_store %arg9[%c0_17, %c0_18, %c0_19], %25 {strides = array<i32>} : memref<2x6x256xf32, #tpu.memory_space<vmem>>, vector<1x1x256xf32>,
    %cst_20 = arith.constant 0.000000e+00 : f32
    %26 = vector.broadcast %cst_20 : f32 to vector<1x256xf32>
    %c0_21 = arith.constant 0 : index
    %c5 = arith.constant 5 : index
    %c0_22 = arith.constant 0 : index
    %27 = vector.load %arg9[%c0_21, %c5, %c0_22] : memref<2x6x256xf32, #tpu.memory_space<vmem>>, vector<1x1x256xf32>
    %28 = vector.shape_cast %27 : vector<1x1x256xf32> to vector<1x256xf32>
    %29 = vector.shape_cast %26 : vector<1x256xf32> to vector<1x1x256xf32>
    tpu.vector_store %arg9[%c0_21, %c5, %c0_22], %29 {strides = array<i32>} : memref<2x6x256xf32, #tpu.memory_space<vmem>>, vector<1x1x256xf32>,
    %c0_23 = arith.constant 0 : index
    %c1_24 = arith.constant 1 : index
    %c0_25 = arith.constant 0 : index
    %30 = vector.load %arg9[%c0_23, %c1_24, %c0_25] : memref<2x6x256xf32, #tpu.memory_space<vmem>>, vector<1x4x256xf32>
    %31 = vector.shape_cast %30 : vector<1x4x256xf32> to vector<4x256xf32>
    %32 = vector.shape_cast %21 : vector<4x256xf32> to vector<1x4x256xf32>
    tpu.vector_store %arg9[%c0_23, %c1_24, %c0_25], %32 {strides = array<i32>} : memref<2x6x256xf32, #tpu.memory_space<vmem>>, vector<1x4x256xf32>,
    %c0_26 = arith.constant 0 : index
    %c0_27 = arith.constant 0 : index
    %c0_28 = arith.constant 0 : index
    %33 = vector.load %arg1[%c0_26, %c0_27, %c0_28] : memref<2x4x128xf32, #tpu.memory_space<vmem>>, vector<1x4x128xf32>
    %34 = vector.shape_cast %33 : vector<1x4x128xf32> to vector<4x128xf32>
    %35 = arith.truncf %34 : vector<4x128xf32> to vector<4x128xbf16>
    %c0_29 = arith.constant 0 : index
    %c0_30 = arith.constant 0 : index
    %36 = vector.load %arg6[%c0_29, %c0_30] : memref<128x256xbf16, #tpu.memory_space<vmem>>, vector<128x256xbf16>
    %cst_31 = arith.constant dense<0.000000e+00> : vector<4x256xf32>
    %37 = tpu.matmul %35, %36, %cst_31 {dimension_numbers = #tpu.dot_dimension_numbers<[1], [0], [0], [1], [0, 0, 1, 1], [], []>} : vector<4x128xbf16>, vector<128x256xbf16>, vector<4x256xf32> -> vector<4x256xf32>
    %c0_32 = arith.constant 0 : index
    %c0_33 = arith.constant 0 : index
    %38 = vector.load %arg7[%c0_32, %c0_33] : memref<1x256xf32, #tpu.memory_space<vmem>>, vector<1x256xf32>
    %39 = vector.broadcast %38 : vector<1x256xf32> to vector<4x256xf32>
    %40 = arith.addf %37, %39 : vector<4x256xf32>
    %c0_34 = arith.constant 0 : index
    %c0_35 = arith.constant 0 : index
    %41 = vector.load %arg5[%c0_34, %c0_35] : memref<1x256xf32, #tpu.memory_space<vmem>>, vector<1x256xf32>
    %42 = vector.broadcast %41 : vector<1x256xf32> to vector<4x256xf32>
    %43 = arith.addf %40, %42 : vector<4x256xf32>
    %c0_36 = arith.constant 0 : index
    %c0_37 = arith.constant 0 : index
    %c0_38 = arith.constant 0 : index
    %44 = vector.load %arg9[%c0_36, %c0_37, %c0_38] : memref<2x6x256xf32, #tpu.memory_space<vmem>>, vector<1x4x256xf32>
    %45 = vector.shape_cast %44 : vector<1x4x256xf32> to vector<4x256xf32>
    %46 = arith.truncf %45 : vector<4x256xf32> to vector<4x256xbf16>
    %c0_39 = arith.constant 0 : index
    %c0_40 = arith.constant 0 : index
    %47 = vector.load %arg4[%c0_39, %c0_40] : memref<768x256xbf16, #tpu.memory_space<vmem>>, vector<256x256xbf16>
    %cst_41 = arith.constant dense<0.000000e+00> : vector<4x256xf32>
    %48 = tpu.matmul %46, %47, %cst_41 {dimension_numbers = #tpu.dot_dimension_numbers<[1], [0], [0], [1], [0, 0, 1, 1], [], []>} : vector<4x256xbf16>, vector<256x256xbf16>, vector<4x256xf32> -> vector<4x256xf32>
    %49 = arith.addf %43, %48 : vector<4x256xf32>
    %c0_42 = arith.constant 0 : index
    %c1_43 = arith.constant 1 : index
    %c0_44 = arith.constant 0 : index
    %50 = vector.load %arg9[%c0_42, %c1_43, %c0_44] : memref<2x6x256xf32, #tpu.memory_space<vmem>>, vector<1x4x256xf32>
    %51 = vector.shape_cast %50 : vector<1x4x256xf32> to vector<4x256xf32>
    %52 = arith.truncf %51 : vector<4x256xf32> to vector<4x256xbf16>
    %c256_45 = arith.constant 256 : index
    %c0_46 = arith.constant 0 : index
    %53 = vector.load %arg4[%c256_45, %c0_46] : memref<768x256xbf16, #tpu.memory_space<vmem>>, vector<256x256xbf16>
    %cst_47 = arith.constant dense<0.000000e+00> : vector<4x256xf32>
    %54 = tpu.matmul %52, %53, %cst_47 {dimension_numbers = #tpu.dot_dimension_numbers<[1], [0], [0], [1], [0, 0, 1, 1], [], []>} : vector<4x256xbf16>, vector<256x256xbf16>, vector<4x256xf32> -> vector<4x256xf32>
    %55 = arith.addf %49, %54 : vector<4x256xf32>
    %c0_48 = arith.constant 0 : index
    %c2 = arith.constant 2 : index
    %c0_49 = arith.constant 0 : index
    %56 = vector.load %arg9[%c0_48, %c2, %c0_49] : memref<2x6x256xf32, #tpu.memory_space<vmem>>, vector<1x4x256xf32>
    %57 = vector.shape_cast %56 : vector<1x4x256xf32> to vector<4x256xf32>
    %58 = arith.truncf %57 : vector<4x256xf32> to vector<4x256xbf16>
    %c512 = arith.constant 512 : index
    %c0_50 = arith.constant 0 : index
    %59 = vector.load %arg4[%c512, %c0_50] : memref<768x256xbf16, #tpu.memory_space<vmem>>, vector<256x256xbf16>
    %cst_51 = arith.constant dense<0.000000e+00> : vector<4x256xf32>
    %60 = tpu.matmul %58, %59, %cst_51 {dimension_numbers = #tpu.dot_dimension_numbers<[1], [0], [0], [1], [0, 0, 1, 1], [], []>} : vector<4x256xbf16>, vector<256x256xbf16>, vector<4x256xf32> -> vector<4x256xf32>
    %61 = arith.addf %55, %60 : vector<4x256xf32>
    %cst_52 = arith.constant 0.000000e+00 : f32
    %62 = vector.broadcast %cst_52 : f32 to vector<4x256xf32>
    %63 = arith.maximumf %61, %62 : vector<4x256xf32>
    %c0_53 = arith.constant 0 : index
    %c0_54 = arith.constant 0 : index
    %c0_55 = arith.constant 0 : index
    %64 = vector.load %arg8[%c0_53, %c0_54, %c0_55] : memref<2x4x256xf32, #tpu.memory_space<vmem>>, vector<1x4x256xf32>
    %65 = vector.shape_cast %64 : vector<1x4x256xf32> to vector<4x256xf32>
    %66 = vector.shape_cast %63 : vector<4x256xf32> to vector<1x4x256xf32>
    tpu.vector_store %arg8[%c0_53, %c0_54, %c0_55], %66 {strides = array<i32>} : memref<2x4x256xf32, #tpu.memory_space<vmem>>, vector<1x4x256xf32>,
    %c1_56 = arith.constant 1 : index
    %c0_57 = arith.constant 0 : index
    %c0_58 = arith.constant 0 : index
    %67 = vector.load %arg0[%c1_56, %c0_57, %c0_58] : memref<2x5x128xf32, #tpu.memory_space<vmem>>, vector<1x4x128xf32>
    %68 = vector.shape_cast %67 : vector<1x4x128xf32> to vector<4x128xf32>
    %c1_59 = arith.constant 1 : index
    %c0_60 = arith.constant 0 : index
    %c0_61 = arith.constant 0 : index
    %69 = vector.load %arg1[%c1_59, %c0_60, %c0_61] : memref<2x4x128xf32, #tpu.memory_space<vmem>>, vector<1x4x128xf32>
    %70 = vector.shape_cast %69 : vector<1x4x128xf32> to vector<4x128xf32>
    %c1_62 = arith.constant 1 : index
    %c1_63 = arith.constant 1 : index
    %c0_64 = arith.constant 0 : index
    %71 = vector.load %arg0[%c1_62, %c1_63, %c0_64] : memref<2x5x128xf32, #tpu.memory_space<vmem>>, vector<1x4x128xf32>
    %72 = vector.shape_cast %71 : vector<1x4x128xf32> to vector<4x128xf32>
    %73 = arith.truncf %68 : vector<4x128xf32> to vector<4x128xbf16>
    %c0_65 = arith.constant 0 : index
    %c0_66 = arith.constant 0 : index
    %74 = vector.load %arg2[%c0_65, %c0_66] : memref<384x256xbf16, #tpu.memory_space<vmem>>, vector<128x256xbf16>
    %cst_67 = arith.constant dense<0.000000e+00> : vector<4x256xf32>
    %75 = tpu.matmul %73, %74, %cst_67 {dimension_numbers = #tpu.dot_dimension_numbers<[1], [0], [0], [1], [0, 0, 1, 1], [], []>} : vector<4x128xbf16>, vector<128x256xbf16>, vector<4x256xf32> -> vector<4x256xf32>
    %76 = arith.truncf %70 : vector<4x128xf32> to vector<4x128xbf16>
    %c128_68 = arith.constant 128 : index
    %c0_69 = arith.constant 0 : index
    %77 = vector.load %arg2[%c128_68, %c0_69] : memref<384x256xbf16, #tpu.memory_space<vmem>>, vector<128x256xbf16>
    %cst_70 = arith.constant dense<0.000000e+00> : vector<4x256xf32>
    %78 = tpu.matmul %76, %77, %cst_70 {dimension_numbers = #tpu.dot_dimension_numbers<[1], [0], [0], [1], [0, 0, 1, 1], [], []>} : vector<4x128xbf16>, vector<128x256xbf16>, vector<4x256xf32> -> vector<4x256xf32>
    %79 = arith.addf %75, %78 : vector<4x256xf32>
    %80 = arith.truncf %72 : vector<4x128xf32> to vector<4x128xbf16>
    %c256_71 = arith.constant 256 : index
    %c0_72 = arith.constant 0 : index
    %81 = vector.load %arg2[%c256_71, %c0_72] : memref<384x256xbf16, #tpu.memory_space<vmem>>, vector<128x256xbf16>
    %cst_73 = arith.constant dense<0.000000e+00> : vector<4x256xf32>
    %82 = tpu.matmul %80, %81, %cst_73 {dimension_numbers = #tpu.dot_dimension_numbers<[1], [0], [0], [1], [0, 0, 1, 1], [], []>} : vector<4x128xbf16>, vector<128x256xbf16>, vector<4x256xf32> -> vector<4x256xf32>
    %83 = arith.addf %79, %82 : vector<4x256xf32>
    %c0_74 = arith.constant 0 : index
    %c0_75 = arith.constant 0 : index
    %84 = vector.load %arg3[%c0_74, %c0_75] : memref<1x256xf32, #tpu.memory_space<vmem>>, vector<1x256xf32>
    %85 = vector.broadcast %84 : vector<1x256xf32> to vector<4x256xf32>
    %86 = arith.addf %83, %85 : vector<4x256xf32>
    %cst_76 = arith.constant 0.000000e+00 : f32
    %87 = vector.broadcast %cst_76 : f32 to vector<4x256xf32>
    %88 = arith.maximumf %86, %87 : vector<4x256xf32>
    %cst_77 = arith.constant 0.000000e+00 : f32
    %89 = vector.broadcast %cst_77 : f32 to vector<1x256xf32>
    %c1_78 = arith.constant 1 : index
    %c0_79 = arith.constant 0 : index
    %c0_80 = arith.constant 0 : index
    %90 = vector.load %arg9[%c1_78, %c0_79, %c0_80] : memref<2x6x256xf32, #tpu.memory_space<vmem>>, vector<1x1x256xf32>
    %91 = vector.shape_cast %90 : vector<1x1x256xf32> to vector<1x256xf32>
    %92 = vector.shape_cast %89 : vector<1x256xf32> to vector<1x1x256xf32>
    tpu.vector_store %arg9[%c1_78, %c0_79, %c0_80], %92 {strides = array<i32>} : memref<2x6x256xf32, #tpu.memory_space<vmem>>, vector<1x1x256xf32>,
    %cst_81 = arith.constant 0.000000e+00 : f32
    %93 = vector.broadcast %cst_81 : f32 to vector<1x256xf32>
    %c1_82 = arith.constant 1 : index
    %c5_83 = arith.constant 5 : index
    %c0_84 = arith.constant 0 : index
    %94 = vector.load %arg9[%c1_82, %c5_83, %c0_84] : memref<2x6x256xf32, #tpu.memory_space<vmem>>, vector<1x1x256xf32>
    %95 = vector.shape_cast %94 : vector<1x1x256xf32> to vector<1x256xf32>
    %96 = vector.shape_cast %93 : vector<1x256xf32> to vector<1x1x256xf32>
    tpu.vector_store %arg9[%c1_82, %c5_83, %c0_84], %96 {strides = array<i32>} : memref<2x6x256xf32, #tpu.memory_space<vmem>>, vector<1x1x256xf32>,
    %c1_85 = arith.constant 1 : index
    %c1_86 = arith.constant 1 : index
    %c0_87 = arith.constant 0 : index
    %97 = vector.load %arg9[%c1_85, %c1_86, %c0_87] : memref<2x6x256xf32, #tpu.memory_space<vmem>>, vector<1x4x256xf32>
    %98 = vector.shape_cast %97 : vector<1x4x256xf32> to vector<4x256xf32>
    %99 = vector.shape_cast %88 : vector<4x256xf32> to vector<1x4x256xf32>
    tpu.vector_store %arg9[%c1_85, %c1_86, %c0_87], %99 {strides = array<i32>} : memref<2x6x256xf32, #tpu.memory_space<vmem>>, vector<1x4x256xf32>,
    %c1_88 = arith.constant 1 : index
    %c0_89 = arith.constant 0 : index
    %c0_90 = arith.constant 0 : index
    %100 = vector.load %arg1[%c1_88, %c0_89, %c0_90] : memref<2x4x128xf32, #tpu.memory_space<vmem>>, vector<1x4x128xf32>
    %101 = vector.shape_cast %100 : vector<1x4x128xf32> to vector<4x128xf32>
    %102 = arith.truncf %101 : vector<4x128xf32> to vector<4x128xbf16>
    %c0_91 = arith.constant 0 : index
    %c0_92 = arith.constant 0 : index
    %103 = vector.load %arg6[%c0_91, %c0_92] : memref<128x256xbf16, #tpu.memory_space<vmem>>, vector<128x256xbf16>
    %cst_93 = arith.constant dense<0.000000e+00> : vector<4x256xf32>
    %104 = tpu.matmul %102, %103, %cst_93 {dimension_numbers = #tpu.dot_dimension_numbers<[1], [0], [0], [1], [0, 0, 1, 1], [], []>} : vector<4x128xbf16>, vector<128x256xbf16>, vector<4x256xf32> -> vector<4x256xf32>
    %c0_94 = arith.constant 0 : index
    %c0_95 = arith.constant 0 : index
    %105 = vector.load %arg7[%c0_94, %c0_95] : memref<1x256xf32, #tpu.memory_space<vmem>>, vector<1x256xf32>
    %106 = vector.broadcast %105 : vector<1x256xf32> to vector<4x256xf32>
    %107 = arith.addf %104, %106 : vector<4x256xf32>
    %c0_96 = arith.constant 0 : index
    %c0_97 = arith.constant 0 : index
    %108 = vector.load %arg5[%c0_96, %c0_97] : memref<1x256xf32, #tpu.memory_space<vmem>>, vector<1x256xf32>
    %109 = vector.broadcast %108 : vector<1x256xf32> to vector<4x256xf32>
    %110 = arith.addf %107, %109 : vector<4x256xf32>
    %c1_98 = arith.constant 1 : index
    %c0_99 = arith.constant 0 : index
    %c0_100 = arith.constant 0 : index
    %111 = vector.load %arg9[%c1_98, %c0_99, %c0_100] : memref<2x6x256xf32, #tpu.memory_space<vmem>>, vector<1x4x256xf32>
    %112 = vector.shape_cast %111 : vector<1x4x256xf32> to vector<4x256xf32>
    %113 = arith.truncf %112 : vector<4x256xf32> to vector<4x256xbf16>
    %c0_101 = arith.constant 0 : index
    %c0_102 = arith.constant 0 : index
    %114 = vector.load %arg4[%c0_101, %c0_102] : memref<768x256xbf16, #tpu.memory_space<vmem>>, vector<256x256xbf16>
    %cst_103 = arith.constant dense<0.000000e+00> : vector<4x256xf32>
    %115 = tpu.matmul %113, %114, %cst_103 {dimension_numbers = #tpu.dot_dimension_numbers<[1], [0], [0], [1], [0, 0, 1, 1], [], []>} : vector<4x256xbf16>, vector<256x256xbf16>, vector<4x256xf32> -> vector<4x256xf32>
    %116 = arith.addf %110, %115 : vector<4x256xf32>
    %c1_104 = arith.constant 1 : index
    %c1_105 = arith.constant 1 : index
    %c0_106 = arith.constant 0 : index
    %117 = vector.load %arg9[%c1_104, %c1_105, %c0_106] : memref<2x6x256xf32, #tpu.memory_space<vmem>>, vector<1x4x256xf32>
    %118 = vector.shape_cast %117 : vector<1x4x256xf32> to vector<4x256xf32>
    %119 = arith.truncf %118 : vector<4x256xf32> to vector<4x256xbf16>
    %c256_107 = arith.constant 256 : index
    %c0_108 = arith.constant 0 : index
    %120 = vector.load %arg4[%c256_107, %c0_108] : memref<768x256xbf16, #tpu.memory_space<vmem>>, vector<256x256xbf16>
    %cst_109 = arith.constant dense<0.000000e+00> : vector<4x256xf32>
    %121 = tpu.matmul %119, %120, %cst_109 {dimension_numbers = #tpu.dot_dimension_numbers<[1], [0], [0], [1], [0, 0, 1, 1], [], []>} : vector<4x256xbf16>, vector<256x256xbf16>, vector<4x256xf32> -> vector<4x256xf32>
    %122 = arith.addf %116, %121 : vector<4x256xf32>
    %c1_110 = arith.constant 1 : index
    %c2_111 = arith.constant 2 : index
    %c0_112 = arith.constant 0 : index
    %123 = vector.load %arg9[%c1_110, %c2_111, %c0_112] : memref<2x6x256xf32, #tpu.memory_space<vmem>>, vector<1x4x256xf32>
    %124 = vector.shape_cast %123 : vector<1x4x256xf32> to vector<4x256xf32>
    %125 = arith.truncf %124 : vector<4x256xf32> to vector<4x256xbf16>
    %c512_113 = arith.constant 512 : index
    %c0_114 = arith.constant 0 : index
    %126 = vector.load %arg4[%c512_113, %c0_114] : memref<768x256xbf16, #tpu.memory_space<vmem>>, vector<256x256xbf16>
    %cst_115 = arith.constant dense<0.000000e+00> : vector<4x256xf32>
    %127 = tpu.matmul %125, %126, %cst_115 {dimension_numbers = #tpu.dot_dimension_numbers<[1], [0], [0], [1], [0, 0, 1, 1], [], []>} : vector<4x256xbf16>, vector<256x256xbf16>, vector<4x256xf32> -> vector<4x256xf32>
    %128 = arith.addf %122, %127 : vector<4x256xf32>
    %cst_116 = arith.constant 0.000000e+00 : f32
    %129 = vector.broadcast %cst_116 : f32 to vector<4x256xf32>
    %130 = arith.maximumf %128, %129 : vector<4x256xf32>
    %c1_117 = arith.constant 1 : index
    %c0_118 = arith.constant 0 : index
    %c0_119 = arith.constant 0 : index
    %131 = vector.load %arg8[%c1_117, %c0_118, %c0_119] : memref<2x4x256xf32, #tpu.memory_space<vmem>>, vector<1x4x256xf32>
    %132 = vector.shape_cast %131 : vector<1x4x256xf32> to vector<4x256xf32>
    %133 = vector.shape_cast %130 : vector<4x256xf32> to vector<1x4x256xf32>
    tpu.vector_store %arg8[%c1_117, %c0_118, %c0_119], %133 {strides = array<i32>} : memref<2x4x256xf32, #tpu.memory_space<vmem>>, vector<1x4x256xf32>,
    return
  }
}

module attributes {stable_mosaic.version = 11 : i64} {
  func.func @_block_kernel(%arg0: memref<2x3x256xf32, #tpu.memory_space<vmem>>, %arg1: memref<2x2x256xf32, #tpu.memory_space<vmem>>, %arg2: memref<768x512xbf16, #tpu.memory_space<vmem>>, %arg3: memref<1x512xf32, #tpu.memory_space<vmem>>, %arg4: memref<1536x512xbf16, #tpu.memory_space<vmem>>, %arg5: memref<1x512xf32, #tpu.memory_space<vmem>>, %arg6: memref<256x512xbf16, #tpu.memory_space<vmem>>, %arg7: memref<1x512xf32, #tpu.memory_space<vmem>>, %arg8: memref<2x2x512xf32, #tpu.memory_space<vmem>>, %arg9: memref<2x4x512xf32, #tpu.memory_space<vmem>>) attributes {dimension_semantics = [], scalar_prefetch = 0 : i64, scratch_operands = 1 : i64, tpu.core_type = #tpu.core_type<tc>} {
    %c0 = arith.constant 0 : index
    %c0_0 = arith.constant 0 : index
    %c0_1 = arith.constant 0 : index
    %0 = vector.load %arg0[%c0, %c0_0, %c0_1] : memref<2x3x256xf32, #tpu.memory_space<vmem>>, vector<1x2x256xf32>
    %1 = vector.shape_cast %0 : vector<1x2x256xf32> to vector<2x256xf32>
    %c0_2 = arith.constant 0 : index
    %c0_3 = arith.constant 0 : index
    %c0_4 = arith.constant 0 : index
    %2 = vector.load %arg1[%c0_2, %c0_3, %c0_4] : memref<2x2x256xf32, #tpu.memory_space<vmem>>, vector<1x2x256xf32>
    %3 = vector.shape_cast %2 : vector<1x2x256xf32> to vector<2x256xf32>
    %c0_5 = arith.constant 0 : index
    %c1 = arith.constant 1 : index
    %c0_6 = arith.constant 0 : index
    %4 = vector.load %arg0[%c0_5, %c1, %c0_6] : memref<2x3x256xf32, #tpu.memory_space<vmem>>, vector<1x2x256xf32>
    %5 = vector.shape_cast %4 : vector<1x2x256xf32> to vector<2x256xf32>
    %6 = arith.truncf %1 : vector<2x256xf32> to vector<2x256xbf16>
    %c0_7 = arith.constant 0 : index
    %c0_8 = arith.constant 0 : index
    %7 = vector.load %arg2[%c0_7, %c0_8] : memref<768x512xbf16, #tpu.memory_space<vmem>>, vector<256x512xbf16>
    %cst = arith.constant dense<0.000000e+00> : vector<2x512xf32>
    %8 = tpu.matmul %6, %7, %cst {dimension_numbers = #tpu.dot_dimension_numbers<[1], [0], [0], [1], [0, 0, 1, 1], [], []>} : vector<2x256xbf16>, vector<256x512xbf16>, vector<2x512xf32> -> vector<2x512xf32>
    %9 = arith.truncf %3 : vector<2x256xf32> to vector<2x256xbf16>
    %c256 = arith.constant 256 : index
    %c0_9 = arith.constant 0 : index
    %10 = vector.load %arg2[%c256, %c0_9] : memref<768x512xbf16, #tpu.memory_space<vmem>>, vector<256x512xbf16>
    %cst_10 = arith.constant dense<0.000000e+00> : vector<2x512xf32>
    %11 = tpu.matmul %9, %10, %cst_10 {dimension_numbers = #tpu.dot_dimension_numbers<[1], [0], [0], [1], [0, 0, 1, 1], [], []>} : vector<2x256xbf16>, vector<256x512xbf16>, vector<2x512xf32> -> vector<2x512xf32>
    %12 = arith.addf %8, %11 : vector<2x512xf32>
    %13 = arith.truncf %5 : vector<2x256xf32> to vector<2x256xbf16>
    %c512 = arith.constant 512 : index
    %c0_11 = arith.constant 0 : index
    %14 = vector.load %arg2[%c512, %c0_11] : memref<768x512xbf16, #tpu.memory_space<vmem>>, vector<256x512xbf16>
    %cst_12 = arith.constant dense<0.000000e+00> : vector<2x512xf32>
    %15 = tpu.matmul %13, %14, %cst_12 {dimension_numbers = #tpu.dot_dimension_numbers<[1], [0], [0], [1], [0, 0, 1, 1], [], []>} : vector<2x256xbf16>, vector<256x512xbf16>, vector<2x512xf32> -> vector<2x512xf32>
    %16 = arith.addf %12, %15 : vector<2x512xf32>
    %c0_13 = arith.constant 0 : index
    %c0_14 = arith.constant 0 : index
    %17 = vector.load %arg3[%c0_13, %c0_14] : memref<1x512xf32, #tpu.memory_space<vmem>>, vector<1x512xf32>
    %18 = vector.broadcast %17 : vector<1x512xf32> to vector<2x512xf32>
    %19 = arith.addf %16, %18 : vector<2x512xf32>
    %cst_15 = arith.constant 0.000000e+00 : f32
    %20 = vector.broadcast %cst_15 : f32 to vector<2x512xf32>
    %21 = arith.maximumf %19, %20 : vector<2x512xf32>
    %cst_16 = arith.constant 0.000000e+00 : f32
    %22 = vector.broadcast %cst_16 : f32 to vector<1x512xf32>
    %c0_17 = arith.constant 0 : index
    %c0_18 = arith.constant 0 : index
    %c0_19 = arith.constant 0 : index
    %23 = vector.load %arg9[%c0_17, %c0_18, %c0_19] : memref<2x4x512xf32, #tpu.memory_space<vmem>>, vector<1x1x512xf32>
    %24 = vector.shape_cast %23 : vector<1x1x512xf32> to vector<1x512xf32>
    %25 = vector.shape_cast %22 : vector<1x512xf32> to vector<1x1x512xf32>
    tpu.vector_store %arg9[%c0_17, %c0_18, %c0_19], %25 {strides = array<i32>} : memref<2x4x512xf32, #tpu.memory_space<vmem>>, vector<1x1x512xf32>,
    %cst_20 = arith.constant 0.000000e+00 : f32
    %26 = vector.broadcast %cst_20 : f32 to vector<1x512xf32>
    %c0_21 = arith.constant 0 : index
    %c3 = arith.constant 3 : index
    %c0_22 = arith.constant 0 : index
    %27 = vector.load %arg9[%c0_21, %c3, %c0_22] : memref<2x4x512xf32, #tpu.memory_space<vmem>>, vector<1x1x512xf32>
    %28 = vector.shape_cast %27 : vector<1x1x512xf32> to vector<1x512xf32>
    %29 = vector.shape_cast %26 : vector<1x512xf32> to vector<1x1x512xf32>
    tpu.vector_store %arg9[%c0_21, %c3, %c0_22], %29 {strides = array<i32>} : memref<2x4x512xf32, #tpu.memory_space<vmem>>, vector<1x1x512xf32>,
    %c0_23 = arith.constant 0 : index
    %c1_24 = arith.constant 1 : index
    %c0_25 = arith.constant 0 : index
    %30 = vector.load %arg9[%c0_23, %c1_24, %c0_25] : memref<2x4x512xf32, #tpu.memory_space<vmem>>, vector<1x2x512xf32>
    %31 = vector.shape_cast %30 : vector<1x2x512xf32> to vector<2x512xf32>
    %32 = vector.shape_cast %21 : vector<2x512xf32> to vector<1x2x512xf32>
    tpu.vector_store %arg9[%c0_23, %c1_24, %c0_25], %32 {strides = array<i32>} : memref<2x4x512xf32, #tpu.memory_space<vmem>>, vector<1x2x512xf32>,
    %c0_26 = arith.constant 0 : index
    %c0_27 = arith.constant 0 : index
    %c0_28 = arith.constant 0 : index
    %33 = vector.load %arg1[%c0_26, %c0_27, %c0_28] : memref<2x2x256xf32, #tpu.memory_space<vmem>>, vector<1x2x256xf32>
    %34 = vector.shape_cast %33 : vector<1x2x256xf32> to vector<2x256xf32>
    %35 = arith.truncf %34 : vector<2x256xf32> to vector<2x256xbf16>
    %c0_29 = arith.constant 0 : index
    %c0_30 = arith.constant 0 : index
    %36 = vector.load %arg6[%c0_29, %c0_30] : memref<256x512xbf16, #tpu.memory_space<vmem>>, vector<256x512xbf16>
    %cst_31 = arith.constant dense<0.000000e+00> : vector<2x512xf32>
    %37 = tpu.matmul %35, %36, %cst_31 {dimension_numbers = #tpu.dot_dimension_numbers<[1], [0], [0], [1], [0, 0, 1, 1], [], []>} : vector<2x256xbf16>, vector<256x512xbf16>, vector<2x512xf32> -> vector<2x512xf32>
    %c0_32 = arith.constant 0 : index
    %c0_33 = arith.constant 0 : index
    %38 = vector.load %arg7[%c0_32, %c0_33] : memref<1x512xf32, #tpu.memory_space<vmem>>, vector<1x512xf32>
    %39 = vector.broadcast %38 : vector<1x512xf32> to vector<2x512xf32>
    %40 = arith.addf %37, %39 : vector<2x512xf32>
    %c0_34 = arith.constant 0 : index
    %c0_35 = arith.constant 0 : index
    %41 = vector.load %arg5[%c0_34, %c0_35] : memref<1x512xf32, #tpu.memory_space<vmem>>, vector<1x512xf32>
    %42 = vector.broadcast %41 : vector<1x512xf32> to vector<2x512xf32>
    %43 = arith.addf %40, %42 : vector<2x512xf32>
    %c0_36 = arith.constant 0 : index
    %c0_37 = arith.constant 0 : index
    %c0_38 = arith.constant 0 : index
    %44 = vector.load %arg9[%c0_36, %c0_37, %c0_38] : memref<2x4x512xf32, #tpu.memory_space<vmem>>, vector<1x2x512xf32>
    %45 = vector.shape_cast %44 : vector<1x2x512xf32> to vector<2x512xf32>
    %46 = arith.truncf %45 : vector<2x512xf32> to vector<2x512xbf16>
    %c0_39 = arith.constant 0 : index
    %c0_40 = arith.constant 0 : index
    %47 = vector.load %arg4[%c0_39, %c0_40] : memref<1536x512xbf16, #tpu.memory_space<vmem>>, vector<512x512xbf16>
    %cst_41 = arith.constant dense<0.000000e+00> : vector<2x512xf32>
    %48 = tpu.matmul %46, %47, %cst_41 {dimension_numbers = #tpu.dot_dimension_numbers<[1], [0], [0], [1], [0, 0, 1, 1], [], []>} : vector<2x512xbf16>, vector<512x512xbf16>, vector<2x512xf32> -> vector<2x512xf32>
    %49 = arith.addf %43, %48 : vector<2x512xf32>
    %c0_42 = arith.constant 0 : index
    %c1_43 = arith.constant 1 : index
    %c0_44 = arith.constant 0 : index
    %50 = vector.load %arg9[%c0_42, %c1_43, %c0_44] : memref<2x4x512xf32, #tpu.memory_space<vmem>>, vector<1x2x512xf32>
    %51 = vector.shape_cast %50 : vector<1x2x512xf32> to vector<2x512xf32>
    %52 = arith.truncf %51 : vector<2x512xf32> to vector<2x512xbf16>
    %c512_45 = arith.constant 512 : index
    %c0_46 = arith.constant 0 : index
    %53 = vector.load %arg4[%c512_45, %c0_46] : memref<1536x512xbf16, #tpu.memory_space<vmem>>, vector<512x512xbf16>
    %cst_47 = arith.constant dense<0.000000e+00> : vector<2x512xf32>
    %54 = tpu.matmul %52, %53, %cst_47 {dimension_numbers = #tpu.dot_dimension_numbers<[1], [0], [0], [1], [0, 0, 1, 1], [], []>} : vector<2x512xbf16>, vector<512x512xbf16>, vector<2x512xf32> -> vector<2x512xf32>
    %55 = arith.addf %49, %54 : vector<2x512xf32>
    %c0_48 = arith.constant 0 : index
    %c2 = arith.constant 2 : index
    %c0_49 = arith.constant 0 : index
    %56 = vector.load %arg9[%c0_48, %c2, %c0_49] : memref<2x4x512xf32, #tpu.memory_space<vmem>>, vector<1x2x512xf32>
    %57 = vector.shape_cast %56 : vector<1x2x512xf32> to vector<2x512xf32>
    %58 = arith.truncf %57 : vector<2x512xf32> to vector<2x512xbf16>
    %c1024 = arith.constant 1024 : index
    %c0_50 = arith.constant 0 : index
    %59 = vector.load %arg4[%c1024, %c0_50] : memref<1536x512xbf16, #tpu.memory_space<vmem>>, vector<512x512xbf16>
    %cst_51 = arith.constant dense<0.000000e+00> : vector<2x512xf32>
    %60 = tpu.matmul %58, %59, %cst_51 {dimension_numbers = #tpu.dot_dimension_numbers<[1], [0], [0], [1], [0, 0, 1, 1], [], []>} : vector<2x512xbf16>, vector<512x512xbf16>, vector<2x512xf32> -> vector<2x512xf32>
    %61 = arith.addf %55, %60 : vector<2x512xf32>
    %cst_52 = arith.constant 0.000000e+00 : f32
    %62 = vector.broadcast %cst_52 : f32 to vector<2x512xf32>
    %63 = arith.maximumf %61, %62 : vector<2x512xf32>
    %c0_53 = arith.constant 0 : index
    %c0_54 = arith.constant 0 : index
    %c0_55 = arith.constant 0 : index
    %64 = vector.load %arg8[%c0_53, %c0_54, %c0_55] : memref<2x2x512xf32, #tpu.memory_space<vmem>>, vector<1x2x512xf32>
    %65 = vector.shape_cast %64 : vector<1x2x512xf32> to vector<2x512xf32>
    %66 = vector.shape_cast %63 : vector<2x512xf32> to vector<1x2x512xf32>
    tpu.vector_store %arg8[%c0_53, %c0_54, %c0_55], %66 {strides = array<i32>} : memref<2x2x512xf32, #tpu.memory_space<vmem>>, vector<1x2x512xf32>,
    %c1_56 = arith.constant 1 : index
    %c0_57 = arith.constant 0 : index
    %c0_58 = arith.constant 0 : index
    %67 = vector.load %arg0[%c1_56, %c0_57, %c0_58] : memref<2x3x256xf32, #tpu.memory_space<vmem>>, vector<1x2x256xf32>
    %68 = vector.shape_cast %67 : vector<1x2x256xf32> to vector<2x256xf32>
    %c1_59 = arith.constant 1 : index
    %c0_60 = arith.constant 0 : index
    %c0_61 = arith.constant 0 : index
    %69 = vector.load %arg1[%c1_59, %c0_60, %c0_61] : memref<2x2x256xf32, #tpu.memory_space<vmem>>, vector<1x2x256xf32>
    %70 = vector.shape_cast %69 : vector<1x2x256xf32> to vector<2x256xf32>
    %c1_62 = arith.constant 1 : index
    %c1_63 = arith.constant 1 : index
    %c0_64 = arith.constant 0 : index
    %71 = vector.load %arg0[%c1_62, %c1_63, %c0_64] : memref<2x3x256xf32, #tpu.memory_space<vmem>>, vector<1x2x256xf32>
    %72 = vector.shape_cast %71 : vector<1x2x256xf32> to vector<2x256xf32>
    %73 = arith.truncf %68 : vector<2x256xf32> to vector<2x256xbf16>
    %c0_65 = arith.constant 0 : index
    %c0_66 = arith.constant 0 : index
    %74 = vector.load %arg2[%c0_65, %c0_66] : memref<768x512xbf16, #tpu.memory_space<vmem>>, vector<256x512xbf16>
    %cst_67 = arith.constant dense<0.000000e+00> : vector<2x512xf32>
    %75 = tpu.matmul %73, %74, %cst_67 {dimension_numbers = #tpu.dot_dimension_numbers<[1], [0], [0], [1], [0, 0, 1, 1], [], []>} : vector<2x256xbf16>, vector<256x512xbf16>, vector<2x512xf32> -> vector<2x512xf32>
    %76 = arith.truncf %70 : vector<2x256xf32> to vector<2x256xbf16>
    %c256_68 = arith.constant 256 : index
    %c0_69 = arith.constant 0 : index
    %77 = vector.load %arg2[%c256_68, %c0_69] : memref<768x512xbf16, #tpu.memory_space<vmem>>, vector<256x512xbf16>
    %cst_70 = arith.constant dense<0.000000e+00> : vector<2x512xf32>
    %78 = tpu.matmul %76, %77, %cst_70 {dimension_numbers = #tpu.dot_dimension_numbers<[1], [0], [0], [1], [0, 0, 1, 1], [], []>} : vector<2x256xbf16>, vector<256x512xbf16>, vector<2x512xf32> -> vector<2x512xf32>
    %79 = arith.addf %75, %78 : vector<2x512xf32>
    %80 = arith.truncf %72 : vector<2x256xf32> to vector<2x256xbf16>
    %c512_71 = arith.constant 512 : index
    %c0_72 = arith.constant 0 : index
    %81 = vector.load %arg2[%c512_71, %c0_72] : memref<768x512xbf16, #tpu.memory_space<vmem>>, vector<256x512xbf16>
    %cst_73 = arith.constant dense<0.000000e+00> : vector<2x512xf32>
    %82 = tpu.matmul %80, %81, %cst_73 {dimension_numbers = #tpu.dot_dimension_numbers<[1], [0], [0], [1], [0, 0, 1, 1], [], []>} : vector<2x256xbf16>, vector<256x512xbf16>, vector<2x512xf32> -> vector<2x512xf32>
    %83 = arith.addf %79, %82 : vector<2x512xf32>
    %c0_74 = arith.constant 0 : index
    %c0_75 = arith.constant 0 : index
    %84 = vector.load %arg3[%c0_74, %c0_75] : memref<1x512xf32, #tpu.memory_space<vmem>>, vector<1x512xf32>
    %85 = vector.broadcast %84 : vector<1x512xf32> to vector<2x512xf32>
    %86 = arith.addf %83, %85 : vector<2x512xf32>
    %cst_76 = arith.constant 0.000000e+00 : f32
    %87 = vector.broadcast %cst_76 : f32 to vector<2x512xf32>
    %88 = arith.maximumf %86, %87 : vector<2x512xf32>
    %cst_77 = arith.constant 0.000000e+00 : f32
    %89 = vector.broadcast %cst_77 : f32 to vector<1x512xf32>
    %c1_78 = arith.constant 1 : index
    %c0_79 = arith.constant 0 : index
    %c0_80 = arith.constant 0 : index
    %90 = vector.load %arg9[%c1_78, %c0_79, %c0_80] : memref<2x4x512xf32, #tpu.memory_space<vmem>>, vector<1x1x512xf32>
    %91 = vector.shape_cast %90 : vector<1x1x512xf32> to vector<1x512xf32>
    %92 = vector.shape_cast %89 : vector<1x512xf32> to vector<1x1x512xf32>
    tpu.vector_store %arg9[%c1_78, %c0_79, %c0_80], %92 {strides = array<i32>} : memref<2x4x512xf32, #tpu.memory_space<vmem>>, vector<1x1x512xf32>,
    %cst_81 = arith.constant 0.000000e+00 : f32
    %93 = vector.broadcast %cst_81 : f32 to vector<1x512xf32>
    %c1_82 = arith.constant 1 : index
    %c3_83 = arith.constant 3 : index
    %c0_84 = arith.constant 0 : index
    %94 = vector.load %arg9[%c1_82, %c3_83, %c0_84] : memref<2x4x512xf32, #tpu.memory_space<vmem>>, vector<1x1x512xf32>
    %95 = vector.shape_cast %94 : vector<1x1x512xf32> to vector<1x512xf32>
    %96 = vector.shape_cast %93 : vector<1x512xf32> to vector<1x1x512xf32>
    tpu.vector_store %arg9[%c1_82, %c3_83, %c0_84], %96 {strides = array<i32>} : memref<2x4x512xf32, #tpu.memory_space<vmem>>, vector<1x1x512xf32>,
    %c1_85 = arith.constant 1 : index
    %c1_86 = arith.constant 1 : index
    %c0_87 = arith.constant 0 : index
    %97 = vector.load %arg9[%c1_85, %c1_86, %c0_87] : memref<2x4x512xf32, #tpu.memory_space<vmem>>, vector<1x2x512xf32>
    %98 = vector.shape_cast %97 : vector<1x2x512xf32> to vector<2x512xf32>
    %99 = vector.shape_cast %88 : vector<2x512xf32> to vector<1x2x512xf32>
    tpu.vector_store %arg9[%c1_85, %c1_86, %c0_87], %99 {strides = array<i32>} : memref<2x4x512xf32, #tpu.memory_space<vmem>>, vector<1x2x512xf32>,
    %c1_88 = arith.constant 1 : index
    %c0_89 = arith.constant 0 : index
    %c0_90 = arith.constant 0 : index
    %100 = vector.load %arg1[%c1_88, %c0_89, %c0_90] : memref<2x2x256xf32, #tpu.memory_space<vmem>>, vector<1x2x256xf32>
    %101 = vector.shape_cast %100 : vector<1x2x256xf32> to vector<2x256xf32>
    %102 = arith.truncf %101 : vector<2x256xf32> to vector<2x256xbf16>
    %c0_91 = arith.constant 0 : index
    %c0_92 = arith.constant 0 : index
    %103 = vector.load %arg6[%c0_91, %c0_92] : memref<256x512xbf16, #tpu.memory_space<vmem>>, vector<256x512xbf16>
    %cst_93 = arith.constant dense<0.000000e+00> : vector<2x512xf32>
    %104 = tpu.matmul %102, %103, %cst_93 {dimension_numbers = #tpu.dot_dimension_numbers<[1], [0], [0], [1], [0, 0, 1, 1], [], []>} : vector<2x256xbf16>, vector<256x512xbf16>, vector<2x512xf32> -> vector<2x512xf32>
    %c0_94 = arith.constant 0 : index
    %c0_95 = arith.constant 0 : index
    %105 = vector.load %arg7[%c0_94, %c0_95] : memref<1x512xf32, #tpu.memory_space<vmem>>, vector<1x512xf32>
    %106 = vector.broadcast %105 : vector<1x512xf32> to vector<2x512xf32>
    %107 = arith.addf %104, %106 : vector<2x512xf32>
    %c0_96 = arith.constant 0 : index
    %c0_97 = arith.constant 0 : index
    %108 = vector.load %arg5[%c0_96, %c0_97] : memref<1x512xf32, #tpu.memory_space<vmem>>, vector<1x512xf32>
    %109 = vector.broadcast %108 : vector<1x512xf32> to vector<2x512xf32>
    %110 = arith.addf %107, %109 : vector<2x512xf32>
    %c1_98 = arith.constant 1 : index
    %c0_99 = arith.constant 0 : index
    %c0_100 = arith.constant 0 : index
    %111 = vector.load %arg9[%c1_98, %c0_99, %c0_100] : memref<2x4x512xf32, #tpu.memory_space<vmem>>, vector<1x2x512xf32>
    %112 = vector.shape_cast %111 : vector<1x2x512xf32> to vector<2x512xf32>
    %113 = arith.truncf %112 : vector<2x512xf32> to vector<2x512xbf16>
    %c0_101 = arith.constant 0 : index
    %c0_102 = arith.constant 0 : index
    %114 = vector.load %arg4[%c0_101, %c0_102] : memref<1536x512xbf16, #tpu.memory_space<vmem>>, vector<512x512xbf16>
    %cst_103 = arith.constant dense<0.000000e+00> : vector<2x512xf32>
    %115 = tpu.matmul %113, %114, %cst_103 {dimension_numbers = #tpu.dot_dimension_numbers<[1], [0], [0], [1], [0, 0, 1, 1], [], []>} : vector<2x512xbf16>, vector<512x512xbf16>, vector<2x512xf32> -> vector<2x512xf32>
    %116 = arith.addf %110, %115 : vector<2x512xf32>
    %c1_104 = arith.constant 1 : index
    %c1_105 = arith.constant 1 : index
    %c0_106 = arith.constant 0 : index
    %117 = vector.load %arg9[%c1_104, %c1_105, %c0_106] : memref<2x4x512xf32, #tpu.memory_space<vmem>>, vector<1x2x512xf32>
    %118 = vector.shape_cast %117 : vector<1x2x512xf32> to vector<2x512xf32>
    %119 = arith.truncf %118 : vector<2x512xf32> to vector<2x512xbf16>
    %c512_107 = arith.constant 512 : index
    %c0_108 = arith.constant 0 : index
    %120 = vector.load %arg4[%c512_107, %c0_108] : memref<1536x512xbf16, #tpu.memory_space<vmem>>, vector<512x512xbf16>
    %cst_109 = arith.constant dense<0.000000e+00> : vector<2x512xf32>
    %121 = tpu.matmul %119, %120, %cst_109 {dimension_numbers = #tpu.dot_dimension_numbers<[1], [0], [0], [1], [0, 0, 1, 1], [], []>} : vector<2x512xbf16>, vector<512x512xbf16>, vector<2x512xf32> -> vector<2x512xf32>
    %122 = arith.addf %116, %121 : vector<2x512xf32>
    %c1_110 = arith.constant 1 : index
    %c2_111 = arith.constant 2 : index
    %c0_112 = arith.constant 0 : index
    %123 = vector.load %arg9[%c1_110, %c2_111, %c0_112] : memref<2x4x512xf32, #tpu.memory_space<vmem>>, vector<1x2x512xf32>
    %124 = vector.shape_cast %123 : vector<1x2x512xf32> to vector<2x512xf32>
    %125 = arith.truncf %124 : vector<2x512xf32> to vector<2x512xbf16>
    %c1024_113 = arith.constant 1024 : index
    %c0_114 = arith.constant 0 : index
    %126 = vector.load %arg4[%c1024_113, %c0_114] : memref<1536x512xbf16, #tpu.memory_space<vmem>>, vector<512x512xbf16>
    %cst_115 = arith.constant dense<0.000000e+00> : vector<2x512xf32>
    %127 = tpu.matmul %125, %126, %cst_115 {dimension_numbers = #tpu.dot_dimension_numbers<[1], [0], [0], [1], [0, 0, 1, 1], [], []>} : vector<2x512xbf16>, vector<512x512xbf16>, vector<2x512xf32> -> vector<2x512xf32>
    %128 = arith.addf %122, %127 : vector<2x512xf32>
    %cst_116 = arith.constant 0.000000e+00 : f32
    %129 = vector.broadcast %cst_116 : f32 to vector<2x512xf32>
    %130 = arith.maximumf %128, %129 : vector<2x512xf32>
    %c1_117 = arith.constant 1 : index
    %c0_118 = arith.constant 0 : index
    %c0_119 = arith.constant 0 : index
    %131 = vector.load %arg8[%c1_117, %c0_118, %c0_119] : memref<2x2x512xf32, #tpu.memory_space<vmem>>, vector<1x2x512xf32>
    %132 = vector.shape_cast %131 : vector<1x2x512xf32> to vector<2x512xf32>
    %133 = vector.shape_cast %130 : vector<2x512xf32> to vector<1x2x512xf32>
    tpu.vector_store %arg8[%c1_117, %c0_118, %c0_119], %133 {strides = array<i32>} : memref<2x2x512xf32, #tpu.memory_space<vmem>>, vector<1x2x512xf32>,
    return
  }
}

module attributes {stable_mosaic.version = 11 : i64} {
  func.func @_head_kernel(%arg0: memref<2x2x512xf32, #tpu.memory_space<vmem>>, %arg1: memref<512x10xf32, #tpu.memory_space<vmem>>, %arg2: memref<1x10xf32, #tpu.memory_space<vmem>>, %arg3: memref<2x10xf32, #tpu.memory_space<vmem>>) attributes {dimension_semantics = [], scalar_prefetch = 0 : i64, scratch_operands = 0 : i64, tpu.core_type = #tpu.core_type<tc>} {
    %c0 = arith.constant 0 : index
    %c0_0 = arith.constant 0 : index
    %c0_1 = arith.constant 0 : index
    %0 = vector.load %arg0[%c0, %c0_0, %c0_1] : memref<2x2x512xf32, #tpu.memory_space<vmem>>, vector<2x2x512xf32>
    %cst = arith.constant dense<0.000000e+00> : vector<2x512xf32>
    %1 = vector.multi_reduction <add>, %0, %cst [1] : vector<2x2x512xf32> to vector<2x512xf32>
    %cst_2 = arith.constant 2.000000e+00 : f32
    %2 = vector.broadcast %cst_2 : f32 to vector<2x512xf32>
    %3 = arith.divf %1, %2 : vector<2x512xf32>
    %c0_3 = arith.constant 0 : index
    %c0_4 = arith.constant 0 : index
    %4 = vector.load %arg1[%c0_3, %c0_4] : memref<512x10xf32, #tpu.memory_space<vmem>>, vector<512x10xf32>
    %cst_5 = arith.constant dense<0.000000e+00> : vector<2x10xf32>
    %5 = tpu.matmul %3, %4, %cst_5 {dimension_numbers = #tpu.dot_dimension_numbers<[1], [0], [0], [1], [0, 0, 1, 1], [], []>} : vector<2x512xf32>, vector<512x10xf32>, vector<2x10xf32> -> vector<2x10xf32>
    %c0_6 = arith.constant 0 : index
    %c0_7 = arith.constant 0 : index
    %6 = vector.load %arg2[%c0_6, %c0_7] : memref<1x10xf32, #tpu.memory_space<vmem>>, vector<1x10xf32>
    %7 = vector.broadcast %6 : vector<1x10xf32> to vector<2x10xf32>
    %8 = arith.addf %5, %7 : vector<2x10xf32>
    %c0_8 = arith.constant 0 : index
    %c0_9 = arith.constant 0 : index
    %9 = vector.load %arg3[%c0_8, %c0_9] : memref<2x10xf32, #tpu.memory_space<vmem>>, vector<2x10xf32>
    tpu.vector_store %arg3[%c0_8, %c0_9], %8 {strides = array<i32>} : memref<2x10xf32, #tpu.memory_space<vmem>>, vector<2x10xf32>,
    return
  }
}

</mosaic_0001>

<bundles_post_ra>
// kernel: resnet1d_forward.6
= control target key start
LH: loop header
LB: loop body
LE: loop exit
PB: predicated region body
PF: predicated region fallthrough
CT: control target
= control target key end

     0   :  { %9 = vsyncpa [#allocation4], 0  ;;  %s480_s0 = inlined_call_operand.vmem [shape: f32[2,16,7], index: 0, kind: input, shape index: {}]   ;;  %s481_s1 = inlined_call_operand.vmem [shape: f32[2,16,7], index: 1, kind: input, shape index: {}]   ;;  %s482_s2 = inlined_call_operand.hbm [shape: bf16[7,64], index: 2, kind: input, shape index: {}]   ;;  %s483_s3 = inlined_call_operand.hbm [shape: f32[1,64], index: 3, kind: input, shape index: {}]   ;;  %s484_s4 = inlined_call_operand.vmem [shape: f32[2,16,64], index: 4, kind: output, shape index: {}]  }
   0x1   :  { %10 = vsyncpa [#allocation6], 0  ;;  %s392_s15 = smov [#allocation3]   ;;  %s393_s17 = smov [#allocation5]  }
   0x2   :  { %s21_s16 = sshll.u32 %s392_s15, 4  ;;  %s31_s18 = sshll.u32 %s393_s17, 4  ;;  %s22_s16 = int_to_ptr.vmem [resolvable:$true] %s21_s16  ;;  %s32_s18 = int_to_ptr.vmem [resolvable:$true] %s31_s18 }
   0x3   :  { %s356_s19 = scalar_lea.vmem %s22_s16, 64  ;;  %p361_p1 = scmp.lt.s32.totalorder %s22_s16, %s22_s16 }
   0x4   :  { %p357_p0 = scmp.ne.s32.totalorder %s22_s16, %s356_s19  ;;  %p362_p2 = scmp.lt.s32.totalorder %s356_s19, %s356_s19 }
   0x6   :  { %p363_p3 = por %p362_p2, %p361_p1 }
   0x8   :  { %p364_p4 = pnand %p363_p3, %p357_p0 }
   0xa   :  { %367 = shalt.err (!%p364_p4)
}
   0xb   :  { %24 = dma.hbm_to_vmem [thread:$0]  %s482_s2, 64, %s22_s16, [#allocation4]  }
   0xc   :  { %s376_s22 = scalar_lea.vmem %s32_s18, 16  ;;  %s380_s23 = scalar_lea.vmem %s32_s18, 32 }
   0xd   :  { %p377_p5 = scmp.ne.s32.totalorder %s32_s18, %s376_s22  ;;  %p381_p6 = scmp.lt.s32.totalorder %s32_s18, %s32_s18 }
   0xe   :  { %p382_p7 = scmp.lt.s32.totalorder %s380_s23, %s376_s22 }
  0x10   :  { %p383_p8 = por %p382_p7, %p381_p6 }
  0x12   :  { %p384_p9 = pnand %p383_p8, %p377_p5 }
  0x14   :  { %387 = shalt.err (!%p384_p9)
}
  0x15   :  { %34 = dma.hbm_to_vmem [thread:$0]  %s483_s3, 16, %s32_s18, [#allocation6]  }
  0x16   :  { %388 = dma.done.wait [#allocation4], 64  }
  0x17   :  { %389 = vsyncadd [#allocation4], 4294967232 }
  0x18   :  { %390 = dma.done.wait [#allocation6], 16  }
  0x19   :  { %391 = vsyncadd [#allocation6], 4294967280  ;;  %vm57_vm0 = vcmask 1042432   ;;  %v394_v0 = vmov 0.0   ;;  %vm58_vm1 = vcmask 1043456   ;;  %v395_v1 = vmov 65535  }
  0x1a   :  { %319 = vmatprep.subr.bf16.mxu0 %v394_v0  ;;  %325 = vmatprep.subr.bf16.mxu1 %v394_v0  ;;  %v59_v2 = vsel %vm57_vm0, 4294967295, %v395_v1  ;;  %vm396_vm2 = vmmov 0   ;;  %v45_v4 = vld [vmem:[#allocation3] sm:$0xf]  ;;  %v42_v6 = vld [vmem:[%s480_s0] sm:$0xff]  ;;  %v43_v8 = vld [vmem:[%s480_s0 + $0x8] sm:$0xff] }
  0x1b   :  { %321 = vmatprep.mubr.msk.bf16.mxu0 %vm396_vm2, %v394_v0  ;;  %327 = vmatprep.mubr.msk.bf16.mxu1 %vm396_vm2, %v394_v0  ;;  %v60_v3 = vsel %vm58_vm1, %v59_v2, 0  ;;  %v173_v5 = vld [vmem:[#allocation3] sm:$0xf]  ;;  %v107_v9 = vld [vmem:[%s481_s1] sm:$0xff]  ;;  %v108_v10 = vld [vmem:[%s481_s1 + $0x8] sm:$0xff]  ;;  %v44_v11 = vpack.c.bf16 %v43_v8, %v42_v6  ;;  %vm53_vm3 = vcmask 56320  }
  0x1c   :  { %v62_v7 = vand.u32 %v60_v3, %v45_v4  ;;  %v109_v12 = vpack.c.bf16 %v108_v10, %v107_v9  ;;  %v185_v13 = vand.u32 %v173_v5, %v60_v3  ;;  %v302_v14 = vld [vmem:[%s480_s0 + $0x10] sm:$0xff]  ;;  %v303_v15 = vld [vmem:[%s480_s0 + $0x18] sm:$0xff]  ;;  %vm156_vm4 = vcmask 516096  }
  0x1d   :  { %v306_v16 = vld [vmem:[%s481_s1 + $0x10] sm:$0xff]  ;;  %v307_v17 = vld [vmem:[%s481_s1 + $0x18] sm:$0xff]  ;;  %v172_v18 = vpack.c.bf16 %v303_v15, %v302_v14  ;;  %157 = vst.msk [vmem:[#allocation2] sm:$0x1] %vm156_vm4, %v394_v0  ;;  %281 = vst.msk [vmem:[#allocation2 + $0x18] sm:$0x1] %vm156_vm4, %v394_v0 }
  0x1e   :  { %320 = vmatpush3.bf16.msra.mxu0 %v62_v7  ;;  %326 = vmatpush3.bf16.msra.mxu1 %v62_v7  ;;  %v233_v19 = vpack.c.bf16 %v307_v17, %v306_v16  ;;  %v299_v20 = vld [vmem:[#allocation5] ss:$0 sm:$0xff]  ;;  %vm158_vm5 = vcmask 523264  }
  0x1f   :  { %337 = vmatprep.subr.bf16.mxu1 %v394_v0  ;;  %331 = vmatprep.subr.bf16.mxu0 %v394_v0 }
  0x21   :  { %322 = vmatmul.mubr.msk.bf16.vlgmr.msra.gmra.mxu0 %vm53_vm3, %v44_v11  ;;  %328 = vmatmul.mubr.msk.bf16.vlgmr.msra.gmra.mxu1 %vm53_vm3, %v109_v12 }
  0x22   :  { %338 = vmatpush3.bf16.msra.mxu1 %v185_v13  ;;  %332 = vmatpush3.bf16.msra.mxu0 %v185_v13 }
  0x23   :  { %333 = vmatprep.mubr.msk.bf16.mxu0 %vm396_vm2, %v394_v0  ;;  %339 = vmatprep.mubr.msk.bf16.mxu1 %vm396_vm2, %v394_v0 }
  0x29   :  { %334 = vmatmul.mubr.msk.bf16.vlgmr.msra.gmra.mxu0 %vm53_vm3, %v172_v18  ;;  %340 = vmatmul.mubr.msk.bf16.vlgmr.msra.gmra.mxu1 %vm53_vm3, %v233_v19 }
  0xe1   :  { %v98_v21 = vpop.f32.mrf.mxu0  ;;  %v147_v22 = vpop.f32.mrf.mxu1 }
  0xe2   :  { %v148_v23 = vadd.f32 %v299_v20, %v147_v22  ;;  %v99_v26 = vadd.f32 %v299_v20, %v98_v21 }
  0xe3   :  { %v323_v24 = vpop.f32.mrf.mxu0  ;;  %v329_v25 = vpop.f32.mrf.mxu1 }
  0xe4   :  { %v154_v27 = vmax.f32 %v148_v23, 0.0  ;;  %v105_v33 = vmax.f32 %v99_v26, 0.0 }
  0xe5   :  { %v101_v28 = vpop.f32.mrf.mxu0  ;;  %v150_v29 = vpop.f32.mrf.mxu1 }
  0xe6   :  { %159 = vst.msk [vmem:[#allocation2 + $0x1] sm:$0xff] %vm158_vm5, %v154_v27  ;;  %v151_v30 = vadd.f32 %v299_v20, %v150_v29  ;;  %v102_v34 = vadd.f32 %v299_v20, %v101_v28  ;;  %v161_v41 = vmax.f32 %v105_v33, %v154_v27 }
  0xe7   :  { %v324_v31 = vpop.f32.mrf.mxu0  ;;  %v330_v32 = vpop.f32.mrf.mxu1 }
  0xe8   :  { %v155_v35 = vmax.f32 %v151_v30, 0.0  ;;  %v106_v42 = vmax.f32 %v102_v34, 0.0 }
  0xe9   :  { %v221_v36 = vpop.f32.mrf.mxu0  ;;  %v271_v37 = vpop.f32.mrf.mxu1 }
  0xea   :  { %160 = vst.msk [vmem:[#allocation2 + $0x9] sm:$0xff] %vm158_vm5, %v155_v35  ;;  %v272_v38 = vadd.f32 %v299_v20, %v271_v37  ;;  %v222_v43 = vadd.f32 %v299_v20, %v221_v36  ;;  %v162_v52 = vmax.f32 %v106_v42, %v155_v35 }
  0xeb   :  { %v335_v39 = vpop.f32.mrf.mxu0  ;;  %v341_v40 = vpop.f32.mrf.mxu1 }
  0xec   :  { %v278_v44 = vmax.f32 %v272_v38, 0.0  ;;  %v228_v53 = vmax.f32 %v222_v43, 0.0 }
  0xed   :  { %v163_v45 = vld [vmem:[#allocation2] sm:$0xff]  ;;  %v224_v46 = vpop.f32.mrf.mxu0  ;;  %v274_v47 = vpop.f32.mrf.mxu1 }
  0xee   :  { %v165_v48 = vmax.f32 %v161_v41, %v163_v45  ;;  %282 = vst.msk [vmem:[#allocation2 + $0x19] sm:$0xff] %vm158_vm5, %v278_v44  ;;  %v275_v49 = vadd.f32 %v299_v20, %v274_v47  ;;  %v225_v54 = vadd.f32 %v299_v20, %v224_v46  ;;  %v284_v58 = vmax.f32 %v228_v53, %v278_v44 }
  0xef   :  { %v342_v50 = vpop.f32.mrf.mxu1  ;;  %v336_v51 = vpop.f32.mrf.mxu0 }
  0xf0   :  { %167 = vst.msk [vmem:[%s484_s4] sm:$0xff] %vm158_vm5, %v165_v48  ;;  %v279_v55 = vmax.f32 %v275_v49, 0.0  ;;  %v229_v59 = vmax.f32 %v225_v54, 0.0 }
  0xf1   :  { %v164_v56 = vld [vmem:[#allocation2 + $0x8] sm:$0xff] }
  0xf2   :  { %v166_v57 = vmax.f32 %v162_v52, %v164_v56  ;;  %283 = vst.msk [vmem:[#allocation2 + $0x21] sm:$0xff] %vm158_vm5, %v279_v55  ;;  %v285_v62 = vmax.f32 %v229_v59, %v279_v55 }
  0xf4   :  { %168 = vst.msk [vmem:[%s484_s4 + $0x8] sm:$0xff] %vm158_vm5, %v166_v57 }
  0xf5   :  { %v286_v60 = vld [vmem:[#allocation2 + $0x18] sm:$0xff] }
  0xf6   :  { %v288_v61 = vmax.f32 %v284_v58, %v286_v60 }
  0xf8   :  { %309 = vst.msk [vmem:[%s484_s4 + $0x10] sm:$0xff] %vm158_vm5, %v288_v61 }
  0xf9   :  { %v287_v63 = vld [vmem:[#allocation2 + $0x20] sm:$0xff] }
  0xfa   :  { %v289_v0 = vmax.f32 %v285_v62, %v287_v63 }
  0xfc   :  { %310 = vst.msk [vmem:[%s484_s4 + $0x18] sm:$0xff] %vm158_vm5, %v289_v0 }
  0xfd   :  { %297 = vsyncpa [#allocation4], 1 }
  0xfe   :  { %298 = vsyncpa [#allocation6], 1 }

// kernel: resnet1d_forward.7
= control target key start
LH: loop header
LB: loop body
LE: loop exit
PB: predicated region body
PF: predicated region fallthrough
CT: control target
= control target key end

     0   :  { %10 = vsyncpa [#allocation4], 0  ;;  %s1810_s0 = inlined_call_operand.vmem [shape: f32[2,18,64], index: 0, kind: input, shape index: {}]   ;;  %s1811_s1 = inlined_call_operand.vmem [shape: bf16[192,64], index: 1, kind: input, shape index: {}]   ;;  %s1812_s2 = inlined_call_operand.hbm [shape: f32[1,64], index: 2, kind: input, shape index: {}]   ;;  %s1813_s3 = inlined_call_operand.vmem [shape: bf16[192,64], index: 3, kind: input, shape index: {}]   ;;  %s1814_s4 = inlined_call_operand.hbm [shape: f32[1,64], index: 4, kind: input, shape index: {}]   ;;  %s1815_s5 = inlined_call_operand.vmem [shape: f32[2,16,64], index: 5, kind: output, shape index: {}]  }
   0x1   :  { %11 = vsyncpa [#allocation6], 0  ;;  %s1454_s18 = smov [#allocation3]   ;;  %s1455_s20 = smov [#allocation5]  }
   0x2   :  { %s22_s19 = sshll.u32 %s1454_s18, 4  ;;  %s34_s21 = sshll.u32 %s1455_s20, 4  ;;  %s23_s19 = int_to_ptr.vmem [resolvable:$true] %s22_s19  ;;  %s35_s21 = int_to_ptr.vmem [resolvable:$true] %s34_s21 }
   0x3   :  { %s1418_s22 = scalar_lea.vmem %s23_s19, 16  ;;  %s1422_s23 = scalar_lea.vmem %s23_s19, 32 }
   0x4   :  { %p1419_p0 = scmp.ne.s32.totalorder %s23_s19, %s1418_s22  ;;  %p1423_p1 = scmp.lt.s32.totalorder %s23_s19, %s23_s19 }
   0x5   :  { %p1424_p2 = scmp.lt.s32.totalorder %s1422_s23, %s1418_s22 }
   0x7   :  { %p1425_p3 = por %p1424_p2, %p1423_p1 }
   0x9   :  { %p1426_p4 = pnand %p1425_p3, %p1419_p0 }
   0xb   :  { %1429 = shalt.err (!%p1426_p4)
}
   0xc   :  { %25 = dma.hbm_to_vmem [thread:$0]  %s1812_s2, 16, %s23_s19, [#allocation4]  }
   0xd   :  { %s1438_s26 = scalar_lea.vmem %s35_s21, 16  ;;  %s1442_s27 = scalar_lea.vmem %s35_s21, 32 }
   0xe   :  { %p1439_p5 = scmp.ne.s32.totalorder %s35_s21, %s1438_s26  ;;  %p1443_p6 = scmp.lt.s32.totalorder %s35_s21, %s35_s21 }
   0xf   :  { %p1444_p7 = scmp.lt.s32.totalorder %s1442_s27, %s1438_s26 }
  0x11   :  { %p1445_p8 = por %p1444_p7, %p1443_p6 }
  0x13   :  { %p1446_p9 = pnand %p1445_p8, %p1439_p5 }
  0x15   :  { %1449 = shalt.err (!%p1446_p9)
}
  0x16   :  { %37 = dma.hbm_to_vmem [thread:$0]  %s1814_s4, 16, %s35_s21, [#allocation6]  }
  0x17   :  { %1450 = dma.done.wait [#allocation4], 16  }
  0x18   :  { %1451 = vsyncadd [#allocation4], 4294967280 }
  0x19   :  { %1452 = dma.done.wait [#allocation6], 16  }
  0x1a   :  { %1453 = vsyncadd [#allocation6], 4294967280  ;;  %v1456_v0 = vmov 0.0   ;;  %vm1457_vm0 = vmmov 0   ;;  %v1362_v1 = vld [vmem:[%s1811_s1 + $0x38] sm:$0xff]   ;;  %v1364_v3 = vld [vmem:[%s1811_s1 + $0x30] sm:$0xff]  }
  0x1b   :  { %1214 = vmatprep.subr.bf16.mxu0 %v1456_v0  ;;  %1226 = vmatprep.subr.bf16.mxu1 %v1456_v0  ;;  %v1363_v2 = vld [vmem:[%s1811_s1 + $0x18] sm:$0xff]   ;;  %v1365_v4 = vld [vmem:[%s1811_s1 + $0x10] sm:$0xff]   ;;  %v1366_v5 = vld [vmem:[%s1811_s1 + $0x28] sm:$0xff]   ;;  %vm93_vm1 = vcmask 523264   ;;  %vm296_vm2 = vcmask 516096  }
  0x1c   :  { %1222 = vmatprep.mubr.msk.bf16.mxu0 %vm1457_vm0, %v1456_v0  ;;  %1234 = vmatprep.mubr.msk.bf16.mxu1 %vm1457_vm0, %v1456_v0  ;;  %v1367_v6 = vld [vmem:[%s1811_s1 + $0x8] sm:$0xff]   ;;  %v1368_v7 = vld [vmem:[%s1811_s1 + $0x20] sm:$0xff]   ;;  %v1370_v14 = vld [vmem:[%s1811_s1 + $0x58] sm:$0xff]   ;;  %297 = vst.msk [vmem:[#allocation2] sm:$0x1] %vm296_vm2, %v1456_v0 }
  0x1d   :  { %1215 = vmatpush3.bf16.msra.mxu0 %v1362_v1  ;;  %1227 = vmatpush3.bf16.msra.mxu1 %v1363_v2  ;;  %v1528_v8 = vld [vmem:[%s1810_s0 + $0x1] sm:$0xff]  ;;  %v1536_v10 = vld [vmem:[%s1810_s0 + $0x9] sm:$0xff]  ;;  %v1374_v22 = vld [vmem:[%s1813_s3 + $0x18] sm:$0xff]   ;;  %298 = vst.msk [vmem:[#allocation2 + $0x11] sm:$0x1] %vm296_vm2, %v1456_v0 }
  0x1e   :  { %1216 = vmatprep.subr.bf16.mxu0 %v1456_v0  ;;  %1228 = vmatprep.subr.bf16.mxu1 %v1456_v0  ;;  %v1369_v9 = vld [vmem:[%s1811_s1] sm:$0xff]   ;;  %v46_v12 = vld [vmem:[%s1810_s0 + $0x8] sm:$0xff]  ;;  %v60_v13 = vpack.c.bf16 %v1536_v10, %v1528_v8  ;;  %v1371_v16 = vld [vmem:[%s1811_s1 + $0x50] sm:$0xff]   ;;  %811 = vst.msk [vmem:[#allocation2 + $0x18] sm:$0x1] %vm296_vm2, %v1456_v0 }
  0x1f   :  { %v45_v11 = vld [vmem:[%s1810_s0] sm:$0xff]  ;;  %v1372_v17 = vld [vmem:[%s1811_s1 + $0x48] sm:$0xff]   ;;  %v1375_v23 = vld [vmem:[%s1813_s3 + $0x38] sm:$0xff]   ;;  %812 = vst.msk [vmem:[#allocation2 + $0x29] sm:$0x1] %vm296_vm2, %v1456_v0 }
  0x20   :  { %v51_v15 = vpack.c.bf16 %v46_v12, %v45_v11  ;;  %v1373_v18 = vld [vmem:[%s1811_s1 + $0x40] sm:$0xff]   ;;  %v50_v20 = vld [vmem:[%s1810_s0 + $0xa] sm:$0xff]  ;;  %v1382_v52 = vld [vmem:[%s1813_s3 + $0x58] sm:$0xff]  }
  0x21   :  { %1217 = vmatpush3.bf16.msra.mxu0 %v1364_v3  ;;  %1229 = vmatpush3.bf16.msra.mxu1 %v1365_v4  ;;  %v49_v19 = vld [vmem:[%s1810_s0 + $0x2] sm:$0xff]  ;;  %v1376_v24 = vld [vmem:[%s1813_s3 + $0x10] sm:$0xff]   ;;  %v1383_v53 = vld [vmem:[%s1811_s1 + $0x38] sm:$0xff]  }
  0x22   :  { %1218 = vmatprep.subr.bf16.mxu0 %v1456_v0  ;;  %1230 = vmatprep.subr.bf16.mxu1 %v1456_v0  ;;  %v206_v21 = vpack.c.bf16 %v50_v20, %v49_v19  ;;  %v1377_v25 = vld [vmem:[%s1813_s3 + $0x30] sm:$0xff]   ;;  %v1378_v26 = vld [vmem:[%s1813_s3 + $0x8] sm:$0xff]   ;;  %v1380_v28 = vld [vmem:[%s1813_s3] sm:$0xff]  }
  0x23   :  { %v1379_v27 = vld [vmem:[%s1813_s3 + $0x28] sm:$0xff]   ;;  %v1381_v29 = vld [vmem:[%s1813_s3 + $0x20] sm:$0xff]   ;;  %v1617_v40 = vld [vmem:[#allocation3] ss:$0 sm:$0xff] }
  0x24   :  { %v1384_v59 = vld [vmem:[%s1813_s3 + $0x50] sm:$0xff]   ;;  %v1386_v61 = vld [vmem:[%s1813_s3 + $0x48] sm:$0xff]   ;;  %v1388_v63 = vld [vmem:[%s1813_s3 + $0x40] sm:$0xff]  }
  0x25   :  { %1219 = vmatpush3.bf16.msra.mxu0 %v1366_v5  ;;  %1231 = vmatpush3.bf16.msra.mxu1 %v1367_v6  ;;  %v1385_v60 = vld [vmem:[%s1811_s1 + $0x30] sm:$0xff]   ;;  %v1387_v62 = vld [vmem:[%s1811_s1 + $0x28] sm:$0xff]   ;;  %v1389_v1 = vld [vmem:[%s1811_s1 + $0x20] sm:$0xff]  }
  0x26   :  { %1220 = vmatprep.subr.bf16.mxu0 %v1456_v0  ;;  %1232 = vmatprep.subr.bf16.mxu1 %v1456_v0  ;;  %v1660_v2 = vld [vmem:[%s1810_s0 + $0x19] sm:$0xff]  ;;  %v1665_v3 = vld [vmem:[%s1810_s0 + $0x21] sm:$0xff]  ;;  %v1392_v12 = vld [vmem:[%s1811_s1 + $0x10] sm:$0xff]  }
  0x27   :  { %v575_v6 = vpack.c.bf16 %v1665_v3, %v1660_v2  ;;  %v1113_v19 = vld [vmem:[%s1810_s0 + $0x20] sm:$0xff] }
  0x28   :  { %v1116_v20 = vld [vmem:[%s1810_s0 + $0x1a] sm:$0xff] }
  0x29   :  { %1221 = vmatpush3.bf16.msra.mxu0 %v1368_v7  ;;  %1233 = vmatpush3.bf16.msra.mxu1 %v1369_v9  ;;  %v1390_v7 = vld [vmem:[%s1811_s1 + $0x18] sm:$0xff]  }
  0x2a   :  { %1238 = vmatprep.subr.bf16.mxu0 %v1456_v0  ;;  %1250 = vmatprep.subr.bf16.mxu1 %v1456_v0  ;;  %v1391_v9 = vld [vmem:[%s1811_s1 + $0x58] sm:$0xff]  }
  0x2c   :  { %1223 = vmatmul.mubr.msk.bf16.vlgmr.msra.gmra.mxu0 %vm93_vm1, %v60_v13  ;;  %1235 = vmatmul.mubr.msk.bf16.vlgmr.msra.gmra.mxu1 %vm93_vm1, %v51_v15  ;;  %v1393_v13 = vld [vmem:[%s1811_s1 + $0x50] sm:$0xff]   ;;  %v1395_v15 = vld [vmem:[%s1811_s1 + $0x48] sm:$0xff]  }
  0x2d   :  { %1239 = vmatpush3.bf16.msra.mxu0 %v1370_v14  ;;  %1246 = vmatprep.mubr.msk.bf16.mxu0 %vm1457_vm0, %v1456_v0  ;;  %v1394_v14 = vld [vmem:[%s1811_s1 + $0x8] sm:$0xff]  }
  0x2e   :  { %1240 = vmatprep.subr.bf16.mxu0 %v1456_v0  ;;  %1258 = vmatprep.mubr.msk.bf16.mxu1 %vm1457_vm0, %v1456_v0 }
  0x2f   :  { %1251 = vmatpush3.bf16.msra.mxu1 %v1374_v22 }
  0x30   :  { %1252 = vmatprep.subr.bf16.mxu1 %v1456_v0 }
  0x31   :  { %1241 = vmatpush3.bf16.msra.mxu0 %v1371_v16  ;;  %v1396_v16 = vld [vmem:[%s1811_s1] sm:$0xff]  }
  0x32   :  { %1242 = vmatprep.subr.bf16.mxu0 %v1456_v0 }
  0x33   :  { %1253 = vmatpush3.bf16.msra.mxu1 %v1376_v24  ;;  %v1398_v24 = vld [vmem:[%s1813_s3 + $0x18] sm:$0xff]  }
  0x34   :  { %1254 = vmatprep.subr.bf16.mxu1 %v1456_v0 }
  0x35   :  { %1243 = vmatpush3.bf16.msra.mxu0 %v1372_v17  ;;  %v1397_v17 = vld [vmem:[%s1811_s1 + $0x40] sm:$0xff]  }
  0x36   :  { %1244 = vmatprep.subr.bf16.mxu0 %v1456_v0 }
  0x37   :  { %1255 = vmatpush3.bf16.msra.mxu1 %v1378_v26  ;;  %v1400_v26 = vld [vmem:[%s1813_s3 + $0x10] sm:$0xff]  }
  0x38   :  { %1256 = vmatprep.subr.bf16.mxu1 %v1456_v0 }
  0x39   :  { %1245 = vmatpush3.bf16.msra.mxu0 %v1373_v18  ;;  %v1112_v18 = vld [vmem:[%s1810_s0 + $0x18] sm:$0xff] }
  0x3a   :  { %1262 = vmatprep.subr.bf16.mxu0 %v1456_v0  ;;  %v566_v22 = vpack.c.bf16 %v1113_v19, %v1112_v18 }
  0x3b   :  { %1257 = vmatpush3.bf16.msra.mxu1 %v1380_v28  ;;  %v1402_v28 = vld [vmem:[%s1813_s3 + $0x8] sm:$0xff]  }
  0x3c   :  { %1247 = vmatmul.mubr.msk.bf16.vlgmr.msra.gmra.mxu0 %vm93_vm1, %v206_v21  ;;  %1274 = vmatprep.subr.bf16.mxu1 %v1456_v0  ;;  %v1117_v21 = vld [vmem:[%s1810_s0 + $0x22] sm:$0xff] }
  0x3d   :  { %1270 = vmatprep.mubr.msk.bf16.mxu0 %vm1457_vm0, %v1456_v0  ;;  %1263 = vmatpush3.bf16.msra.mxu0 %v1375_v23  ;;  %v720_v23 = vpack.c.bf16 %v1117_v21, %v1116_v20 }
  0x3e   :  { %1264 = vmatprep.subr.bf16.mxu0 %v1456_v0 }
  0x41   :  { %1265 = vmatpush3.bf16.msra.mxu0 %v1377_v25  ;;  %v1399_v25 = vld [vmem:[%s1813_s3 + $0x38] sm:$0xff]  }
  0x42   :  { %1266 = vmatprep.subr.bf16.mxu0 %v1456_v0 }
  0x45   :  { %1267 = vmatpush3.bf16.msra.mxu0 %v1379_v27  ;;  %v1401_v27 = vld [vmem:[%s1813_s3 + $0x30] sm:$0xff]  }
  0x46   :  { %1268 = vmatprep.subr.bf16.mxu0 %v1456_v0 }
  0x49   :  { %1269 = vmatpush3.bf16.msra.mxu0 %v1381_v29  ;;  %v1403_v29 = vld [vmem:[%s1813_s3 + $0x28] sm:$0xff]  }
  0x4a   :  { %1286 = vmatprep.subr.bf16.mxu0 %v1456_v0 }
  0xec   :  { %v131_v30 = vpop.f32.mrf.mxu0  ;;  %v199_v31 = vpop.f32.mrf.mxu1 }
  0xed   :  { %v200_v38 = vadd.f32 %v199_v31, %v131_v30  ;;  %v1404_v30 = vld [vmem:[%s1813_s3] sm:$0xff]  }
  0xee   :  { %v1224_v32 = vpop.f32.mrf.mxu0  ;;  %v1236_v33 = vpop.f32.mrf.mxu1  ;;  %v1405_v31 = vld [vmem:[%s1813_s3 + $0x20] sm:$0xff]  }
  0xf0   :  { %v134_v34 = vpop.f32.mrf.mxu0  ;;  %v202_v35 = vpop.f32.mrf.mxu1 }
  0xf1   :  { %v203_v43 = vadd.f32 %v202_v35, %v134_v34 }
  0xf2   :  { %v1225_v36 = vpop.f32.mrf.mxu0  ;;  %v1237_v37 = vpop.f32.mrf.mxu1 }
  0xf3   :  { %v1760_v36 = vld [vmem:[#allocation5] ss:$0 sm:$0xff] }
  0xfc   :  { %v276_v39 = vpop.f32.mrf.mxu0 }
  0xfd   :  { %v283_v41 = vadd.f32 %v276_v39, %v200_v38 }
  0xfe   :  { %v1248_v42 = vpop.f32.mrf.mxu0 }
  0xff   :  { %v292_v44 = vadd.f32 %v1617_v40, %v283_v41  ;;  %v310_v42 = vadd.f32 %v1760_v36, %v1528_v8 }
 0x100   :  { %v279_v45 = vpop.f32.mrf.mxu0 }
 0x101   :  { %v294_v46 = vmax.f32 %v292_v44, 0.0  ;;  %v284_v47 = vadd.f32 %v279_v45, %v203_v43  ;;  %v311_v44 = vadd.f32 %v1760_v36, %v1536_v10 }
 0x102   :  { %v1249_v48 = vpop.f32.mrf.mxu0 }
 0x103   :  { %299 = vst.msk [vmem:[#allocation2 + $0x1] sm:$0xff] %vm93_vm1, %v294_v46  ;;  %v293_v49 = vadd.f32 %v1617_v40, %v284_v47 }
 0x105   :  { %v295_v50 = vmax.f32 %v293_v49, 0.0 }
 0x107   :  { %300 = vst.msk [vmem:[#allocation2 + $0x9] sm:$0xff] %vm93_vm1, %v295_v50 }
 0x10a   :  { %v312_v51 = vld [vmem:[#allocation2] sm:$0xff] }
 0x10b   :  { %v393_v55 = vld [vmem:[#allocation2 + $0x1] sm:$0xff] }
 0x10e   :  { %v313_v54 = vld [vmem:[#allocation2 + $0x8] sm:$0xff] }
 0x10f   :  { %v394_v56 = vld [vmem:[#allocation2 + $0x9] sm:$0xff]  ;;  %v314_v57 = vpack.c.bf16 %v313_v54, %v312_v51 }
 0x110   :  { %v395_v58 = vpack.c.bf16 %v394_v56, %v393_v55  ;;  %v474_v4 = vld [vmem:[#allocation2 + $0x2] sm:$0xff]  ;;  %v475_v5 = vld [vmem:[#allocation2 + $0xa] sm:$0xff] }
 0x111   :  { %1259 = vmatmul.mubr.msk.bf16.vlgmr.msra.gmra.mxu1 %vm93_vm1, %v314_v57  ;;  %v476_v11 = vpack.c.bf16 %v475_v5, %v474_v4 }
 0x112   :  { %1271 = vmatmul.mubr.msk.bf16.vlgmr.msra.gmra.mxu0 %vm93_vm1, %v395_v58  ;;  %1275 = vmatpush3.bf16.msra.mxu1 %v1382_v52 }
 0x113   :  { %1287 = vmatpush3.bf16.msra.mxu0 %v1383_v53  ;;  %1276 = vmatprep.subr.bf16.mxu1 %v1456_v0 }
 0x114   :  { %1288 = vmatprep.subr.bf16.mxu0 %v1456_v0  ;;  %1282 = vmatprep.mubr.msk.bf16.mxu1 %vm1457_vm0, %v1456_v0 }
 0x115   :  { %1294 = vmatprep.mubr.msk.bf16.mxu0 %vm1457_vm0, %v1456_v0 }
 0x116   :  { %1277 = vmatpush3.bf16.msra.mxu1 %v1384_v59 }
 0x117   :  { %1289 = vmatpush3.bf16.msra.mxu0 %v1385_v60  ;;  %1278 = vmatprep.subr.bf16.mxu1 %v1456_v0 }
 0x118   :  { %1290 = vmatprep.subr.bf16.mxu0 %v1456_v0 }
 0x11a   :  { %1279 = vmatpush3.bf16.msra.mxu1 %v1386_v61 }
 0x11b   :  { %1291 = vmatpush3.bf16.msra.mxu0 %v1387_v62  ;;  %1280 = vmatprep.subr.bf16.mxu1 %v1456_v0 }
 0x11c   :  { %1292 = vmatprep.subr.bf16.mxu0 %v1456_v0 }
 0x11e   :  { %1281 = vmatpush3.bf16.msra.mxu1 %v1388_v63 }
 0x11f   :  { %1293 = vmatpush3.bf16.msra.mxu0 %v1389_v1  ;;  %1298 = vmatprep.subr.bf16.mxu1 %v1456_v0 }
 0x120   :  { %1310 = vmatprep.subr.bf16.mxu0 %v1456_v0 }
 0x121   :  { %1283 = vmatmul.mubr.msk.bf16.vlgmr.msra.gmra.mxu1 %vm93_vm1, %v476_v11 }
 0x122   :  { %1295 = vmatmul.mubr.msk.bf16.vlgmr.msra.gmra.mxu0 %vm93_vm1, %v575_v6  ;;  %1299 = vmatpush3.bf16.msra.mxu1 %v1390_v7 }
 0x123   :  { %1311 = vmatpush3.bf16.msra.mxu0 %v1391_v9  ;;  %1300 = vmatprep.subr.bf16.mxu1 %v1456_v0 }
 0x124   :  { %1312 = vmatprep.subr.bf16.mxu0 %v1456_v0  ;;  %1306 = vmatprep.mubr.msk.bf16.mxu1 %vm1457_vm0, %v1456_v0 }
 0x125   :  { %1318 = vmatprep.mubr.msk.bf16.mxu0 %vm1457_vm0, %v1456_v0 }
 0x126   :  { %1301 = vmatpush3.bf16.msra.mxu1 %v1392_v12 }
 0x127   :  { %1313 = vmatpush3.bf16.msra.mxu0 %v1393_v13  ;;  %1302 = vmatprep.subr.bf16.mxu1 %v1456_v0 }
 0x128   :  { %1314 = vmatprep.subr.bf16.mxu0 %v1456_v0 }
 0x12a   :  { %1303 = vmatpush3.bf16.msra.mxu1 %v1394_v14 }
 0x12b   :  { %1315 = vmatpush3.bf16.msra.mxu0 %v1395_v15  ;;  %1304 = vmatprep.subr.bf16.mxu1 %v1456_v0 }
 0x12c   :  { %1316 = vmatprep.subr.bf16.mxu0 %v1456_v0 }
 0x12e   :  { %1305 = vmatpush3.bf16.msra.mxu1 %v1396_v16  ;;  %v1406_v16 = vld [vmem:[%s1813_s3 + $0x58] sm:$0xff]  }
 0x12f   :  { %1317 = vmatpush3.bf16.msra.mxu0 %v1397_v17  ;;  %1322 = vmatprep.subr.bf16.mxu1 %v1456_v0 }
 0x130   :  { %1334 = vmatprep.subr.bf16.mxu0 %v1456_v0 }
 0x131   :  { %1307 = vmatmul.mubr.msk.bf16.vlgmr.msra.gmra.mxu1 %vm93_vm1, %v566_v22  ;;  %v1408_v22 = vld [vmem:[%s1813_s3 + $0x48] sm:$0xff]  }
 0x132   :  { %1319 = vmatmul.mubr.msk.bf16.vlgmr.msra.gmra.mxu0 %vm93_vm1, %v720_v23  ;;  %1330 = vmatprep.mubr.msk.bf16.mxu1 %vm1457_vm0, %v1456_v0  ;;  %v1409_v23 = vld [vmem:[%s1813_s3 + $0x40] sm:$0xff]  }
 0x133   :  { %1342 = vmatprep.mubr.msk.bf16.mxu0 %vm1457_vm0, %v1456_v0  ;;  %1323 = vmatpush3.bf16.msra.mxu1 %v1398_v24 }
 0x134   :  { %1335 = vmatpush3.bf16.msra.mxu0 %v1399_v25  ;;  %1324 = vmatprep.subr.bf16.mxu1 %v1456_v0 }
 0x135   :  { %1336 = vmatprep.subr.bf16.mxu0 %v1456_v0 }
 0x137   :  { %1325 = vmatpush3.bf16.msra.mxu1 %v1400_v26 }
 0x138   :  { %1337 = vmatpush3.bf16.msra.mxu0 %v1401_v27  ;;  %1326 = vmatprep.subr.bf16.mxu1 %v1456_v0 }
 0x139   :  { %1338 = vmatprep.subr.bf16.mxu0 %v1456_v0 }
 0x13b   :  { %1327 = vmatpush3.bf16.msra.mxu1 %v1402_v28 }
 0x13c   :  { %1339 = vmatpush3.bf16.msra.mxu0 %v1403_v29  ;;  %1328 = vmatprep.subr.bf16.mxu1 %v1456_v0 }
 0x13d   :  { %1340 = vmatprep.subr.bf16.mxu0 %v1456_v0 }
 0x13f   :  { %1329 = vmatpush3.bf16.msra.mxu1 %v1404_v30 }
 0x140   :  { %1341 = vmatpush3.bf16.msra.mxu0 %v1405_v31  ;;  %1346 = vmatprep.subr.bf16.mxu1 %v1456_v0 }
 0x1d1   :  { %v384_v32 = vpop.f32.mrf.mxu1 }
 0x1d2   :  { %v465_v33 = vpop.f32.mrf.mxu0  ;;  %v391_v43 = vadd.f32 %v384_v32, %v310_v42 }
 0x1d3   :  { %v1260_v34 = vpop.f32.mrf.mxu1 }
 0x1d4   :  { %v1272_v35 = vpop.f32.mrf.mxu0  ;;  %v472_v45 = vadd.f32 %v465_v33, %v391_v43 }
 0x1d5   :  { %v387_v37 = vpop.f32.mrf.mxu1  ;;  %v824_v35 = vadd.f32 %v1660_v2, %v1760_v36 }
 0x1d6   :  { %v468_v38 = vpop.f32.mrf.mxu0  ;;  %v392_v46 = vadd.f32 %v387_v37, %v311_v44 }
 0x1d7   :  { %v1261_v39 = vpop.f32.mrf.mxu1 }
 0x1d8   :  { %v1273_v41 = vpop.f32.mrf.mxu0  ;;  %v473_v52 = vadd.f32 %v468_v38, %v392_v46 }
 0x1e1   :  { %v546_v47 = vpop.f32.mrf.mxu1 }
 0x1e2   :  { %v645_v48 = vpop.f32.mrf.mxu0  ;;  %v553_v49 = vadd.f32 %v546_v47, %v472_v45 }
 0x1e3   :  { %v1284_v50 = vpop.f32.mrf.mxu1 }
 0x1e4   :  { %v1296_v51 = vpop.f32.mrf.mxu0  ;;  %v555_v53 = vmax.f32 %v553_v49, 0.0 }
 0x1e5   :  { %v549_v54 = vpop.f32.mrf.mxu1 }
 0x1e6   :  { %v648_v55 = vpop.f32.mrf.mxu0  ;;  %557 = vst.msk [vmem:[%s1815_s5] sm:$0xff] %vm93_vm1, %v555_v53  ;;  %v554_v8 = vadd.f32 %v549_v54, %v473_v52 }
 0x1e7   :  { %v1285_v56 = vpop.f32.mrf.mxu1 }
 0x1e8   :  { %v1297_v57 = vpop.f32.mrf.mxu0  ;;  %v556_v10 = vmax.f32 %v554_v8, 0.0 }
 0x1ea   :  { %558 = vst.msk [vmem:[%s1815_s5 + $0x8] sm:$0xff] %vm93_vm1, %v556_v10 }
 0x1f1   :  { %v713_v58 = vpop.f32.mrf.mxu1 }
 0x1f2   :  { %v790_v59 = vpop.f32.mrf.mxu0  ;;  %v714_v60 = vadd.f32 %v713_v58, %v645_v48 }
 0x1f3   :  { %v1308_v61 = vpop.f32.mrf.mxu1 }
 0x1f4   :  { %v1320_v62 = vpop.f32.mrf.mxu0  ;;  %v797_v63 = vadd.f32 %v790_v59, %v714_v60 }
 0x1f5   :  { %v716_v1 = vpop.f32.mrf.mxu1 }
 0x1f6   :  { %v793_v4 = vpop.f32.mrf.mxu0  ;;  %v806_v5 = vadd.f32 %v1617_v40, %v797_v63  ;;  %v717_v6 = vadd.f32 %v716_v1, %v648_v55 }
 0x1f7   :  { %v1309_v7 = vpop.f32.mrf.mxu1 }
 0x1f8   :  { %v1321_v9 = vpop.f32.mrf.mxu0  ;;  %v808_v11 = vmax.f32 %v806_v5, 0.0  ;;  %v798_v12 = vadd.f32 %v793_v4, %v717_v6 }
 0x1fa   :  { %813 = vst.msk [vmem:[#allocation2 + $0x19] sm:$0xff] %vm93_vm1, %v808_v11  ;;  %v807_v13 = vadd.f32 %v1617_v40, %v798_v12  ;;  %v1407_v40 = vld [vmem:[%s1813_s3 + $0x50] sm:$0xff]  }
 0x1fc   :  { %v809_v14 = vmax.f32 %v807_v13, 0.0 }
 0x1fe   :  { %814 = vst.msk [vmem:[#allocation2 + $0x21] sm:$0xff] %vm93_vm1, %v809_v14 }
 0x201   :  { %v826_v15 = vld [vmem:[#allocation2 + $0x18] sm:$0xff] }
 0x202   :  { %v907_v18 = vld [vmem:[#allocation2 + $0x19] sm:$0xff] }
 0x205   :  { %v827_v17 = vld [vmem:[#allocation2 + $0x20] sm:$0xff] }
 0x206   :  { %v908_v19 = vld [vmem:[#allocation2 + $0x21] sm:$0xff]  ;;  %v828_v20 = vpack.c.bf16 %v827_v17, %v826_v15 }
 0x207   :  { %v909_v21 = vpack.c.bf16 %v908_v19, %v907_v18  ;;  %v988_v24 = vld [vmem:[#allocation2 + $0x1a] sm:$0xff]  ;;  %v989_v25 = vld [vmem:[#allocation2 + $0x22] sm:$0xff] }
 0x208   :  { %1331 = vmatmul.mubr.msk.bf16.vlgmr.msra.gmra.mxu1 %vm93_vm1, %v828_v20  ;;  %v990_v26 = vpack.c.bf16 %v989_v25, %v988_v24 }
 0x209   :  { %1343 = vmatmul.mubr.msk.bf16.vlgmr.msra.gmra.mxu0 %vm93_vm1, %v909_v21  ;;  %1347 = vmatpush3.bf16.msra.mxu1 %v1406_v16 }
 0x20a   :  { %1354 = vmatprep.mubr.msk.bf16.mxu1 %vm1457_vm0, %v1456_v0  ;;  %1348 = vmatprep.subr.bf16.mxu1 %v1456_v0 }
 0x20d   :  { %1349 = vmatpush3.bf16.msra.mxu1 %v1407_v40 }
 0x20e   :  { %1350 = vmatprep.subr.bf16.mxu1 %v1456_v0 }
 0x211   :  { %1351 = vmatpush3.bf16.msra.mxu1 %v1408_v22 }
 0x212   :  { %1352 = vmatprep.subr.bf16.mxu1 %v1456_v0  ;;  %v825_v0 = vadd.f32 %v1665_v3, %v1760_v36 }
 0x215   :  { %1353 = vmatpush3.bf16.msra.mxu1 %v1409_v23 }
 0x218   :  { %1355 = vmatmul.mubr.msk.bf16.vlgmr.msra.gmra.mxu1 %vm93_vm1, %v990_v26 }
 0x2c8   :  { %v898_v27 = vpop.f32.mrf.mxu1 }
 0x2c9   :  { %v979_v28 = vpop.f32.mrf.mxu0  ;;  %v905_v37 = vadd.f32 %v898_v27, %v824_v35 }
 0x2ca   :  { %v1332_v29 = vpop.f32.mrf.mxu1 }
 0x2cb   :  { %v1344_v30 = vpop.f32.mrf.mxu0  ;;  %v986_v38 = vadd.f32 %v979_v28, %v905_v37 }
 0x2cc   :  { %v901_v31 = vpop.f32.mrf.mxu1 }
 0x2cd   :  { %v982_v32 = vpop.f32.mrf.mxu0  ;;  %v906_v39 = vadd.f32 %v901_v31, %v825_v0 }
 0x2ce   :  { %v1333_v33 = vpop.f32.mrf.mxu1 }
 0x2cf   :  { %v1345_v34 = vpop.f32.mrf.mxu0  ;;  %v987_v44 = vadd.f32 %v982_v32, %v906_v39 }
 0x2d8   :  { %v1060_v41 = vpop.f32.mrf.mxu1 }
 0x2d9   :  { %v1067_v42 = vadd.f32 %v1060_v41, %v986_v38 }
 0x2da   :  { %v1356_v43 = vpop.f32.mrf.mxu1 }
 0x2db   :  { %v1069_v45 = vmax.f32 %v1067_v42, 0.0 }
 0x2dc   :  { %v1063_v46 = vpop.f32.mrf.mxu1 }
 0x2dd   :  { %1152 = vst.msk [vmem:[%s1815_s5 + $0x10] sm:$0xff] %vm93_vm1, %v1069_v45  ;;  %v1068_v47 = vadd.f32 %v1063_v46, %v987_v44 }
 0x2de   :  { %v1357_v48 = vpop.f32.mrf.mxu1 }
 0x2df   :  { %v1070_v2 = vmax.f32 %v1068_v47, 0.0 }
 0x2e1   :  { %1153 = vst.msk [vmem:[%s1815_s5 + $0x18] sm:$0xff] %vm93_vm1, %v1070_v2 }
 0x2e2   :  { %1078 = vsyncpa [#allocation4], 1 }
 0x2e3   :  { %1079 = vsyncpa [#allocation6], 1 }

// kernel: resnet1d_forward.8
= control target key start
LH: loop header
LB: loop body
LE: loop exit
PB: predicated region body
PF: predicated region fallthrough
CT: control target
= control target key end

     0   :  { %13 = vsyncpa [#allocation4], 0  ;;  %s2300_s0 = inlined_call_operand.vmem [shape: f32[2,9,64], index: 0, kind: input, shape index: {}]   ;;  %s2301_s1 = inlined_call_operand.vmem [shape: f32[2,8,64], index: 1, kind: input, shape index: {}]   ;;  %s2302_s2 = inlined_call_operand.hbm [shape: bf16[192,128], index: 2, kind: input, shape index: {}]   ;;  %s2303_s3 = inlined_call_operand.hbm [shape: f32[1,128], index: 3, kind: input, shape index: {}]   ;;  %s2304_s4 = inlined_call_operand.hbm [shape: bf16[384,128], index: 4, kind: input, shape index: {}]   ;;  %s2305_s5 = inlined_call_operand.hbm [shape: f32[1,128], index: 5, kind: input, shape index: {}]   ;;  %s2306_s6 = inlined_call_operand.hbm [shape: bf16[64,128], index: 6, kind: input, shape index: {}]   ;;  %s2307_s7 = inlined_call_operand.hbm [shape: f32[1,128], index: 7, kind: input, shape index: {}]   ;;  %s2308_s8 = inlined_call_operand.vmem [shape: f32[2,8,128], index: 8, kind: output, shape index: {}]  }
   0x1   :  { %14 = vsyncpa [#allocation6], 0 }
   0x2   :  { %15 = vsyncpa [#allocation9], 0 }
   0x3   :  { %16 = vsyncpa [#allocation12], 0  ;;  %s2064_s27 = smov [#allocation5]   ;;  %s2065_s29 = smov [#allocation8]  }
   0x4   :  { %s39_s28 = sshll.u32 %s2064_s27, 4  ;;  %s61_s30 = sshll.u32 %s2065_s29, 4  ;;  %s40_s28 = int_to_ptr.vmem [resolvable:$true] %s39_s28  ;;  %s62_s30 = int_to_ptr.vmem [resolvable:$true] %s61_s30 }
   0x5   :  { %s1944_s9 = scalar_lea.vmem %s40_s28, 16  ;;  %s1948_s10 = scalar_lea.vmem %s40_s28, 32 }
   0x6   :  { %p1945_p0 = scmp.ne.s32.totalorder %s40_s28, %s1944_s9  ;;  %p1949_p1 = scmp.lt.s32.totalorder %s40_s28, %s40_s28 }
   0x7   :  { %p1950_p2 = scmp.lt.s32.totalorder %s1948_s10, %s1944_s9 }
   0x9   :  { %p1951_p3 = por %p1950_p2, %p1949_p1 }
   0xb   :  { %p1952_p4 = pnand %p1951_p3, %p1945_p0 }
   0xd   :  { %1955 = shalt.err (!%p1952_p4)
}
   0xe   :  { %42 = dma.hbm_to_vmem [thread:$0]  %s2303_s3, 16, %s40_s28, [#allocation6]  }
   0xf   :  { %s1964_s13 = scalar_lea.vmem %s62_s30, 16  ;;  %s1968_s14 = scalar_lea.vmem %s62_s30, 32 }
  0x10   :  { %p1965_p5 = scmp.ne.s32.totalorder %s62_s30, %s1964_s13  ;;  %p1969_p6 = scmp.lt.s32.totalorder %s62_s30, %s62_s30 }
  0x11   :  { %p1970_p7 = scmp.lt.s32.totalorder %s1968_s14, %s1964_s13 }
  0x13   :  { %p1971_p8 = por %p1970_p7, %p1969_p6 }
  0x15   :  { %p1972_p9 = pnand %p1971_p8, %p1965_p5 }
  0x17   :  { %1975 = shalt.err (!%p1972_p9)
}
  0x18   :  { %64 = dma.hbm_to_vmem [thread:$0]  %s2305_s5, 16, %s62_s30, [#allocation9]  }
  0x19   :  { %s2066_s17 = smov [#allocation3]  }
  0x1a   :  { %s26_s18 = sshll.u32 %s2066_s17, 4  ;;  %s27_s18 = int_to_ptr.vmem [resolvable:$true] %s26_s18 }
  0x1b   :  { %s1984_s19 = scalar_lea.vmem %s27_s18, 1536  ;;  %p1989_p11 = scmp.lt.s32.totalorder %s27_s18, %s27_s18 }
  0x1c   :  { %p1985_p10 = scmp.ne.s32.totalorder %s27_s18, %s1984_s19  ;;  %p1990_p12 = scmp.lt.s32.totalorder %s1984_s19, %s1984_s19 }
  0x1e   :  { %p1991_p13 = por %p1990_p12, %p1989_p11 }
  0x20   :  { %p1992_p0 = pnand %p1991_p13, %p1985_p10 }
  0x22   :  { %1995 = shalt.err (!%p1992_p0)
}
  0x23   :  { %s2067_s3 = smov 64   ;;  %s2068_s20 = smov 4  }
  0x24   :  { %32 = dma.hbm_to_vmem [thread:$0]  %s2302_s2, 1536, %s27_s18, [#allocation4], %s2067_s3, %s2067_s3, %s2068_s20  }
  0x25   :  { %s2069_s23 = smov [#allocation7]   ;;  %s2070_s5 = smov [#allocation10]  }
  0x26   :  { %s48_s24 = sshll.u32 %s2069_s23, 4  ;;  %s70_s25 = sshll.u32 %s2070_s5, 4  ;;  %s49_s24 = int_to_ptr.vmem [resolvable:$true] %s48_s24  ;;  %s71_s25 = int_to_ptr.vmem [resolvable:$true] %s70_s25 }
  0x27   :  { %s2004_s26 = scalar_lea.vmem %s49_s24, 3072  ;;  %p2009_p2 = scmp.lt.s32.totalorder %s49_s24, %s49_s24 }
  0x28   :  { %p2005_p1 = scmp.ne.s32.totalorder %s49_s24, %s2004_s26  ;;  %p2010_p3 = scmp.lt.s32.totalorder %s2004_s26, %s2004_s26 }
  0x2a   :  { %p2011_p4 = por %p2010_p3, %p2009_p2 }
  0x2c   :  { %p2012_p5 = pnand %p2011_p4, %p2005_p1 }
  0x2e   :  { %2015 = shalt.err (!%p2012_p5)
}
  0x2f   :  { %54 = dma.hbm_to_vmem [thread:$0]  %s2304_s4, 3072, %s49_s24, [#allocation6], %s2067_s3, %s2067_s3, %s2068_s20  }
  0x30   :  { %s2024_s29 = scalar_lea.vmem %s71_s25, 512  ;;  %p2029_p7 = scmp.lt.s32.totalorder %s71_s25, %s71_s25 }
  0x31   :  { %p2025_p6 = scmp.ne.s32.totalorder %s71_s25, %s2024_s29  ;;  %p2030_p8 = scmp.lt.s32.totalorder %s2024_s29, %s2024_s29 }
  0x33   :  { %p2031_p9 = por %p2030_p8, %p2029_p7 }
  0x35   :  { %p2032_p10 = pnand %p2031_p9, %p2025_p6 }
  0x37   :  { %2035 = shalt.err (!%p2032_p10)
}
  0x38   :  { %76 = dma.hbm_to_vmem [thread:$0]  %s2306_s6, 512, %s71_s25, [#allocation9], %s2067_s3, %s2067_s3, %s2068_s20  }
  0x39   :  { %s2071_s9 = smov [#allocation11]  }
  0x3a   :  { %s83_s10 = sshll.u32 %s2071_s9, 4  ;;  %s84_s10 = int_to_ptr.vmem [resolvable:$true] %s83_s10 }
  0x3b   :  { %s2044_s11 = scalar_lea.vmem %s84_s10, 16  ;;  %s2048_s12 = scalar_lea.vmem %s84_s10, 32 }
  0x3c   :  { %p2045_p11 = scmp.ne.s32.totalorder %s84_s10, %s2044_s11  ;;  %p2049_p12 = scmp.lt.s32.totalorder %s84_s10, %s84_s10 }
  0x3d   :  { %p2050_p13 = scmp.lt.s32.totalorder %s2048_s12, %s2044_s11 }
  0x3f   :  { %p2051_p0 = por %p2050_p13, %p2049_p12 }
  0x41   :  { %p2052_p1 = pnand %p2051_p0, %p2045_p11 }
  0x43   :  { %2055 = shalt.err (!%p2052_p1)
}
  0x44   :  { %86 = dma.hbm_to_vmem [thread:$0]  %s2307_s7, 16, %s84_s10, [#allocation12]  }
  0x45   :  { %2056 = dma.done.wait [#allocation4], 1536  }
  0x46   :  { %2057 = vsyncadd [#allocation4], 4294965760 }
  0x47   :  { %2058 = dma.done.wait [#allocation6], 3088  }
  0x48   :  { %2059 = vsyncadd [#allocation6], 4294964208 }
  0x49   :  { %2060 = dma.done.wait [#allocation9], 528  }
  0x4a   :  { %2061 = vsyncadd [#allocation9], 4294966768 }
  0x4b   :  { %2062 = dma.done.wait [#allocation12], 16  }
  0x4c   :  { %2063 = vsyncadd [#allocation12], 4294967280  ;;  %v2072_v0 = vmov 0.0   ;;  %vm2073_vm0 = vmmov 0   ;;  %v1856_v1 = vld [vmem:[#allocation3 + $0x38] sm:$0xff]   ;;  %v1857_v2 = vld [vmem:[#allocation3 + $0x30] sm:$0xff]  }
  0x4d   :  { %1630 = vmatprep.subr.bf16.mxu1 %v2072_v0  ;;  %348 = vst [vmem:[#allocation2] sm:$0x1] %v2072_v0  ;;  %349 = vst [vmem:[#allocation2 + $0x9] sm:$0x1] %v2072_v0  ;;  %1654 = vmatprep.subr.bf16.mxu0 %v2072_v0  ;;  %v1860_v3 = vld [vmem:[#allocation3 + $0x58] sm:$0xff]   ;;  %v1858_v4 = vld [vmem:[#allocation3 + $0x28] sm:$0xff]  }
  0x4e   :  { %1010 = vst [vmem:[#allocation2 + $0x10] sm:$0x1] %v2072_v0  ;;  %1011 = vst [vmem:[#allocation2 + $0x19] sm:$0x1] %v2072_v0  ;;  %1638 = vmatprep.mubr.msk.bf16.mxu1 %vm2073_vm0, %v2072_v0  ;;  %1662 = vmatprep.mubr.msk.bf16.mxu0 %vm2073_vm0, %v2072_v0  ;;  %v1862_v5 = vld [vmem:[#allocation3 + $0x50] sm:$0xff]   ;;  %v1859_v6 = vld [vmem:[#allocation3 + $0x20] sm:$0xff]  }
  0x4f   :  { %1631 = vmatpush3.bf16.msra.mxu1 %v1856_v1  ;;  %1655 = vmatpush3.bf16.msra.mxu0 %v1860_v3  ;;  %v107_v7 = vld [vmem:[%s2301_s1] sm:$0xff]  ;;  %v1864_v8 = vld [vmem:[#allocation3 + $0x48] sm:$0xff]   ;;  %v1861_v9 = vld [vmem:[#allocation3 + $0x18] sm:$0xff]   ;;  %vm151_vm1 = vcmask 523264  }
  0x50   :  { %1632 = vmatprep.subr.bf16.mxu1 %v2072_v0  ;;  %1656 = vmatprep.subr.bf16.mxu0 %v2072_v0  ;;  %v118_v10 = vpack.c.bf16 %v107_v7, %v107_v7  ;;  %v1866_v11 = vld [vmem:[#allocation3 + $0x40] sm:$0xff]   ;;  %v1863_v13 = vld [vmem:[#allocation3 + $0x10] sm:$0xff]   ;;  %v1865_v15 = vld [vmem:[#allocation3 + $0x8] sm:$0xff]  }
  0x51   :  { %v108_v12 = vld [vmem:[%s2300_s0 + $0x1] sm:$0xff]  ;;  %v1869_v20 = vld [vmem:[#allocation10 + $0x10] sm:$0xff]   ;;  %v1870_v21 = vld [vmem:[#allocation10 + $0x8] sm:$0xff]  }
  0x52   :  { %v262_v14 = vpack.c.bf16 %v108_v12, %v108_v12  ;;  %v1867_v16 = vld [vmem:[#allocation3] sm:$0xff]   ;;  %v1875_v24 = vld [vmem:[#allocation7 + $0x70] sm:$0xff]   ;;  %v1877_v26 = vld [vmem:[#allocation7 + $0x68] sm:$0xff]  }
  0x53   :  { %1633 = vmatpush3.bf16.msra.mxu1 %v1857_v2  ;;  %1657 = vmatpush3.bf16.msra.mxu0 %v1862_v5  ;;  %v106_v17 = vld [vmem:[%s2300_s0] sm:$0xff]  ;;  %v1874_v27 = vld [vmem:[#allocation7 + $0x30] sm:$0xff]   ;;  %v1876_v29 = vld [vmem:[#allocation7 + $0x28] sm:$0xff]  }
  0x54   :  { %1634 = vmatprep.subr.bf16.mxu1 %v2072_v0  ;;  %1658 = vmatprep.subr.bf16.mxu0 %v2072_v0  ;;  %v1868_v18 = vld [vmem:[#allocation10 + $0x18] sm:$0xff]   ;;  %v109_v19 = vpack.c.bf16 %v106_v17, %v106_v17  ;;  %v1871_v22 = vld [vmem:[#allocation10] sm:$0xff]   ;;  %v1883_v32 = vld [vmem:[#allocation7 + $0x50] sm:$0xff]  }
  0x55   :  { %v1873_v23 = vld [vmem:[#allocation7 + $0x78] sm:$0xff]   ;;  %v1879_v28 = vld [vmem:[#allocation7 + $0x60] sm:$0xff]   ;;  %v1885_v34 = vld [vmem:[#allocation7 + $0x48] sm:$0xff]  }
  0x56   :  { %v1872_v25 = vld [vmem:[#allocation7 + $0x38] sm:$0xff]   ;;  %v1878_v31 = vld [vmem:[#allocation7 + $0x20] sm:$0xff]   ;;  %v1882_v35 = vld [vmem:[#allocation7 + $0x10] sm:$0xff]  }
  0x57   :  { %1635 = vmatpush3.bf16.msra.mxu1 %v1858_v4  ;;  %1659 = vmatpush3.bf16.msra.mxu0 %v1864_v8  ;;  %v1881_v30 = vld [vmem:[#allocation7 + $0x58] sm:$0xff]   ;;  %v1887_v36 = vld [vmem:[#allocation7 + $0x40] sm:$0xff]   ;;  %v1884_v37 = vld [vmem:[#allocation7 + $0x8] sm:$0xff]  }
  0x58   :  { %1636 = vmatprep.subr.bf16.mxu1 %v2072_v0  ;;  %1660 = vmatprep.subr.bf16.mxu0 %v2072_v0  ;;  %v1880_v33 = vld [vmem:[#allocation7 + $0x18] sm:$0xff]   ;;  %v1886_v38 = vld [vmem:[#allocation7] sm:$0xff]   ;;  %v1891_v58 = vld [vmem:[#allocation3 + $0x30] sm:$0xff]  }
  0x59   :  { %v2200_v49 = vld [vmem:[#allocation5] ss:$0 sm:$0xff]  ;;  %v1889_v56 = vld [vmem:[#allocation3 + $0x38] sm:$0xff]   ;;  %v1893_v61 = vld [vmem:[#allocation3 + $0x28] sm:$0xff]  }
  0x5a   :  { %v1888_v60 = vld [vmem:[#allocation7 + $0xb8] sm:$0xff]   ;;  %v1890_v2 = vld [vmem:[#allocation7 + $0xb0] sm:$0xff]   ;;  %v1485_v4 = vld [vmem:[%s2301_s1 + $0x8] sm:$0xff] }
  0x5b   :  { %1637 = vmatpush3.bf16.msra.mxu1 %v1859_v6  ;;  %1661 = vmatpush3.bf16.msra.mxu0 %v1866_v11  ;;  %v1895_v3 = vld [vmem:[#allocation3 + $0x20] sm:$0xff]   ;;  %v2216_v7 = vpack.c.bf16 %v1485_v4, %v1485_v4  ;;  %v1892_v8 = vld [vmem:[#allocation7 + $0xa8] sm:$0xff]  }
  0x5c   :  { %1642 = vmatprep.subr.bf16.mxu1 %v2072_v0  ;;  %1678 = vmatprep.subr.bf16.mxu0 %v2072_v0  ;;  %v1899_v11 = vld [vmem:[#allocation3 + $0x10] sm:$0xff]   ;;  %v1896_v12 = vld [vmem:[#allocation7 + $0x98] sm:$0xff]  }
  0x5e   :  { %1639 = vmatmul.mubr.msk.bf16.vlgmr.msra.gmra.mxu1 %vm151_vm1, %v118_v10  ;;  %1663 = vmatmul.mubr.msk.bf16.vlgmr.msra.gmra.mxu0 %vm151_vm1, %v262_v14  ;;  %v1898_v14 = vld [vmem:[#allocation7 + $0x90] sm:$0xff]  }
  0x5f   :  { %1643 = vmatpush3.bf16.msra.mxu1 %v1861_v9  ;;  %1650 = vmatprep.mubr.msk.bf16.mxu1 %vm2073_vm0, %v2072_v0  ;;  %v1897_v9 = vld [vmem:[#allocation3 + $0x18] sm:$0xff]  }
  0x60   :  { %1644 = vmatprep.subr.bf16.mxu1 %v2072_v0  ;;  %1694 = vmatprep.mubr.msk.bf16.mxu0 %vm2073_vm0, %v2072_v0 }
  0x61   :  { %1679 = vmatpush3.bf16.msra.mxu0 %v1872_v25  ;;  %v1907_v25 = vld [vmem:[#allocation3 + $0x40] sm:$0xff]  }
  0x62   :  { %1680 = vmatprep.subr.bf16.mxu0 %v2072_v0 }
  0x63   :  { %1645 = vmatpush3.bf16.msra.mxu1 %v1863_v13  ;;  %v1901_v13 = vld [vmem:[#allocation3 + $0x8] sm:$0xff]  }
  0x64   :  { %1646 = vmatprep.subr.bf16.mxu1 %v2072_v0 }
  0x65   :  { %1681 = vmatpush3.bf16.msra.mxu0 %v1874_v27 }
  0x66   :  { %1682 = vmatprep.subr.bf16.mxu0 %v2072_v0 }
  0x67   :  { %1647 = vmatpush3.bf16.msra.mxu1 %v1865_v15  ;;  %v1903_v15 = vld [vmem:[#allocation3] sm:$0xff]  }
  0x68   :  { %1648 = vmatprep.subr.bf16.mxu1 %v2072_v0 }
  0x69   :  { %1683 = vmatpush3.bf16.msra.mxu0 %v1876_v29  ;;  %v1909_v29 = vld [vmem:[#allocation10 + $0x10] sm:$0xff]  }
  0x6a   :  { %1684 = vmatprep.subr.bf16.mxu0 %v2072_v0 }
  0x6b   :  { %1649 = vmatpush3.bf16.msra.mxu1 %v1867_v16  ;;  %v1484_v16 = vld [vmem:[%s2300_s0 + $0x10] sm:$0xff] }
  0x6c   :  { %1666 = vmatprep.subr.bf16.mxu1 %v2072_v0  ;;  %v771_v17 = vpack.c.bf16 %v1484_v16, %v1484_v16 }
  0x6d   :  { %1685 = vmatpush3.bf16.msra.mxu0 %v1878_v31  ;;  %v1911_v31 = vld [vmem:[#allocation10] sm:$0xff]  }
  0x6e   :  { %1651 = vmatmul.mubr.msk.bf16.vlgmr.msra.gmra.mxu1 %vm151_vm1, %v109_v19  ;;  %1686 = vmatprep.subr.bf16.mxu0 %v2072_v0  ;;  %v1902_v19 = vld [vmem:[#allocation7 + $0x80] sm:$0xff]  }
  0x6f   :  { %1667 = vmatpush3.bf16.msra.mxu1 %v1868_v18  ;;  %1674 = vmatprep.mubr.msk.bf16.mxu1 %vm2073_vm0, %v2072_v0  ;;  %v1900_v18 = vld [vmem:[#allocation7 + $0x88] sm:$0xff]  }
  0x70   :  { %1668 = vmatprep.subr.bf16.mxu1 %v2072_v0 }
  0x71   :  { %1687 = vmatpush3.bf16.msra.mxu0 %v1880_v33  ;;  %v1915_v33 = vld [vmem:[#allocation7 + $0x70] sm:$0xff]  }
  0x72   :  { %1688 = vmatprep.subr.bf16.mxu0 %v2072_v0 }
  0x73   :  { %1669 = vmatpush3.bf16.msra.mxu1 %v1869_v20 }
  0x74   :  { %1670 = vmatprep.subr.bf16.mxu1 %v2072_v0 }
  0x75   :  { %1689 = vmatpush3.bf16.msra.mxu0 %v1882_v35  ;;  %v1917_v35 = vld [vmem:[#allocation7 + $0x68] sm:$0xff]  }
  0x76   :  { %1690 = vmatprep.subr.bf16.mxu0 %v2072_v0 }
  0x77   :  { %1671 = vmatpush3.bf16.msra.mxu1 %v1870_v21  ;;  %v1904_v21 = vld [vmem:[#allocation3 + $0x58] sm:$0xff]  }
  0x78   :  { %1672 = vmatprep.subr.bf16.mxu1 %v2072_v0 }
  0x79   :  { %1691 = vmatpush3.bf16.msra.mxu0 %v1884_v37  ;;  %v1919_v37 = vld [vmem:[#allocation7 + $0x60] sm:$0xff]  }
  0x7a   :  { %1692 = vmatprep.subr.bf16.mxu0 %v2072_v0 }
  0x7b   :  { %1673 = vmatpush3.bf16.msra.mxu1 %v1871_v22 }
  0x7c   :  { %1698 = vmatprep.subr.bf16.mxu1 %v2072_v0 }
  0x7d   :  { %1693 = vmatpush3.bf16.msra.mxu0 %v1886_v38  ;;  %v1916_v38 = vld [vmem:[#allocation7 + $0x28] sm:$0xff]  }
  0x7e   :  { %1675 = vmatmul.mubr.msk.bf16.vlgmr.msra.gmra.mxu1 %vm151_vm1, %v118_v10  ;;  %1718 = vmatprep.subr.bf16.mxu0 %v2072_v0  ;;  %v1894_v10 = vld [vmem:[#allocation7 + $0xa0] sm:$0xff]  }
  0x7f   :  { %1714 = vmatprep.mubr.msk.bf16.mxu1 %vm2073_vm0, %v2072_v0  ;;  %1699 = vmatpush3.bf16.msra.mxu1 %v1873_v23  ;;  %v1905_v23 = vld [vmem:[#allocation3 + $0x50] sm:$0xff]  }
  0x80   :  { %1700 = vmatprep.subr.bf16.mxu1 %v2072_v0 }
  0x83   :  { %1701 = vmatpush3.bf16.msra.mxu1 %v1875_v24  ;;  %v1906_v24 = vld [vmem:[#allocation3 + $0x48] sm:$0xff]  }
  0x84   :  { %1702 = vmatprep.subr.bf16.mxu1 %v2072_v0 }
  0x87   :  { %1703 = vmatpush3.bf16.msra.mxu1 %v1877_v26  ;;  %v1486_v26 = vld [vmem:[%s2300_s0 + $0x11] sm:$0xff] }
  0x88   :  { %1704 = vmatprep.subr.bf16.mxu1 %v2072_v0  ;;  %v923_v27 = vpack.c.bf16 %v1486_v26, %v1486_v26  ;;  %v1929_v26 = vld [vmem:[#allocation7 + $0xb0] sm:$0xff]  }
  0x8b   :  { %1705 = vmatpush3.bf16.msra.mxu1 %v1879_v28  ;;  %v1908_v28 = vld [vmem:[#allocation10 + $0x18] sm:$0xff]  }
  0x8c   :  { %1706 = vmatprep.subr.bf16.mxu1 %v2072_v0 }
  0x8f   :  { %1707 = vmatpush3.bf16.msra.mxu1 %v1881_v30  ;;  %v1910_v30 = vld [vmem:[#allocation10 + $0x8] sm:$0xff]  }
  0x90   :  { %1708 = vmatprep.subr.bf16.mxu1 %v2072_v0 }
  0x93   :  { %1709 = vmatpush3.bf16.msra.mxu1 %v1883_v32  ;;  %v1913_v32 = vld [vmem:[#allocation7 + $0x78] sm:$0xff]  }
  0x94   :  { %1710 = vmatprep.subr.bf16.mxu1 %v2072_v0 }
  0x97   :  { %1711 = vmatpush3.bf16.msra.mxu1 %v1885_v34  ;;  %v1912_v34 = vld [vmem:[#allocation7 + $0x38] sm:$0xff]  }
  0x98   :  { %1712 = vmatprep.subr.bf16.mxu1 %v2072_v0 }
  0x9b   :  { %1713 = vmatpush3.bf16.msra.mxu1 %v1887_v36  ;;  %v1914_v36 = vld [vmem:[#allocation7 + $0x30] sm:$0xff]  }
  0x9c   :  { %1738 = vmatprep.subr.bf16.mxu1 %v2072_v0 }
 0x11e   :  { %v189_v39 = vpop.f32.mrf.mxu1  ;;  %v332_v42 = vpop.f32.mrf.mxu0 }
 0x120   :  { %v1640_v40 = vpop.f32.mrf.mxu1  ;;  %v1664_v44 = vpop.f32.mrf.mxu0 }
 0x121   :  { %v1918_v40 = vld [vmem:[#allocation7 + $0x20] sm:$0xff]   ;;  %v1922_v44 = vld [vmem:[#allocation7 + $0x10] sm:$0xff]  }
 0x122   :  { %v192_v41 = vpop.f32.mrf.mxu1  ;;  %v335_v45 = vpop.f32.mrf.mxu0 }
 0x123   :  { %v1923_v41 = vld [vmem:[#allocation7 + $0x50] sm:$0xff]   ;;  %v1927_v45 = vld [vmem:[#allocation7 + $0x40] sm:$0xff]  }
 0x124   :  { %v1641_v43 = vpop.f32.mrf.mxu1  ;;  %v1665_v46 = vpop.f32.mrf.mxu0 }
 0x125   :  { %v1925_v43 = vld [vmem:[#allocation7 + $0x48] sm:$0xff]  }
 0x126   :  { %v1924_v46 = vld [vmem:[#allocation7 + $0x8] sm:$0xff]  }
 0x12e   :  { %v256_v47 = vpop.f32.mrf.mxu1 }
 0x12f   :  { %v257_v48 = vadd.f32 %v256_v47, %v189_v39  ;;  %v1921_v39 = vld [vmem:[#allocation7 + $0x58] sm:$0xff]   ;;  %v1926_v47 = vld [vmem:[#allocation7] sm:$0xff]  }
 0x130   :  { %v1652_v50 = vpop.f32.mrf.mxu1 }
 0x131   :  { %v338_v51 = vadd.f32 %v332_v42, %v257_v48  ;;  %v1920_v42 = vld [vmem:[#allocation7 + $0x18] sm:$0xff]  }
 0x132   :  { %v259_v52 = vpop.f32.mrf.mxu1 }
 0x133   :  { %v346_v53 = vadd.f32 %v2200_v49, %v338_v51 }
 0x134   :  { %v1653_v54 = vpop.f32.mrf.mxu1 }
 0x135   :  { %v347_v55 = vmax.f32 %v346_v53, 0.0 }
 0x137   :  { %350 = vst [vmem:[#allocation2 + $0x1] sm:$0xff] %v347_v55  ;;  %v551_v57 = vpack.c.bf16 %v347_v55, %v347_v55 }
 0x139   :  { %1715 = vmatmul.mubr.bf16.vlgmr.msra.gmra.mxu1 %v551_v57 }
 0x13a   :  { %1739 = vmatpush3.bf16.msra.mxu1 %v1889_v56  ;;  %1746 = vmatprep.mubr.msk.bf16.mxu1 %vm2073_vm0, %v2072_v0 }
 0x13b   :  { %1740 = vmatprep.subr.bf16.mxu1 %v2072_v0 }
 0x13e   :  { %v443_v59 = vld [vmem:[#allocation2] sm:$0xff]  ;;  %1741 = vmatpush3.bf16.msra.mxu1 %v1891_v58  ;;  %v2206_v62 = vpop.f32.mrf.mxu1 }
 0x13f   :  { %v444_v63 = vpack.c.bf16 %v443_v59, %v443_v59  ;;  %1742 = vmatprep.subr.bf16.mxu1 %v2072_v0  ;;  %v657_v20 = vld [vmem:[#allocation2 + $0x2] sm:$0xff] }
 0x140   :  { %v1676_v1 = vpop.f32.mrf.mxu1  ;;  %v658_v22 = vpack.c.bf16 %v657_v20, %v657_v20 }
 0x141   :  { %1695 = vmatmul.mubr.bf16.vlgmr.msra.gmra.mxu0 %v444_v63  ;;  %v2279_v1 = vld [vmem:[#allocation8] ss:$0 sm:$0xff] }
 0x142   :  { %1719 = vmatpush3.bf16.msra.mxu0 %v1888_v60  ;;  %1743 = vmatpush3.bf16.msra.mxu1 %v1893_v61  ;;  %v432_v5 = vpop.f32.mrf.mxu1  ;;  %v2275_v61 = vld [vmem:[#allocation11] ss:$0 sm:$0xff] }
 0x143   :  { %1720 = vmatprep.subr.bf16.mxu0 %v2072_v0  ;;  %1744 = vmatprep.subr.bf16.mxu1 %v2072_v0  ;;  %v430_v63 = vadd.f32 %v2275_v61, %v2206_v62 }
 0x144   :  { %1734 = vmatprep.mubr.msk.bf16.mxu0 %vm2073_vm0, %v2072_v0  ;;  %v1677_v6 = vpop.f32.mrf.mxu1 }
 0x146   :  { %1721 = vmatpush3.bf16.msra.mxu0 %v1890_v2  ;;  %1745 = vmatpush3.bf16.msra.mxu1 %v1895_v3  ;;  %v442_v3 = vadd.f32 %v2279_v1, %v430_v63 }
 0x147   :  { %1722 = vmatprep.subr.bf16.mxu0 %v2072_v0  ;;  %1750 = vmatprep.subr.bf16.mxu1 %v2072_v0 }
 0x149   :  { %1747 = vmatmul.mubr.msk.bf16.vlgmr.msra.gmra.mxu1 %vm151_vm1, %v2216_v7 }
 0x14a   :  { %1723 = vmatpush3.bf16.msra.mxu0 %v1892_v8  ;;  %1751 = vmatpush3.bf16.msra.mxu1 %v1897_v9 }
 0x14b   :  { %1724 = vmatprep.subr.bf16.mxu0 %v2072_v0  ;;  %1752 = vmatprep.subr.bf16.mxu1 %v2072_v0 }
 0x14c   :  { %1758 = vmatprep.mubr.msk.bf16.mxu1 %vm2073_vm0, %v2072_v0 }
 0x14e   :  { %1725 = vmatpush3.bf16.msra.mxu0 %v1894_v10  ;;  %1753 = vmatpush3.bf16.msra.mxu1 %v1899_v11 }
 0x14f   :  { %1726 = vmatprep.subr.bf16.mxu0 %v2072_v0  ;;  %1754 = vmatprep.subr.bf16.mxu1 %v2072_v0 }
 0x152   :  { %1727 = vmatpush3.bf16.msra.mxu0 %v1896_v12  ;;  %1755 = vmatpush3.bf16.msra.mxu1 %v1901_v13 }
 0x153   :  { %1728 = vmatprep.subr.bf16.mxu0 %v2072_v0  ;;  %1756 = vmatprep.subr.bf16.mxu1 %v2072_v0 }
 0x156   :  { %1729 = vmatpush3.bf16.msra.mxu0 %v1898_v14  ;;  %1757 = vmatpush3.bf16.msra.mxu1 %v1903_v15 }
 0x157   :  { %1730 = vmatprep.subr.bf16.mxu0 %v2072_v0  ;;  %1774 = vmatprep.subr.bf16.mxu1 %v2072_v0 }
 0x159   :  { %1759 = vmatmul.mubr.msk.bf16.vlgmr.msra.gmra.mxu1 %vm151_vm1, %v771_v17 }
 0x15a   :  { %1731 = vmatpush3.bf16.msra.mxu0 %v1900_v18  ;;  %1782 = vmatprep.mubr.msk.bf16.mxu1 %vm2073_vm0, %v2072_v0 }
 0x15b   :  { %1732 = vmatprep.subr.bf16.mxu0 %v2072_v0  ;;  %1775 = vmatpush3.bf16.msra.mxu1 %v1908_v28  ;;  %v1932_v28 = vld [vmem:[#allocation7 + $0x98] sm:$0xff]  }
 0x15c   :  { %1776 = vmatprep.subr.bf16.mxu1 %v2072_v0 }
 0x15e   :  { %1733 = vmatpush3.bf16.msra.mxu0 %v1902_v19 }
 0x15f   :  { %1762 = vmatprep.subr.bf16.mxu0 %v2072_v0  ;;  %1777 = vmatpush3.bf16.msra.mxu1 %v1909_v29  ;;  %v1933_v29 = vld [vmem:[#allocation7 + $0x90] sm:$0xff]  }
 0x160   :  { %1778 = vmatprep.subr.bf16.mxu1 %v2072_v0 }
 0x161   :  { %1735 = vmatmul.mubr.bf16.vlgmr.msra.gmra.mxu0 %v658_v22 }
 0x162   :  { %1763 = vmatpush3.bf16.msra.mxu0 %v1904_v21  ;;  %1770 = vmatprep.mubr.msk.bf16.mxu0 %vm2073_vm0, %v2072_v0 }
 0x163   :  { %1764 = vmatprep.subr.bf16.mxu0 %v2072_v0  ;;  %1779 = vmatpush3.bf16.msra.mxu1 %v1910_v30  ;;  %v1934_v30 = vld [vmem:[#allocation7 + $0x88] sm:$0xff]  }
 0x164   :  { %1780 = vmatprep.subr.bf16.mxu1 %v2072_v0 }
 0x166   :  { %1765 = vmatpush3.bf16.msra.mxu0 %v1905_v23 }
 0x167   :  { %1766 = vmatprep.subr.bf16.mxu0 %v2072_v0  ;;  %1781 = vmatpush3.bf16.msra.mxu1 %v1911_v31 }
 0x168   :  { %1806 = vmatprep.subr.bf16.mxu1 %v2072_v0 }
 0x16a   :  { %1767 = vmatpush3.bf16.msra.mxu0 %v1906_v24  ;;  %1783 = vmatmul.mubr.msk.bf16.vlgmr.msra.gmra.mxu1 %vm151_vm1, %v2216_v7  ;;  %v1928_v24 = vld [vmem:[#allocation7 + $0xb8] sm:$0xff]  }
 0x16b   :  { %1768 = vmatprep.subr.bf16.mxu0 %v2072_v0  ;;  %1822 = vmatprep.mubr.msk.bf16.mxu1 %vm2073_vm0, %v2072_v0 }
 0x16c   :  { %1807 = vmatpush3.bf16.msra.mxu1 %v1913_v32 }
 0x16d   :  { %1808 = vmatprep.subr.bf16.mxu1 %v2072_v0 }
 0x16e   :  { %1769 = vmatpush3.bf16.msra.mxu0 %v1907_v25 }
 0x16f   :  { %1786 = vmatprep.subr.bf16.mxu0 %v2072_v0 }
 0x170   :  { %1809 = vmatpush3.bf16.msra.mxu1 %v1915_v33  ;;  %v1935_v33 = vld [vmem:[#allocation7 + $0x80] sm:$0xff]  }
 0x171   :  { %1771 = vmatmul.mubr.msk.bf16.vlgmr.msra.gmra.mxu0 %vm151_vm1, %v923_v27  ;;  %1810 = vmatprep.subr.bf16.mxu1 %v2072_v0  ;;  %v1930_v27 = vld [vmem:[#allocation7 + $0xa8] sm:$0xff]  }
 0x172   :  { %1802 = vmatprep.mubr.msk.bf16.mxu0 %vm2073_vm0, %v2072_v0  ;;  %1787 = vmatpush3.bf16.msra.mxu0 %v1912_v34 }
 0x173   :  { %1788 = vmatprep.subr.bf16.mxu0 %v2072_v0 }
 0x174   :  { %1811 = vmatpush3.bf16.msra.mxu1 %v1917_v35 }
 0x175   :  { %1812 = vmatprep.subr.bf16.mxu1 %v2072_v0 }
 0x176   :  { %1789 = vmatpush3.bf16.msra.mxu0 %v1914_v36 }
 0x177   :  { %1790 = vmatprep.subr.bf16.mxu0 %v2072_v0 }
 0x178   :  { %1813 = vmatpush3.bf16.msra.mxu1 %v1919_v37 }
 0x179   :  { %1814 = vmatprep.subr.bf16.mxu1 %v2072_v0 }
 0x17a   :  { %1791 = vmatpush3.bf16.msra.mxu0 %v1916_v38 }
 0x17b   :  { %1792 = vmatprep.subr.bf16.mxu0 %v2072_v0 }
 0x17c   :  { %1815 = vmatpush3.bf16.msra.mxu1 %v1921_v39 }
 0x17d   :  { %1816 = vmatprep.subr.bf16.mxu1 %v2072_v0 }
 0x17e   :  { %1793 = vmatpush3.bf16.msra.mxu0 %v1918_v40 }
 0x17f   :  { %1794 = vmatprep.subr.bf16.mxu0 %v2072_v0 }
 0x180   :  { %1817 = vmatpush3.bf16.msra.mxu1 %v1923_v41 }
 0x181   :  { %1818 = vmatprep.subr.bf16.mxu1 %v2072_v0 }
 0x182   :  { %1795 = vmatpush3.bf16.msra.mxu0 %v1920_v42 }
 0x183   :  { %1796 = vmatprep.subr.bf16.mxu0 %v2072_v0 }
 0x184   :  { %1819 = vmatpush3.bf16.msra.mxu1 %v1925_v43 }
 0x185   :  { %1820 = vmatprep.subr.bf16.mxu1 %v2072_v0 }
 0x186   :  { %1797 = vmatpush3.bf16.msra.mxu0 %v1922_v44 }
 0x187   :  { %1798 = vmatprep.subr.bf16.mxu0 %v2072_v0 }
 0x188   :  { %1821 = vmatpush3.bf16.msra.mxu1 %v1927_v45 }
 0x18a   :  { %1799 = vmatpush3.bf16.msra.mxu0 %v1924_v46 }
 0x18b   :  { %1800 = vmatprep.subr.bf16.mxu0 %v2072_v0 }
 0x18e   :  { %1801 = vmatpush3.bf16.msra.mxu0 %v1926_v47 }
 0x18f   :  { %1826 = vmatprep.subr.bf16.mxu0 %v2072_v0 }
 0x1f9   :  { %v650_v48 = vpop.f32.mrf.mxu1 }
 0x1fb   :  { %v1716_v50 = vpop.f32.mrf.mxu1 }
 0x1fd   :  { %v653_v51 = vpop.f32.mrf.mxu1 }
 0x1ff   :  { %v1717_v52 = vpop.f32.mrf.mxu1 }
 0x201   :  { %v543_v53 = vpop.f32.mrf.mxu0 }
 0x202   :  { %v549_v5 = vadd.f32 %v543_v53, %v442_v3 }
 0x203   :  { %v1696_v54 = vpop.f32.mrf.mxu0 }
 0x204   :  { %v656_v8 = vadd.f32 %v650_v48, %v549_v5 }
 0x205   :  { %v546_v55 = vpop.f32.mrf.mxu0 }
 0x207   :  { %v1697_v56 = vpop.f32.mrf.mxu0 }
 0x209   :  { %v850_v57 = vpop.f32.mrf.mxu1 }
 0x20b   :  { %v1748_v58 = vpop.f32.mrf.mxu1 }
 0x20d   :  { %v853_v59 = vpop.f32.mrf.mxu1 }
 0x20f   :  { %v1749_v60 = vpop.f32.mrf.mxu1 }
 0x219   :  { %v917_v2 = vpop.f32.mrf.mxu1 }
 0x21a   :  { %v918_v14 = vadd.f32 %v917_v2, %v850_v57 }
 0x21b   :  { %v1760_v4 = vpop.f32.mrf.mxu1 }
 0x21d   :  { %v920_v6 = vpop.f32.mrf.mxu1 }
 0x21f   :  { %v1761_v7 = vpop.f32.mrf.mxu1 }
 0x221   :  { %v757_v9 = vpop.f32.mrf.mxu0 }
 0x222   :  { %v763_v10 = vadd.f32 %v757_v9, %v656_v8 }
 0x223   :  { %v1736_v11 = vpop.f32.mrf.mxu0 }
 0x224   :  { %v764_v12 = vmax.f32 %v763_v10, 0.0 }
 0x225   :  { %v760_v13 = vpop.f32.mrf.mxu0 }
 0x226   :  { %765 = vst [vmem:[%s2308_s8] sm:$0xff] %v764_v12 }
 0x227   :  { %v1737_v62 = vpop.f32.mrf.mxu0 }
 0x22a   :  { %v1091_v31 = vpop.f32.mrf.mxu1 }
 0x22b   :  { %v1092_v46 = vadd.f32 %v2275_v61, %v1091_v31 }
 0x22c   :  { %v1784_v32 = vpop.f32.mrf.mxu1 }
 0x22d   :  { %v1104_v47 = vadd.f32 %v2279_v1, %v1092_v46 }
 0x22e   :  { %v1094_v34 = vpop.f32.mrf.mxu1 }
 0x230   :  { %v1785_v36 = vpop.f32.mrf.mxu1 }
 0x231   :  { %v993_v15 = vpop.f32.mrf.mxu0 }
 0x232   :  { %v999_v16 = vadd.f32 %v993_v15, %v918_v14 }
 0x233   :  { %v1772_v17 = vpop.f32.mrf.mxu0 }
 0x234   :  { %v1007_v18 = vadd.f32 %v2200_v49, %v999_v16  ;;  %v1931_v49 = vld [vmem:[#allocation7 + $0xa0] sm:$0xff]  }
 0x235   :  { %v996_v19 = vpop.f32.mrf.mxu0 }
 0x236   :  { %v1008_v20 = vmax.f32 %v1007_v18, 0.0 }
 0x237   :  { %v1773_v21 = vpop.f32.mrf.mxu0 }
 0x238   :  { %1012 = vst [vmem:[#allocation2 + $0x11] sm:$0xff] %v1008_v20  ;;  %v1213_v22 = vpack.c.bf16 %v1008_v20, %v1008_v20 }
 0x23a   :  { %1823 = vmatmul.mubr.bf16.vlgmr.msra.gmra.mxu1 %v1213_v22 }
 0x23f   :  { %v1105_v23 = vld [vmem:[#allocation2 + $0x10] sm:$0xff] }
 0x240   :  { %v1106_v25 = vpack.c.bf16 %v1105_v23, %v1105_v23  ;;  %v1319_v35 = vld [vmem:[#allocation2 + $0x12] sm:$0xff] }
 0x241   :  { %v1320_v37 = vpack.c.bf16 %v1319_v35, %v1319_v35 }
 0x242   :  { %1803 = vmatmul.mubr.bf16.vlgmr.msra.gmra.mxu0 %v1106_v25 }
 0x243   :  { %1827 = vmatpush3.bf16.msra.mxu0 %v1928_v24  ;;  %1842 = vmatprep.mubr.msk.bf16.mxu0 %vm2073_vm0, %v2072_v0 }
 0x244   :  { %1828 = vmatprep.subr.bf16.mxu0 %v2072_v0 }
 0x247   :  { %1829 = vmatpush3.bf16.msra.mxu0 %v1929_v26 }
 0x248   :  { %1830 = vmatprep.subr.bf16.mxu0 %v2072_v0 }
 0x24b   :  { %1831 = vmatpush3.bf16.msra.mxu0 %v1930_v27 }
 0x24c   :  { %1832 = vmatprep.subr.bf16.mxu0 %v2072_v0 }
 0x24f   :  { %1833 = vmatpush3.bf16.msra.mxu0 %v1931_v49 }
 0x250   :  { %1834 = vmatprep.subr.bf16.mxu0 %v2072_v0 }
 0x253   :  { %1835 = vmatpush3.bf16.msra.mxu0 %v1932_v28 }
 0x254   :  { %1836 = vmatprep.subr.bf16.mxu0 %v2072_v0 }
 0x257   :  { %1837 = vmatpush3.bf16.msra.mxu0 %v1933_v29 }
 0x258   :  { %1838 = vmatprep.subr.bf16.mxu0 %v2072_v0 }
 0x25b   :  { %1839 = vmatpush3.bf16.msra.mxu0 %v1934_v30 }
 0x25c   :  { %1840 = vmatprep.subr.bf16.mxu0 %v2072_v0 }
 0x25f   :  { %1841 = vmatpush3.bf16.msra.mxu0 %v1935_v33 }
 0x262   :  { %1843 = vmatmul.mubr.bf16.vlgmr.msra.gmra.mxu0 %v1320_v37 }
 0x2fa   :  { %v1312_v38 = vpop.f32.mrf.mxu1 }
 0x2fc   :  { %v1824_v39 = vpop.f32.mrf.mxu1 }
 0x2fe   :  { %v1315_v40 = vpop.f32.mrf.mxu1 }
 0x300   :  { %v1825_v41 = vpop.f32.mrf.mxu1 }
 0x302   :  { %v1205_v42 = vpop.f32.mrf.mxu0 }
 0x303   :  { %v1211_v48 = vadd.f32 %v1205_v42, %v1104_v47 }
 0x304   :  { %v1804_v43 = vpop.f32.mrf.mxu0 }
 0x305   :  { %v1318_v0 = vadd.f32 %v1312_v38, %v1211_v48 }
 0x306   :  { %v1208_v44 = vpop.f32.mrf.mxu0 }
 0x308   :  { %v1805_v45 = vpop.f32.mrf.mxu0 }
 0x322   :  { %v1419_v50 = vpop.f32.mrf.mxu0 }
 0x323   :  { %v1425_v51 = vadd.f32 %v1419_v50, %v1318_v0 }
 0x324   :  { %v1844_v52 = vpop.f32.mrf.mxu0 }
 0x325   :  { %v1426_v53 = vmax.f32 %v1425_v51, 0.0 }
 0x326   :  { %v1422_v54 = vpop.f32.mrf.mxu0 }
 0x327   :  { %1535 = vst [vmem:[%s2308_s8 + $0x8] sm:$0xff] %v1426_v53 }
 0x328   :  { %v1845_v55 = vpop.f32.mrf.mxu0 }
 0x329   :  { %1433 = vsyncpa [#allocation4], 1 }
 0x32a   :  { %1434 = vsyncpa [#allocation6], 1 }
 0x32b   :  { %1435 = vsyncpa [#allocation9], 1 }
 0x32c   :  { %1436 = vsyncpa [#allocation12], 1 }

// kernel: resnet1d_forward.11
= control target key start
LH: loop header
LB: loop body
LE: loop exit
PB: predicated region body
PF: predicated region fallthrough
CT: control target
= control target key end

     0   :  { %v468_v26 = vmov 1983009808   ;;  %v23_v28 = vlaneseq  ;;  %vm61_vm0 = vcmask 1041408   ;;  %s706_s0 = inlined_call_operand.vmem [shape: f32[2,2,512], index: 0, kind: input, shape index: {}]   ;;  %s707_s1 = inlined_call_operand.vmem [shape: f32[512,10], index: 1, kind: input, shape index: {}]   ;;  %s708_s2 = inlined_call_operand.vmem [shape: f32[1,10], index: 2, kind: input, shape index: {}]   ;;  %s709_s3 = inlined_call_operand.hbm [shape: f32[2,10], index: 3, kind: output, shape index: {}]  }
   0x1   :  { %v158_v0 = vld [vmem:[%s707_s1 + $0xf8] sm:$0xff]  ;;  %v157_v4 = vld [vmem:[%s707_s1 + $0xf0] sm:$0xff]  ;;  %v156_v8 = vld [vmem:[%s707_s1 + $0xe8] sm:$0xff]  ;;  %v21_v27 = vunpack.c.l.s4 %v468_v26 }
   0x2   :  { %v190_v1 = vld [vmem:[%s707_s1 + $0x1f8] sm:$0xff]  ;;  %372 = vmatprep.subr.mxu0 %v158_v0  ;;  %v189_v5 = vld [vmem:[%s707_s1 + $0x1f0] sm:$0xff]  ;;  %v188_v9 = vld [vmem:[%s707_s1 + $0x1e8] sm:$0xff]  ;;  %v24_v38 = vshrl.u32 %v23_v28, 7 }
   0x3   :  { %v142_v2 = vld [vmem:[%s707_s1 + $0x78] sm:$0xff]  ;;  %407 = vmatprep.subr.mxu1 %v190_v1  ;;  %v141_v6 = vld [vmem:[%s707_s1 + $0x70] sm:$0xff]  ;;  %v140_v10 = vld [vmem:[%s707_s1 + $0x68] sm:$0xff]  ;;  %v22_v37 = vunpack.c.0.s8 %v21_v27 }
   0x4   :  { %v174_v3 = vld [vmem:[%s707_s1 + $0x178] sm:$0xff]  ;;  %373 = vmatpush3.msra.mxu0 %v142_v2  ;;  %v173_v7 = vld [vmem:[%s707_s1 + $0x170] sm:$0xff]  ;;  %v172_v11 = vld [vmem:[%s707_s1 + $0x168] sm:$0xff] }
   0x5   :  { %408 = vmatpush3.msra.mxu1 %v174_v3  ;;  %374 = vmatprep.subr.mxu0 %v157_v4  ;;  %v155_v12 = vld [vmem:[%s707_s1 + $0xe0] sm:$0xff]  ;;  %v154_v16 = vld [vmem:[%s707_s1 + $0xd8] sm:$0xff]  ;;  %v153_v20 = vld [vmem:[%s707_s1 + $0xd0] sm:$0xff]  ;;  %v25_v47 = vsub.s32 %v22_v37, %v24_v38 }
   0x6   :  { %409 = vmatprep.subr.mxu1 %v189_v5  ;;  %375 = vmatpush3.msra.mxu0 %v141_v6  ;;  %v187_v13 = vld [vmem:[%s707_s1 + $0x1e0] sm:$0xff]  ;;  %v186_v17 = vld [vmem:[%s707_s1 + $0x1d8] sm:$0xff]  ;;  %v185_v21 = vld [vmem:[%s707_s1 + $0x1d0] sm:$0xff] }
   0x7   :  { %410 = vmatpush3.msra.mxu1 %v173_v7  ;;  %376 = vmatprep.subr.mxu0 %v156_v8  ;;  %v139_v14 = vld [vmem:[%s707_s1 + $0x60] sm:$0xff]  ;;  %v138_v18 = vld [vmem:[%s707_s1 + $0x58] sm:$0xff]  ;;  %v137_v22 = vld [vmem:[%s707_s1 + $0x50] sm:$0xff] }
   0x8   :  { %411 = vmatprep.subr.mxu1 %v188_v9  ;;  %v171_v15 = vld [vmem:[%s707_s1 + $0x160] sm:$0xff]  ;;  %377 = vmatpush3.msra.mxu0 %v140_v10  ;;  %v170_v19 = vld [vmem:[%s707_s1 + $0x158] sm:$0xff]  ;;  %v169_v23 = vld [vmem:[%s707_s1 + $0x150] sm:$0xff] }
   0x9   :  { %412 = vmatpush3.msra.mxu1 %v172_v11  ;;  %378 = vmatprep.subr.mxu0 %v155_v12  ;;  %v152_v24 = vld [vmem:[%s707_s1 + $0xc8] sm:$0xff]  ;;  %v151_v31 = vld [vmem:[%s707_s1 + $0xc0] sm:$0xff]  ;;  %v150_v35 = vld [vmem:[%s707_s1 + $0xb8] sm:$0xff] }
   0xa   :  { %413 = vmatprep.subr.mxu1 %v187_v13  ;;  %379 = vmatpush3.msra.mxu0 %v139_v14  ;;  %v184_v25 = vld [vmem:[%s707_s1 + $0x1c8] sm:$0xff]  ;;  %v183_v32 = vld [vmem:[%s707_s1 + $0x1c0] sm:$0xff]  ;;  %v182_v36 = vld [vmem:[%s707_s1 + $0x1b8] sm:$0xff] }
   0xb   :  { %414 = vmatpush3.msra.mxu1 %v171_v15  ;;  %380 = vmatprep.subr.mxu0 %v154_v16  ;;  %v136_v29 = vld [vmem:[%s707_s1 + $0x48] sm:$0xff]  ;;  %v135_v33 = vld [vmem:[%s707_s1 + $0x40] sm:$0xff]  ;;  %v134_v39 = vld [vmem:[%s707_s1 + $0x38] sm:$0xff] }
   0xc   :  { %415 = vmatprep.subr.mxu1 %v186_v17  ;;  %381 = vmatpush3.msra.mxu0 %v138_v18  ;;  %v168_v30 = vld [vmem:[%s707_s1 + $0x148] sm:$0xff]  ;;  %v167_v34 = vld [vmem:[%s707_s1 + $0x140] sm:$0xff]  ;;  %v166_v40 = vld [vmem:[%s707_s1 + $0x138] sm:$0xff] }
   0xd   :  { %416 = vmatpush3.msra.mxu1 %v170_v19  ;;  %382 = vmatprep.subr.mxu0 %v153_v20  ;;  %v149_v41 = vld [vmem:[%s707_s1 + $0xb0] sm:$0xff]  ;;  %v148_v45 = vld [vmem:[%s707_s1 + $0xa8] sm:$0xff]  ;;  %v147_v50 = vld [vmem:[%s707_s1 + $0xa0] sm:$0xff] }
   0xe   :  { %417 = vmatprep.subr.mxu1 %v185_v21  ;;  %383 = vmatpush3.msra.mxu0 %v137_v22  ;;  %v181_v42 = vld [vmem:[%s707_s1 + $0x1b0] sm:$0xff]  ;;  %v180_v46 = vld [vmem:[%s707_s1 + $0x1a8] sm:$0xff]  ;;  %v179_v51 = vld [vmem:[%s707_s1 + $0x1a0] sm:$0xff] }
   0xf   :  { %418 = vmatpush3.msra.mxu1 %v169_v23  ;;  %384 = vmatprep.subr.mxu0 %v152_v24  ;;  %v133_v43 = vld [vmem:[%s707_s1 + $0x30] sm:$0xff]  ;;  %v132_v48 = vld [vmem:[%s707_s1 + $0x28] sm:$0xff]  ;;  %v131_v52 = vld [vmem:[%s707_s1 + $0x20] sm:$0xff] }
  0x10   :  { %419 = vmatprep.subr.mxu1 %v184_v25  ;;  %385 = vmatpush3.msra.mxu0 %v136_v29  ;;  %v165_v44 = vld [vmem:[%s707_s1 + $0x130] sm:$0xff]  ;;  %v164_v49 = vld [vmem:[%s707_s1 + $0x128] sm:$0xff]  ;;  %v163_v53 = vld [vmem:[%s707_s1 + $0x120] sm:$0xff] }
  0x11   :  { %420 = vmatpush3.msra.mxu1 %v168_v30  ;;  %386 = vmatprep.subr.mxu0 %v151_v31  ;;  %v15_v54 = vld [vmem:[%s706_s0] sm:$0xff]  ;;  %v16_v55 = vld [vmem:[%s706_s0 + $0x8] sm:$0xff]  ;;  %v146_v56 = vld [vmem:[%s707_s1 + $0x98] sm:$0xff] }
  0x12   :  { %421 = vmatprep.subr.mxu1 %v183_v32  ;;  %387 = vmatpush3.msra.mxu0 %v135_v33  ;;  %v178_v57 = vld [vmem:[%s707_s1 + $0x198] sm:$0xff]  ;;  %v26_v58 = vrot.slane %v15_v54, %v25_v47  ;;  %v43_v59 = vrot.slane %v16_v55, %v25_v47  ;;  %v19_v60 = vcombine.high %v15_v54, %v15_v54 }
  0x13   :  { %422 = vmatpush3.msra.mxu1 %v167_v34  ;;  %388 = vmatprep.subr.mxu0 %v150_v35 }
  0x14   :  { %423 = vmatprep.subr.mxu1 %v182_v36  ;;  %389 = vmatpush3.msra.mxu0 %v134_v39 }
  0x15   :  { %424 = vmatpush3.msra.mxu1 %v166_v40  ;;  %390 = vmatprep.subr.mxu0 %v149_v41 }
  0x16   :  { %425 = vmatprep.subr.mxu1 %v181_v42  ;;  %391 = vmatpush3.msra.mxu0 %v133_v43 }
  0x17   :  { %426 = vmatpush3.msra.mxu1 %v165_v44  ;;  %392 = vmatprep.subr.mxu0 %v148_v45 }
  0x18   :  { %427 = vmatprep.subr.mxu1 %v180_v46  ;;  %393 = vmatpush3.msra.mxu0 %v132_v48 }
  0x19   :  { %428 = vmatpush3.msra.mxu1 %v164_v49 }
  0x1a   :  { %8 = vsyncpa [#allocation3], 0  ;;  %394 = vmatprep.subr.mxu0 %v147_v50  ;;  %429 = vmatprep.subr.mxu1 %v179_v51  ;;  %v130_v61 = vld [vmem:[%s707_s1 + $0x18] sm:$0xff]  ;;  %v36_v63 = vcombine.high %v16_v55, %v16_v55  ;;  %v145_v0 = vld [vmem:[%s707_s1 + $0x90] sm:$0xff]  ;;  %v34_v2 = vcombine.high %v26_v58, %v26_v58  ;;  %v51_v3 = vcombine.high %v43_v59, %v43_v59  ;;  %v62_v5 = vsel %vm61_vm0, %v26_v58, 0.0  ;;  %s469_s9 = smov [#allocation2]  }
  0x1b   :  { %v162_v62 = vld [vmem:[%s707_s1 + $0x118] sm:$0xff]  ;;  %395 = vmatpush3.msra.mxu0 %v131_v52  ;;  %430 = vmatpush3.msra.mxu1 %v163_v53  ;;  %v177_v1 = vld [vmem:[%s707_s1 + $0x190] sm:$0xff]  ;;  %v33_v4 = vrot.slane %v19_v60, %v25_v47  ;;  %v63_v9 = vrot.slane %v62_v5, 4  ;;  %v90_v10 = vsel %vm61_vm0, %v43_v59, 0.0  ;;  %v144_v11 = vld [vmem:[%s707_s1 + $0x88] sm:$0xff]  ;;  %vm206_vm1 = vcmask 1041409  }
  0x1c   :  { %396 = vmatprep.subr.mxu0 %v146_v56  ;;  %431 = vmatprep.subr.mxu1 %v178_v57  ;;  %v129_v6 = vld [vmem:[%s707_s1 + $0x10] sm:$0xff]  ;;  %v50_v8 = vrot.slane %v36_v63, %v25_v47  ;;  %v176_v12 = vld [vmem:[%s707_s1 + $0x188] sm:$0xff]  ;;  %v69_v13 = vsel %vm61_vm0, %v34_v2, 0.0  ;;  %v97_v14 = vsel %vm61_vm0, %v51_v3, 0.0  ;;  %v91_v16 = vrot.slane %v90_v10, 4  ;;  %v143_v23 = vld [vmem:[%s707_s1 + $0x80] sm:$0xff] }
  0x1d   :  { %v161_v7 = vld [vmem:[%s707_s1 + $0x110] sm:$0xff]  ;;  %397 = vmatpush3.msra.mxu0 %v130_v61  ;;  %432 = vmatpush3.msra.mxu1 %v162_v62  ;;  %v35_v15 = vcombine.high %v33_v4, %v33_v4  ;;  %v128_v17 = vld [vmem:[%s707_s1 + $0x8] sm:$0xff]  ;;  %v70_v19 = vrot.slane %v69_v13, 4  ;;  %v98_v20 = vrot.slane %v97_v14, 4  ;;  %v64_v22 = vadd.f32 %v63_v9, %v62_v5  ;;  %v175_v24 = vld [vmem:[%s707_s1 + $0x180] sm:$0xff]  ;;  %s363_s0 = sshll.u32 %s469_s9, 4  ;;  %s364_s0 = int_to_ptr.vmem [resolvable:$true] %s363_s0 }
  0x1e   :  { %398 = vmatprep.subr.mxu0 %v145_v0  ;;  %433 = vmatprep.subr.mxu1 %v177_v1  ;;  %v160_v18 = vld [vmem:[%s707_s1 + $0x108] sm:$0xff]  ;;  %v52_v21 = vcombine.high %v50_v8, %v50_v8  ;;  %v92_v26 = vadd.f32 %v91_v16, %v90_v10  ;;  %v76_v27 = vsel %vm61_vm0, %v33_v4, 0.0  ;;  %v104_v28 = vsel %vm61_vm0, %v50_v8, 0.0  ;;  %v127_v29 = vld [vmem:[%s707_s1] sm:$0xff]  ;;  %s446_s10 = scalar_lea.vmem %s364_s0, 32  ;;  %p451_p1 = scmp.lt.s32.totalorder %s364_s0, %s364_s0 }
  0x1f   :  { %399 = vmatpush3.msra.mxu0 %v129_v6  ;;  %434 = vmatpush3.msra.mxu1 %v161_v7  ;;  %v83_v25 = vsel %vm61_vm0, %v35_v15, 0.0  ;;  %v71_v30 = vadd.f32 %v70_v19, %v69_v13  ;;  %v99_v31 = vadd.f32 %v98_v20, %v97_v14  ;;  %v159_v32 = vld [vmem:[%s707_s1 + $0x100] sm:$0xff]  ;;  %v65_v36 = vrot.slane %v64_v22, 2  ;;  %p447_p0 = scmp.ne.s32.totalorder %s364_s0, %s446_s10  ;;  %p452_p2 = scmp.lt.s32.totalorder %s446_s10, %s446_s10 }
  0x20   :  { %400 = vmatprep.subr.mxu0 %v144_v11  ;;  %435 = vmatprep.subr.mxu1 %v176_v12  ;;  %v84_v33 = vrot.slane %v83_v25, 4  ;;  %v111_v34 = vsel %vm61_vm0, %v52_v21, 0.0  ;;  %v93_v37 = vrot.slane %v92_v26, 2  ;;  %v77_v38 = vrot.slane %v76_v27, 4 }
  0x21   :  { %401 = vmatpush3.msra.mxu0 %v128_v17  ;;  %436 = vmatpush3.msra.mxu1 %v160_v18  ;;  %v112_v35 = vrot.slane %v111_v34, 4  ;;  %v72_v39 = vrot.slane %v71_v30, 2  ;;  %v100_v40 = vrot.slane %v99_v31, 2  ;;  %v105_v42 = vrot.slane %v104_v28, 4  ;;  %p453_p3 = por %p452_p2, %p451_p1 }
  0x22   :  { %402 = vmatprep.subr.mxu0 %v143_v23  ;;  %437 = vmatprep.subr.mxu1 %v175_v24  ;;  %v85_v41 = vadd.f32 %v84_v33, %v83_v25  ;;  %v66_v44 = vadd.f32 %v65_v36, %v64_v22  ;;  %v94_v45 = vadd.f32 %v93_v37, %v92_v26  ;;  %v371_v23 = vld [vmem:[%s708_s2] ss:$0 sm:$0xff]  ;;  %vm355_vm2 = vcmask 74752  }
  0x23   :  { %403 = vmatpush3.msra.mxu0 %v127_v29  ;;  %438 = vmatpush3.msra.mxu1 %v159_v32  ;;  %v113_v43 = vadd.f32 %v112_v35, %v111_v34  ;;  %v73_v46 = vadd.f32 %v72_v39, %v71_v30  ;;  %v101_v47 = vadd.f32 %v100_v40, %v99_v31  ;;  %p454_p4 = pnand %p453_p3, %p447_p0 }
  0x24   :  { %v86_v48 = vrot.slane %v85_v41, 2  ;;  %v78_v49 = vadd.f32 %v77_v38, %v76_v27  ;;  %v67_v51 = vrot.slane %v66_v44, 1  ;;  %v95_v52 = vrot.slane %v94_v45, 1 }
  0x25   :  { %v114_v50 = vrot.slane %v113_v43, 2  ;;  %v106_v53 = vadd.f32 %v105_v42, %v104_v28  ;;  %v74_v54 = vrot.slane %v73_v46, 1  ;;  %v102_v55 = vrot.slane %v101_v47, 1 }
  0x26   :  { %v87_v56 = vadd.f32 %v86_v48, %v85_v41  ;;  %v79_v57 = vrot.slane %v78_v49, 2  ;;  %v68_v59 = vadd.f32 %v67_v51, %v66_v44  ;;  %v96_v60 = vadd.f32 %v95_v52, %v94_v45 }
  0x27   :  { %v115_v58 = vadd.f32 %v114_v50, %v113_v43  ;;  %v107_v61 = vrot.slane %v106_v53, 2  ;;  %v75_v62 = vadd.f32 %v74_v54, %v73_v46  ;;  %v103_v63 = vadd.f32 %v102_v55, %v101_v47 }
  0x28   :  { %v88_v0 = vrot.slane %v87_v56, 1  ;;  %v80_v1 = vadd.f32 %v79_v57, %v78_v49  ;;  %v119_v3 = vmul.f32 0.5, %v68_v59  ;;  %v123_v4 = vmul.f32 0.5, %v96_v60 }
  0x29   :  { %v116_v2 = vrot.slane %v115_v58, 1  ;;  %v108_v5 = vadd.f32 %v107_v61, %v106_v53  ;;  %v120_v6 = vmul.f32 0.5, %v75_v62  ;;  %v124_v7 = vmul.f32 0.5, %v103_v63 }
  0x2a   :  { %v89_v8 = vadd.f32 %v88_v0, %v87_v56  ;;  %v81_v9 = vrot.slane %v80_v1, 1  ;;  %v207_v11 = vsel %vm206_vm1, %v123_v4, %v119_v3 }
  0x2b   :  { %v117_v10 = vadd.f32 %v116_v2, %v115_v58  ;;  %v109_v12 = vrot.slane %v108_v5, 1  ;;  %v208_v13 = vsel %vm206_vm1, %v124_v7, %v120_v6 }
  0x2c   :  { %v122_v14 = vmul.f32 0.5, %v89_v8  ;;  %v82_v15 = vadd.f32 %v81_v9, %v80_v1  ;;  %279 = vmatprep.mubr.f32.mxu0 %v208_v13 }
  0x2d   :  { %v126_v16 = vmul.f32 0.5, %v117_v10  ;;  %v110_v17 = vadd.f32 %v109_v12, %v108_v5  ;;  %280 = vmatmul.mubr.f32.vlgmr.msra.gmra.mxu0 %v207_v11 }
  0x2e   :  { %v121_v18 = vmul.f32 0.5, %v82_v15 }
  0x2f   :  { %v210_v19 = vsel %vm206_vm1, %v126_v16, %v122_v14  ;;  %v125_v20 = vmul.f32 0.5, %v110_v17 }
  0x30   :  { %349 = vmatprep.mubr.f32.mxu1 %v210_v19 }
  0x31   :  { %v209_v21 = vsel %vm206_vm1, %v125_v20, %v121_v18 }
  0x32   :  { %350 = vmatmul.mubr.f32.vlgmr.msra.gmra.mxu1 %v209_v21 }
  0xed   :  { %v404_v22 = vpop.f32.mrf.mxu0 }
  0xef   :  { %v405_v24 = vpop.f32.mrf.mxu0 }
  0xf0   :  { %v406_v25 = vadd.f32 %v405_v24, %v404_v22 }
  0xf2   :  { %v439_v26 = vpop.f32.mrf.mxu1  ;;  %v282_v27 = vadd.f32 %v406_v25, %v371_v23 }
  0xf4   :  { %v440_v28 = vpop.f32.mrf.mxu1 }
  0xf5   :  { %v441_v29 = vadd.f32 %v440_v28, %v439_v26 }
  0xf7   :  { %v352_v30 = vadd.f32 %v441_v29, %v282_v27 }
  0xf9   :  { %356 = vst.msk [vmem:[#allocation2] sm:$0x3] %vm355_vm2, %v352_v30 }
  0xfa   :  { %457 = shalt.err (!%p454_p4)
}
  0xfb   :  { %366 = dma.vmem_to_hbm [thread:$0]  %s364_s0, 32, %s709_s3, [#allocation3]  }
  0xfc   :  { %466 = dma.done.wait [#allocation3], 32  }
  0xfd   :  { %467 = vsyncadd [#allocation3], 4294967264 }
  0xfe   :  { %370 = vsyncpa [#allocation3], 1 }

// kernel: resnet1d_forward.9
= control target key start
LH: loop header
LB: loop body
LE: loop exit
PB: predicated region body
PF: predicated region fallthrough
CT: control target
= control target key end

     0   :  { %13 = vsyncpa [#allocation4], 0  ;;  %s3930_s0 = inlined_call_operand.vmem [shape: f32[2,5,128], index: 0, kind: input, shape index: {}]   ;;  %s3931_s1 = inlined_call_operand.vmem [shape: f32[2,4,128], index: 1, kind: input, shape index: {}]   ;;  %s3932_s2 = inlined_call_operand.hbm [shape: bf16[384,256], index: 2, kind: input, shape index: {}]   ;;  %s3933_s3 = inlined_call_operand.hbm [shape: f32[1,256], index: 3, kind: input, shape index: {}]   ;;  %s3934_s4 = inlined_call_operand.hbm [shape: bf16[768,256], index: 4, kind: input, shape index: {}]   ;;  %s3935_s5 = inlined_call_operand.hbm [shape: f32[1,256], index: 5, kind: input, shape index: {}]   ;;  %s3936_s6 = inlined_call_operand.hbm [shape: bf16[128,256], index: 6, kind: input, shape index: {}]   ;;  %s3937_s7 = inlined_call_operand.hbm [shape: f32[1,256], index: 7, kind: input, shape index: {}]   ;;  %s3938_s8 = inlined_call_operand.vmem [shape: f32[2,4,256], index: 8, kind: output, shape index: {}]  }
   0x1   :  { %14 = vsyncpa [#allocation6], 0 }
   0x2   :  { %15 = vsyncpa [#allocation9], 0 }
   0x3   :  { %16 = vsyncpa [#allocation12], 0  ;;  %s3767_s27 = smov [#allocation5]   ;;  %s3768_s29 = smov [#allocation8]  }
   0x4   :  { %s39_s28 = sshll.u32 %s3767_s27, 4  ;;  %s61_s30 = sshll.u32 %s3768_s29, 4  ;;  %s40_s28 = int_to_ptr.vmem [resolvable:$true] %s39_s28  ;;  %s62_s30 = int_to_ptr.vmem [resolvable:$true] %s61_s30 }
   0x5   :  { %s3647_s9 = scalar_lea.vmem %s40_s28, 32  ;;  %p3652_p1 = scmp.lt.s32.totalorder %s40_s28, %s40_s28 }
   0x6   :  { %p3648_p0 = scmp.ne.s32.totalorder %s40_s28, %s3647_s9  ;;  %p3653_p2 = scmp.lt.s32.totalorder %s3647_s9, %s3647_s9 }
   0x8   :  { %p3654_p3 = por %p3653_p2, %p3652_p1 }
   0xa   :  { %p3655_p4 = pnand %p3654_p3, %p3648_p0 }
   0xc   :  { %3658 = shalt.err (!%p3655_p4)
}
   0xd   :  { %42 = dma.hbm_to_vmem [thread:$0]  %s3933_s3, 32, %s40_s28, [#allocation6]  }
   0xe   :  { %s3667_s12 = scalar_lea.vmem %s62_s30, 32  ;;  %p3672_p6 = scmp.lt.s32.totalorder %s62_s30, %s62_s30 }
   0xf   :  { %p3668_p5 = scmp.ne.s32.totalorder %s62_s30, %s3667_s12  ;;  %p3673_p7 = scmp.lt.s32.totalorder %s3667_s12, %s3667_s12 }
  0x11   :  { %p3674_p8 = por %p3673_p7, %p3672_p6 }
  0x13   :  { %p3675_p9 = pnand %p3674_p8, %p3668_p5 }
  0x15   :  { %3678 = shalt.err (!%p3675_p9)
}
  0x16   :  { %64 = dma.hbm_to_vmem [thread:$0]  %s3935_s5, 32, %s62_s30, [#allocation9]  }
  0x17   :  { %s3769_s15 = smov [#allocation3]  }
  0x18   :  { %s26_s16 = sshll.u32 %s3769_s15, 4  ;;  %s27_s16 = int_to_ptr.vmem [resolvable:$true] %s26_s16 }
  0x19   :  { %s3687_s17 = scalar_lea.vmem %s27_s16, 6144  ;;  %p3692_p11 = scmp.lt.s32.totalorder %s27_s16, %s27_s16 }
  0x1a   :  { %p3688_p10 = scmp.ne.s32.totalorder %s27_s16, %s3687_s17  ;;  %p3693_p12 = scmp.lt.s32.totalorder %s3687_s17, %s3687_s17 }
  0x1c   :  { %p3694_p13 = por %p3693_p12, %p3692_p11 }
  0x1e   :  { %p3695_p0 = pnand %p3694_p13, %p3688_p10 }
  0x20   :  { %3698 = shalt.err (!%p3695_p0)
}
  0x21   :  { %s3770_s3 = smov 128   ;;  %s3771_s18 = smov 8  }
  0x22   :  { %32 = dma.hbm_to_vmem [thread:$0]  %s3932_s2, 6144, %s27_s16, [#allocation4], %s3770_s3, %s3770_s3, %s3771_s18  }
  0x23   :  { %s3772_s21 = smov [#allocation7]   ;;  %s3773_s5 = smov [#allocation10]  }
  0x24   :  { %s48_s22 = sshll.u32 %s3772_s21, 4  ;;  %s70_s23 = sshll.u32 %s3773_s5, 4  ;;  %s49_s22 = int_to_ptr.vmem [resolvable:$true] %s48_s22  ;;  %s71_s23 = int_to_ptr.vmem [resolvable:$true] %s70_s23 }
  0x25   :  { %s3707_s24 = scalar_lea.vmem %s49_s22, 12288  ;;  %p3712_p2 = scmp.lt.s32.totalorder %s49_s22, %s49_s22 }
  0x26   :  { %p3708_p1 = scmp.ne.s32.totalorder %s49_s22, %s3707_s24  ;;  %p3713_p3 = scmp.lt.s32.totalorder %s3707_s24, %s3707_s24 }
  0x28   :  { %p3714_p4 = por %p3713_p3, %p3712_p2 }
  0x2a   :  { %p3715_p5 = pnand %p3714_p4, %p3708_p1 }
  0x2c   :  { %3718 = shalt.err (!%p3715_p5)
}
  0x2d   :  { %54 = dma.hbm_to_vmem [thread:$0]  %s3934_s4, 12288, %s49_s22, [#allocation6], %s3770_s3, %s3770_s3, %s3771_s18  }
  0x2e   :  { %s3727_s27 = scalar_lea.vmem %s71_s23, 2048  ;;  %p3732_p7 = scmp.lt.s32.totalorder %s71_s23, %s71_s23 }
  0x2f   :  { %p3728_p6 = scmp.ne.s32.totalorder %s71_s23, %s3727_s27  ;;  %p3733_p8 = scmp.lt.s32.totalorder %s3727_s27, %s3727_s27 }
  0x31   :  { %p3734_p9 = por %p3733_p8, %p3732_p7 }
  0x33   :  { %p3735_p10 = pnand %p3734_p9, %p3728_p6 }
  0x35   :  { %3738 = shalt.err (!%p3735_p10)
}
  0x36   :  { %76 = dma.hbm_to_vmem [thread:$0]  %s3936_s6, 2048, %s71_s23, [#allocation9], %s3770_s3, %s3770_s3, %s3771_s18  }
  0x37   :  { %s3774_s29 = smov [#allocation11]  }
  0x38   :  { %s83_s30 = sshll.u32 %s3774_s29, 4  ;;  %s84_s30 = int_to_ptr.vmem [resolvable:$true] %s83_s30 }
  0x39   :  { %s3747_s9 = scalar_lea.vmem %s84_s30, 32  ;;  %p3752_p12 = scmp.lt.s32.totalorder %s84_s30, %s84_s30 }
  0x3a   :  { %p3748_p11 = scmp.ne.s32.totalorder %s84_s30, %s3747_s9  ;;  %p3753_p13 = scmp.lt.s32.totalorder %s3747_s9, %s3747_s9 }
  0x3c   :  { %p3754_p0 = por %p3753_p13, %p3752_p12 }
  0x3e   :  { %p3755_p1 = pnand %p3754_p0, %p3748_p11 }
  0x40   :  { %3758 = shalt.err (!%p3755_p1)
}
  0x41   :  { %86 = dma.hbm_to_vmem [thread:$0]  %s3937_s7, 32, %s84_s30, [#allocation12]  }
  0x42   :  { %3759 = dma.done.wait [#allocation4], 6144  }
  0x43   :  { %3760 = vsyncadd [#allocation4], 4294961152 }
  0x44   :  { %3761 = dma.done.wait [#allocation6], 12320  }
  0x45   :  { %3762 = vsyncadd [#allocation6], 4294954976 }
  0x46   :  { %3763 = dma.done.wait [#allocation9], 2080  }
  0x47   :  { %3764 = vsyncadd [#allocation9], 4294965216 }
  0x48   :  { %3765 = dma.done.wait [#allocation12], 32  }
  0x49   :  { %3766 = vsyncadd [#allocation12], 4294967264  ;;  %v3775_v0 = vmov 0   ;;  %v3176_v1 = vld [vmem:[#allocation3 + $0xf4] ss:$8 sps:$4 sm:$0xff]  }
  0x4a   :  { %255 = vmatprep.mubr.bf16.mxu1 %v3775_v0  ;;  %514 = vmatprep.mubr.bf16.mxu0 %v3775_v0  ;;  %v3178_v2 = vld [vmem:[#allocation3 + $0xf0] ss:$8 sps:$4 sm:$0xff]   ;;  %v3179_v3 = vld [vmem:[#allocation3 + $0xe4] ss:$8 sps:$4 sm:$0xff]   ;;  %v3181_v4 = vld [vmem:[#allocation3 + $0xe0] ss:$8 sps:$4 sm:$0xff]  }
  0x4b   :  { %223 = vmatprep.subr.bf16.mxu1 %v3176_v1  ;;  %v3182_v5 = vld [vmem:[#allocation3 + $0xd4] ss:$8 sps:$4 sm:$0xff]   ;;  %v3184_v6 = vld [vmem:[#allocation3 + $0xd0] ss:$8 sps:$4 sm:$0xff]   ;;  %v3185_v7 = vld [vmem:[#allocation3 + $0xc4] ss:$8 sps:$4 sm:$0xff]  }
  0x4c   :  { %224 = vmatpush1.bf16.msra.mxu1 %v3178_v2  ;;  %v3187_v8 = vld [vmem:[#allocation3 + $0xc0] ss:$8 sps:$4 sm:$0xff]   ;;  %v3199_v9 = vld [vmem:[#allocation3 + $0x174] ss:$8 sps:$4 sm:$0xff]   ;;  %v3202_v10 = vld [vmem:[#allocation3 + $0x170] ss:$8 sps:$4 sm:$0xff]  }
  0x4d   :  { %225 = vmatprep.subr.bf16.mxu1 %v3179_v3  ;;  %v3188_v11 = vld [vmem:[#allocation3 + $0xb4] ss:$8 sps:$4 sm:$0xff]   ;;  %482 = vmatprep.subr.bf16.mxu0 %v3199_v9  ;;  %v3206_v12 = vld [vmem:[#allocation3 + $0x164] ss:$8 sps:$4 sm:$0xff]   ;;  %v3208_v13 = vld [vmem:[#allocation3 + $0x160] ss:$8 sps:$4 sm:$0xff]  }
  0x4e   :  { %483 = vmatpush1.bf16.msra.mxu0 %v3202_v10  ;;  %v3190_v14 = vld [vmem:[#allocation3 + $0xb0] ss:$8 sps:$4 sm:$0xff]   ;;  %v3191_v15 = vld [vmem:[#allocation3 + $0xa4] ss:$8 sps:$4 sm:$0xff]   ;;  %v3212_v16 = vld [vmem:[#allocation3 + $0x154] ss:$8 sps:$4 sm:$0xff]  }
  0x4f   :  { %484 = vmatprep.subr.bf16.mxu0 %v3206_v12  ;;  %v3193_v17 = vld [vmem:[#allocation3 + $0xa0] ss:$8 sps:$4 sm:$0xff]   ;;  %v3214_v18 = vld [vmem:[#allocation3 + $0x150] ss:$8 sps:$4 sm:$0xff]   ;;  %v3218_v19 = vld [vmem:[#allocation3 + $0x144] ss:$8 sps:$4 sm:$0xff]  }
  0x50   :  { %226 = vmatpush1.bf16.msra.mxu1 %v3181_v4  ;;  %v3194_v20 = vld [vmem:[#allocation3 + $0x94] ss:$8 sps:$4 sm:$0xff]   ;;  %v3196_v21 = vld [vmem:[#allocation3 + $0x90] ss:$8 sps:$4 sm:$0xff]   ;;  %v3220_v22 = vld [vmem:[#allocation3 + $0x140] ss:$8 sps:$4 sm:$0xff]  }
  0x51   :  { %227 = vmatprep.subr.bf16.mxu1 %v3182_v5  ;;  %v3224_v23 = vld [vmem:[#allocation3 + $0x134] ss:$8 sps:$4 sm:$0xff]   ;;  %v3197_v24 = vld [vmem:[#allocation3 + $0x84] ss:$8 sps:$4 sm:$0xff]   ;;  %v3201_v25 = vld [vmem:[#allocation3 + $0x80] ss:$8 sps:$4 sm:$0xff]  }
  0x52   :  { %485 = vmatpush1.bf16.msra.mxu0 %v3208_v13  ;;  %v107_v26 = vld [vmem:[%s3931_s1] sm:$0xf]  ;;  %v3226_v27 = vld [vmem:[#allocation3 + $0x130] ss:$8 sps:$4 sm:$0xff]   ;;  %v3230_v28 = vld [vmem:[#allocation3 + $0x124] ss:$8 sps:$4 sm:$0xff]  }
  0x53   :  { %486 = vmatprep.subr.bf16.mxu0 %v3212_v16  ;;  %v3205_v29 = vld [vmem:[#allocation3 + $0x74] ss:$8 sps:$4 sm:$0xff]   ;;  %v126_v30 = vpack.c.bf16 %v107_v26, %v107_v26  ;;  %v3203_v31 = vld [vmem:[#allocation3 + $0x70] ss:$8 sps:$4 sm:$0xff]   ;;  %v3232_v32 = vld [vmem:[#allocation3 + $0x120] ss:$8 sps:$4 sm:$0xff]  }
  0x54   :  { %228 = vmatpush1.bf16.msra.mxu1 %v3184_v6  ;;  %v3236_v33 = vld [vmem:[#allocation3 + $0x114] ss:$8 sps:$4 sm:$0xff]   ;;  %v3211_v34 = vld [vmem:[#allocation3 + $0x64] ss:$8 sps:$4 sm:$0xff]   ;;  %v3238_v35 = vld [vmem:[#allocation3 + $0x110] ss:$8 sps:$4 sm:$0xff]  }
  0x55   :  { %229 = vmatprep.subr.bf16.mxu1 %v3185_v7  ;;  %v3209_v36 = vld [vmem:[#allocation3 + $0x60] ss:$8 sps:$4 sm:$0xff]   ;;  %v3242_v37 = vld [vmem:[#allocation3 + $0x104] ss:$8 sps:$4 sm:$0xff]   ;;  %v3217_v38 = vld [vmem:[#allocation3 + $0x54] ss:$8 sps:$4 sm:$0xff]  }
  0x56   :  { %487 = vmatpush1.bf16.msra.mxu0 %v3214_v18  ;;  %v3244_v39 = vld [vmem:[#allocation3 + $0x100] ss:$8 sps:$4 sm:$0xff]   ;;  %v3215_v41 = vld [vmem:[#allocation3 + $0x50] ss:$8 sps:$4 sm:$0xff]   ;;  %v3223_v42 = vld [vmem:[#allocation3 + $0x44] ss:$8 sps:$4 sm:$0xff]  }
  0x57   :  { %488 = vmatprep.subr.bf16.mxu0 %v3218_v19  ;;  %v108_v40 = vld [vmem:[%s3930_s0 + $0x1] sm:$0xf]  ;;  %v3269_v45 = vld [vmem:[#allocation7 + $0x70] ss:$8 sps:$4 sm:$0xff]   ;;  %v3277_v49 = vld [vmem:[#allocation7 + $0x64] ss:$8 sps:$4 sm:$0xff]  }
  0x58   :  { %230 = vmatpush1.bf16.msra.mxu1 %v3187_v8  ;;  %v385_v43 = vpack.c.bf16 %v108_v40, %v108_v40  ;;  %v3221_v44 = vld [vmem:[#allocation3 + $0x40] ss:$8 sps:$4 sm:$0xff]   ;;  %v3229_v47 = vld [vmem:[#allocation3 + $0x34] ss:$8 sps:$4 sm:$0xff]   ;;  %v3227_v50 = vld [vmem:[#allocation3 + $0x30] ss:$8 sps:$4 sm:$0xff]  }
  0x59   :  { %231 = vmatprep.subr.bf16.mxu1 %v3188_v11  ;;  %v3271_v46 = vld [vmem:[#allocation7 + $0x74] ss:$8 sps:$4 sm:$0xff]   ;;  %v3275_v48 = vld [vmem:[#allocation7 + $0x60] ss:$8 sps:$4 sm:$0xff]   ;;  %v3281_v52 = vld [vmem:[#allocation7 + $0x50] ss:$8 sps:$4 sm:$0xff]  }
  0x5a   :  { %489 = vmatpush1.bf16.msra.mxu0 %v3220_v22  ;;  %v3235_v51 = vld [vmem:[#allocation3 + $0x24] ss:$8 sps:$4 sm:$0xff]   ;;  %v3233_v53 = vld [vmem:[#allocation3 + $0x20] ss:$8 sps:$4 sm:$0xff]   ;;  %v3241_v55 = vld [vmem:[#allocation3 + $0x14] ss:$8 sps:$4 sm:$0xff]  }
  0x5b   :  { %490 = vmatprep.subr.bf16.mxu0 %v3224_v23  ;;  %v3283_v54 = vld [vmem:[#allocation7 + $0x54] ss:$8 sps:$4 sm:$0xff]   ;;  %v3247_v57 = vld [vmem:[#allocation3 + $0x4] ss:$8 sps:$4 sm:$0xff]   ;;  %v3253_v63 = vld [vmem:[#allocation10 + $0x64] ss:$8 sps:$4 sm:$0xff]  }
  0x5c   :  { %232 = vmatpush1.bf16.msra.mxu1 %v3190_v14  ;;  %v3239_v56 = vld [vmem:[#allocation3 + $0x10] ss:$8 sps:$4 sm:$0xff]   ;;  %v3245_v58 = vld [vmem:[#allocation3] ss:$8 sps:$4 sm:$0xff]   ;;  %v3248_v61 = vld [vmem:[#allocation10 + $0x70] ss:$8 sps:$4 sm:$0xff]  }
  0x5d   :  { %233 = vmatprep.subr.bf16.mxu1 %v3191_v15  ;;  %v106_v59 = vld [vmem:[%s3930_s0] sm:$0xf]  ;;  %v3251_v1 = vld [vmem:[#allocation10 + $0x60] ss:$8 sps:$4 sm:$0xff]   ;;  %v3254_v3 = vld [vmem:[#allocation10 + $0x50] ss:$8 sps:$4 sm:$0xff]  }
  0x5e   :  { %491 = vmatpush1.bf16.msra.mxu0 %v3226_v27  ;;  %v3250_v60 = vld [vmem:[#allocation10 + $0x74] ss:$8 sps:$4 sm:$0xff]   ;;  %v109_v62 = vpack.c.bf16 %v106_v59, %v106_v59  ;;  %v3259_v4 = vld [vmem:[#allocation10 + $0x44] ss:$8 sps:$4 sm:$0xff]   ;;  %v3257_v5 = vld [vmem:[#allocation10 + $0x40] ss:$8 sps:$4 sm:$0xff]  }
  0x5f   :  { %492 = vmatprep.subr.bf16.mxu0 %v3230_v28  ;;  %v3256_v2 = vld [vmem:[#allocation10 + $0x54] ss:$8 sps:$4 sm:$0xff]   ;;  %v3260_v7 = vld [vmem:[#allocation10 + $0x30] ss:$8 sps:$4 sm:$0xff]   ;;  %v3265_v8 = vld [vmem:[#allocation10 + $0x24] ss:$8 sps:$4 sm:$0xff]  }
  0x60   :  { %234 = vmatpush1.bf16.msra.mxu1 %v3193_v17  ;;  %v3262_v6 = vld [vmem:[#allocation10 + $0x34] ss:$8 sps:$4 sm:$0xff]   ;;  %v3263_v9 = vld [vmem:[#allocation10 + $0x20] ss:$8 sps:$4 sm:$0xff]   ;;  %v3266_v11 = vld [vmem:[#allocation10 + $0x10] ss:$8 sps:$4 sm:$0xff]  }
  0x61   :  { %235 = vmatprep.subr.bf16.mxu1 %v3194_v20  ;;  %v3268_v10 = vld [vmem:[#allocation10 + $0x14] ss:$8 sps:$4 sm:$0xff]   ;;  %v3274_v12 = vld [vmem:[#allocation10 + $0x4] ss:$8 sps:$4 sm:$0xff]   ;;  %v3272_v13 = vld [vmem:[#allocation10] ss:$8 sps:$4 sm:$0xff]  }
  0x62   :  { %493 = vmatpush1.bf16.msra.mxu0 %v3232_v32  ;;  %v558_v14 = vld [vmem:[%s3931_s1] sm:$0xf]  ;;  %v3278_v16 = vld [vmem:[#allocation7 + $0x170] ss:$8 sps:$4 sm:$0xff]   ;;  %v3286_v18 = vld [vmem:[#allocation7 + $0x164] ss:$8 sps:$4 sm:$0xff]  }
  0x63   :  { %494 = vmatprep.subr.bf16.mxu0 %v3236_v33  ;;  %v3280_v15 = vld [vmem:[#allocation7 + $0x174] ss:$8 sps:$4 sm:$0xff]   ;;  %v559_v17 = vpack.c.bf16 %v558_v14, %v558_v14  ;;  %v3284_v19 = vld [vmem:[#allocation7 + $0x160] ss:$8 sps:$4 sm:$0xff]   ;;  %v3289_v20 = vld [vmem:[#allocation7 + $0x44] ss:$8 sps:$4 sm:$0xff]  }
  0x64   :  { %236 = vmatpush1.bf16.msra.mxu1 %v3196_v21  ;;  %v3287_v21 = vld [vmem:[#allocation7 + $0x40] ss:$8 sps:$4 sm:$0xff]   ;;  %v3292_v22 = vld [vmem:[#allocation7 + $0x154] ss:$8 sps:$4 sm:$0xff]   ;;  %v3290_v23 = vld [vmem:[#allocation7 + $0x150] ss:$8 sps:$4 sm:$0xff]  }
  0x65   :  { %237 = vmatprep.subr.bf16.mxu1 %v3197_v24  ;;  %v3295_v24 = vld [vmem:[#allocation7 + $0x34] ss:$8 sps:$4 sm:$0xff]   ;;  %v3298_v26 = vld [vmem:[#allocation7 + $0x144] ss:$8 sps:$4 sm:$0xff]   ;;  %v3299_v28 = vld [vmem:[#allocation7 + $0x20] ss:$8 sps:$4 sm:$0xff]  }
  0x66   :  { %495 = vmatpush1.bf16.msra.mxu0 %v3238_v35  ;;  %v3301_v27 = vld [vmem:[#allocation7 + $0x24] ss:$8 sps:$4 sm:$0xff]   ;;  %v3305_v32 = vld [vmem:[#allocation7 + $0x10] ss:$8 sps:$4 sm:$0xff]  }
  0x67   :  { %496 = vmatprep.subr.bf16.mxu0 %v3242_v37  ;;  %v3302_v33 = vld [vmem:[#allocation7 + $0x130] ss:$8 sps:$4 sm:$0xff]   ;;  %v3313_v35 = vld [vmem:[#allocation7 + $0x4] ss:$8 sps:$4 sm:$0xff]   ;;  %v3308_v37 = vld [vmem:[#allocation7 + $0x120] ss:$8 sps:$4 sm:$0xff]  }
  0x68   :  { %238 = vmatpush1.bf16.msra.mxu1 %v3201_v25  ;;  %v3293_v25 = vld [vmem:[#allocation7 + $0x30] ss:$8 sps:$4 sm:$0xff]   ;;  %v3346_v59 = vld [vmem:[#allocation7 + $0x1c4] ss:$8 sps:$4 sm:$0xff]  }
  0x69   :  { %344 = vmatprep.subr.bf16.mxu1 %v3205_v29  ;;  %v3296_v29 = vld [vmem:[#allocation7 + $0x140] ss:$8 sps:$4 sm:$0xff]   ;;  %v3317_v40 = vld [vmem:[#allocation7 + $0xf0] ss:$8 sps:$4 sm:$0xff]  }
  0x6a   :  { %497 = vmatpush1.bf16.msra.mxu0 %v3244_v39  ;;  %v3316_v39 = vld [vmem:[#allocation7 + $0x114] ss:$8 sps:$4 sm:$0xff]  }
  0x6b   :  { %256 = vmatmul.mubr.bf16.vlgmr.msra.gmra.mxu1 %v126_v30  ;;  %919 = vmatprep.subr.bf16.mxu0 %v3271_v46  ;;  %v3307_v30 = vld [vmem:[#allocation7 + $0x14] ss:$8 sps:$4 sm:$0xff]  }
  0x6c   :  { %345 = vmatpush1.bf16.msra.mxu1 %v3203_v31  ;;  %376 = vmatprep.mubr.bf16.mxu1 %v3775_v0  ;;  %v3304_v31 = vld [vmem:[#allocation7 + $0x134] ss:$8 sps:$4 sm:$0xff]  }
  0x6d   :  { %346 = vmatprep.subr.bf16.mxu1 %v3211_v34  ;;  %515 = vmatmul.mubr.bf16.vlgmr.msra.gmra.mxu0 %v385_v43  ;;  %v3310_v34 = vld [vmem:[#allocation7 + $0x124] ss:$8 sps:$4 sm:$0xff]   ;;  %v3331_v46 = vld [vmem:[#allocation7 + $0xd4] ss:$8 sps:$4 sm:$0xff]  }
  0x6e   :  { %920 = vmatpush1.bf16.msra.mxu0 %v3269_v45  ;;  %v3322_v43 = vld [vmem:[#allocation7 + $0x104] ss:$8 sps:$4 sm:$0xff]   ;;  %v3320_v45 = vld [vmem:[#allocation7 + $0x100] ss:$8 sps:$4 sm:$0xff]   ;;  %v3623_v14 = vld [vmem:[#allocation3 + $0xf4] ss:$8 sps:$4 sm:$0xff]  }
  0x6f   :  { %921 = vmatprep.subr.bf16.mxu0 %v3277_v49  ;;  %v3326_v49 = vld [vmem:[#allocation7 + $0x1f0] ss:$8 sps:$4 sm:$0xff]  }
  0x70   :  { %347 = vmatpush1.bf16.msra.mxu1 %v3209_v36  ;;  %v3311_v36 = vld [vmem:[#allocation7] ss:$8 sps:$4 sm:$0xff]  }
  0x71   :  { %348 = vmatprep.subr.bf16.mxu1 %v3217_v38  ;;  %v3319_v38 = vld [vmem:[#allocation7 + $0xf4] ss:$8 sps:$4 sm:$0xff]  }
  0x72   :  { %922 = vmatpush1.bf16.msra.mxu0 %v3275_v48  ;;  %v3329_v48 = vld [vmem:[#allocation7 + $0xd0] ss:$8 sps:$4 sm:$0xff]  }
  0x73   :  { %923 = vmatprep.subr.bf16.mxu0 %v3283_v54  ;;  %v3340_v54 = vld [vmem:[#allocation7 + $0x1d4] ss:$8 sps:$4 sm:$0xff]  }
  0x74   :  { %349 = vmatpush1.bf16.msra.mxu1 %v3215_v41  ;;  %v3314_v41 = vld [vmem:[#allocation7 + $0x110] ss:$8 sps:$4 sm:$0xff]  }
  0x75   :  { %350 = vmatprep.subr.bf16.mxu1 %v3223_v42  ;;  %v3325_v42 = vld [vmem:[#allocation7 + $0xe4] ss:$8 sps:$4 sm:$0xff]  }
  0x76   :  { %924 = vmatpush1.bf16.msra.mxu0 %v3281_v52  ;;  %v3337_v52 = vld [vmem:[#allocation7 + $0xc4] ss:$8 sps:$4 sm:$0xff]  }
  0x77   :  { %925 = vmatprep.subr.bf16.mxu0 %v3289_v20 }
  0x78   :  { %351 = vmatpush1.bf16.msra.mxu1 %v3221_v44  ;;  %v3323_v44 = vld [vmem:[#allocation7 + $0xe0] ss:$8 sps:$4 sm:$0xff]  }
  0x79   :  { %352 = vmatprep.subr.bf16.mxu1 %v3229_v47  ;;  %v3328_v47 = vld [vmem:[#allocation7 + $0x1f4] ss:$8 sps:$4 sm:$0xff]  }
  0x7a   :  { %926 = vmatpush1.bf16.msra.mxu0 %v3287_v21 }
  0x7b   :  { %927 = vmatprep.subr.bf16.mxu0 %v3295_v24 }
  0x7c   :  { %353 = vmatpush1.bf16.msra.mxu1 %v3227_v50  ;;  %v3334_v50 = vld [vmem:[#allocation7 + $0x1e4] ss:$8 sps:$4 sm:$0xff]  }
  0x7d   :  { %354 = vmatprep.subr.bf16.mxu1 %v3235_v51  ;;  %v3332_v51 = vld [vmem:[#allocation7 + $0x1e0] ss:$8 sps:$4 sm:$0xff]  }
  0x7e   :  { %928 = vmatpush1.bf16.msra.mxu0 %v3293_v25  ;;  %v525_v25 = vld [vmem:[#allocation5] sm:$0x3] }
  0x7f   :  { %929 = vmatprep.subr.bf16.mxu0 %v3301_v27 }
  0x80   :  { %355 = vmatpush1.bf16.msra.mxu1 %v3233_v53  ;;  %v3335_v53 = vld [vmem:[#allocation7 + $0xc0] ss:$8 sps:$4 sm:$0xff]  }
  0x81   :  { %356 = vmatprep.subr.bf16.mxu1 %v3241_v55  ;;  %v3338_v55 = vld [vmem:[#allocation7 + $0x1d0] ss:$8 sps:$4 sm:$0xff]  }
  0x82   :  { %930 = vmatpush1.bf16.msra.mxu0 %v3299_v28 }
  0x83   :  { %931 = vmatprep.subr.bf16.mxu0 %v3307_v30 }
  0x84   :  { %357 = vmatpush1.bf16.msra.mxu1 %v3239_v56  ;;  %v527_v56 = vlaneseq }
  0x85   :  { %358 = vmatprep.subr.bf16.mxu1 %v3247_v57  ;;  %v3343_v57 = vld [vmem:[#allocation7 + $0xb4] ss:$8 sps:$4 sm:$0xff]  }
  0x86   :  { %932 = vmatpush1.bf16.msra.mxu0 %v3305_v32  ;;  %vm543_vm0 = vcmp.lt.s32.totalorder %v527_v56, 256 }
  0x87   :  { %933 = vmatprep.subr.bf16.mxu0 %v3313_v35 }
  0x88   :  { %359 = vmatpush1.bf16.msra.mxu1 %v3245_v58  ;;  %v3341_v58 = vld [vmem:[#allocation7 + $0xb0] ss:$8 sps:$4 sm:$0xff]  }
  0x89   :  { %668 = vmatprep.subr.bf16.mxu1 %v3250_v60  ;;  %v3776_v60 = vmov 0.0  }
  0x8a   :  { %934 = vmatpush1.bf16.msra.mxu0 %v3311_v36  ;;  %545 = vst.msk [vmem:[#allocation2] ss:$8 sm:$0x3] %vm543_vm0, %v3776_v60  ;;  %548 = vst.msk [vmem:[#allocation2 + $0x5] ss:$8 sm:$0x3] %vm543_vm0, %v3776_v60 }
  0x8b   :  { %377 = vmatmul.mubr.bf16.vlgmr.msra.gmra.mxu1 %v109_v62  ;;  %935 = vmatprep.subr.bf16.mxu0 %v3319_v38  ;;  %1907 = vst.msk [vmem:[#allocation2 + $0x10] ss:$8 sm:$0x3] %vm543_vm0, %v3776_v60  ;;  %1910 = vst.msk [vmem:[#allocation2 + $0x15] ss:$8 sm:$0x3] %vm543_vm0, %v3776_v60 }
  0x8c   :  { %669 = vmatpush1.bf16.msra.mxu1 %v3248_v61  ;;  %700 = vmatprep.mubr.bf16.mxu1 %v3775_v0  ;;  %v3344_v61 = vld [vmem:[#allocation7 + $0x1c0] ss:$8 sps:$4 sm:$0xff]   ;;  %v3349_v62 = vld [vmem:[#allocation7 + $0xa4] ss:$8 sps:$4 sm:$0xff]  }
  0x8d   :  { %670 = vmatprep.subr.bf16.mxu1 %v3253_v63  ;;  %v3347_v63 = vld [vmem:[#allocation7 + $0xa0] ss:$8 sps:$4 sm:$0xff]  }
  0x8e   :  { %936 = vmatpush2.bf16.msra.mxu0 %v3317_v40 }
  0x8f   :  { %937 = vmatprep.subr.bf16.mxu0 %v3325_v42 }
  0x90   :  { %671 = vmatpush1.bf16.msra.mxu1 %v3251_v1  ;;  %v3352_v1 = vld [vmem:[#allocation7 + $0x1b4] ss:$8 sps:$4 sm:$0xff]  }
  0x91   :  { %672 = vmatprep.subr.bf16.mxu1 %v3256_v2  ;;  %v3350_v2 = vld [vmem:[#allocation7 + $0x1b0] ss:$8 sps:$4 sm:$0xff]  }
  0x92   :  { %938 = vmatpush2.bf16.msra.mxu0 %v3323_v44 }
  0x93   :  { %939 = vmatprep.subr.bf16.mxu0 %v3331_v46 }
  0x94   :  { %673 = vmatpush1.bf16.msra.mxu1 %v3254_v3  ;;  %v3353_v3 = vld [vmem:[#allocation7 + $0x90] ss:$8 sps:$4 sm:$0xff]  }
  0x95   :  { %674 = vmatprep.subr.bf16.mxu1 %v3259_v4  ;;  %v3355_v4 = vld [vmem:[#allocation7 + $0x94] ss:$8 sps:$4 sm:$0xff]  }
  0x96   :  { %940 = vmatpush2.bf16.msra.mxu0 %v3329_v48 }
  0x97   :  { %941 = vmatprep.subr.bf16.mxu0 %v3337_v52 }
  0x98   :  { %675 = vmatpush1.bf16.msra.mxu1 %v3257_v5  ;;  %v3358_v5 = vld [vmem:[#allocation7 + $0x1a4] ss:$8 sps:$4 sm:$0xff]  }
  0x99   :  { %676 = vmatprep.subr.bf16.mxu1 %v3262_v6  ;;  %v3361_v6 = vld [vmem:[#allocation7 + $0x84] ss:$8 sps:$4 sm:$0xff]  }
  0x9a   :  { %942 = vmatpush2.bf16.msra.mxu0 %v3335_v53 }
  0x9b   :  { %943 = vmatprep.subr.bf16.mxu0 %v3343_v57 }
  0x9c   :  { %677 = vmatpush1.bf16.msra.mxu1 %v3260_v7  ;;  %v3359_v7 = vld [vmem:[#allocation7 + $0x80] ss:$8 sps:$4 sm:$0xff]  }
  0x9d   :  { %678 = vmatprep.subr.bf16.mxu1 %v3265_v8  ;;  %v3356_v8 = vld [vmem:[#allocation7 + $0x1a0] ss:$8 sps:$4 sm:$0xff]  }
  0x9e   :  { %944 = vmatpush2.bf16.msra.mxu0 %v3341_v58 }
  0x9f   :  { %945 = vmatprep.subr.bf16.mxu0 %v3349_v62 }
  0xa0   :  { %679 = vmatpush1.bf16.msra.mxu1 %v3263_v9  ;;  %v3364_v9 = vld [vmem:[#allocation7 + $0x194] ss:$8 sps:$4 sm:$0xff]  }
  0xa1   :  { %680 = vmatprep.subr.bf16.mxu1 %v3268_v10  ;;  %v3362_v10 = vld [vmem:[#allocation7 + $0x190] ss:$8 sps:$4 sm:$0xff]  }
  0xa2   :  { %946 = vmatpush2.bf16.msra.mxu0 %v3347_v63  ;;  %v3376_v63 = vld [vmem:[#allocation7 + $0x254] ss:$8 sps:$4 sm:$0xff]  }
  0xa3   :  { %947 = vmatprep.subr.bf16.mxu0 %v3355_v4  ;;  %v3379_v4 = vld [vmem:[#allocation7 + $0x244] ss:$8 sps:$4 sm:$0xff]  }
  0xa4   :  { %681 = vmatpush1.bf16.msra.mxu1 %v3266_v11  ;;  %v3367_v11 = vld [vmem:[#allocation7 + $0x274] ss:$8 sps:$4 sm:$0xff]  }
  0xa5   :  { %682 = vmatprep.subr.bf16.mxu1 %v3274_v12  ;;  %v3370_v12 = vld [vmem:[#allocation7 + $0x184] ss:$8 sps:$4 sm:$0xff]  }
  0xa6   :  { %948 = vmatpush2.bf16.msra.mxu0 %v3353_v3  ;;  %v3374_v3 = vld [vmem:[#allocation7 + $0x250] ss:$8 sps:$4 sm:$0xff]  }
  0xa7   :  { %949 = vmatprep.subr.bf16.mxu0 %v3361_v6  ;;  %v3625_v6 = vld [vmem:[#allocation3 + $0xe4] ss:$8 sps:$4 sm:$0xff]  }
  0xa8   :  { %683 = vmatpush1.bf16.msra.mxu1 %v3272_v13  ;;  %v3368_v13 = vld [vmem:[#allocation7 + $0x180] ss:$8 sps:$4 sm:$0xff]  }
  0xa9   :  { %1174 = vmatprep.subr.bf16.mxu1 %v3280_v15 }
  0xaa   :  { %950 = vmatpush2.bf16.msra.mxu0 %v3359_v7 }
  0xab   :  { %701 = vmatmul.mubr.bf16.vlgmr.msra.gmra.mxu1 %v559_v17  ;;  %1419 = vmatprep.subr.bf16.mxu0 %v3367_v11  ;;  %v3626_v11 = vld [vmem:[#allocation3 + $0xe0] ss:$8 sps:$4 sm:$0xff]  }
  0xac   :  { %1175 = vmatpush1.bf16.msra.mxu1 %v3278_v16 }
  0xad   :  { %1176 = vmatprep.subr.bf16.mxu1 %v3286_v18 }
  0xb0   :  { %1177 = vmatpush1.bf16.msra.mxu1 %v3284_v19 }
  0xb1   :  { %1178 = vmatprep.subr.bf16.mxu1 %v3292_v22 }
  0xb4   :  { %1179 = vmatpush1.bf16.msra.mxu1 %v3290_v23  ;;  %v528_v23 = vshrl.u32 %v527_v56, 7 }
  0xb5   :  { %1180 = vmatprep.subr.bf16.mxu1 %v3298_v26 }
  0xb6   :  { %v3856_v24 = vsub.s32 0, %v528_v23  ;;  %v3858_v26 = vsub.s32 1, %v528_v23  ;;  %v3386_v23 = vld [vmem:[#allocation7 + $0x210] ss:$8 sps:$4 sm:$0xff]  }
  0xb8   :  { %1181 = vmatpush1.bf16.msra.mxu1 %v3296_v29  ;;  %v530_v29 = vrot.slane %v525_v25, %v3856_v24 }
  0xb9   :  { %1182 = vmatprep.subr.bf16.mxu1 %v3304_v31 }
  0xbc   :  { %1183 = vmatpush1.bf16.msra.mxu1 %v3302_v33  ;;  %v534_v33 = vrot.slane %v525_v25, %v3858_v26  ;;  %v3391_v25 = vld [vmem:[#allocation7 + $0x204] ss:$8 sps:$4 sm:$0xff]  }
  0xbd   :  { %1184 = vmatprep.subr.bf16.mxu1 %v3310_v34 }
  0xc0   :  { %1185 = vmatpush1.bf16.msra.mxu1 %v3308_v37 }
  0xc1   :  { %1186 = vmatprep.subr.bf16.mxu1 %v3316_v39 }
  0xc4   :  { %1187 = vmatpush1.bf16.msra.mxu1 %v3314_v41 }
  0xc5   :  { %1188 = vmatprep.subr.bf16.mxu1 %v3322_v43 }
  0xc8   :  { %1189 = vmatpush1.bf16.msra.mxu1 %v3320_v45 }
  0xc9   :  { %1190 = vmatprep.subr.bf16.mxu1 %v3328_v47 }
  0xcc   :  { %1191 = vmatpush2.bf16.msra.mxu1 %v3326_v49 }
  0xcd   :  { %1192 = vmatprep.subr.bf16.mxu1 %v3334_v50  ;;  %v3365_v50 = vld [vmem:[#allocation7 + $0x270] ss:$8 sps:$4 sm:$0xff]  }
  0xd0   :  { %1193 = vmatpush2.bf16.msra.mxu1 %v3332_v51 }
  0xd1   :  { %1194 = vmatprep.subr.bf16.mxu1 %v3340_v54  ;;  %v3373_v54 = vld [vmem:[#allocation7 + $0x264] ss:$8 sps:$4 sm:$0xff]  }
  0xd4   :  { %1195 = vmatpush2.bf16.msra.mxu1 %v3338_v55 }
  0xd5   :  { %1196 = vmatprep.subr.bf16.mxu1 %v3346_v59  ;;  %v3371_v59 = vld [vmem:[#allocation7 + $0x260] ss:$8 sps:$4 sm:$0xff]  }
  0xd8   :  { %1197 = vmatpush2.bf16.msra.mxu1 %v3344_v61 }
  0xd9   :  { %1198 = vmatprep.subr.bf16.mxu1 %v3352_v1 }
  0xdc   :  { %1199 = vmatpush2.bf16.msra.mxu1 %v3350_v2 }
  0xdd   :  { %1200 = vmatprep.subr.bf16.mxu1 %v3358_v5  ;;  %v3624_v5 = vld [vmem:[#allocation3 + $0xf0] ss:$8 sps:$4 sm:$0xff]  }
  0xe0   :  { %1201 = vmatpush2.bf16.msra.mxu1 %v3356_v8  ;;  %v3377_v8 = vld [vmem:[#allocation7 + $0x240] ss:$8 sps:$4 sm:$0xff]  }
  0xe1   :  { %1202 = vmatprep.subr.bf16.mxu1 %v3364_v9  ;;  %v3382_v9 = vld [vmem:[#allocation7 + $0x234] ss:$8 sps:$4 sm:$0xff]  }
  0xe4   :  { %1203 = vmatpush2.bf16.msra.mxu1 %v3362_v10 }
  0xe5   :  { %1204 = vmatprep.subr.bf16.mxu1 %v3370_v12  ;;  %v3627_v12 = vld [vmem:[#allocation3 + $0xd4] ss:$8 sps:$4 sm:$0xff]  }
  0xe8   :  { %1205 = vmatpush2.bf16.msra.mxu1 %v3368_v13 }
  0xe9   :  { %1588 = vmatprep.subr.bf16.mxu1 %v3623_v14  ;;  %v3380_v14 = vld [vmem:[#allocation7 + $0x230] ss:$8 sps:$4 sm:$0xff]  }
 0x12b   :  { %v257_v15 = vpop.f32.mrf.mxu1 }
 0x12d   :  { %v259_v16 = vpop.f32.mrf.mxu1  ;;  %v516_v19 = vpop.f32.mrf.mxu0 }
 0x12f   :  { %v261_v17 = vpop.f32.mrf.mxu1  ;;  %v518_v20 = vpop.f32.mrf.mxu0 }
 0x130   :  { %v3628_v17 = vld [vmem:[#allocation3 + $0xd0] ss:$8 sps:$4 sm:$0xff]  }
 0x131   :  { %v262_v18 = vpop.f32.mrf.mxu1  ;;  %v520_v21 = vpop.f32.mrf.mxu0 }
 0x132   :  { %v3629_v18 = vld [vmem:[#allocation3 + $0xc4] ss:$8 sps:$4 sm:$0xff]   ;;  %v3630_v21 = vld [vmem:[#allocation3 + $0xc0] ss:$8 sps:$4 sm:$0xff]  }
 0x133   :  { %v521_v22 = vpop.f32.mrf.mxu0 }
 0x134   :  { %v3631_v22 = vld [vmem:[#allocation3 + $0xb4] ss:$8 sps:$4 sm:$0xff]  }
 0x14b   :  { %v378_v27 = vpop.f32.mrf.mxu1 }
 0x14c   :  { %v379_v28 = vadd.f32 %v378_v27, %v257_v15  ;;  %v3385_v15 = vld [vmem:[#allocation7 + $0x224] ss:$8 sps:$4 sm:$0xff]  }
 0x14d   :  { %v380_v30 = vpop.f32.mrf.mxu1  ;;  %v3632_v27 = vld [vmem:[#allocation3 + $0xb0] ss:$8 sps:$4 sm:$0xff]  }
 0x14e   :  { %v523_v31 = vadd.f32 %v516_v19, %v379_v28  ;;  %v381_v32 = vadd.f32 %v380_v30, %v259_v16  ;;  %v3383_v19 = vld [vmem:[#allocation7 + $0x220] ss:$8 sps:$4 sm:$0xff]   ;;  %v3394_v30 = vld [vmem:[#allocation7 + $0x2f4] ss:$8 sps:$4 sm:$0xff]  }
 0x14f   :  { %v382_v34 = vpop.f32.mrf.mxu1  ;;  %v3633_v28 = vld [vmem:[#allocation3 + $0xa4] ss:$8 sps:$4 sm:$0xff]  }
 0x150   :  { %v537_v35 = vadd.f32 %v530_v29, %v523_v31  ;;  %v524_v36 = vadd.f32 %v518_v20, %v381_v32  ;;  %v3388_v20 = vld [vmem:[#allocation7 + $0x214] ss:$8 sps:$4 sm:$0xff]   ;;  %v3389_v29 = vld [vmem:[#allocation7 + $0x200] ss:$8 sps:$4 sm:$0xff]   ;;  %v3392_v34 = vld [vmem:[#allocation7 + $0x2f0] ss:$8 sps:$4 sm:$0xff]  }
 0x151   :  { %v383_v37 = vpop.f32.mrf.mxu1  ;;  %v3634_v31 = vld [vmem:[#allocation3 + $0xa0] ss:$8 sps:$4 sm:$0xff]   ;;  %v3635_v32 = vld [vmem:[#allocation3 + $0x94] ss:$8 sps:$4 sm:$0xff]  }
 0x152   :  { %v539_v38 = vmax.f32 %v537_v35, 0.0  ;;  %v538_v39 = vadd.f32 %v534_v33, %v524_v36  ;;  %v3397_v33 = vld [vmem:[#allocation3 + $0x84] ss:$8 sps:$4 sm:$0xff]   ;;  %v3636_v36 = vld [vmem:[#allocation3 + $0x90] ss:$8 sps:$4 sm:$0xff]  }
 0x153   :  { %v3400_v35 = vld [vmem:[#allocation7 + $0x2e4] ss:$8 sps:$4 sm:$0xff]  }
 0x154   :  { %v552_v40 = vrot.slane %v539_v38, 7  ;;  %v540_v41 = vmax.f32 %v538_v39, 0.0  ;;  %v3395_v37 = vld [vmem:[#allocation3 + $0x80] ss:$8 sps:$4 sm:$0xff]   ;;  %v3002_v38 = vld [vmem:[%s3931_s1 + $0x4] sm:$0xf] }
 0x155   :  { %v3398_v39 = vld [vmem:[#allocation7 + $0x2e0] ss:$8 sps:$4 sm:$0xff]  }
 0x156   :  { %556 = vst [vmem:[#allocation2] sm:$0x1e] %v552_v40  ;;  %v553_v42 = vrot.slane %v540_v41, 7  ;;  %v1491_v40 = vpack.c.bf16 %v3002_v38, %v3002_v38  ;;  %v3403_v41 = vld [vmem:[#allocation7 + $0x2d4] ss:$8 sps:$4 sm:$0xff]  }
 0x157   :  { %v3461_v38 = vld [vmem:[#allocation3 + $0x100] ss:$8 sps:$4 sm:$0xff]  }
 0x158   :  { %557 = vst [vmem:[#allocation2 + $0x8] sm:$0x1e] %v553_v42  ;;  %v3637_v42 = vld [vmem:[#allocation3 + $0x74] ss:$8 sps:$4 sm:$0xff]  }
 0x15d   :  { %v962_v43 = vld [vmem:[#allocation2] sm:$0x1e] }
 0x15e   :  { %v723_v44 = vld [vmem:[#allocation2] sm:$0xf]  ;;  %v964_v45 = vpack.c.bf16 %v962_v43, %v962_v43  ;;  %v3406_v43 = vld [vmem:[#allocation3 + $0x64] ss:$8 sps:$4 sm:$0xff]  }
 0x15f   :  { %v724_v46 = vld [vmem:[#allocation2 + $0x8] sm:$0xf]  ;;  %v725_v53 = vpack.c.bf16 %v723_v44, %v723_v44  ;;  %v3401_v44 = vld [vmem:[#allocation7 + $0x2d0] ss:$8 sps:$4 sm:$0xff]  }
 0x160   :  { %v1218_v47 = vld [vmem:[#allocation2 + $0x8] sm:$0x3c]  ;;  %v726_v49 = vpack.c.bf16 %v724_v46, %v724_v46  ;;  %v1001_v55 = vshll.u32 %v964_v45, 16  ;;  %v999_v62 = vshrl.u32 %v964_v45, 16  ;;  %v3409_v45 = vld [vmem:[#allocation7 + $0x2c4] ss:$8 sps:$4 sm:$0xff]  }
 0x161   :  { %v963_v48 = vld [vmem:[#allocation2 + $0x8] sm:$0x1e]  ;;  %v1220_v51 = vpack.c.bf16 %v1218_v47, %v1218_v47  ;;  %v3638_v46 = vld [vmem:[#allocation3 + $0x70] ss:$8 sps:$4 sm:$0xff]  }
 0x162   :  { %v965_v52 = vpack.c.bf16 %v963_v48, %v963_v48  ;;  %951 = vmatprep.mubr.bf16.mxu0 %v726_v49  ;;  %v1003_v58 = vrot.slane %v1001_v55, 1  ;;  %v3404_v47 = vld [vmem:[#allocation3 + $0x60] ss:$8 sps:$4 sm:$0xff]   ;;  %v3412_v48 = vld [vmem:[#allocation3 + $0x54] ss:$8 sps:$4 sm:$0xff]  }
 0x163   :  { %v1256_v56 = vrot.slane %v1220_v51, 1  ;;  %952 = vmatmul.mubr.bf16.vlgmr.msra.gmra.mxu0 %v725_v53  ;;  %v3407_v49 = vld [vmem:[#allocation7 + $0x2c0] ss:$8 sps:$4 sm:$0xff]   ;;  %v3410_v51 = vld [vmem:[#allocation3 + $0x50] ss:$8 sps:$4 sm:$0xff]  }
 0x164   :  { %v1008_v57 = vshll.u32 %v965_v52, 16  ;;  %1420 = vmatpush1.bf16.msra.mxu0 %v3365_v50  ;;  %v1006_v60 = vshrl.u32 %v965_v52, 16  ;;  %v1004_v2 = vor.u32 %v1003_v58, %v999_v62  ;;  %v3415_v50 = vld [vmem:[#allocation7 + $0x2b4] ss:$8 sps:$4 sm:$0xff]   ;;  %v3418_v52 = vld [vmem:[#allocation3 + $0x44] ss:$8 sps:$4 sm:$0xff]  }
 0x165   :  { %1451 = vmatprep.mubr.bf16.mxu0 %v1256_v56  ;;  %1421 = vmatprep.subr.bf16.mxu0 %v3373_v54  ;;  %v3413_v53 = vld [vmem:[#allocation7 + $0x2b0] ss:$8 sps:$4 sm:$0xff]   ;;  %v3871_v54 = vld [vmem:[#allocation7 + $0x2a4] ss:$8 sps:$4 sm:$0xff]   ;;  %v3876_v58 = vld [vmem:[#allocation7 + $0x294] ss:$8 sps:$4 sm:$0xff]  }
 0x166   :  { %v1010_v61 = vrot.slane %v1008_v57, 1  ;;  %v3416_v55 = vld [vmem:[#allocation3 + $0x40] ss:$8 sps:$4 sm:$0xff]   ;;  %v3424_v56 = vld [vmem:[#allocation3 + $0x34] ss:$8 sps:$4 sm:$0xff]  }
 0x167   :  { %v3873_v57 = vld [vmem:[#allocation7 + $0x2a0] ss:$8 sps:$4 sm:$0xff]   ;;  %v3882_v62 = vld [vmem:[#allocation7 + $0x284] ss:$8 sps:$4 sm:$0xff]  }
 0x168   :  { %v1011_v1 = vor.u32 %v1010_v61, %v1006_v60  ;;  %1422 = vmatpush1.bf16.msra.mxu0 %v3371_v59  ;;  %v3422_v59 = vld [vmem:[#allocation3 + $0x30] ss:$8 sps:$4 sm:$0xff]   ;;  %v3430_v60 = vld [vmem:[#allocation3 + $0x24] ss:$8 sps:$4 sm:$0xff]  }
 0x169   :  { %1423 = vmatprep.subr.bf16.mxu0 %v3376_v63  ;;  %v3879_v61 = vld [vmem:[#allocation7 + $0x290] ss:$8 sps:$4 sm:$0xff]   ;;  %v3428_v63 = vld [vmem:[#allocation3 + $0x20] ss:$8 sps:$4 sm:$0xff]  }
 0x16a   :  { %1206 = vmatprep.mubr.bf16.mxu1 %v1011_v1  ;;  %v1217_v1 = vld [vmem:[#allocation2] sm:$0x3c] }
 0x16b   :  { %1207 = vmatmul.mubr.bf16.vlgmr.msra.gmra.mxu1 %v1004_v2  ;;  %v3863_v7 = vpop.f32.mrf.mxu1  ;;  %v3436_v2 = vld [vmem:[#allocation3 + $0x14] ss:$8 sps:$4 sm:$0xff]  }
 0x16c   :  { %1589 = vmatpush1.bf16.msra.mxu1 %v3624_v5  ;;  %1620 = vmatprep.mubr.bf16.mxu1 %v3775_v0  ;;  %v3439_v5 = vld [vmem:[#allocation3 + $0x174] ss:$8 sps:$4 sm:$0xff]  }
 0x16d   :  { %1590 = vmatprep.subr.bf16.mxu1 %v3625_v6  ;;  %1424 = vmatpush1.bf16.msra.mxu0 %v3374_v3  ;;  %v3865_v10 = vpop.f32.mrf.mxu1  ;;  %v3885_v3 = vld [vmem:[#allocation7 + $0x280] ss:$8 sps:$4 sm:$0xff]   ;;  %v3434_v6 = vld [vmem:[#allocation3 + $0x10] ss:$8 sps:$4 sm:$0xff]  }
 0x16e   :  { %1425 = vmatprep.subr.bf16.mxu0 %v3379_v4  ;;  %v1219_v4 = vpack.c.bf16 %v1217_v1, %v1217_v1  ;;  %v3500_v1 = vld [vmem:[#allocation7 + $0x160] ss:$8 sps:$4 sm:$0xff]  }
 0x16f   :  { %v706_v13 = vpop.f32.mrf.mxu1 }
 0x170   :  { %1591 = vmatpush1.bf16.msra.mxu1 %v3626_v11  ;;  %v1255_v11 = vrot.slane %v1219_v4, 1  ;;  %v3440_v13 = vld [vmem:[#allocation3] ss:$8 sps:$4 sm:$0xff]  }
 0x171   :  { %1592 = vmatprep.subr.bf16.mxu1 %v3627_v12  ;;  %1426 = vmatpush1.bf16.msra.mxu0 %v3377_v8  ;;  %v707_v16 = vpop.f32.mrf.mxu1  ;;  %v3442_v8 = vld [vmem:[#allocation3 + $0x4] ss:$8 sps:$4 sm:$0xff]  }
 0x172   :  { %1427 = vmatprep.subr.bf16.mxu0 %v3382_v9  ;;  %v3437_v9 = vld [vmem:[#allocation3 + $0x170] ss:$8 sps:$4 sm:$0xff]   ;;  %v3445_v12 = vld [vmem:[#allocation3 + $0x164] ss:$8 sps:$4 sm:$0xff]  }
 0x173   :  { %v3503_v4 = vld [vmem:[#allocation7 + $0x40] ss:$8 sps:$4 sm:$0xff]  }
 0x174   :  { %1593 = vmatpush1.bf16.msra.mxu1 %v3628_v17  ;;  %v3448_v17 = vld [vmem:[#allocation3 + $0x154] ss:$8 sps:$4 sm:$0xff]  }
 0x175   :  { %1594 = vmatprep.subr.bf16.mxu1 %v3629_v18  ;;  %1428 = vmatpush1.bf16.msra.mxu0 %v3380_v14  ;;  %v3001_v14 = vld [vmem:[%s3930_s0 + $0x8] sm:$0xf]  ;;  %v3446_v18 = vld [vmem:[#allocation3 + $0x150] ss:$8 sps:$4 sm:$0xff]  }
 0x176   :  { %1429 = vmatprep.subr.bf16.mxu0 %v3385_v15  ;;  %v3443_v15 = vld [vmem:[#allocation3 + $0x160] ss:$8 sps:$4 sm:$0xff]   ;;  %v1474_v16 = vpack.c.bf16 %v3001_v14, %v3001_v14 }
 0x177   :  { %v3515_v14 = vld [vmem:[#allocation7 + $0x20] ss:$8 sps:$4 sm:$0xff]  }
 0x178   :  { %1595 = vmatpush1.bf16.msra.mxu1 %v3630_v21  ;;  %v3454_v21 = vld [vmem:[#allocation3 + $0x134] ss:$8 sps:$4 sm:$0xff]  }
 0x179   :  { %1596 = vmatprep.subr.bf16.mxu1 %v3631_v22  ;;  %1430 = vmatpush1.bf16.msra.mxu0 %v3383_v19  ;;  %v3451_v19 = vld [vmem:[#allocation3 + $0x144] ss:$8 sps:$4 sm:$0xff]   ;;  %v3464_v22 = vld [vmem:[#allocation10 + $0x70] ss:$8 sps:$4 sm:$0xff]  }
 0x17a   :  { %1431 = vmatprep.subr.bf16.mxu0 %v3388_v20  ;;  %v3449_v20 = vld [vmem:[#allocation3 + $0x140] ss:$8 sps:$4 sm:$0xff]  }
 0x17c   :  { %1597 = vmatpush1.bf16.msra.mxu1 %v3632_v27  ;;  %v3469_v27 = vld [vmem:[#allocation10 + $0x64] ss:$8 sps:$4 sm:$0xff]  }
 0x17d   :  { %1598 = vmatprep.subr.bf16.mxu1 %v3633_v28  ;;  %1432 = vmatpush1.bf16.msra.mxu0 %v3386_v23  ;;  %v3466_v23 = vld [vmem:[#allocation10 + $0x74] ss:$8 sps:$4 sm:$0xff]   ;;  %v3457_v28 = vld [vmem:[#allocation3 + $0x124] ss:$8 sps:$4 sm:$0xff]  }
 0x17e   :  { %1433 = vmatprep.subr.bf16.mxu0 %v3391_v25  ;;  %v3452_v25 = vld [vmem:[#allocation3 + $0x130] ss:$8 sps:$4 sm:$0xff]  }
 0x180   :  { %1599 = vmatpush1.bf16.msra.mxu1 %v3634_v31  ;;  %v3455_v31 = vld [vmem:[#allocation3 + $0x120] ss:$8 sps:$4 sm:$0xff]  }
 0x181   :  { %1600 = vmatprep.subr.bf16.mxu1 %v3635_v32  ;;  %1434 = vmatpush1.bf16.msra.mxu0 %v3389_v29  ;;  %v3467_v29 = vld [vmem:[#allocation10 + $0x60] ss:$8 sps:$4 sm:$0xff]   ;;  %v3470_v32 = vld [vmem:[#allocation10 + $0x50] ss:$8 sps:$4 sm:$0xff]  }
 0x182   :  { %1435 = vmatprep.subr.bf16.mxu0 %v3394_v30  ;;  %v3472_v30 = vld [vmem:[#allocation10 + $0x54] ss:$8 sps:$4 sm:$0xff]  }
 0x184   :  { %1601 = vmatpush1.bf16.msra.mxu1 %v3636_v36  ;;  %v3473_v36 = vld [vmem:[#allocation10 + $0x40] ss:$8 sps:$4 sm:$0xff]  }
 0x185   :  { %1602 = vmatprep.subr.bf16.mxu1 %v3397_v33  ;;  %1436 = vmatpush2.bf16.msra.mxu0 %v3392_v34  ;;  %v3475_v33 = vld [vmem:[#allocation10 + $0x44] ss:$8 sps:$4 sm:$0xff]  }
 0x186   :  { %1437 = vmatprep.subr.bf16.mxu0 %v3400_v35  ;;  %v3458_v34 = vld [vmem:[#allocation3 + $0x110] ss:$8 sps:$4 sm:$0xff]   ;;  %v3463_v35 = vld [vmem:[#allocation3 + $0x104] ss:$8 sps:$4 sm:$0xff]  }
 0x188   :  { %1603 = vmatpush1.bf16.msra.mxu1 %v3395_v37  ;;  %v3478_v37 = vld [vmem:[#allocation10 + $0x34] ss:$8 sps:$4 sm:$0xff]  }
 0x189   :  { %1709 = vmatprep.subr.bf16.mxu1 %v3637_v42  ;;  %1438 = vmatpush2.bf16.msra.mxu0 %v3398_v39  ;;  %v3003_v39 = vld [vmem:[%s3930_s0 + $0x9] sm:$0xf] }
 0x18a   :  { %1439 = vmatprep.subr.bf16.mxu0 %v3403_v41  ;;  %v3476_v41 = vld [vmem:[#allocation10 + $0x30] ss:$8 sps:$4 sm:$0xff]   ;;  %v1750_v42 = vpack.c.bf16 %v3003_v39, %v3003_v39  ;;  %v3551_v39 = vld [vmem:[#allocation7 + $0xc0] ss:$8 sps:$4 sm:$0xff]  }
 0x18b   :  { %1621 = vmatmul.mubr.bf16.vlgmr.msra.gmra.mxu1 %v1491_v40  ;;  %v3487_v40 = vld [vmem:[#allocation7 + $0x74] ss:$8 sps:$4 sm:$0xff]  }
 0x18c   :  { %1710 = vmatpush1.bf16.msra.mxu1 %v3638_v46  ;;  %1741 = vmatprep.mubr.bf16.mxu1 %v3775_v0  ;;  %v3484_v46 = vld [vmem:[#allocation10 + $0x14] ss:$8 sps:$4 sm:$0xff]  }
 0x18d   :  { %1711 = vmatprep.subr.bf16.mxu1 %v3406_v43  ;;  %1440 = vmatpush2.bf16.msra.mxu0 %v3401_v44  ;;  %v3481_v43 = vld [vmem:[#allocation10 + $0x24] ss:$8 sps:$4 sm:$0xff]  }
 0x18e   :  { %1441 = vmatprep.subr.bf16.mxu0 %v3409_v45  ;;  %v3485_v44 = vld [vmem:[#allocation7 + $0x70] ss:$8 sps:$4 sm:$0xff]   ;;  %v3479_v45 = vld [vmem:[#allocation10 + $0x20] ss:$8 sps:$4 sm:$0xff]  }
 0x190   :  { %1712 = vmatpush1.bf16.msra.mxu1 %v3404_v47  ;;  %v3482_v47 = vld [vmem:[#allocation10 + $0x10] ss:$8 sps:$4 sm:$0xff]  }
 0x191   :  { %1713 = vmatprep.subr.bf16.mxu1 %v3412_v48  ;;  %1442 = vmatpush2.bf16.msra.mxu0 %v3407_v49  ;;  %v3490_v48 = vld [vmem:[#allocation10 + $0x4] ss:$8 sps:$4 sm:$0xff]  }
 0x192   :  { %1443 = vmatprep.subr.bf16.mxu0 %v3415_v50  ;;  %v3491_v49 = vld [vmem:[#allocation7 + $0x60] ss:$8 sps:$4 sm:$0xff]   ;;  %v3493_v50 = vld [vmem:[#allocation7 + $0x64] ss:$8 sps:$4 sm:$0xff]  }
 0x194   :  { %1714 = vmatpush1.bf16.msra.mxu1 %v3410_v51  ;;  %v3488_v51 = vld [vmem:[#allocation10] ss:$8 sps:$4 sm:$0xff]  }
 0x195   :  { %1715 = vmatprep.subr.bf16.mxu1 %v3418_v52  ;;  %1444 = vmatpush2.bf16.msra.mxu0 %v3413_v53  ;;  %v3496_v52 = vld [vmem:[#allocation7 + $0x174] ss:$8 sps:$4 sm:$0xff]   ;;  %v3052_v53 = vld [vmem:[%s3931_s1 + $0x4] sm:$0xf] }
 0x196   :  { %1445 = vmatprep.subr.bf16.mxu0 %v3871_v54 }
 0x198   :  { %1716 = vmatpush1.bf16.msra.mxu1 %v3416_v55  ;;  %v3497_v55 = vld [vmem:[#allocation7 + $0x50] ss:$8 sps:$4 sm:$0xff]  }
 0x199   :  { %1717 = vmatprep.subr.bf16.mxu1 %v3424_v56  ;;  %1446 = vmatpush2.bf16.msra.mxu0 %v3873_v57  ;;  %v3499_v56 = vld [vmem:[#allocation7 + $0x54] ss:$8 sps:$4 sm:$0xff]  }
 0x19a   :  { %1447 = vmatprep.subr.bf16.mxu0 %v3876_v58 }
 0x19c   :  { %1718 = vmatpush1.bf16.msra.mxu1 %v3422_v59  ;;  %v3494_v59 = vld [vmem:[#allocation7 + $0x170] ss:$8 sps:$4 sm:$0xff]  }
 0x19d   :  { %1719 = vmatprep.subr.bf16.mxu1 %v3430_v60  ;;  %1448 = vmatpush2.bf16.msra.mxu0 %v3879_v61  ;;  %v1921_v60 = vpack.c.bf16 %v3052_v53, %v3052_v53  ;;  %v3572_v53 = vld [vmem:[#allocation7 + $0x1a0] ss:$8 sps:$4 sm:$0xff]  }
 0x19e   :  { %1449 = vmatprep.subr.bf16.mxu0 %v3882_v62 }
 0x1a0   :  { %1720 = vmatpush1.bf16.msra.mxu1 %v3428_v63  ;;  %v3502_v63 = vld [vmem:[#allocation7 + $0x164] ss:$8 sps:$4 sm:$0xff]  }
 0x1a1   :  { %1721 = vmatprep.subr.bf16.mxu1 %v3436_v2  ;;  %1450 = vmatpush2.bf16.msra.mxu0 %v3885_v3  ;;  %v3505_v2 = vld [vmem:[#allocation7 + $0x44] ss:$8 sps:$4 sm:$0xff]  }
 0x1a2   :  { %1847 = vmatprep.subr.bf16.mxu0 %v3439_v5  ;;  %v3508_v5 = vld [vmem:[#allocation7 + $0x154] ss:$8 sps:$4 sm:$0xff]  }
 0x1a4   :  { %1722 = vmatpush1.bf16.msra.mxu1 %v3434_v6  ;;  %1452 = vmatmul.mubr.bf16.vlgmr.msra.gmra.mxu0 %v1255_v11  ;;  %v3506_v6 = vld [vmem:[#allocation7 + $0x150] ss:$8 sps:$4 sm:$0xff]   ;;  %v3514_v11 = vld [vmem:[#allocation7 + $0x144] ss:$8 sps:$4 sm:$0xff]  }
 0x1a5   :  { %1723 = vmatprep.subr.bf16.mxu1 %v3442_v8  ;;  %1848 = vmatpush1.bf16.msra.mxu0 %v3437_v9  ;;  %v3511_v8 = vld [vmem:[#allocation7 + $0x34] ss:$8 sps:$4 sm:$0xff]   ;;  %v3509_v9 = vld [vmem:[#allocation7 + $0x30] ss:$8 sps:$4 sm:$0xff]  }
 0x1a6   :  { %1879 = vmatprep.mubr.bf16.mxu0 %v3775_v0  ;;  %1849 = vmatprep.subr.bf16.mxu0 %v3445_v12  ;;  %v3512_v12 = vld [vmem:[#allocation7 + $0x140] ss:$8 sps:$4 sm:$0xff]  }
 0x1a8   :  { %1724 = vmatpush1.bf16.msra.mxu1 %v3440_v13  ;;  %v3517_v13 = vld [vmem:[#allocation7 + $0x24] ss:$8 sps:$4 sm:$0xff]  }
 0x1a9   :  { %1850 = vmatpush1.bf16.msra.mxu0 %v3443_v15  ;;  %2030 = vmatprep.subr.bf16.mxu1 %v3466_v23  ;;  %v3518_v15 = vld [vmem:[#allocation7 + $0x130] ss:$8 sps:$4 sm:$0xff]   ;;  %v3532_v23 = vld [vmem:[#allocation7 + $0x114] ss:$8 sps:$4 sm:$0xff]  }
 0x1aa   :  { %1851 = vmatprep.subr.bf16.mxu0 %v3448_v17  ;;  %v3521_v17 = vld [vmem:[#allocation7 + $0x10] ss:$8 sps:$4 sm:$0xff]  }
 0x1ab   :  { %1742 = vmatmul.mubr.bf16.vlgmr.msra.gmra.mxu1 %v1474_v16  ;;  %v3520_v16 = vld [vmem:[#allocation7 + $0x134] ss:$8 sps:$4 sm:$0xff]  }
 0x1ac   :  { %2062 = vmatprep.mubr.bf16.mxu1 %v3775_v0  ;;  %2031 = vmatpush1.bf16.msra.mxu1 %v3464_v22  ;;  %v3460_v0 = vld [vmem:[#allocation3 + $0x114] ss:$8 sps:$4 sm:$0xff]   ;;  %v3527_v22 = vld [vmem:[#allocation7] ss:$8 sps:$4 sm:$0xff]  }
 0x1ad   :  { %1852 = vmatpush1.bf16.msra.mxu0 %v3446_v18  ;;  %2032 = vmatprep.subr.bf16.mxu1 %v3469_v27  ;;  %v3523_v18 = vld [vmem:[#allocation7 + $0x14] ss:$8 sps:$4 sm:$0xff]   ;;  %v3530_v27 = vld [vmem:[#allocation7 + $0x110] ss:$8 sps:$4 sm:$0xff]  }
 0x1ae   :  { %1853 = vmatprep.subr.bf16.mxu0 %v3451_v19  ;;  %v3526_v19 = vld [vmem:[#allocation7 + $0x124] ss:$8 sps:$4 sm:$0xff]  }
 0x1b0   :  { %2033 = vmatpush1.bf16.msra.mxu1 %v3467_v29  ;;  %v3538_v29 = vld [vmem:[#allocation7 + $0x104] ss:$8 sps:$4 sm:$0xff]  }
 0x1b1   :  { %1854 = vmatpush1.bf16.msra.mxu0 %v3449_v20  ;;  %2034 = vmatprep.subr.bf16.mxu1 %v3472_v30  ;;  %v3529_v20 = vld [vmem:[#allocation7 + $0x4] ss:$8 sps:$4 sm:$0xff]  }
 0x1b2   :  { %1855 = vmatprep.subr.bf16.mxu0 %v3454_v21  ;;  %v3524_v21 = vld [vmem:[#allocation7 + $0x120] ss:$8 sps:$4 sm:$0xff]   ;;  %v3541_v30 = vld [vmem:[#allocation7 + $0xe4] ss:$8 sps:$4 sm:$0xff]  }
 0x1b4   :  { %2035 = vmatpush1.bf16.msra.mxu1 %v3470_v32  ;;  %v3544_v32 = vld [vmem:[#allocation7 + $0x1f4] ss:$8 sps:$4 sm:$0xff]  }
 0x1b5   :  { %1856 = vmatpush1.bf16.msra.mxu0 %v3452_v25  ;;  %2036 = vmatprep.subr.bf16.mxu1 %v3475_v33  ;;  %v3535_v25 = vld [vmem:[#allocation7 + $0xf4] ss:$8 sps:$4 sm:$0xff]  }
 0x1b6   :  { %1857 = vmatprep.subr.bf16.mxu0 %v3457_v28  ;;  %v3533_v28 = vld [vmem:[#allocation7 + $0xf0] ss:$8 sps:$4 sm:$0xff]   ;;  %v3547_v33 = vld [vmem:[#allocation7 + $0xd4] ss:$8 sps:$4 sm:$0xff]  }
 0x1b8   :  { %2037 = vmatpush1.bf16.msra.mxu1 %v3473_v36  ;;  %v3550_v36 = vld [vmem:[#allocation7 + $0x1e4] ss:$8 sps:$4 sm:$0xff]  }
 0x1b9   :  { %1858 = vmatpush1.bf16.msra.mxu0 %v3455_v31  ;;  %2038 = vmatprep.subr.bf16.mxu1 %v3478_v37  ;;  %v3536_v31 = vld [vmem:[#allocation7 + $0x100] ss:$8 sps:$4 sm:$0xff]  }
 0x1ba   :  { %1859 = vmatprep.subr.bf16.mxu0 %v3460_v0  ;;  %v3539_v0 = vld [vmem:[#allocation7 + $0xe0] ss:$8 sps:$4 sm:$0xff]  }
 0x1bb   :  { %v3548_v37 = vld [vmem:[#allocation7 + $0x1e0] ss:$8 sps:$4 sm:$0xff]  }
 0x1bc   :  { %2039 = vmatpush1.bf16.msra.mxu1 %v3476_v41  ;;  %v3554_v41 = vld [vmem:[#allocation7 + $0x1d0] ss:$8 sps:$4 sm:$0xff]  }
 0x1bd   :  { %1860 = vmatpush1.bf16.msra.mxu0 %v3458_v34  ;;  %2040 = vmatprep.subr.bf16.mxu1 %v3481_v43  ;;  %v3542_v34 = vld [vmem:[#allocation7 + $0x1f0] ss:$8 sps:$4 sm:$0xff]  }
 0x1be   :  { %1861 = vmatprep.subr.bf16.mxu0 %v3463_v35  ;;  %v3545_v35 = vld [vmem:[#allocation7 + $0xd0] ss:$8 sps:$4 sm:$0xff]  }
 0x1bf   :  { %v3557_v43 = vld [vmem:[#allocation7 + $0xb0] ss:$8 sps:$4 sm:$0xff]  }
 0x1c0   :  { %2041 = vmatpush1.bf16.msra.mxu1 %v3479_v45  ;;  %v3560_v45 = vld [vmem:[#allocation7 + $0x1c0] ss:$8 sps:$4 sm:$0xff]  }
 0x1c1   :  { %1862 = vmatpush1.bf16.msra.mxu0 %v3461_v38  ;;  %2042 = vmatprep.subr.bf16.mxu1 %v3484_v46  ;;  %v3553_v38 = vld [vmem:[#allocation7 + $0xc4] ss:$8 sps:$4 sm:$0xff]  }
 0x1c2   :  { %2281 = vmatprep.subr.bf16.mxu0 %v3487_v40  ;;  %v3556_v40 = vld [vmem:[#allocation7 + $0x1d4] ss:$8 sps:$4 sm:$0xff]   ;;  %v3565_v46 = vld [vmem:[#allocation7 + $0xa4] ss:$8 sps:$4 sm:$0xff]  }
 0x1c4   :  { %1880 = vmatmul.mubr.bf16.vlgmr.msra.gmra.mxu0 %v1750_v42  ;;  %2043 = vmatpush1.bf16.msra.mxu1 %v3482_v47  ;;  %v3559_v42 = vld [vmem:[#allocation7 + $0xb4] ss:$8 sps:$4 sm:$0xff]   ;;  %v3563_v47 = vld [vmem:[#allocation7 + $0xa0] ss:$8 sps:$4 sm:$0xff]  }
 0x1c5   :  { %2282 = vmatpush1.bf16.msra.mxu0 %v3485_v44  ;;  %2044 = vmatprep.subr.bf16.mxu1 %v3490_v48  ;;  %v3562_v44 = vld [vmem:[#allocation7 + $0x1c4] ss:$8 sps:$4 sm:$0xff]   ;;  %v3568_v48 = vld [vmem:[#allocation7 + $0x1b4] ss:$8 sps:$4 sm:$0xff]  }
 0x1c6   :  { %2283 = vmatprep.subr.bf16.mxu0 %v3493_v50  ;;  %v3569_v50 = vld [vmem:[#allocation7 + $0x90] ss:$8 sps:$4 sm:$0xff]  }
 0x1c8   :  { %2045 = vmatpush1.bf16.msra.mxu1 %v3488_v51  ;;  %v3571_v51 = vld [vmem:[#allocation7 + $0x94] ss:$8 sps:$4 sm:$0xff]  }
 0x1c9   :  { %2284 = vmatpush1.bf16.msra.mxu0 %v3491_v49  ;;  %2536 = vmatprep.subr.bf16.mxu1 %v3496_v52  ;;  %v3566_v49 = vld [vmem:[#allocation7 + $0x1b0] ss:$8 sps:$4 sm:$0xff]   ;;  %v3574_v52 = vld [vmem:[#allocation7 + $0x1a4] ss:$8 sps:$4 sm:$0xff]  }
 0x1ca   :  { %2285 = vmatprep.subr.bf16.mxu0 %v3499_v56  ;;  %v3575_v56 = vld [vmem:[#allocation7 + $0x80] ss:$8 sps:$4 sm:$0xff]  }
 0x1cb   :  { %2063 = vmatmul.mubr.bf16.vlgmr.msra.gmra.mxu1 %v1921_v60  ;;  %v3578_v60 = vld [vmem:[#allocation7 + $0x190] ss:$8 sps:$4 sm:$0xff]  }
 0x1cc   :  { %2537 = vmatpush1.bf16.msra.mxu1 %v3494_v59  ;;  %v3580_v59 = vld [vmem:[#allocation7 + $0x194] ss:$8 sps:$4 sm:$0xff]  }
 0x1cd   :  { %2286 = vmatpush1.bf16.msra.mxu0 %v3497_v55  ;;  %2538 = vmatprep.subr.bf16.mxu1 %v3502_v63  ;;  %v3577_v55 = vld [vmem:[#allocation7 + $0x84] ss:$8 sps:$4 sm:$0xff]   ;;  %v3583_v63 = vld [vmem:[#allocation7 + $0x274] ss:$8 sps:$4 sm:$0xff]  }
 0x1ce   :  { %2287 = vmatprep.subr.bf16.mxu0 %v3505_v2  ;;  %v3586_v2 = vld [vmem:[#allocation7 + $0x184] ss:$8 sps:$4 sm:$0xff]  }
 0x1d0   :  { %2539 = vmatpush1.bf16.msra.mxu1 %v3500_v1  ;;  %v3584_v1 = vld [vmem:[#allocation7 + $0x180] ss:$8 sps:$4 sm:$0xff]  }
 0x1d1   :  { %2288 = vmatpush1.bf16.msra.mxu0 %v3503_v4  ;;  %2540 = vmatprep.subr.bf16.mxu1 %v3508_v5 }
 0x1d2   :  { %2289 = vmatprep.subr.bf16.mxu0 %v3511_v8 }
 0x1d4   :  { %2541 = vmatpush1.bf16.msra.mxu1 %v3506_v6 }
 0x1d5   :  { %2290 = vmatpush1.bf16.msra.mxu0 %v3509_v9  ;;  %2542 = vmatprep.subr.bf16.mxu1 %v3514_v11 }
 0x1d6   :  { %2291 = vmatprep.subr.bf16.mxu0 %v3517_v13 }
 0x1d8   :  { %2543 = vmatpush1.bf16.msra.mxu1 %v3512_v12 }
 0x1d9   :  { %2292 = vmatpush1.bf16.msra.mxu0 %v3515_v14  ;;  %2544 = vmatprep.subr.bf16.mxu1 %v3520_v16 }
 0x1da   :  { %2293 = vmatprep.subr.bf16.mxu0 %v3523_v18  ;;  %v576_v18 = vld [vmem:[#allocation11] sm:$0x3] }
 0x1dc   :  { %2545 = vmatpush1.bf16.msra.mxu1 %v3518_v15 }
 0x1dd   :  { %2294 = vmatpush1.bf16.msra.mxu0 %v3521_v17  ;;  %2546 = vmatprep.subr.bf16.mxu1 %v3526_v19  ;;  %v581_v19 = vrot.slane %v576_v18, %v3856_v24 }
 0x1de   :  { %2295 = vmatprep.subr.bf16.mxu0 %v3529_v20  ;;  %v709_v20 = vld [vmem:[#allocation8] sm:$0x3] }
 0x1e0   :  { %2547 = vmatpush1.bf16.msra.mxu1 %v3524_v21  ;;  %v585_v21 = vrot.slane %v576_v18, %v3858_v26 }
 0x1e1   :  { %2296 = vmatpush1.bf16.msra.mxu0 %v3527_v22  ;;  %2548 = vmatprep.subr.bf16.mxu1 %v3532_v23  ;;  %v703_v22 = vadd.f32 %v3863_v7, %v581_v19  ;;  %v714_v23 = vrot.slane %v709_v20, %v3856_v24 }
 0x1e2   :  { %2297 = vmatprep.subr.bf16.mxu0 %v3535_v25  ;;  %v705_v25 = vadd.f32 %v3865_v10, %v585_v21 }
 0x1e4   :  { %2549 = vmatpush1.bf16.msra.mxu1 %v3530_v27  ;;  %v718_v27 = vrot.slane %v709_v20, %v3858_v26  ;;  %v3589_v20 = vld [vmem:[#allocation7 + $0x264] ss:$8 sps:$4 sm:$0xff]  }
 0x1e5   :  { %2298 = vmatpush2.bf16.msra.mxu0 %v3533_v28  ;;  %2550 = vmatprep.subr.bf16.mxu1 %v3538_v29  ;;  %v721_v28 = vadd.f32 %v714_v23, %v703_v22 }
 0x1e6   :  { %2299 = vmatprep.subr.bf16.mxu0 %v3541_v30  ;;  %v722_v30 = vadd.f32 %v718_v27, %v705_v25 }
 0x1e8   :  { %2551 = vmatpush1.bf16.msra.mxu1 %v3536_v31 }
 0x1e9   :  { %2300 = vmatpush2.bf16.msra.mxu0 %v3539_v0  ;;  %2552 = vmatprep.subr.bf16.mxu1 %v3544_v32 }
 0x1ea   :  { %2301 = vmatprep.subr.bf16.mxu0 %v3547_v33 }
 0x1ec   :  { %2553 = vmatpush2.bf16.msra.mxu1 %v3542_v34 }
 0x1ed   :  { %2302 = vmatpush2.bf16.msra.mxu0 %v3545_v35  ;;  %2554 = vmatprep.subr.bf16.mxu1 %v3550_v36 }
 0x1ee   :  { %2303 = vmatprep.subr.bf16.mxu0 %v3553_v38 }
 0x1f0   :  { %2555 = vmatpush2.bf16.msra.mxu1 %v3548_v37 }
 0x1f1   :  { %2304 = vmatpush2.bf16.msra.mxu0 %v3551_v39  ;;  %2556 = vmatprep.subr.bf16.mxu1 %v3556_v40 }
 0x1f2   :  { %2305 = vmatprep.subr.bf16.mxu0 %v3559_v42 }
 0x1f4   :  { %2557 = vmatpush2.bf16.msra.mxu1 %v3554_v41 }
 0x1f5   :  { %2306 = vmatpush2.bf16.msra.mxu0 %v3557_v43  ;;  %2558 = vmatprep.subr.bf16.mxu1 %v3562_v44  ;;  %v1890_v44 = vld [vmem:[#allocation5] sm:$0x3] }
 0x1f6   :  { %2307 = vmatprep.subr.bf16.mxu0 %v3565_v46  ;;  %v1895_v46 = vrot.slane %v1890_v44, %v3856_v24 }
 0x1f8   :  { %2559 = vmatpush2.bf16.msra.mxu1 %v3560_v45 }
 0x1f9   :  { %2308 = vmatpush2.bf16.msra.mxu0 %v3563_v47  ;;  %2560 = vmatprep.subr.bf16.mxu1 %v3568_v48 }
 0x1fa   :  { %2309 = vmatprep.subr.bf16.mxu0 %v3571_v51 }
 0x1fc   :  { %2561 = vmatpush2.bf16.msra.mxu1 %v3566_v49 }
 0x1fd   :  { %2310 = vmatpush2.bf16.msra.mxu0 %v3569_v50  ;;  %2562 = vmatprep.subr.bf16.mxu1 %v3574_v52  ;;  %v1899_v50 = vrot.slane %v1890_v44, %v3858_v26  ;;  %v3608_v44 = vld [vmem:[#allocation7 + $0x2f0] ss:$8 sps:$4 sm:$0xff]  }
 0x1fe   :  { %2311 = vmatprep.subr.bf16.mxu0 %v3577_v55 }
 0x200   :  { %2563 = vmatpush2.bf16.msra.mxu1 %v3572_v53 }
 0x201   :  { %2312 = vmatpush2.bf16.msra.mxu0 %v3575_v56  ;;  %2564 = vmatprep.subr.bf16.mxu1 %v3580_v59 }
 0x202   :  { %2781 = vmatprep.subr.bf16.mxu0 %v3583_v63 }
 0x204   :  { %2565 = vmatpush2.bf16.msra.mxu1 %v3578_v60 }
 0x205   :  { %2566 = vmatprep.subr.bf16.mxu1 %v3586_v2 }
 0x208   :  { %2567 = vmatpush2.bf16.msra.mxu1 %v3584_v1 }
 0x223   :  { %v953_v4 = vpop.f32.mrf.mxu0 }
 0x224   :  { %v960_v29 = vadd.f32 %v953_v4, %v721_v28  ;;  %v3587_v28 = vld [vmem:[#allocation7 + $0x260] ss:$8 sps:$4 sm:$0xff]  }
 0x225   :  { %v955_v5 = vpop.f32.mrf.mxu0 }
 0x226   :  { %v961_v31 = vadd.f32 %v955_v5, %v722_v30 }
 0x227   :  { %v957_v6 = vpop.f32.mrf.mxu0 }
 0x229   :  { %v958_v8 = vpop.f32.mrf.mxu0 }
 0x22b   :  { %v1208_v9 = vpop.f32.mrf.mxu1 }
 0x22c   :  { %v1215_v0 = vadd.f32 %v1208_v9, %v960_v29 }
 0x22d   :  { %v1210_v11 = vpop.f32.mrf.mxu1 }
 0x22e   :  { %v1216_v33 = vadd.f32 %v1210_v11, %v961_v31 }
 0x22f   :  { %v1212_v12 = vpop.f32.mrf.mxu1 }
 0x231   :  { %v1213_v13 = vpop.f32.mrf.mxu1 }
 0x24b   :  { %v1622_v14 = vpop.f32.mrf.mxu1 }
 0x24d   :  { %v1624_v15 = vpop.f32.mrf.mxu1 }
 0x24f   :  { %v1626_v16 = vpop.f32.mrf.mxu1 }
 0x250   :  { %v3581_v16 = vld [vmem:[#allocation7 + $0x270] ss:$8 sps:$4 sm:$0xff]  }
 0x251   :  { %v1627_v17 = vpop.f32.mrf.mxu1 }
 0x264   :  { %v1453_v32 = vpop.f32.mrf.mxu0 }
 0x265   :  { %v1460_v34 = vadd.f32 %v1453_v32, %v1215_v0  ;;  %v3592_v0 = vld [vmem:[#allocation7 + $0x254] ss:$8 sps:$4 sm:$0xff]  }
 0x266   :  { %v1455_v35 = vpop.f32.mrf.mxu0 }
 0x267   :  { %v1461_v36 = vadd.f32 %v1455_v35, %v1216_v33  ;;  %v1462_v38 = vmax.f32 %v1460_v34, 0.0  ;;  %v3590_v34 = vld [vmem:[#allocation7 + $0x250] ss:$8 sps:$4 sm:$0xff]   ;;  %v3595_v35 = vld [vmem:[#allocation7 + $0x244] ss:$8 sps:$4 sm:$0xff]  }
 0x268   :  { %v1457_v37 = vpop.f32.mrf.mxu0 }
 0x269   :  { %v1463_v39 = vmax.f32 %v1461_v36, 0.0  ;;  %v3593_v36 = vld [vmem:[#allocation7 + $0x240] ss:$8 sps:$4 sm:$0xff]   ;;  %v3598_v37 = vld [vmem:[#allocation7 + $0x234] ss:$8 sps:$4 sm:$0xff]  }
 0x26a   :  { %v1458_v7 = vpop.f32.mrf.mxu0 }
 0x26b   :  { %v1743_v40 = vpop.f32.mrf.mxu1  ;;  %v1466_v41 = vcombine.low %v1462_v38, %v1463_v39  ;;  %v3596_v38 = vld [vmem:[#allocation7 + $0x230] ss:$8 sps:$4 sm:$0xff]   ;;  %v3601_v39 = vld [vmem:[#allocation7 + $0x224] ss:$8 sps:$4 sm:$0xff]   ;;  %v3599_v7 = vld [vmem:[#allocation7 + $0x220] ss:$8 sps:$4 sm:$0xff]  }
 0x26c   :  { %v1744_v45 = vadd.f32 %v1743_v40, %v1622_v14  ;;  %v3604_v40 = vld [vmem:[#allocation7 + $0x214] ss:$8 sps:$4 sm:$0xff]  }
 0x26d   :  { %v1745_v42 = vpop.f32.mrf.mxu1  ;;  %1468 = vst [vmem:[%s3938_s8] sm:$0xff] %v1466_v41  ;;  %v3602_v41 = vld [vmem:[#allocation7 + $0x210] ss:$8 sps:$4 sm:$0xff]  }
 0x26e   :  { %v1746_v48 = vadd.f32 %v1745_v42, %v1624_v15  ;;  %v3607_v42 = vld [vmem:[#allocation7 + $0x204] ss:$8 sps:$4 sm:$0xff]  }
 0x26f   :  { %v1747_v10 = vpop.f32.mrf.mxu1 }
 0x270   :  { %v3605_v10 = vld [vmem:[#allocation7 + $0x200] ss:$8 sps:$4 sm:$0xff]  }
 0x271   :  { %v1748_v43 = vpop.f32.mrf.mxu1 }
 0x272   :  { %v3610_v43 = vld [vmem:[#allocation7 + $0x2f4] ss:$8 sps:$4 sm:$0xff]  }
 0x284   :  { %v1881_v47 = vpop.f32.mrf.mxu0 }
 0x285   :  { %v1888_v49 = vadd.f32 %v1881_v47, %v1744_v45  ;;  %v3613_v45 = vld [vmem:[#allocation7 + $0x2e4] ss:$8 sps:$4 sm:$0xff]   ;;  %v3616_v47 = vld [vmem:[#allocation7 + $0x2d4] ss:$8 sps:$4 sm:$0xff]  }
 0x286   :  { %v1883_v51 = vpop.f32.mrf.mxu0 }
 0x287   :  { %v1902_v52 = vadd.f32 %v1895_v46, %v1888_v49  ;;  %v1889_v53 = vadd.f32 %v1883_v51, %v1746_v48  ;;  %v3611_v46 = vld [vmem:[#allocation7 + $0x2e0] ss:$8 sps:$4 sm:$0xff]   ;;  %v3614_v48 = vld [vmem:[#allocation7 + $0x2d0] ss:$8 sps:$4 sm:$0xff]   ;;  %v3619_v49 = vld [vmem:[#allocation7 + $0x2c4] ss:$8 sps:$4 sm:$0xff]  }
 0x288   :  { %v1885_v55 = vpop.f32.mrf.mxu0  ;;  %v3622_v51 = vld [vmem:[#allocation7 + $0x2b4] ss:$8 sps:$4 sm:$0xff]  }
 0x289   :  { %v1904_v56 = vmax.f32 %v1902_v52, 0.0  ;;  %v1903_v59 = vadd.f32 %v1899_v50, %v1889_v53  ;;  %v3617_v50 = vld [vmem:[#allocation7 + $0x2c0] ss:$8 sps:$4 sm:$0xff]   ;;  %v3620_v52 = vld [vmem:[#allocation7 + $0x2b0] ss:$8 sps:$4 sm:$0xff]  }
 0x28a   :  { %v1886_v60 = vpop.f32.mrf.mxu0 }
 0x28b   :  { %v1914_v63 = vrot.slane %v1904_v56, 7  ;;  %v1905_v1 = vmax.f32 %v1903_v59, 0.0  ;;  %v3911_v4 = vpop.f32.mrf.mxu1 }
 0x28d   :  { %1918 = vst [vmem:[#allocation2 + $0x10] sm:$0x1e] %v1914_v63  ;;  %v1915_v2 = vrot.slane %v1905_v1, 7  ;;  %v3913_v6 = vpop.f32.mrf.mxu1 }
 0x28f   :  { %1919 = vst [vmem:[#allocation2 + $0x18] sm:$0x1e] %v1915_v2  ;;  %v2068_v14 = vpop.f32.mrf.mxu1 }
 0x291   :  { %v2069_v22 = vpop.f32.mrf.mxu1 }
 0x294   :  { %v2324_v5 = vld [vmem:[#allocation2 + $0x10] sm:$0x1e] }
 0x295   :  { %v2085_v8 = vld [vmem:[#allocation2 + $0x10] sm:$0xf]  ;;  %v2326_v9 = vpack.c.bf16 %v2324_v5, %v2324_v5 }
 0x296   :  { %v2086_v11 = vld [vmem:[#allocation2 + $0x18] sm:$0xf]  ;;  %v2087_v19 = vpack.c.bf16 %v2085_v8, %v2085_v8  ;;  %v2579_v53 = vld [vmem:[#allocation2 + $0x10] sm:$0x3c]  ;;  %v1938_v8 = vld [vmem:[#allocation11] sm:$0x3] }
 0x297   :  { %v2580_v12 = vld [vmem:[#allocation2 + $0x18] sm:$0x3c]  ;;  %v2088_v15 = vpack.c.bf16 %v2086_v11, %v2086_v11  ;;  %v2363_v21 = vshll.u32 %v2326_v9, 16  ;;  %v2361_v31 = vshrl.u32 %v2326_v9, 16  ;;  %v2581_v55 = vpack.c.bf16 %v2579_v53, %v2579_v53  ;;  %v2071_v9 = vld [vmem:[#allocation8] sm:$0x3] }
 0x298   :  { %v2325_v13 = vld [vmem:[#allocation2 + $0x18] sm:$0x1e]  ;;  %v2582_v17 = vpack.c.bf16 %v2580_v12, %v2580_v12  ;;  %v2080_v12 = vrot.slane %v2071_v9, %v3858_v26 }
 0x299   :  { %v2327_v18 = vpack.c.bf16 %v2325_v13, %v2325_v13  ;;  %2313 = vmatprep.mubr.bf16.mxu0 %v2088_v15  ;;  %v2365_v27 = vrot.slane %v2363_v21, 1  ;;  %v2617_v56 = vrot.slane %v2581_v55, 1 }
 0x29a   :  { %v2618_v23 = vrot.slane %v2582_v17, 1  ;;  %2314 = vmatmul.mubr.bf16.vlgmr.msra.gmra.mxu0 %v2087_v19 }
 0x29b   :  { %v2370_v25 = vshll.u32 %v2327_v18, 16  ;;  %2782 = vmatpush1.bf16.msra.mxu0 %v3581_v16  ;;  %v2368_v29 = vshrl.u32 %v2327_v18, 16  ;;  %v2366_v33 = vor.u32 %v2365_v27, %v2361_v31 }
 0x29c   :  { %2813 = vmatprep.mubr.bf16.mxu0 %v2618_v23  ;;  %2783 = vmatprep.subr.bf16.mxu0 %v3589_v20 }
 0x29d   :  { %v2372_v30 = vrot.slane %v2370_v25, 1 }
 0x29f   :  { %v2373_v32 = vor.u32 %v2372_v30, %v2368_v29  ;;  %2784 = vmatpush1.bf16.msra.mxu0 %v3587_v28 }
 0x2a0   :  { %2785 = vmatprep.subr.bf16.mxu0 %v3592_v0 }
 0x2a1   :  { %2568 = vmatprep.mubr.bf16.mxu1 %v2373_v32 }
 0x2a2   :  { %2569 = vmatmul.mubr.bf16.vlgmr.msra.gmra.mxu1 %v2366_v33 }
 0x2a3   :  { %2786 = vmatpush1.bf16.msra.mxu0 %v3590_v34 }
 0x2a4   :  { %2787 = vmatprep.subr.bf16.mxu0 %v3595_v35 }
 0x2a7   :  { %2788 = vmatpush1.bf16.msra.mxu0 %v3593_v36 }
 0x2a8   :  { %2789 = vmatprep.subr.bf16.mxu0 %v3598_v37 }
 0x2ab   :  { %2790 = vmatpush1.bf16.msra.mxu0 %v3596_v38 }
 0x2ac   :  { %2791 = vmatprep.subr.bf16.mxu0 %v3601_v39 }
 0x2af   :  { %2792 = vmatpush1.bf16.msra.mxu0 %v3599_v7 }
 0x2b0   :  { %2793 = vmatprep.subr.bf16.mxu0 %v3604_v40 }
 0x2b3   :  { %2794 = vmatpush1.bf16.msra.mxu0 %v3602_v41 }
 0x2b4   :  { %2795 = vmatprep.subr.bf16.mxu0 %v3607_v42 }
 0x2b7   :  { %2796 = vmatpush1.bf16.msra.mxu0 %v3605_v10 }
 0x2b8   :  { %2797 = vmatprep.subr.bf16.mxu0 %v3610_v43 }
 0x2bb   :  { %2798 = vmatpush2.bf16.msra.mxu0 %v3608_v44 }
 0x2bc   :  { %2799 = vmatprep.subr.bf16.mxu0 %v3613_v45 }
 0x2bf   :  { %2800 = vmatpush2.bf16.msra.mxu0 %v3611_v46 }
 0x2c0   :  { %2801 = vmatprep.subr.bf16.mxu0 %v3616_v47 }
 0x2c3   :  { %2802 = vmatpush2.bf16.msra.mxu0 %v3614_v48 }
 0x2c4   :  { %2803 = vmatprep.subr.bf16.mxu0 %v3619_v49 }
 0x2c7   :  { %2804 = vmatpush2.bf16.msra.mxu0 %v3617_v50 }
 0x2c8   :  { %2805 = vmatprep.subr.bf16.mxu0 %v3622_v51 }
 0x2cb   :  { %2806 = vmatpush2.bf16.msra.mxu0 %v3620_v52 }
 0x2cc   :  { %2807 = vmatprep.subr.bf16.mxu0 %v3871_v54 }
 0x2cf   :  { %2808 = vmatpush2.bf16.msra.mxu0 %v3873_v57 }
 0x2d0   :  { %2809 = vmatprep.subr.bf16.mxu0 %v3876_v58  ;;  %v1943_v58 = vrot.slane %v1938_v8, %v3856_v24 }
 0x2d3   :  { %2810 = vmatpush2.bf16.msra.mxu0 %v3879_v61  ;;  %v1947_v61 = vrot.slane %v1938_v8, %v3858_v26 }
 0x2d4   :  { %2811 = vmatprep.subr.bf16.mxu0 %v3882_v62  ;;  %v2065_v62 = vadd.f32 %v3911_v4, %v1943_v58 }
 0x2d5   :  { %v2067_v11 = vadd.f32 %v3913_v6, %v1947_v61 }
 0x2d7   :  { %2812 = vmatpush2.bf16.msra.mxu0 %v3885_v3  ;;  %v2076_v3 = vrot.slane %v2071_v9, %v3856_v24  ;;  %v2084_v14 = vadd.f32 %v2080_v12, %v2067_v11 }
 0x2d9   :  { %v2083_v13 = vadd.f32 %v2076_v3, %v2065_v62 }
 0x2da   :  { %2814 = vmatmul.mubr.bf16.vlgmr.msra.gmra.mxu0 %v2617_v56 }
 0x35a   :  { %v2315_v59 = vpop.f32.mrf.mxu0 }
 0x35b   :  { %v2322_v15 = vadd.f32 %v2315_v59, %v2083_v13 }
 0x35c   :  { %v2317_v60 = vpop.f32.mrf.mxu0 }
 0x35d   :  { %v2323_v16 = vadd.f32 %v2317_v60, %v2084_v14 }
 0x35e   :  { %v2319_v63 = vpop.f32.mrf.mxu0 }
 0x360   :  { %v2320_v1 = vpop.f32.mrf.mxu0 }
 0x362   :  { %v2570_v2 = vpop.f32.mrf.mxu1 }
 0x363   :  { %v2577_v17 = vadd.f32 %v2570_v2, %v2322_v15 }
 0x364   :  { %v2572_v54 = vpop.f32.mrf.mxu1 }
 0x365   :  { %v2578_v19 = vadd.f32 %v2572_v54, %v2323_v16 }
 0x366   :  { %v2574_v5 = vpop.f32.mrf.mxu1 }
 0x368   :  { %v2575_v57 = vpop.f32.mrf.mxu1 }
 0x39a   :  { %v2815_v18 = vpop.f32.mrf.mxu0 }
 0x39b   :  { %v2822_v20 = vadd.f32 %v2815_v18, %v2577_v17 }
 0x39c   :  { %v2817_v21 = vpop.f32.mrf.mxu0 }
 0x39d   :  { %v2823_v22 = vadd.f32 %v2817_v21, %v2578_v19  ;;  %v2824_v25 = vmax.f32 %v2822_v20, 0.0 }
 0x39e   :  { %v2819_v23 = vpop.f32.mrf.mxu0 }
 0x39f   :  { %v2825_v27 = vmax.f32 %v2823_v22, 0.0 }
 0x3a0   :  { %v2820_v4 = vpop.f32.mrf.mxu0 }
 0x3a1   :  { %v2828_v28 = vcombine.low %v2824_v25, %v2825_v27 }
 0x3a3   :  { %3165 = vst [vmem:[%s3938_s8 + $0x8] sm:$0xff] %v2828_v28 }
 0x3a4   :  { %2836 = vsyncpa [#allocation4], 1 }
 0x3a5   :  { %2837 = vsyncpa [#allocation6], 1 }
 0x3a6   :  { %2838 = vsyncpa [#allocation9], 1 }
 0x3a7   :  { %2839 = vsyncpa [#allocation12], 1 }

// kernel: resnet1d_forward.10
= control target key start
LH: loop header
LB: loop body
LE: loop exit
PB: predicated region body
PF: predicated region fallthrough
CT: control target
= control target key end

     0   :  { %13 = vsyncpa [#allocation4], 0  ;;  %s15948_s0 = inlined_call_operand.vmem [shape: f32[2,3,256], index: 0, kind: input, shape index: {}]   ;;  %s15949_s1 = inlined_call_operand.vmem [shape: f32[2,2,256], index: 1, kind: input, shape index: {}]   ;;  %s15950_s2 = inlined_call_operand.hbm [shape: bf16[768,512], index: 2, kind: input, shape index: {}]   ;;  %s15951_s3 = inlined_call_operand.vmem [shape: f32[1,512], index: 3, kind: input, shape index: {}]   ;;  %s15952_s4 = inlined_call_operand.vmem [shape: bf16[1536,512], index: 4, kind: input, shape index: {}]   ;;  %s15953_s5 = inlined_call_operand.vmem [shape: f32[1,512], index: 5, kind: input, shape index: {}]   ;;  %s15954_s6 = inlined_call_operand.hbm [shape: bf16[256,512], index: 6, kind: input, shape index: {}]   ;;  %s15955_s7 = inlined_call_operand.vmem [shape: f32[1,512], index: 7, kind: input, shape index: {}]   ;;  %s15956_s8 = inlined_call_operand.vmem [shape: f32[2,2,512], index: 8, kind: output, shape index: {}]  }
   0x1   :  { %14 = vsyncpa [#allocation6], 0  ;;  %s13211_s27 = smov [#allocation3]  }
   0x2   :  { %s24_s28 = sshll.u32 %s13211_s27, 4  ;;  %s25_s28 = int_to_ptr.vmem [resolvable:$true] %s24_s28 }
   0x3   :  { %s13175_s29 = scalar_lea.vmem %s25_s28, 24576  ;;  %p13180_p1 = scmp.lt.s32.totalorder %s25_s28, %s25_s28 }
   0x4   :  { %p13176_p0 = scmp.ne.s32.totalorder %s25_s28, %s13175_s29  ;;  %p13181_p2 = scmp.lt.s32.totalorder %s13175_s29, %s13175_s29 }
   0x6   :  { %p13182_p3 = por %p13181_p2, %p13180_p1 }
   0x8   :  { %p13183_p4 = pnand %p13182_p3, %p13176_p0 }
   0xa   :  { %13186 = shalt.err (!%p13183_p4)
}
   0xb   :  { %s13212_s30 = smov 256   ;;  %s13213_s9 = smov 16  }
   0xc   :  { %30 = dma.hbm_to_vmem [thread:$0]  %s15950_s2, 24576, %s25_s28, [#allocation4], %s13212_s30, %s13212_s30, %s13213_s9  }
   0xd   :  { %s13214_s12 = smov [#allocation5]  }
   0xe   :  { %s42_s13 = sshll.u32 %s13214_s12, 4  ;;  %s43_s13 = int_to_ptr.vmem [resolvable:$true] %s42_s13 }
   0xf   :  { %s13195_s14 = scalar_lea.vmem %s43_s13, 8192  ;;  %p13200_p6 = scmp.lt.s32.totalorder %s43_s13, %s43_s13 }
  0x10   :  { %p13196_p5 = scmp.ne.s32.totalorder %s43_s13, %s13195_s14  ;;  %p13201_p7 = scmp.lt.s32.totalorder %s13195_s14, %s13195_s14 }
  0x12   :  { %p13202_p8 = por %p13201_p7, %p13200_p6 }
  0x14   :  { %p13203_p9 = pnand %p13202_p8, %p13196_p5 }
  0x16   :  { %13206 = shalt.err (!%p13203_p9)
}
  0x17   :  { %48 = dma.hbm_to_vmem [thread:$0]  %s15954_s6, 8192, %s43_s13, [#allocation6], %s13212_s30, %s13212_s30, %s13213_s9  }
  0x18   :  { %13207 = dma.done.wait [#allocation4], 24576  }
  0x19   :  { %13208 = vsyncadd [#allocation4], 4294942720 }
  0x1a   :  { %13209 = dma.done.wait [#allocation6], 8192  }
  0x1b   :  { %13210 = vsyncadd [#allocation6], 4294959104  ;;  %v11231_v0 = vld [vmem:[#allocation3 + $0x2e4] ss:$16 sps:$4 sm:$0xff]   ;;  %v11233_v1 = vld [vmem:[#allocation3 + $0x2ec] ss:$16 sps:$4 sm:$0xff]  }
  0x1c   :  { %526 = vmatprep.subr.bf16.mxu0 %v11231_v0  ;;  %v11235_v2 = vld [vmem:[#allocation3 + $0x2e0] ss:$16 sps:$4 sm:$0xff]   ;;  %v11236_v3 = vld [vmem:[#allocation3 + $0x2e8] ss:$16 sps:$4 sm:$0xff]   ;;  %567 = vmatprep.subr.bf16.mxu1 %v11233_v1  ;;  %v11237_v4 = vld [vmem:[#allocation3 + $0x2c4] ss:$16 sps:$4 sm:$0xff]  }
  0x1d   :  { %527 = vmatpush1.bf16.msra.mxu0 %v11235_v2  ;;  %568 = vmatpush1.bf16.msra.mxu1 %v11236_v3  ;;  %v11239_v5 = vld [vmem:[#allocation3 + $0x2cc] ss:$16 sps:$4 sm:$0xff]   ;;  %v11241_v6 = vld [vmem:[#allocation3 + $0x2c0] ss:$16 sps:$4 sm:$0xff]   ;;  %v11242_v7 = vld [vmem:[#allocation3 + $0x2c8] ss:$16 sps:$4 sm:$0xff]  }
  0x1e   :  { %528 = vmatprep.subr.bf16.mxu0 %v11237_v4  ;;  %569 = vmatprep.subr.bf16.mxu1 %v11239_v5  ;;  %v11243_v8 = vld [vmem:[#allocation3 + $0x2a4] ss:$16 sps:$4 sm:$0xff]   ;;  %v11245_v9 = vld [vmem:[#allocation3 + $0x2ac] ss:$16 sps:$4 sm:$0xff]   ;;  %v11247_v10 = vld [vmem:[#allocation3 + $0x2a0] ss:$16 sps:$4 sm:$0xff]  }
  0x1f   :  { %v11248_v11 = vld [vmem:[#allocation3 + $0x2a8] ss:$16 sps:$4 sm:$0xff]   ;;  %v11249_v12 = vld [vmem:[#allocation3 + $0x284] ss:$16 sps:$4 sm:$0xff]   ;;  %v11251_v13 = vld [vmem:[#allocation3 + $0x28c] ss:$16 sps:$4 sm:$0xff]  }
  0x20   :  { %v11253_v14 = vld [vmem:[#allocation3 + $0x280] ss:$16 sps:$4 sm:$0xff]   ;;  %v11254_v15 = vld [vmem:[#allocation3 + $0x288] ss:$16 sps:$4 sm:$0xff]   ;;  %v11255_v16 = vld [vmem:[#allocation3 + $0x264] ss:$16 sps:$4 sm:$0xff]  }
  0x21   :  { %529 = vmatpush1.bf16.msra.mxu0 %v11241_v6  ;;  %570 = vmatpush1.bf16.msra.mxu1 %v11242_v7  ;;  %v11257_v17 = vld [vmem:[#allocation3 + $0x26c] ss:$16 sps:$4 sm:$0xff]   ;;  %v11259_v18 = vld [vmem:[#allocation3 + $0x260] ss:$16 sps:$4 sm:$0xff]   ;;  %v11260_v19 = vld [vmem:[#allocation3 + $0x268] ss:$16 sps:$4 sm:$0xff]  }
  0x22   :  { %530 = vmatprep.subr.bf16.mxu0 %v11243_v8  ;;  %571 = vmatprep.subr.bf16.mxu1 %v11245_v9  ;;  %v11261_v20 = vld [vmem:[#allocation3 + $0x244] ss:$16 sps:$4 sm:$0xff]   ;;  %v11263_v21 = vld [vmem:[#allocation3 + $0x24c] ss:$16 sps:$4 sm:$0xff]   ;;  %v11265_v22 = vld [vmem:[#allocation3 + $0x240] ss:$16 sps:$4 sm:$0xff]  }
  0x23   :  { %v11266_v23 = vld [vmem:[#allocation3 + $0x248] ss:$16 sps:$4 sm:$0xff]   ;;  %v11267_v24 = vld [vmem:[#allocation3 + $0x224] ss:$16 sps:$4 sm:$0xff]   ;;  %v11269_v25 = vld [vmem:[#allocation3 + $0x22c] ss:$16 sps:$4 sm:$0xff]  }
  0x24   :  { %v11271_v26 = vld [vmem:[#allocation3 + $0x220] ss:$16 sps:$4 sm:$0xff]   ;;  %v11272_v27 = vld [vmem:[#allocation3 + $0x228] ss:$16 sps:$4 sm:$0xff]   ;;  %v11273_v28 = vld [vmem:[#allocation3 + $0x204] ss:$16 sps:$4 sm:$0xff]  }
  0x25   :  { %531 = vmatpush1.bf16.msra.mxu0 %v11247_v10  ;;  %572 = vmatpush1.bf16.msra.mxu1 %v11248_v11  ;;  %v11275_v29 = vld [vmem:[#allocation3 + $0x20c] ss:$16 sps:$4 sm:$0xff]   ;;  %v11277_v30 = vld [vmem:[#allocation3 + $0x200] ss:$16 sps:$4 sm:$0xff]   ;;  %v11278_v31 = vld [vmem:[#allocation3 + $0x208] ss:$16 sps:$4 sm:$0xff]  }
  0x26   :  { %532 = vmatprep.subr.bf16.mxu0 %v11249_v12  ;;  %573 = vmatprep.subr.bf16.mxu1 %v11251_v13  ;;  %v11279_v32 = vld [vmem:[#allocation3 + $0x3e4] ss:$16 sps:$4 sm:$0xff]   ;;  %v11281_v33 = vld [vmem:[#allocation3 + $0x3ec] ss:$16 sps:$4 sm:$0xff]   ;;  %v11283_v34 = vld [vmem:[#allocation3 + $0x3e0] ss:$16 sps:$4 sm:$0xff]  }
  0x27   :  { %v11284_v35 = vld [vmem:[#allocation3 + $0x3e8] ss:$16 sps:$4 sm:$0xff]   ;;  %v11285_v36 = vld [vmem:[#allocation3 + $0x3c4] ss:$16 sps:$4 sm:$0xff]   ;;  %v11287_v37 = vld [vmem:[#allocation3 + $0x3cc] ss:$16 sps:$4 sm:$0xff]  }
  0x28   :  { %v11289_v38 = vld [vmem:[#allocation3 + $0x3c0] ss:$16 sps:$4 sm:$0xff]   ;;  %v11290_v39 = vld [vmem:[#allocation3 + $0x3c8] ss:$16 sps:$4 sm:$0xff]   ;;  %v11291_v40 = vld [vmem:[#allocation3 + $0x3a4] ss:$16 sps:$4 sm:$0xff]  }
  0x29   :  { %533 = vmatpush1.bf16.msra.mxu0 %v11253_v14  ;;  %574 = vmatpush1.bf16.msra.mxu1 %v11254_v15  ;;  %v11293_v41 = vld [vmem:[#allocation3 + $0x3ac] ss:$16 sps:$4 sm:$0xff]   ;;  %v11295_v42 = vld [vmem:[#allocation3 + $0x3a0] ss:$16 sps:$4 sm:$0xff]   ;;  %v11296_v43 = vld [vmem:[#allocation3 + $0x3a8] ss:$16 sps:$4 sm:$0xff]  }
  0x2a   :  { %534 = vmatprep.subr.bf16.mxu0 %v11255_v16  ;;  %575 = vmatprep.subr.bf16.mxu1 %v11257_v17  ;;  %v11297_v44 = vld [vmem:[#allocation3 + $0x384] ss:$16 sps:$4 sm:$0xff]   ;;  %v11299_v45 = vld [vmem:[#allocation3 + $0x38c] ss:$16 sps:$4 sm:$0xff]   ;;  %v11301_v47 = vld [vmem:[#allocation3 + $0x380] ss:$16 sps:$4 sm:$0xff]  }
  0x2b   :  { %v9936_v46 = vld.sshfl [vmem:[%s15949_s1] sm:$0x33 pattern:$0x76325410]  ;;  %v11302_v48 = vld [vmem:[#allocation3 + $0x388] ss:$16 sps:$4 sm:$0xff]  }
  0x2c   :  { %v137_v49 = vcombine.high %v9936_v46, %v9936_v46  ;;  %v11303_v50 = vld [vmem:[#allocation3 + $0x364] ss:$16 sps:$4 sm:$0xff]   ;;  %v11305_v51 = vld [vmem:[#allocation3 + $0x36c] ss:$16 sps:$4 sm:$0xff]   ;;  %v11307_v53 = vld [vmem:[#allocation3 + $0x360] ss:$16 sps:$4 sm:$0xff]   ;;  %v140_v5 = vpack.c.bf16 %v9936_v46, %v9936_v46 }
  0x2d   :  { %535 = vmatpush1.bf16.msra.mxu0 %v11259_v18  ;;  %576 = vmatpush1.bf16.msra.mxu1 %v11260_v19  ;;  %v11308_v54 = vld [vmem:[#allocation3 + $0x368] ss:$16 sps:$4 sm:$0xff]   ;;  %v11309_v55 = vld [vmem:[#allocation3 + $0x344] ss:$16 sps:$4 sm:$0xff]   ;;  %v11311_v56 = vld [vmem:[#allocation3 + $0x34c] ss:$16 sps:$4 sm:$0xff]  }
  0x2e   :  { %536 = vmatprep.subr.bf16.mxu0 %v11261_v20  ;;  %577 = vmatprep.subr.bf16.mxu1 %v11263_v21  ;;  %v141_v52 = vpack.c.bf16 %v137_v49, %v137_v49  ;;  %v11313_v57 = vld [vmem:[#allocation3 + $0x340] ss:$16 sps:$4 sm:$0xff]   ;;  %v11314_v58 = vld [vmem:[#allocation3 + $0x348] ss:$16 sps:$4 sm:$0xff]   ;;  %v11315_v59 = vld [vmem:[#allocation3 + $0x324] ss:$16 sps:$4 sm:$0xff]  }
  0x2f   :  { %v11317_v60 = vld [vmem:[#allocation3 + $0x32c] ss:$16 sps:$4 sm:$0xff]   ;;  %v11319_v61 = vld [vmem:[#allocation3 + $0x320] ss:$16 sps:$4 sm:$0xff]   ;;  %v11320_v62 = vld [vmem:[#allocation3 + $0x328] ss:$16 sps:$4 sm:$0xff]  }
  0x30   :  { %558 = vmatprep.mubr.bf16.mxu0 %v141_v52  ;;  %599 = vmatprep.mubr.bf16.mxu1 %v141_v52  ;;  %v11321_v63 = vld [vmem:[#allocation3 + $0x304] ss:$16 sps:$4 sm:$0xff]   ;;  %v11323_v0 = vld [vmem:[#allocation3 + $0x30c] ss:$16 sps:$4 sm:$0xff]   ;;  %v11325_v1 = vld [vmem:[#allocation3 + $0x300] ss:$16 sps:$4 sm:$0xff]  }
  0x31   :  { %537 = vmatpush1.bf16.msra.mxu0 %v11265_v22  ;;  %578 = vmatpush1.bf16.msra.mxu1 %v11266_v23  ;;  %v11326_v2 = vld [vmem:[#allocation3 + $0x308] ss:$16 sps:$4 sm:$0xff]   ;;  %v11329_v3 = vld [vmem:[#allocation3 + $0xe4] ss:$16 sps:$4 sm:$0xff]   ;;  %v11332_v4 = vld [vmem:[#allocation3 + $0xec] ss:$16 sps:$4 sm:$0xff]  }
  0x32   :  { %538 = vmatprep.subr.bf16.mxu0 %v11267_v24  ;;  %579 = vmatprep.subr.bf16.mxu1 %v11269_v25  ;;  %v11327_v6 = vld [vmem:[#allocation3 + $0xe0] ss:$16 sps:$4 sm:$0xff]   ;;  %v11330_v7 = vld [vmem:[#allocation3 + $0xe8] ss:$16 sps:$4 sm:$0xff]   ;;  %v11335_v8 = vld [vmem:[#allocation3 + $0xc4] ss:$16 sps:$4 sm:$0xff]  }
  0x33   :  { %v11338_v9 = vld [vmem:[#allocation3 + $0xcc] ss:$16 sps:$4 sm:$0xff]   ;;  %v11333_v10 = vld [vmem:[#allocation3 + $0xc0] ss:$16 sps:$4 sm:$0xff]   ;;  %v11336_v11 = vld [vmem:[#allocation3 + $0xc8] ss:$16 sps:$4 sm:$0xff]  }
  0x34   :  { %v11341_v12 = vld [vmem:[#allocation3 + $0xa4] ss:$16 sps:$4 sm:$0xff]   ;;  %v11344_v13 = vld [vmem:[#allocation3 + $0xac] ss:$16 sps:$4 sm:$0xff]   ;;  %v11339_v14 = vld [vmem:[#allocation3 + $0xa0] ss:$16 sps:$4 sm:$0xff]  }
  0x35   :  { %539 = vmatpush1.bf16.msra.mxu0 %v11271_v26  ;;  %580 = vmatpush1.bf16.msra.mxu1 %v11272_v27  ;;  %v11342_v15 = vld [vmem:[#allocation3 + $0xa8] ss:$16 sps:$4 sm:$0xff]   ;;  %v11347_v16 = vld [vmem:[#allocation3 + $0x84] ss:$16 sps:$4 sm:$0xff]   ;;  %v11350_v17 = vld [vmem:[#allocation3 + $0x8c] ss:$16 sps:$4 sm:$0xff]  }
  0x36   :  { %540 = vmatprep.subr.bf16.mxu0 %v11273_v28  ;;  %581 = vmatprep.subr.bf16.mxu1 %v11275_v29  ;;  %v11345_v18 = vld [vmem:[#allocation3 + $0x80] ss:$16 sps:$4 sm:$0xff]   ;;  %v11348_v19 = vld [vmem:[#allocation3 + $0x88] ss:$16 sps:$4 sm:$0xff]   ;;  %v11353_v20 = vld [vmem:[#allocation3 + $0x64] ss:$16 sps:$4 sm:$0xff]  }
  0x37   :  { %v11356_v21 = vld [vmem:[#allocation3 + $0x6c] ss:$16 sps:$4 sm:$0xff]   ;;  %v11351_v22 = vld [vmem:[#allocation3 + $0x60] ss:$16 sps:$4 sm:$0xff]   ;;  %v11354_v23 = vld [vmem:[#allocation3 + $0x68] ss:$16 sps:$4 sm:$0xff]  }
  0x38   :  { %v11359_v24 = vld [vmem:[#allocation3 + $0x44] ss:$16 sps:$4 sm:$0xff]   ;;  %v11362_v25 = vld [vmem:[#allocation3 + $0x4c] ss:$16 sps:$4 sm:$0xff]   ;;  %v11357_v26 = vld [vmem:[#allocation3 + $0x40] ss:$16 sps:$4 sm:$0xff]  }
  0x39   :  { %541 = vmatpush1.bf16.msra.mxu0 %v11277_v30  ;;  %582 = vmatpush1.bf16.msra.mxu1 %v11278_v31  ;;  %v11360_v27 = vld [vmem:[#allocation3 + $0x48] ss:$16 sps:$4 sm:$0xff]   ;;  %v11365_v28 = vld [vmem:[#allocation3 + $0x24] ss:$16 sps:$4 sm:$0xff]   ;;  %v11368_v29 = vld [vmem:[#allocation3 + $0x2c] ss:$16 sps:$4 sm:$0xff]  }
  0x3a   :  { %542 = vmatprep.subr.bf16.mxu0 %v11279_v32  ;;  %583 = vmatprep.subr.bf16.mxu1 %v11281_v33  ;;  %v13274_v30 = vld [vmem:[%s15948_s0] sm:$0x33]  ;;  %v11366_v33 = vld [vmem:[#allocation3 + $0x28] ss:$16 sps:$4 sm:$0xff]   ;;  %v11398_v52 = vld [vmem:[#allocation3 + $0x18c] ss:$16 sps:$4 sm:$0xff]  }
  0x3b   :  { %v61_v31 = vcombine.high %v13274_v30, %v13274_v30  ;;  %v11363_v32 = vld [vmem:[#allocation3 + $0x20] ss:$16 sps:$4 sm:$0xff]   ;;  %v11384_v46 = vld [vmem:[#allocation3 + $0x1c8] ss:$16 sps:$4 sm:$0xff]  }
  0x3c   :  { %v11387_v49 = vld [vmem:[#allocation3 + $0x1a0] ss:$16 sps:$4 sm:$0xff]  }
  0x3d   :  { %543 = vmatpush2.bf16.msra.mxu0 %v11283_v34  ;;  %584 = vmatpush2.bf16.msra.mxu1 %v11284_v35  ;;  %v64_v34 = vpack.c.bf16 %v61_v31, %v61_v31  ;;  %v11371_v35 = vld [vmem:[#allocation3 + $0x4] ss:$16 sps:$4 sm:$0xff]  }
  0x3e   :  { %544 = vmatprep.subr.bf16.mxu0 %v11285_v36  ;;  %585 = vmatprep.subr.bf16.mxu1 %v11287_v37  ;;  %v11374_v36 = vld [vmem:[#allocation3 + $0xc] ss:$16 sps:$4 sm:$0xff]   ;;  %v11369_v37 = vld [vmem:[#allocation3] ss:$16 sps:$4 sm:$0xff]   ;;  %v11450_v31 = vld [vmem:[#allocation3 + $0x464] ss:$16 sps:$4 sm:$0xff]  }
  0x41   :  { %545 = vmatpush2.bf16.msra.mxu0 %v11289_v38  ;;  %586 = vmatpush2.bf16.msra.mxu1 %v11290_v39  ;;  %v11372_v38 = vld [vmem:[#allocation3 + $0x8] ss:$16 sps:$4 sm:$0xff]   ;;  %v11377_v39 = vld [vmem:[#allocation3 + $0x1e4] ss:$16 sps:$4 sm:$0xff]  }
  0x42   :  { %546 = vmatprep.subr.bf16.mxu0 %v11291_v40  ;;  %587 = vmatprep.subr.bf16.mxu1 %v11293_v41  ;;  %v11380_v40 = vld [vmem:[#allocation3 + $0x1ec] ss:$16 sps:$4 sm:$0xff]   ;;  %v11375_v41 = vld [vmem:[#allocation3 + $0x1e0] ss:$16 sps:$4 sm:$0xff]  }
  0x45   :  { %547 = vmatpush2.bf16.msra.mxu0 %v11295_v42  ;;  %588 = vmatpush2.bf16.msra.mxu1 %v11296_v43  ;;  %v11378_v42 = vld [vmem:[#allocation3 + $0x1e8] ss:$16 sps:$4 sm:$0xff]   ;;  %v11383_v43 = vld [vmem:[#allocation3 + $0x1c4] ss:$16 sps:$4 sm:$0xff]  }
  0x46   :  { %548 = vmatprep.subr.bf16.mxu0 %v11297_v44  ;;  %589 = vmatprep.subr.bf16.mxu1 %v11299_v45  ;;  %v11386_v44 = vld [vmem:[#allocation3 + $0x1cc] ss:$16 sps:$4 sm:$0xff]   ;;  %v11381_v45 = vld [vmem:[#allocation3 + $0x1c0] ss:$16 sps:$4 sm:$0xff]  }
  0x49   :  { %549 = vmatpush2.bf16.msra.mxu0 %v11301_v47  ;;  %590 = vmatpush2.bf16.msra.mxu1 %v11302_v48  ;;  %v11389_v47 = vld [vmem:[#allocation3 + $0x1a4] ss:$16 sps:$4 sm:$0xff]   ;;  %v11392_v48 = vld [vmem:[#allocation3 + $0x1ac] ss:$16 sps:$4 sm:$0xff]  }
  0x4a   :  { %550 = vmatprep.subr.bf16.mxu0 %v11303_v50  ;;  %591 = vmatprep.subr.bf16.mxu1 %v11305_v51  ;;  %v11390_v50 = vld [vmem:[#allocation3 + $0x1a8] ss:$16 sps:$4 sm:$0xff]   ;;  %v11395_v51 = vld [vmem:[#allocation3 + $0x184] ss:$16 sps:$4 sm:$0xff]  }
  0x4d   :  { %551 = vmatpush2.bf16.msra.mxu0 %v11307_v53  ;;  %592 = vmatpush2.bf16.msra.mxu1 %v11308_v54  ;;  %v11393_v53 = vld [vmem:[#allocation3 + $0x180] ss:$16 sps:$4 sm:$0xff]   ;;  %v11396_v54 = vld [vmem:[#allocation3 + $0x188] ss:$16 sps:$4 sm:$0xff]  }
  0x4e   :  { %552 = vmatprep.subr.bf16.mxu0 %v11309_v55  ;;  %593 = vmatprep.subr.bf16.mxu1 %v11311_v56  ;;  %v11401_v55 = vld [vmem:[#allocation3 + $0x164] ss:$16 sps:$4 sm:$0xff]   ;;  %v11404_v56 = vld [vmem:[#allocation3 + $0x16c] ss:$16 sps:$4 sm:$0xff]  }
  0x51   :  { %553 = vmatpush2.bf16.msra.mxu0 %v11313_v57  ;;  %594 = vmatpush2.bf16.msra.mxu1 %v11314_v58  ;;  %v11399_v57 = vld [vmem:[#allocation3 + $0x160] ss:$16 sps:$4 sm:$0xff]   ;;  %v11402_v58 = vld [vmem:[#allocation3 + $0x168] ss:$16 sps:$4 sm:$0xff]  }
  0x52   :  { %554 = vmatprep.subr.bf16.mxu0 %v11315_v59  ;;  %595 = vmatprep.subr.bf16.mxu1 %v11317_v60  ;;  %v11407_v59 = vld [vmem:[#allocation3 + $0x144] ss:$16 sps:$4 sm:$0xff]   ;;  %v11410_v60 = vld [vmem:[#allocation3 + $0x14c] ss:$16 sps:$4 sm:$0xff]  }
  0x55   :  { %555 = vmatpush2.bf16.msra.mxu0 %v11319_v61  ;;  %596 = vmatpush2.bf16.msra.mxu1 %v11320_v62  ;;  %v11405_v61 = vld [vmem:[#allocation3 + $0x140] ss:$16 sps:$4 sm:$0xff]   ;;  %v11408_v62 = vld [vmem:[#allocation3 + $0x148] ss:$16 sps:$4 sm:$0xff]  }
  0x56   :  { %556 = vmatprep.subr.bf16.mxu0 %v11321_v63  ;;  %597 = vmatprep.subr.bf16.mxu1 %v11323_v0  ;;  %v11413_v63 = vld [vmem:[#allocation3 + $0x124] ss:$16 sps:$4 sm:$0xff]   ;;  %v11416_v0 = vld [vmem:[#allocation3 + $0x12c] ss:$16 sps:$4 sm:$0xff]  }
  0x59   :  { %557 = vmatpush2.bf16.msra.mxu0 %v11325_v1  ;;  %598 = vmatpush2.bf16.msra.mxu1 %v11326_v2  ;;  %v11411_v1 = vld [vmem:[#allocation3 + $0x120] ss:$16 sps:$4 sm:$0xff]   ;;  %v11414_v2 = vld [vmem:[#allocation3 + $0x128] ss:$16 sps:$4 sm:$0xff]  }
  0x5a   :  { %928 = vmatprep.subr.bf16.mxu0 %v11329_v3  ;;  %969 = vmatprep.subr.bf16.mxu1 %v11332_v4  ;;  %v11419_v3 = vld [vmem:[#allocation3 + $0x104] ss:$16 sps:$4 sm:$0xff]   ;;  %v11422_v4 = vld [vmem:[#allocation3 + $0x10c] ss:$16 sps:$4 sm:$0xff]  }
  0x5c   :  { %559 = vmatmul.mubr.bf16.vlgmr.msra.gmra.mxu0 %v140_v5  ;;  %600 = vmatmul.mubr.bf16.vlgmr.msra.gmra.mxu1 %v140_v5  ;;  %v11417_v5 = vld [vmem:[#allocation3 + $0x100] ss:$16 sps:$4 sm:$0xff]  }
  0x5d   :  { %929 = vmatpush1.bf16.msra.mxu0 %v11327_v6  ;;  %970 = vmatpush1.bf16.msra.mxu1 %v11330_v7  ;;  %v11420_v6 = vld [vmem:[#allocation3 + $0x108] ss:$16 sps:$4 sm:$0xff]   ;;  %v11426_v7 = vld [vmem:[#allocation3 + $0x4e4] ss:$16 sps:$4 sm:$0xff]  }
  0x5e   :  { %930 = vmatprep.subr.bf16.mxu0 %v11335_v8  ;;  %971 = vmatprep.subr.bf16.mxu1 %v11338_v9  ;;  %v11429_v8 = vld [vmem:[#allocation3 + $0x4ec] ss:$16 sps:$4 sm:$0xff]   ;;  %v11424_v9 = vld [vmem:[#allocation3 + $0x4e0] ss:$16 sps:$4 sm:$0xff]  }
  0x5f   :  { %960 = vmatprep.mubr.bf16.mxu0 %v64_v34  ;;  %1001 = vmatprep.mubr.bf16.mxu1 %v64_v34  ;;  %v11451_v34 = vld [vmem:[#allocation3 + $0x468] ss:$16 sps:$4 sm:$0xff]  }
  0x61   :  { %931 = vmatpush1.bf16.msra.mxu0 %v11333_v10  ;;  %972 = vmatpush1.bf16.msra.mxu1 %v11336_v11  ;;  %v63_v10 = vpack.c.bf16 %v13274_v30, %v13274_v30  ;;  %v11427_v11 = vld [vmem:[#allocation3 + $0x4e8] ss:$16 sps:$4 sm:$0xff]  }
  0x62   :  { %932 = vmatprep.subr.bf16.mxu0 %v11341_v12  ;;  %973 = vmatprep.subr.bf16.mxu1 %v11344_v13  ;;  %v11432_v12 = vld [vmem:[#allocation3 + $0x4c4] ss:$16 sps:$4 sm:$0xff]   ;;  %v11435_v13 = vld [vmem:[#allocation3 + $0x4cc] ss:$16 sps:$4 sm:$0xff]   ;;  %v11445_v30 = vld [vmem:[#allocation3 + $0x488] ss:$16 sps:$4 sm:$0xff]  }
  0x65   :  { %933 = vmatpush1.bf16.msra.mxu0 %v11339_v14  ;;  %974 = vmatpush1.bf16.msra.mxu1 %v11342_v15  ;;  %v13283_v14 = vld [vmem:[%s15948_s0] sm:$0x66] }
  0x66   :  { %934 = vmatprep.subr.bf16.mxu0 %v11347_v16  ;;  %975 = vmatprep.subr.bf16.mxu1 %v11350_v17  ;;  %v1011_v15 = vcombine.high %v13283_v14, %v13283_v14  ;;  %v11430_v16 = vld [vmem:[#allocation3 + $0x4c0] ss:$16 sps:$4 sm:$0xff]   ;;  %v11433_v17 = vld [vmem:[#allocation3 + $0x4c8] ss:$16 sps:$4 sm:$0xff]  }
  0x69   :  { %935 = vmatpush1.bf16.msra.mxu0 %v11345_v18  ;;  %976 = vmatpush1.bf16.msra.mxu1 %v11348_v19  ;;  %v11438_v18 = vld [vmem:[#allocation3 + $0x4a4] ss:$16 sps:$4 sm:$0xff]   ;;  %v11441_v19 = vld [vmem:[#allocation3 + $0x4ac] ss:$16 sps:$4 sm:$0xff]  }
  0x6a   :  { %936 = vmatprep.subr.bf16.mxu0 %v11353_v20  ;;  %977 = vmatprep.subr.bf16.mxu1 %v11356_v21  ;;  %v1014_v20 = vpack.c.bf16 %v1011_v15, %v1011_v15 }
  0x6c   :  { %v1087_v21 = vshrl.u32 %v1014_v20, 16 }
  0x6d   :  { %937 = vmatpush1.bf16.msra.mxu0 %v11351_v22  ;;  %978 = vmatpush1.bf16.msra.mxu1 %v11354_v23  ;;  %v1089_v22 = vshll.u32 %v1014_v20, 16  ;;  %v11436_v23 = vld [vmem:[#allocation3 + $0x4a0] ss:$16 sps:$4 sm:$0xff]   ;;  %v11523_v20 = vld [vmem:[#allocation5 + $0xe4] ss:$16 sps:$4 sm:$0xff]  }
  0x6e   :  { %938 = vmatprep.subr.bf16.mxu0 %v11359_v24  ;;  %979 = vmatprep.subr.bf16.mxu1 %v11362_v25  ;;  %v11439_v24 = vld [vmem:[#allocation3 + $0x4a8] ss:$16 sps:$4 sm:$0xff]  }
  0x6f   :  { %v1091_v25 = vrot.slane %v1089_v22, 1  ;;  %v11524_v22 = vld [vmem:[#allocation5 + $0xe8] ss:$16 sps:$4 sm:$0xff]  }
  0x71   :  { %939 = vmatpush1.bf16.msra.mxu0 %v11357_v26  ;;  %980 = vmatpush1.bf16.msra.mxu1 %v11360_v27  ;;  %v11444_v26 = vld [vmem:[#allocation3 + $0x484] ss:$16 sps:$4 sm:$0xff]   ;;  %v11447_v27 = vld [vmem:[#allocation3 + $0x48c] ss:$16 sps:$4 sm:$0xff]  }
  0x72   :  { %940 = vmatprep.subr.bf16.mxu0 %v11365_v28  ;;  %981 = vmatprep.subr.bf16.mxu1 %v11368_v29  ;;  %v1092_v28 = vor.u32 %v1091_v25, %v1087_v21  ;;  %v11442_v29 = vld [vmem:[#allocation3 + $0x480] ss:$16 sps:$4 sm:$0xff]   ;;  %v11526_v21 = vld [vmem:[#allocation5 + $0xec] ss:$16 sps:$4 sm:$0xff]  }
  0x73   :  { %v11532_v25 = vld [vmem:[#allocation5 + $0xcc] ss:$16 sps:$4 sm:$0xff]  }
  0x75   :  { %941 = vmatpush1.bf16.msra.mxu0 %v11363_v32  ;;  %982 = vmatpush1.bf16.msra.mxu1 %v11366_v33  ;;  %v11453_v32 = vld [vmem:[#allocation3 + $0x46c] ss:$16 sps:$4 sm:$0xff]   ;;  %v11448_v33 = vld [vmem:[#allocation3 + $0x460] ss:$16 sps:$4 sm:$0xff]  }
  0x76   :  { %942 = vmatprep.subr.bf16.mxu0 %v11371_v35  ;;  %983 = vmatprep.subr.bf16.mxu1 %v11374_v36  ;;  %v11456_v35 = vld [vmem:[#allocation3 + $0x444] ss:$16 sps:$4 sm:$0xff]   ;;  %v11459_v36 = vld [vmem:[#allocation3 + $0x44c] ss:$16 sps:$4 sm:$0xff]  }
  0x79   :  { %943 = vmatpush1.bf16.msra.mxu0 %v11369_v37  ;;  %984 = vmatpush1.bf16.msra.mxu1 %v11372_v38  ;;  %v11454_v37 = vld [vmem:[#allocation3 + $0x440] ss:$16 sps:$4 sm:$0xff]   ;;  %v11457_v38 = vld [vmem:[#allocation3 + $0x448] ss:$16 sps:$4 sm:$0xff]  }
  0x7a   :  { %944 = vmatprep.subr.bf16.mxu0 %v11377_v39  ;;  %985 = vmatprep.subr.bf16.mxu1 %v11380_v40  ;;  %v11462_v39 = vld [vmem:[#allocation3 + $0x424] ss:$16 sps:$4 sm:$0xff]   ;;  %v11465_v40 = vld [vmem:[#allocation3 + $0x42c] ss:$16 sps:$4 sm:$0xff]  }
  0x7d   :  { %945 = vmatpush2.bf16.msra.mxu0 %v11375_v41  ;;  %986 = vmatpush2.bf16.msra.mxu1 %v11378_v42  ;;  %v11460_v41 = vld [vmem:[#allocation3 + $0x420] ss:$16 sps:$4 sm:$0xff]   ;;  %v11463_v42 = vld [vmem:[#allocation3 + $0x428] ss:$16 sps:$4 sm:$0xff]  }
  0x7e   :  { %946 = vmatprep.subr.bf16.mxu0 %v11383_v43  ;;  %987 = vmatprep.subr.bf16.mxu1 %v11386_v44  ;;  %v11468_v43 = vld [vmem:[#allocation3 + $0x404] ss:$16 sps:$4 sm:$0xff]   ;;  %v11471_v44 = vld [vmem:[#allocation3 + $0x40c] ss:$16 sps:$4 sm:$0xff]  }
  0x81   :  { %947 = vmatpush2.bf16.msra.mxu0 %v11381_v45  ;;  %988 = vmatpush2.bf16.msra.mxu1 %v11384_v46  ;;  %v11466_v45 = vld [vmem:[#allocation3 + $0x400] ss:$16 sps:$4 sm:$0xff]   ;;  %v11469_v46 = vld [vmem:[#allocation3 + $0x408] ss:$16 sps:$4 sm:$0xff]  }
  0x82   :  { %948 = vmatprep.subr.bf16.mxu0 %v11389_v47  ;;  %989 = vmatprep.subr.bf16.mxu1 %v11392_v48  ;;  %v11474_v47 = vld [vmem:[#allocation3 + $0x5e4] ss:$16 sps:$4 sm:$0xff]   ;;  %v11477_v48 = vld [vmem:[#allocation3 + $0x5ec] ss:$16 sps:$4 sm:$0xff]  }
  0x85   :  { %949 = vmatpush2.bf16.msra.mxu0 %v11387_v49  ;;  %990 = vmatpush2.bf16.msra.mxu1 %v11390_v50  ;;  %v11472_v49 = vld [vmem:[#allocation3 + $0x5e0] ss:$16 sps:$4 sm:$0xff]   ;;  %v11475_v50 = vld [vmem:[#allocation3 + $0x5e8] ss:$16 sps:$4 sm:$0xff]  }
  0x86   :  { %950 = vmatprep.subr.bf16.mxu0 %v11395_v51  ;;  %991 = vmatprep.subr.bf16.mxu1 %v11398_v52  ;;  %v11480_v51 = vld [vmem:[#allocation3 + $0x5c4] ss:$16 sps:$4 sm:$0xff]   ;;  %v11483_v52 = vld [vmem:[#allocation3 + $0x5cc] ss:$16 sps:$4 sm:$0xff]  }
  0x89   :  { %951 = vmatpush2.bf16.msra.mxu0 %v11393_v53  ;;  %992 = vmatpush2.bf16.msra.mxu1 %v11396_v54  ;;  %v11478_v53 = vld [vmem:[#allocation3 + $0x5c0] ss:$16 sps:$4 sm:$0xff]   ;;  %v11481_v54 = vld [vmem:[#allocation3 + $0x5c8] ss:$16 sps:$4 sm:$0xff]  }
  0x8a   :  { %952 = vmatprep.subr.bf16.mxu0 %v11401_v55  ;;  %993 = vmatprep.subr.bf16.mxu1 %v11404_v56  ;;  %v11486_v55 = vld [vmem:[#allocation3 + $0x5a4] ss:$16 sps:$4 sm:$0xff]   ;;  %v11489_v56 = vld [vmem:[#allocation3 + $0x5ac] ss:$16 sps:$4 sm:$0xff]  }
  0x8d   :  { %953 = vmatpush2.bf16.msra.mxu0 %v11399_v57  ;;  %994 = vmatpush2.bf16.msra.mxu1 %v11402_v58  ;;  %v11484_v57 = vld [vmem:[#allocation3 + $0x5a0] ss:$16 sps:$4 sm:$0xff]   ;;  %v11487_v58 = vld [vmem:[#allocation3 + $0x5a8] ss:$16 sps:$4 sm:$0xff]  }
  0x8e   :  { %954 = vmatprep.subr.bf16.mxu0 %v11407_v59  ;;  %995 = vmatprep.subr.bf16.mxu1 %v11410_v60  ;;  %v11492_v59 = vld [vmem:[#allocation3 + $0x584] ss:$16 sps:$4 sm:$0xff]   ;;  %v11495_v60 = vld [vmem:[#allocation3 + $0x58c] ss:$16 sps:$4 sm:$0xff]  }
  0x91   :  { %955 = vmatpush2.bf16.msra.mxu0 %v11405_v61  ;;  %996 = vmatpush2.bf16.msra.mxu1 %v11408_v62  ;;  %v11490_v61 = vld [vmem:[#allocation3 + $0x580] ss:$16 sps:$4 sm:$0xff]   ;;  %v11493_v62 = vld [vmem:[#allocation3 + $0x588] ss:$16 sps:$4 sm:$0xff]  }
  0x92   :  { %956 = vmatprep.subr.bf16.mxu0 %v11413_v63  ;;  %997 = vmatprep.subr.bf16.mxu1 %v11416_v0  ;;  %v11498_v63 = vld [vmem:[#allocation3 + $0x564] ss:$16 sps:$4 sm:$0xff]   ;;  %v11501_v0 = vld [vmem:[#allocation3 + $0x56c] ss:$16 sps:$4 sm:$0xff]  }
  0x95   :  { %957 = vmatpush2.bf16.msra.mxu0 %v11411_v1  ;;  %998 = vmatpush2.bf16.msra.mxu1 %v11414_v2  ;;  %v11496_v1 = vld [vmem:[#allocation3 + $0x560] ss:$16 sps:$4 sm:$0xff]   ;;  %v11499_v2 = vld [vmem:[#allocation3 + $0x568] ss:$16 sps:$4 sm:$0xff]  }
  0x96   :  { %958 = vmatprep.subr.bf16.mxu0 %v11419_v3  ;;  %999 = vmatprep.subr.bf16.mxu1 %v11422_v4  ;;  %v11504_v3 = vld [vmem:[#allocation3 + $0x544] ss:$16 sps:$4 sm:$0xff]   ;;  %v11507_v4 = vld [vmem:[#allocation3 + $0x54c] ss:$16 sps:$4 sm:$0xff]  }
  0x99   :  { %959 = vmatpush2.bf16.msra.mxu0 %v11417_v5  ;;  %1000 = vmatpush2.bf16.msra.mxu1 %v11420_v6  ;;  %v11502_v5 = vld [vmem:[#allocation3 + $0x540] ss:$16 sps:$4 sm:$0xff]   ;;  %v11505_v6 = vld [vmem:[#allocation3 + $0x548] ss:$16 sps:$4 sm:$0xff]  }
  0x9a   :  { %1415 = vmatprep.subr.bf16.mxu0 %v11426_v7  ;;  %1456 = vmatprep.subr.bf16.mxu1 %v11429_v8  ;;  %v11510_v7 = vld [vmem:[#allocation3 + $0x524] ss:$16 sps:$4 sm:$0xff]   ;;  %v11513_v8 = vld [vmem:[#allocation3 + $0x52c] ss:$16 sps:$4 sm:$0xff]  }
  0x9c   :  { %961 = vmatmul.mubr.bf16.vlgmr.msra.gmra.mxu0 %v63_v10  ;;  %1002 = vmatmul.mubr.bf16.vlgmr.msra.gmra.mxu1 %v63_v10  ;;  %v11508_v10 = vld [vmem:[#allocation3 + $0x520] ss:$16 sps:$4 sm:$0xff]  }
  0x9d   :  { %1416 = vmatpush1.bf16.msra.mxu0 %v11424_v9  ;;  %1457 = vmatpush1.bf16.msra.mxu1 %v11427_v11  ;;  %v1013_v9 = vpack.c.bf16 %v13283_v14, %v13283_v14  ;;  %v11511_v11 = vld [vmem:[#allocation3 + $0x528] ss:$16 sps:$4 sm:$0xff]   ;;  %v11521_v14 = vld [vmem:[#allocation5 + $0xe0] ss:$16 sps:$4 sm:$0xff]  }
  0x9e   :  { %1417 = vmatprep.subr.bf16.mxu0 %v11432_v12  ;;  %1458 = vmatprep.subr.bf16.mxu1 %v11435_v13  ;;  %v11516_v12 = vld [vmem:[#allocation3 + $0x504] ss:$16 sps:$4 sm:$0xff]   ;;  %v11519_v13 = vld [vmem:[#allocation3 + $0x50c] ss:$16 sps:$4 sm:$0xff]  }
  0x9f   :  { %1447 = vmatprep.mubr.bf16.mxu0 %v1092_v28  ;;  %1488 = vmatprep.mubr.bf16.mxu1 %v1092_v28  ;;  %v1082_v15 = vshll.u32 %v1013_v9, 16  ;;  %v11535_v28 = vld [vmem:[#allocation5 + $0xa4] ss:$16 sps:$4 sm:$0xff]  }
  0xa1   :  { %1418 = vmatpush1.bf16.msra.mxu0 %v11430_v16  ;;  %1459 = vmatpush1.bf16.msra.mxu1 %v11433_v17  ;;  %v11514_v16 = vld [vmem:[#allocation3 + $0x500] ss:$16 sps:$4 sm:$0xff]   ;;  %v11517_v17 = vld [vmem:[#allocation3 + $0x508] ss:$16 sps:$4 sm:$0xff]  }
  0xa2   :  { %1419 = vmatprep.subr.bf16.mxu0 %v11438_v18  ;;  %1460 = vmatprep.subr.bf16.mxu1 %v11441_v19  ;;  %v1080_v18 = vshrl.u32 %v1013_v9, 16  ;;  %v1084_v19 = vrot.slane %v1082_v15, 1  ;;  %v11593_v9 = vld [vmem:[#allocation5 + $0x160] ss:$16 sps:$4 sm:$0xff]   ;;  %v11602_v15 = vld [vmem:[#allocation5 + $0x148] ss:$16 sps:$4 sm:$0xff]  }
  0xa5   :  { %1420 = vmatpush1.bf16.msra.mxu0 %v11436_v23  ;;  %1461 = vmatpush1.bf16.msra.mxu1 %v11439_v24  ;;  %v1085_v23 = vor.u32 %v1084_v19, %v1080_v18  ;;  %v11529_v24 = vld [vmem:[#allocation5 + $0xc4] ss:$16 sps:$4 sm:$0xff]   ;;  %v11605_v18 = vld [vmem:[#allocation5 + $0x120] ss:$16 sps:$4 sm:$0xff]   ;;  %v11608_v19 = vld [vmem:[#allocation5 + $0x128] ss:$16 sps:$4 sm:$0xff]  }
  0xa6   :  { %1421 = vmatprep.subr.bf16.mxu0 %v11444_v26  ;;  %1462 = vmatprep.subr.bf16.mxu1 %v11447_v27  ;;  %v11527_v26 = vld [vmem:[#allocation5 + $0xc0] ss:$16 sps:$4 sm:$0xff]   ;;  %v11530_v27 = vld [vmem:[#allocation5 + $0xc8] ss:$16 sps:$4 sm:$0xff]  }
  0xa9   :  { %1422 = vmatpush1.bf16.msra.mxu0 %v11442_v29  ;;  %1463 = vmatpush1.bf16.msra.mxu1 %v11445_v30  ;;  %v11538_v29 = vld [vmem:[#allocation5 + $0xac] ss:$16 sps:$4 sm:$0xff]   ;;  %v11533_v30 = vld [vmem:[#allocation5 + $0xa0] ss:$16 sps:$4 sm:$0xff]  }
  0xaa   :  { %1423 = vmatprep.subr.bf16.mxu0 %v11450_v31  ;;  %1464 = vmatprep.subr.bf16.mxu1 %v11453_v32  ;;  %v11536_v31 = vld [vmem:[#allocation5 + $0xa8] ss:$16 sps:$4 sm:$0xff]   ;;  %v11541_v32 = vld [vmem:[#allocation5 + $0x84] ss:$16 sps:$4 sm:$0xff]  }
  0xad   :  { %1424 = vmatpush1.bf16.msra.mxu0 %v11448_v33  ;;  %1465 = vmatpush1.bf16.msra.mxu1 %v11451_v34  ;;  %v11544_v33 = vld [vmem:[#allocation5 + $0x8c] ss:$16 sps:$4 sm:$0xff]   ;;  %v11539_v34 = vld [vmem:[#allocation5 + $0x80] ss:$16 sps:$4 sm:$0xff]  }
  0xae   :  { %1425 = vmatprep.subr.bf16.mxu0 %v11456_v35  ;;  %1466 = vmatprep.subr.bf16.mxu1 %v11459_v36  ;;  %v11542_v35 = vld [vmem:[#allocation5 + $0x88] ss:$16 sps:$4 sm:$0xff]   ;;  %v11547_v36 = vld [vmem:[#allocation5 + $0x64] ss:$16 sps:$4 sm:$0xff]  }
  0xb1   :  { %1426 = vmatpush1.bf16.msra.mxu0 %v11454_v37  ;;  %1467 = vmatpush1.bf16.msra.mxu1 %v11457_v38  ;;  %v11550_v37 = vld [vmem:[#allocation5 + $0x6c] ss:$16 sps:$4 sm:$0xff]   ;;  %v13292_v38 = vld.sshfl [vmem:[%s15949_s1] sm:$0x33 pattern:$0x76325410] }
  0xb2   :  { %1427 = vmatprep.subr.bf16.mxu0 %v11462_v39  ;;  %1468 = vmatprep.subr.bf16.mxu1 %v11465_v40  ;;  %v1559_v39 = vcombine.high %v13292_v38, %v13292_v38  ;;  %v11545_v40 = vld [vmem:[#allocation5 + $0x60] ss:$16 sps:$4 sm:$0xff]  }
  0xb5   :  { %1428 = vmatpush1.bf16.msra.mxu0 %v11460_v41  ;;  %1469 = vmatpush1.bf16.msra.mxu1 %v11463_v42  ;;  %v11548_v41 = vld [vmem:[#allocation5 + $0x68] ss:$16 sps:$4 sm:$0xff]   ;;  %v1563_v42 = vpack.c.bf16 %v1559_v39, %v1559_v39  ;;  %v11632_v39 = vld [vmem:[%s15952_s4 + $0x2a0] ss:$16 sps:$4 sm:$0xff]  }
  0xb6   :  { %1429 = vmatprep.subr.bf16.mxu0 %v11468_v43  ;;  %1470 = vmatprep.subr.bf16.mxu1 %v11471_v44  ;;  %v11553_v43 = vld [vmem:[#allocation5 + $0x44] ss:$16 sps:$4 sm:$0xff]   ;;  %v11556_v44 = vld [vmem:[#allocation5 + $0x4c] ss:$16 sps:$4 sm:$0xff]  }
  0xb9   :  { %1430 = vmatpush1.bf16.msra.mxu0 %v11466_v45  ;;  %1471 = vmatpush1.bf16.msra.mxu1 %v11469_v46  ;;  %v11551_v45 = vld [vmem:[#allocation5 + $0x40] ss:$16 sps:$4 sm:$0xff]   ;;  %v11554_v46 = vld [vmem:[#allocation5 + $0x48] ss:$16 sps:$4 sm:$0xff]  }
  0xba   :  { %1431 = vmatprep.subr.bf16.mxu0 %v11474_v47  ;;  %1472 = vmatprep.subr.bf16.mxu1 %v11477_v48  ;;  %v11559_v47 = vld [vmem:[#allocation5 + $0x24] ss:$16 sps:$4 sm:$0xff]   ;;  %v11562_v48 = vld [vmem:[#allocation5 + $0x2c] ss:$16 sps:$4 sm:$0xff]  }
  0xbd   :  { %1432 = vmatpush2.bf16.msra.mxu0 %v11472_v49  ;;  %1473 = vmatpush2.bf16.msra.mxu1 %v11475_v50  ;;  %v11557_v49 = vld [vmem:[#allocation5 + $0x20] ss:$16 sps:$4 sm:$0xff]   ;;  %v11560_v50 = vld [vmem:[#allocation5 + $0x28] ss:$16 sps:$4 sm:$0xff]  }
  0xbe   :  { %1433 = vmatprep.subr.bf16.mxu0 %v11480_v51  ;;  %1474 = vmatprep.subr.bf16.mxu1 %v11483_v52  ;;  %v11565_v51 = vld [vmem:[#allocation5 + $0x4] ss:$16 sps:$4 sm:$0xff]   ;;  %v11568_v52 = vld [vmem:[#allocation5 + $0xc] ss:$16 sps:$4 sm:$0xff]  }
  0xc1   :  { %1434 = vmatpush2.bf16.msra.mxu0 %v11478_v53  ;;  %1475 = vmatpush2.bf16.msra.mxu1 %v11481_v54  ;;  %v11563_v53 = vld [vmem:[#allocation5] ss:$16 sps:$4 sm:$0xff]   ;;  %v11566_v54 = vld [vmem:[#allocation5 + $0x8] ss:$16 sps:$4 sm:$0xff]  }
  0xc2   :  { %1435 = vmatprep.subr.bf16.mxu0 %v11486_v55  ;;  %1476 = vmatprep.subr.bf16.mxu1 %v11489_v56  ;;  %v11571_v55 = vld [vmem:[#allocation5 + $0x1e4] ss:$16 sps:$4 sm:$0xff]   ;;  %v11574_v56 = vld [vmem:[#allocation5 + $0x1ec] ss:$16 sps:$4 sm:$0xff]  }
  0xc5   :  { %1436 = vmatpush2.bf16.msra.mxu0 %v11484_v57  ;;  %1477 = vmatpush2.bf16.msra.mxu1 %v11487_v58  ;;  %v11569_v57 = vld [vmem:[#allocation5 + $0x1e0] ss:$16 sps:$4 sm:$0xff]   ;;  %v11572_v58 = vld [vmem:[#allocation5 + $0x1e8] ss:$16 sps:$4 sm:$0xff]  }
  0xc6   :  { %1437 = vmatprep.subr.bf16.mxu0 %v11492_v59  ;;  %1478 = vmatprep.subr.bf16.mxu1 %v11495_v60  ;;  %v11577_v59 = vld [vmem:[#allocation5 + $0x1c4] ss:$16 sps:$4 sm:$0xff]   ;;  %v11580_v60 = vld [vmem:[#allocation5 + $0x1cc] ss:$16 sps:$4 sm:$0xff]  }
  0xc9   :  { %1438 = vmatpush2.bf16.msra.mxu0 %v11490_v61  ;;  %1479 = vmatpush2.bf16.msra.mxu1 %v11493_v62  ;;  %v11575_v61 = vld [vmem:[#allocation5 + $0x1c0] ss:$16 sps:$4 sm:$0xff]   ;;  %v11578_v62 = vld [vmem:[#allocation5 + $0x1c8] ss:$16 sps:$4 sm:$0xff]  }
  0xca   :  { %1439 = vmatprep.subr.bf16.mxu0 %v11498_v63  ;;  %1480 = vmatprep.subr.bf16.mxu1 %v11501_v0  ;;  %v11583_v63 = vld [vmem:[#allocation5 + $0x1a4] ss:$16 sps:$4 sm:$0xff]   ;;  %v11586_v0 = vld [vmem:[#allocation5 + $0x1ac] ss:$16 sps:$4 sm:$0xff]  }
  0xcd   :  { %1440 = vmatpush2.bf16.msra.mxu0 %v11496_v1  ;;  %1481 = vmatpush2.bf16.msra.mxu1 %v11499_v2  ;;  %v11581_v1 = vld [vmem:[#allocation5 + $0x1a0] ss:$16 sps:$4 sm:$0xff]   ;;  %v11584_v2 = vld [vmem:[#allocation5 + $0x1a8] ss:$16 sps:$4 sm:$0xff]  }
  0xce   :  { %1441 = vmatprep.subr.bf16.mxu0 %v11504_v3  ;;  %1482 = vmatprep.subr.bf16.mxu1 %v11507_v4  ;;  %v11589_v3 = vld [vmem:[#allocation5 + $0x184] ss:$16 sps:$4 sm:$0xff]   ;;  %v11592_v4 = vld [vmem:[#allocation5 + $0x18c] ss:$16 sps:$4 sm:$0xff]  }
  0xd1   :  { %1442 = vmatpush2.bf16.msra.mxu0 %v11502_v5  ;;  %1483 = vmatpush2.bf16.msra.mxu1 %v11505_v6  ;;  %v11587_v5 = vld [vmem:[#allocation5 + $0x180] ss:$16 sps:$4 sm:$0xff]   ;;  %v11590_v6 = vld [vmem:[#allocation5 + $0x188] ss:$16 sps:$4 sm:$0xff]  }
  0xd2   :  { %1443 = vmatprep.subr.bf16.mxu0 %v11510_v7  ;;  %1484 = vmatprep.subr.bf16.mxu1 %v11513_v8  ;;  %v11595_v7 = vld [vmem:[#allocation5 + $0x164] ss:$16 sps:$4 sm:$0xff]   ;;  %v11598_v8 = vld [vmem:[#allocation5 + $0x16c] ss:$16 sps:$4 sm:$0xff]  }
  0xd5   :  { %1444 = vmatpush2.bf16.msra.mxu0 %v11508_v10  ;;  %1485 = vmatpush2.bf16.msra.mxu1 %v11511_v11  ;;  %v11596_v10 = vld [vmem:[#allocation5 + $0x168] ss:$16 sps:$4 sm:$0xff]   ;;  %v11601_v11 = vld [vmem:[#allocation5 + $0x144] ss:$16 sps:$4 sm:$0xff]  }
  0xd6   :  { %1445 = vmatprep.subr.bf16.mxu0 %v11516_v12  ;;  %1486 = vmatprep.subr.bf16.mxu1 %v11519_v13  ;;  %v11604_v12 = vld [vmem:[#allocation5 + $0x14c] ss:$16 sps:$4 sm:$0xff]   ;;  %v11599_v13 = vld [vmem:[#allocation5 + $0x140] ss:$16 sps:$4 sm:$0xff]  }
  0xd9   :  { %1446 = vmatpush2.bf16.msra.mxu0 %v11514_v16  ;;  %1487 = vmatpush2.bf16.msra.mxu1 %v11517_v17  ;;  %v11607_v16 = vld [vmem:[#allocation5 + $0x124] ss:$16 sps:$4 sm:$0xff]   ;;  %v11610_v17 = vld [vmem:[#allocation5 + $0x12c] ss:$16 sps:$4 sm:$0xff]  }
  0xda   :  { %1970 = vmatprep.subr.bf16.mxu0 %v11523_v20  ;;  %2011 = vmatprep.subr.bf16.mxu1 %v11526_v21  ;;  %v11613_v20 = vld [vmem:[#allocation5 + $0x104] ss:$16 sps:$4 sm:$0xff]   ;;  %v11616_v21 = vld [vmem:[#allocation5 + $0x10c] ss:$16 sps:$4 sm:$0xff]  }
  0xdc   :  { %1448 = vmatmul.mubr.bf16.vlgmr.msra.gmra.mxu0 %v1085_v23  ;;  %1489 = vmatmul.mubr.bf16.vlgmr.msra.gmra.mxu1 %v1085_v23  ;;  %v11619_v23 = vld [vmem:[%s15952_s4 + $0xe4] ss:$16 sps:$4 sm:$0xff]  }
  0xdd   :  { %1971 = vmatpush1.bf16.msra.mxu0 %v11521_v14  ;;  %2012 = vmatpush1.bf16.msra.mxu1 %v11524_v22  ;;  %v11611_v14 = vld [vmem:[#allocation5 + $0x100] ss:$16 sps:$4 sm:$0xff]   ;;  %v11614_v22 = vld [vmem:[#allocation5 + $0x108] ss:$16 sps:$4 sm:$0xff]  }
  0xde   :  { %1972 = vmatprep.subr.bf16.mxu0 %v11529_v24  ;;  %2013 = vmatprep.subr.bf16.mxu1 %v11532_v25  ;;  %v11622_v24 = vld [vmem:[%s15952_s4 + $0x2e4] ss:$16 sps:$4 sm:$0xff]   ;;  %v11617_v25 = vld [vmem:[%s15952_s4 + $0xe0] ss:$16 sps:$4 sm:$0xff]  }
  0xdf   :  { %2002 = vmatprep.mubr.bf16.mxu0 %v1563_v42  ;;  %2043 = vmatprep.mubr.bf16.mxu1 %v1563_v42  ;;  %v11637_v42 = vld [vmem:[%s15952_s4 + $0x84] ss:$16 sps:$4 sm:$0xff]  }
  0xe1   :  { %1973 = vmatpush1.bf16.msra.mxu0 %v11527_v26  ;;  %2014 = vmatpush1.bf16.msra.mxu1 %v11530_v27  ;;  %v11620_v26 = vld [vmem:[%s15952_s4 + $0x2e0] ss:$16 sps:$4 sm:$0xff]   ;;  %v1562_v27 = vpack.c.bf16 %v13292_v38, %v13292_v38 }
  0xe2   :  { %1974 = vmatprep.subr.bf16.mxu0 %v11535_v28  ;;  %2015 = vmatprep.subr.bf16.mxu1 %v11538_v29  ;;  %v11625_v28 = vld [vmem:[%s15952_s4 + $0xc4] ss:$16 sps:$4 sm:$0xff]   ;;  %v11629_v38 = vld [vmem:[%s15952_s4 + $0xa0] ss:$16 sps:$4 sm:$0xff]  }
  0xe3   :  { %v11628_v29 = vld [vmem:[%s15952_s4 + $0x2c4] ss:$16 sps:$4 sm:$0xff]  }
  0xe5   :  { %1975 = vmatpush1.bf16.msra.mxu0 %v11533_v30  ;;  %2016 = vmatpush1.bf16.msra.mxu1 %v11536_v31  ;;  %v11623_v30 = vld [vmem:[%s15952_s4 + $0xc0] ss:$16 sps:$4 sm:$0xff]  }
  0xe6   :  { %1976 = vmatprep.subr.bf16.mxu0 %v11541_v32  ;;  %2017 = vmatprep.subr.bf16.mxu1 %v11544_v33  ;;  %v11626_v33 = vld [vmem:[%s15952_s4 + $0x2c0] ss:$16 sps:$4 sm:$0xff]  }
  0xe9   :  { %1977 = vmatpush1.bf16.msra.mxu0 %v11539_v34  ;;  %2018 = vmatpush1.bf16.msra.mxu1 %v11542_v35  ;;  %v11631_v34 = vld [vmem:[%s15952_s4 + $0xa4] ss:$16 sps:$4 sm:$0xff]  }
  0xea   :  { %1978 = vmatprep.subr.bf16.mxu0 %v11547_v36  ;;  %2019 = vmatprep.subr.bf16.mxu1 %v11550_v37  ;;  %v11634_v35 = vld [vmem:[%s15952_s4 + $0x2a4] ss:$16 sps:$4 sm:$0xff]  }
  0xed   :  { %1979 = vmatpush1.bf16.msra.mxu0 %v11545_v40  ;;  %2020 = vmatpush1.bf16.msra.mxu1 %v11548_v41 }
  0xee   :  { %1980 = vmatprep.subr.bf16.mxu0 %v11553_v43  ;;  %2021 = vmatprep.subr.bf16.mxu1 %v11556_v44  ;;  %v11640_v43 = vld [vmem:[%s15952_s4 + $0x284] ss:$16 sps:$4 sm:$0xff]  }
  0xf1   :  { %1981 = vmatpush1.bf16.msra.mxu0 %v11551_v45  ;;  %2022 = vmatpush1.bf16.msra.mxu1 %v11554_v46  ;;  %v11635_v46 = vld [vmem:[%s15952_s4 + $0x80] ss:$16 sps:$4 sm:$0xff]  }
  0xf2   :  { %1982 = vmatprep.subr.bf16.mxu0 %v11559_v47  ;;  %2023 = vmatprep.subr.bf16.mxu1 %v11562_v48  ;;  %v11638_v47 = vld [vmem:[%s15952_s4 + $0x280] ss:$16 sps:$4 sm:$0xff]   ;;  %v11643_v48 = vld [vmem:[%s15952_s4 + $0x64] ss:$16 sps:$4 sm:$0xff]  }
  0xf5   :  { %1983 = vmatpush1.bf16.msra.mxu0 %v11557_v49  ;;  %2024 = vmatpush1.bf16.msra.mxu1 %v11560_v50  ;;  %v11646_v49 = vld [vmem:[%s15952_s4 + $0x264] ss:$16 sps:$4 sm:$0xff]   ;;  %v1503_v50 = vlaneseq }
  0xf6   :  { %1984 = vmatprep.subr.bf16.mxu0 %v11565_v51  ;;  %2025 = vmatprep.subr.bf16.mxu1 %v11568_v52  ;;  %v11641_v51 = vld [vmem:[%s15952_s4 + $0x60] ss:$16 sps:$4 sm:$0xff]  }
  0xf7   :  { %vm1533_vm0 = vcmp.lt.s32.totalorder %v1503_v50, 512  ;;  %v11644_v52 = vld [vmem:[%s15952_s4 + $0x260] ss:$16 sps:$4 sm:$0xff]  }
  0xf9   :  { %1985 = vmatpush1.bf16.msra.mxu0 %v11563_v53  ;;  %2026 = vmatpush1.bf16.msra.mxu1 %v11566_v54  ;;  %v13215_v53 = vmov 0.0   ;;  %v11649_v54 = vld [vmem:[%s15952_s4 + $0x44] ss:$16 sps:$4 sm:$0xff]  }
  0xfa   :  { %1986 = vmatprep.subr.bf16.mxu0 %v11571_v55  ;;  %2027 = vmatprep.subr.bf16.mxu1 %v11574_v56  ;;  %1535 = vst.msk [vmem:[#allocation2] ss:$4 sm:$0xf] %vm1533_vm0, %v13215_v53  ;;  %1537 = vst.msk [vmem:[#allocation2 + $0x3] ss:$4 sm:$0xf] %vm1533_vm0, %v13215_v53 }
  0xfb   :  { %6470 = vst.msk [vmem:[#allocation2 + $0x10] ss:$4 sm:$0xf] %vm1533_vm0, %v13215_v53  ;;  %6472 = vst.msk [vmem:[#allocation2 + $0x13] ss:$4 sm:$0xf] %vm1533_vm0, %v13215_v53 }
  0xfc   :  { %v11652_v55 = vld [vmem:[%s15952_s4 + $0x244] ss:$16 sps:$4 sm:$0xff]   ;;  %v11647_v56 = vld [vmem:[%s15952_s4 + $0x40] ss:$16 sps:$4 sm:$0xff]  }
  0xfd   :  { %1987 = vmatpush2.bf16.msra.mxu0 %v11569_v57  ;;  %2028 = vmatpush2.bf16.msra.mxu1 %v11572_v58  ;;  %v11650_v57 = vld [vmem:[%s15952_s4 + $0x240] ss:$16 sps:$4 sm:$0xff]   ;;  %v11655_v58 = vld [vmem:[%s15952_s4 + $0x24] ss:$16 sps:$4 sm:$0xff]  }
  0xfe   :  { %1988 = vmatprep.subr.bf16.mxu0 %v11577_v59  ;;  %2029 = vmatprep.subr.bf16.mxu1 %v11580_v60  ;;  %v11658_v59 = vld [vmem:[%s15952_s4 + $0x224] ss:$16 sps:$4 sm:$0xff]   ;;  %v11653_v60 = vld [vmem:[%s15952_s4 + $0x20] ss:$16 sps:$4 sm:$0xff]  }
 0x101   :  { %1989 = vmatpush2.bf16.msra.mxu0 %v11575_v61  ;;  %2030 = vmatpush2.bf16.msra.mxu1 %v11578_v62  ;;  %v11656_v61 = vld [vmem:[%s15952_s4 + $0x220] ss:$16 sps:$4 sm:$0xff]   ;;  %v11661_v62 = vld [vmem:[%s15952_s4 + $0x4] ss:$16 sps:$4 sm:$0xff]  }
 0x102   :  { %1990 = vmatprep.subr.bf16.mxu0 %v11583_v63  ;;  %2031 = vmatprep.subr.bf16.mxu1 %v11586_v0  ;;  %v11664_v63 = vld [vmem:[%s15952_s4 + $0x204] ss:$16 sps:$4 sm:$0xff]   ;;  %v11659_v0 = vld [vmem:[%s15952_s4] ss:$16 sps:$4 sm:$0xff]  }
 0x105   :  { %1991 = vmatpush2.bf16.msra.mxu0 %v11581_v1  ;;  %2032 = vmatpush2.bf16.msra.mxu1 %v11584_v2  ;;  %v11662_v1 = vld [vmem:[%s15952_s4 + $0x200] ss:$16 sps:$4 sm:$0xff]   ;;  %v11667_v2 = vld [vmem:[%s15952_s4 + $0x1e4] ss:$16 sps:$4 sm:$0xff]  }
 0x106   :  { %1992 = vmatprep.subr.bf16.mxu0 %v11589_v3  ;;  %2033 = vmatprep.subr.bf16.mxu1 %v11592_v4  ;;  %v11670_v3 = vld [vmem:[%s15952_s4 + $0x3e4] ss:$16 sps:$4 sm:$0xff]   ;;  %v11665_v4 = vld [vmem:[%s15952_s4 + $0x1e0] ss:$16 sps:$4 sm:$0xff]  }
 0x109   :  { %1993 = vmatpush2.bf16.msra.mxu0 %v11587_v5  ;;  %2034 = vmatpush2.bf16.msra.mxu1 %v11590_v6  ;;  %v11668_v5 = vld [vmem:[%s15952_s4 + $0x3e0] ss:$16 sps:$4 sm:$0xff]   ;;  %v11673_v6 = vld [vmem:[%s15952_s4 + $0x1c4] ss:$16 sps:$4 sm:$0xff]  }
 0x10a   :  { %1994 = vmatprep.subr.bf16.mxu0 %v11595_v7  ;;  %2035 = vmatprep.subr.bf16.mxu1 %v11598_v8  ;;  %v11676_v7 = vld [vmem:[%s15952_s4 + $0x3c4] ss:$16 sps:$4 sm:$0xff]   ;;  %v11671_v8 = vld [vmem:[%s15952_s4 + $0x1c0] ss:$16 sps:$4 sm:$0xff]  }
 0x10d   :  { %1995 = vmatpush2.bf16.msra.mxu0 %v11593_v9  ;;  %2036 = vmatpush2.bf16.msra.mxu1 %v11596_v10  ;;  %v11674_v9 = vld [vmem:[%s15952_s4 + $0x3c0] ss:$16 sps:$4 sm:$0xff]   ;;  %v11679_v10 = vld [vmem:[%s15952_s4 + $0x1a4] ss:$16 sps:$4 sm:$0xff]  }
 0x10e   :  { %1996 = vmatprep.subr.bf16.mxu0 %v11601_v11  ;;  %2037 = vmatprep.subr.bf16.mxu1 %v11604_v12  ;;  %v11682_v11 = vld [vmem:[%s15952_s4 + $0x3a4] ss:$16 sps:$4 sm:$0xff]   ;;  %v11677_v12 = vld [vmem:[%s15952_s4 + $0x1a0] ss:$16 sps:$4 sm:$0xff]  }
 0x111   :  { %1997 = vmatpush2.bf16.msra.mxu0 %v11599_v13  ;;  %2038 = vmatpush2.bf16.msra.mxu1 %v11602_v15  ;;  %v11680_v13 = vld [vmem:[%s15952_s4 + $0x3a0] ss:$16 sps:$4 sm:$0xff]   ;;  %v11685_v15 = vld [vmem:[%s15952_s4 + $0x184] ss:$16 sps:$4 sm:$0xff]  }
 0x112   :  { %1998 = vmatprep.subr.bf16.mxu0 %v11607_v16  ;;  %2039 = vmatprep.subr.bf16.mxu1 %v11610_v17  ;;  %v11688_v16 = vld [vmem:[%s15952_s4 + $0x384] ss:$16 sps:$4 sm:$0xff]   ;;  %v11683_v17 = vld [vmem:[%s15952_s4 + $0x180] ss:$16 sps:$4 sm:$0xff]  }
 0x115   :  { %1999 = vmatpush2.bf16.msra.mxu0 %v11605_v18  ;;  %2040 = vmatpush2.bf16.msra.mxu1 %v11608_v19  ;;  %v11686_v18 = vld [vmem:[%s15952_s4 + $0x380] ss:$16 sps:$4 sm:$0xff]   ;;  %v11691_v19 = vld [vmem:[%s15952_s4 + $0x164] ss:$16 sps:$4 sm:$0xff]  }
 0x116   :  { %2000 = vmatprep.subr.bf16.mxu0 %v11613_v20  ;;  %2041 = vmatprep.subr.bf16.mxu1 %v11616_v21  ;;  %v11694_v20 = vld [vmem:[%s15952_s4 + $0x364] ss:$16 sps:$4 sm:$0xff]   ;;  %v11689_v21 = vld [vmem:[%s15952_s4 + $0x160] ss:$16 sps:$4 sm:$0xff]  }
 0x119   :  { %2001 = vmatpush2.bf16.msra.mxu0 %v11611_v14  ;;  %2042 = vmatpush2.bf16.msra.mxu1 %v11614_v22  ;;  %v11692_v14 = vld [vmem:[%s15952_s4 + $0x360] ss:$16 sps:$4 sm:$0xff]   ;;  %v11697_v22 = vld [vmem:[%s15952_s4 + $0x144] ss:$16 sps:$4 sm:$0xff]  }
 0x11a   :  { %2858 = vmatprep.subr.bf16.mxu0 %v11619_v23  ;;  %2899 = vmatprep.subr.bf16.mxu1 %v11622_v24  ;;  %v11700_v23 = vld [vmem:[%s15952_s4 + $0x344] ss:$16 sps:$4 sm:$0xff]   ;;  %v11695_v24 = vld [vmem:[%s15952_s4 + $0x140] ss:$16 sps:$4 sm:$0xff]  }
 0x11c   :  { %v13319_v31 = vpop.f32.mrf.mxu0  ;;  %v13321_v32 = vpop.f32.mrf.mxu1  ;;  %2003 = vmatmul.mubr.bf16.vlgmr.msra.gmra.mxu0 %v1562_v27  ;;  %2044 = vmatmul.mubr.bf16.vlgmr.msra.gmra.mxu1 %v1562_v27  ;;  %v11706_v27 = vld [vmem:[%s15952_s4 + $0x324] ss:$16 sps:$4 sm:$0xff]  }
 0x11d   :  { %2859 = vmatpush1.bf16.msra.mxu0 %v11617_v25  ;;  %2900 = vmatpush1.bf16.msra.mxu1 %v11620_v26  ;;  %v11698_v25 = vld [vmem:[%s15952_s4 + $0x340] ss:$16 sps:$4 sm:$0xff]   ;;  %v11703_v26 = vld [vmem:[%s15952_s4 + $0x124] ss:$16 sps:$4 sm:$0xff]  }
 0x11e   :  { %v13332_v36 = vpop.f32.mrf.mxu0  ;;  %v13334_v37 = vpop.f32.mrf.mxu1  ;;  %2860 = vmatprep.subr.bf16.mxu0 %v11625_v28  ;;  %2901 = vmatprep.subr.bf16.mxu1 %v11628_v29  ;;  %v11701_v28 = vld [vmem:[%s15952_s4 + $0x120] ss:$16 sps:$4 sm:$0xff]  }
 0x11f   :  { %v11704_v29 = vld [vmem:[%s15952_s4 + $0x320] ss:$16 sps:$4 sm:$0xff]  }
 0x120   :  { %v564_v40 = vpop.f32.mrf.mxu0  ;;  %v605_v41 = vpop.f32.mrf.mxu1 }
 0x121   :  { %2861 = vmatpush1.bf16.msra.mxu0 %v11623_v30  ;;  %2902 = vmatpush1.bf16.msra.mxu1 %v11626_v33  ;;  %v11709_v30 = vld [vmem:[%s15952_s4 + $0x104] ss:$16 sps:$4 sm:$0xff]  }
 0x122   :  { %v565_v44 = vpop.f32.mrf.mxu0  ;;  %v606_v45 = vpop.f32.mrf.mxu1  ;;  %2862 = vmatprep.subr.bf16.mxu0 %v11631_v34  ;;  %2903 = vmatprep.subr.bf16.mxu1 %v11634_v35  ;;  %v11712_v33 = vld [vmem:[%s15952_s4 + $0x304] ss:$16 sps:$4 sm:$0xff]   ;;  %v11707_v34 = vld [vmem:[%s15952_s4 + $0x100] ss:$16 sps:$4 sm:$0xff]  }
 0x123   :  { %v11710_v35 = vld [vmem:[%s15952_s4 + $0x300] ss:$16 sps:$4 sm:$0xff]  }
 0x125   :  { %2863 = vmatpush1.bf16.msra.mxu0 %v11629_v38  ;;  %2904 = vmatpush1.bf16.msra.mxu1 %v11632_v39  ;;  %v11717_v38 = vld [vmem:[%s15952_s4 + $0xec] ss:$16 sps:$4 sm:$0xff]  }
 0x126   :  { %2864 = vmatprep.subr.bf16.mxu0 %v11637_v42  ;;  %2905 = vmatprep.subr.bf16.mxu1 %v11640_v43  ;;  %v11720_v39 = vld [vmem:[%s15952_s4 + $0x2ec] ss:$16 sps:$4 sm:$0xff]  }
 0x129   :  { %2865 = vmatpush1.bf16.msra.mxu0 %v11635_v46  ;;  %2906 = vmatpush1.bf16.msra.mxu1 %v11638_v47 }
 0x12a   :  { %2866 = vmatprep.subr.bf16.mxu0 %v11643_v48  ;;  %2907 = vmatprep.subr.bf16.mxu1 %v11646_v49 }
 0x12d   :  { %2867 = vmatpush1.bf16.msra.mxu0 %v11641_v51  ;;  %2908 = vmatpush1.bf16.msra.mxu1 %v11644_v52  ;;  %v13508_v51 = vshrl.u32 %v1503_v50, 7 }
 0x12e   :  { %2868 = vmatprep.subr.bf16.mxu0 %v11649_v54  ;;  %2909 = vmatprep.subr.bf16.mxu1 %v11652_v55 }
 0x12f   :  { %v13511_v52 = vsub.s32 0, %v13508_v51  ;;  %v13514_v53 = vsub.s32 2, %v13508_v51  ;;  %v13523_v54 = vsub.s32 3, %v13508_v51 }
 0x131   :  { %2869 = vmatpush1.bf16.msra.mxu0 %v11647_v56  ;;  %2910 = vmatpush1.bf16.msra.mxu1 %v11650_v57 }
 0x132   :  { %2870 = vmatprep.subr.bf16.mxu0 %v11655_v58  ;;  %2911 = vmatprep.subr.bf16.mxu1 %v11658_v59 }
 0x135   :  { %2871 = vmatpush1.bf16.msra.mxu0 %v11653_v60  ;;  %2912 = vmatpush1.bf16.msra.mxu1 %v11656_v61 }
 0x136   :  { %2872 = vmatprep.subr.bf16.mxu0 %v11661_v62  ;;  %2913 = vmatprep.subr.bf16.mxu1 %v11664_v63 }
 0x139   :  { %2873 = vmatpush1.bf16.msra.mxu0 %v11659_v0  ;;  %2914 = vmatpush1.bf16.msra.mxu1 %v11662_v1 }
 0x13a   :  { %2874 = vmatprep.subr.bf16.mxu0 %v11667_v2  ;;  %2915 = vmatprep.subr.bf16.mxu1 %v11670_v3 }
 0x13d   :  { %2875 = vmatpush2.bf16.msra.mxu0 %v11665_v4  ;;  %2916 = vmatpush2.bf16.msra.mxu1 %v11668_v5 }
 0x13e   :  { %2876 = vmatprep.subr.bf16.mxu0 %v11673_v6  ;;  %2917 = vmatprep.subr.bf16.mxu1 %v11676_v7 }
 0x141   :  { %2877 = vmatpush2.bf16.msra.mxu0 %v11671_v8  ;;  %2918 = vmatpush2.bf16.msra.mxu1 %v11674_v9 }
 0x142   :  { %2878 = vmatprep.subr.bf16.mxu0 %v11679_v10  ;;  %2919 = vmatprep.subr.bf16.mxu1 %v11682_v11 }
 0x145   :  { %2879 = vmatpush2.bf16.msra.mxu0 %v11677_v12  ;;  %2920 = vmatpush2.bf16.msra.mxu1 %v11680_v13 }
 0x146   :  { %2880 = vmatprep.subr.bf16.mxu0 %v11685_v15  ;;  %2921 = vmatprep.subr.bf16.mxu1 %v11688_v16 }
 0x149   :  { %2881 = vmatpush2.bf16.msra.mxu0 %v11683_v17  ;;  %2922 = vmatpush2.bf16.msra.mxu1 %v11686_v18 }
 0x14a   :  { %2882 = vmatprep.subr.bf16.mxu0 %v11691_v19  ;;  %2923 = vmatprep.subr.bf16.mxu1 %v11694_v20 }
 0x14d   :  { %2883 = vmatpush2.bf16.msra.mxu0 %v11689_v21  ;;  %2924 = vmatpush2.bf16.msra.mxu1 %v11692_v14 }
 0x14e   :  { %2884 = vmatprep.subr.bf16.mxu0 %v11697_v22  ;;  %2925 = vmatprep.subr.bf16.mxu1 %v11700_v23  ;;  %v11715_v22 = vld [vmem:[%s15952_s4 + $0xe8] ss:$16 sps:$4 sm:$0xff]  }
 0x151   :  { %2885 = vmatpush2.bf16.msra.mxu0 %v11695_v24  ;;  %2926 = vmatpush2.bf16.msra.mxu1 %v11698_v25  ;;  %v11718_v25 = vld [vmem:[%s15952_s4 + $0x2e8] ss:$16 sps:$4 sm:$0xff]  }
 0x152   :  { %2886 = vmatprep.subr.bf16.mxu0 %v11703_v26  ;;  %2927 = vmatprep.subr.bf16.mxu1 %v11706_v27  ;;  %v11723_v26 = vld [vmem:[%s15952_s4 + $0xcc] ss:$16 sps:$4 sm:$0xff]  }
 0x153   :  { %v11726_v27 = vld [vmem:[%s15952_s4 + $0x2cc] ss:$16 sps:$4 sm:$0xff]  }
 0x155   :  { %2887 = vmatpush2.bf16.msra.mxu0 %v11701_v28  ;;  %2928 = vmatpush2.bf16.msra.mxu1 %v11704_v29 }
 0x156   :  { %2888 = vmatprep.subr.bf16.mxu0 %v11709_v30  ;;  %2929 = vmatprep.subr.bf16.mxu1 %v11712_v33  ;;  %v11721_v30 = vld [vmem:[%s15952_s4 + $0xc8] ss:$16 sps:$4 sm:$0xff]  }
 0x157   :  { %v11724_v33 = vld [vmem:[%s15952_s4 + $0x2c8] ss:$16 sps:$4 sm:$0xff]  }
 0x159   :  { %2889 = vmatpush2.bf16.msra.mxu0 %v11707_v34  ;;  %2930 = vmatpush2.bf16.msra.mxu1 %v11710_v35  ;;  %v11729_v34 = vld [vmem:[%s15952_s4 + $0xac] ss:$16 sps:$4 sm:$0xff]  }
 0x15a   :  { %2940 = vmatprep.subr.bf16.mxu0 %v11717_v38  ;;  %2981 = vmatprep.subr.bf16.mxu1 %v11720_v39  ;;  %v11732_v35 = vld [vmem:[%s15952_s4 + $0x2ac] ss:$16 sps:$4 sm:$0xff]   ;;  %v11727_v38 = vld [vmem:[%s15952_s4 + $0xa8] ss:$16 sps:$4 sm:$0xff]  }
 0x15b   :  { %v11730_v39 = vld [vmem:[%s15952_s4 + $0x2a8] ss:$16 sps:$4 sm:$0xff]  }
 0x15c   :  { %v962_v40 = vpop.f32.mrf.mxu0  ;;  %v1003_v41 = vpop.f32.mrf.mxu1 }
 0x15d   :  { %v963_v42 = vadd.f32 %v962_v40, %v13319_v31  ;;  %v1004_v43 = vadd.f32 %v1003_v41, %v13321_v32  ;;  %v1501_v31 = vld [vmem:[%s15951_s3] sm:$0xf]  ;;  %v13520_v32 = vsub.s32 1, %v13508_v51  ;;  %v11735_v40 = vld [vmem:[%s15952_s4 + $0x8c] ss:$16 sps:$4 sm:$0xff]  }
 0x15e   :  { %v964_v44 = vpop.f32.mrf.mxu0  ;;  %v1005_v45 = vpop.f32.mrf.mxu1  ;;  %v1506_v55 = vrot.slane %v1501_v31, %v13511_v52  ;;  %v1514_v50 = vrot.slane %v1501_v31, %v13514_v53  ;;  %v1518_v59 = vrot.slane %v1501_v31, %v13523_v54  ;;  %v11738_v41 = vld [vmem:[%s15952_s4 + $0x28c] ss:$16 sps:$4 sm:$0xff]  }
 0x15f   :  { %v1510_v58 = vrot.slane %v1501_v31, %v13520_v32  ;;  %v965_v60 = vadd.f32 %v964_v44, %v13332_v36  ;;  %v1006_v61 = vadd.f32 %v1005_v45, %v13334_v37  ;;  %v11741_v44 = vld [vmem:[%s15952_s4 + $0x6c] ss:$16 sps:$4 sm:$0xff]   ;;  %v11745_v31 = vld [vmem:[%s15952_s4 + $0x48] ss:$16 sps:$4 sm:$0xff]  }
 0x160   :  { %v966_v46 = vpop.f32.mrf.mxu0  ;;  %v1007_v47 = vpop.f32.mrf.mxu1  ;;  %v11744_v45 = vld [vmem:[%s15952_s4 + $0x26c] ss:$16 sps:$4 sm:$0xff]  }
 0x161   :  { %v11739_v46 = vld [vmem:[%s15952_s4 + $0x68] ss:$16 sps:$4 sm:$0xff]  }
 0x162   :  { %v967_v48 = vpop.f32.mrf.mxu0  ;;  %v1008_v49 = vpop.f32.mrf.mxu1  ;;  %v11742_v47 = vld [vmem:[%s15952_s4 + $0x268] ss:$16 sps:$4 sm:$0xff]  }
 0x163   :  { %v11747_v48 = vld [vmem:[%s15952_s4 + $0x4c] ss:$16 sps:$4 sm:$0xff]  }
 0x164   :  { %v11750_v49 = vld [vmem:[%s15952_s4 + $0x24c] ss:$16 sps:$4 sm:$0xff]  }
 0x19c   :  { %v1449_v56 = vpop.f32.mrf.mxu0  ;;  %v1490_v57 = vpop.f32.mrf.mxu1 }
 0x19d   :  { %v1497_v62 = vadd.f32 %v1449_v56, %v963_v42  ;;  %v1499_v63 = vadd.f32 %v1490_v57, %v1004_v43  ;;  %v11733_v42 = vld [vmem:[%s15952_s4 + $0x88] ss:$16 sps:$4 sm:$0xff]   ;;  %v11756_v56 = vld [vmem:[%s15952_s4 + $0x22c] ss:$16 sps:$4 sm:$0xff]  }
 0x19e   :  { %v1451_v0 = vpop.f32.mrf.mxu0  ;;  %v1492_v1 = vpop.f32.mrf.mxu1  ;;  %v11736_v43 = vld [vmem:[%s15952_s4 + $0x288] ss:$16 sps:$4 sm:$0xff]  }
 0x19f   :  { %v1523_v2 = vadd.f32 %v1506_v55, %v1497_v62  ;;  %v1525_v3 = vadd.f32 %v1514_v50, %v1499_v63  ;;  %v1498_v4 = vadd.f32 %v1451_v0, %v965_v60  ;;  %v1500_v5 = vadd.f32 %v1492_v1, %v1006_v61  ;;  %v11748_v55 = vld [vmem:[%s15952_s4 + $0x248] ss:$16 sps:$4 sm:$0xff]   ;;  %v11753_v50 = vld [vmem:[%s15952_s4 + $0x2c] ss:$16 sps:$4 sm:$0xff]  }
 0x1a0   :  { %v1453_v6 = vpop.f32.mrf.mxu0  ;;  %v1494_v7 = vpop.f32.mrf.mxu1  ;;  %v11751_v57 = vld [vmem:[%s15952_s4 + $0x28] ss:$16 sps:$4 sm:$0xff]   ;;  %v11762_v60 = vld [vmem:[%s15952_s4 + $0x20c] ss:$16 sps:$4 sm:$0xff]  }
 0x1a1   :  { %v1524_v8 = vadd.f32 %v1510_v58, %v1498_v4  ;;  %v1526_v9 = vadd.f32 %v1518_v59, %v1500_v5  ;;  %v1527_v10 = vmax.f32 %v1523_v2, 0.0  ;;  %v1529_v13 = vmax.f32 %v1525_v3, 0.0  ;;  %v11754_v58 = vld [vmem:[%s15952_s4 + $0x228] ss:$16 sps:$4 sm:$0xff]   ;;  %v11759_v59 = vld [vmem:[%s15952_s4 + $0xc] ss:$16 sps:$4 sm:$0xff]  }
 0x1a2   :  { %v1454_v11 = vpop.f32.mrf.mxu0  ;;  %v1495_v12 = vpop.f32.mrf.mxu1  ;;  %v11757_v61 = vld [vmem:[%s15952_s4 + $0x8] ss:$16 sps:$4 sm:$0xff]   ;;  %v11765_v63 = vld [vmem:[%s15952_s4 + $0x1ec] ss:$16 sps:$4 sm:$0xff]  }
 0x1a3   :  { %v1528_v15 = vmax.f32 %v1524_v8, 0.0  ;;  %v1530_v36 = vmax.f32 %v1526_v9, 0.0  ;;  %v11760_v62 = vld [vmem:[%s15952_s4 + $0x208] ss:$16 sps:$4 sm:$0xff]   ;;  %v11768_v0 = vld [vmem:[%s15952_s4 + $0x3ec] ss:$16 sps:$4 sm:$0xff]  }
 0x1a4   :  { %v11763_v1 = vld [vmem:[%s15952_s4 + $0x1e8] ss:$16 sps:$4 sm:$0xff]   ;;  %v11771_v3 = vld [vmem:[%s15952_s4 + $0x1cc] ss:$16 sps:$4 sm:$0xff]  }
 0x1a5   :  { %v1542_v16 = vcombine.low %v1527_v10, %v1528_v15  ;;  %v1543_v37 = vcombine.low %v1529_v13, %v1530_v36  ;;  %v11766_v2 = vld [vmem:[%s15952_s4 + $0x3e8] ss:$16 sps:$4 sm:$0xff]   ;;  %v11774_v4 = vld [vmem:[%s15952_s4 + $0x3cc] ss:$16 sps:$4 sm:$0xff]  }
 0x1a6   :  { %v11769_v5 = vld [vmem:[%s15952_s4 + $0x1c8] ss:$16 sps:$4 sm:$0xff]   ;;  %v11777_v7 = vld [vmem:[%s15952_s4 + $0x1ac] ss:$16 sps:$4 sm:$0xff]  }
 0x1a7   :  { %v1544_v17 = vrot.slane %v1542_v16, 7  ;;  %v1545_v18 = vrot.slane %v1543_v37, 7  ;;  %v11772_v6 = vld [vmem:[%s15952_s4 + $0x3c8] ss:$16 sps:$4 sm:$0xff]   ;;  %v11780_v8 = vld [vmem:[%s15952_s4 + $0x3ac] ss:$16 sps:$4 sm:$0xff]  }
 0x1a8   :  { %v11775_v9 = vld [vmem:[%s15952_s4 + $0x1a8] ss:$16 sps:$4 sm:$0xff]   ;;  %v11783_v11 = vld [vmem:[%s15952_s4 + $0x18c] ss:$16 sps:$4 sm:$0xff]  }
 0x1a9   :  { %1548 = vst [vmem:[#allocation2] sm:$0x66] %v1544_v17  ;;  %1549 = vst [vmem:[#allocation2 + $0x8] sm:$0x66] %v1545_v18  ;;  %v11778_v10 = vld [vmem:[%s15952_s4 + $0x3a8] ss:$16 sps:$4 sm:$0xff]  }
 0x1aa   :  { %v11786_v12 = vld [vmem:[%s15952_s4 + $0x38c] ss:$16 sps:$4 sm:$0xff]   ;;  %v11781_v36 = vld [vmem:[%s15952_s4 + $0x188] ss:$16 sps:$4 sm:$0xff]  }
 0x1ab   :  { %v11784_v16 = vld [vmem:[%s15952_s4 + $0x388] ss:$16 sps:$4 sm:$0xff]   ;;  %v11789_v18 = vld [vmem:[%s15952_s4 + $0x16c] ss:$16 sps:$4 sm:$0xff]  }
 0x1b0   :  { %v2078_v19 = vld [vmem:[#allocation2] sm:$0x33]  ;;  %v2079_v20 = vld [vmem:[#allocation2 + $0x8] sm:$0x33] }
 0x1b1   :  { %v2082_v21 = vcombine.high %v2078_v19, %v2078_v19  ;;  %v2083_v14 = vcombine.high %v2079_v20, %v2079_v20  ;;  %v13543_v28 = vpack.c.bf16 %v2078_v19, %v2078_v19  ;;  %v13545_v29 = vpack.c.bf16 %v2079_v20, %v2079_v20  ;;  %v11792_v19 = vld [vmem:[%s15952_s4 + $0x36c] ss:$16 sps:$4 sm:$0xff]   ;;  %v13689_v20 = vld [vmem:[#allocation2] sm:$0x66] }
 0x1b3   :  { %v2087_v23 = vpack.c.bf16 %v2082_v21, %v2082_v21  ;;  %v2089_v24 = vpack.c.bf16 %v2083_v14, %v2083_v14 }
 0x1b5   :  { %2890 = vmatprep.mubr.bf16.mxu0 %v2087_v23  ;;  %2931 = vmatprep.mubr.bf16.mxu1 %v2089_v24 }
 0x1b6   :  { %2891 = vmatmul.mubr.bf16.vlgmr.msra.gmra.mxu0 %v13543_v28  ;;  %2932 = vmatmul.mubr.bf16.vlgmr.msra.gmra.mxu1 %v13545_v29 }
 0x1b7   :  { %2941 = vmatpush1.bf16.msra.mxu0 %v11715_v22  ;;  %2982 = vmatpush1.bf16.msra.mxu1 %v11718_v25  ;;  %v11787_v22 = vld [vmem:[%s15952_s4 + $0x168] ss:$16 sps:$4 sm:$0xff]  }
 0x1b8   :  { %2972 = vmatprep.mubr.bf16.mxu0 %v2087_v23  ;;  %3013 = vmatprep.mubr.bf16.mxu1 %v2089_v24  ;;  %v11790_v23 = vld [vmem:[%s15952_s4 + $0x368] ss:$16 sps:$4 sm:$0xff]  }
 0x1b9   :  { %2942 = vmatprep.subr.bf16.mxu0 %v11723_v26  ;;  %2983 = vmatprep.subr.bf16.mxu1 %v11726_v27  ;;  %v13697_v24 = vld [vmem:[#allocation2 + $0x8] sm:$0x66] }
 0x1ba   :  { %v11795_v27 = vld [vmem:[%s15952_s4 + $0x14c] ss:$16 sps:$4 sm:$0xff]  }
 0x1bb   :  { %2943 = vmatpush1.bf16.msra.mxu0 %v11721_v30  ;;  %2984 = vmatpush1.bf16.msra.mxu1 %v11724_v33  ;;  %v11798_v30 = vld [vmem:[%s15952_s4 + $0x34c] ss:$16 sps:$4 sm:$0xff]   ;;  %v11793_v33 = vld [vmem:[%s15952_s4 + $0x148] ss:$16 sps:$4 sm:$0xff]  }
 0x1bc   :  { %2944 = vmatprep.subr.bf16.mxu0 %v11729_v34  ;;  %2985 = vmatprep.subr.bf16.mxu1 %v11732_v35  ;;  %v11796_v34 = vld [vmem:[%s15952_s4 + $0x348] ss:$16 sps:$4 sm:$0xff]   ;;  %v3030_v35 = vcombine.high %v13689_v20, %v13689_v20 }
 0x1bf   :  { %2945 = vmatpush1.bf16.msra.mxu0 %v11727_v38  ;;  %2986 = vmatpush1.bf16.msra.mxu1 %v11730_v39  ;;  %v3031_v38 = vcombine.high %v13697_v24, %v13697_v24  ;;  %v11801_v39 = vld [vmem:[%s15952_s4 + $0x12c] ss:$16 sps:$4 sm:$0xff]  }
 0x1c0   :  { %2946 = vmatprep.subr.bf16.mxu0 %v11735_v40  ;;  %2987 = vmatprep.subr.bf16.mxu1 %v11738_v41  ;;  %v11804_v40 = vld [vmem:[%s15952_s4 + $0x32c] ss:$16 sps:$4 sm:$0xff]   ;;  %v11799_v41 = vld [vmem:[%s15952_s4 + $0x128] ss:$16 sps:$4 sm:$0xff]  }
 0x1c3   :  { %2947 = vmatpush1.bf16.msra.mxu0 %v11733_v42  ;;  %2988 = vmatpush1.bf16.msra.mxu1 %v11736_v43  ;;  %v11802_v42 = vld [vmem:[%s15952_s4 + $0x328] ss:$16 sps:$4 sm:$0xff]   ;;  %v3035_v43 = vpack.c.bf16 %v3030_v35, %v3030_v35  ;;  %v11861_v35 = vld [vmem:[%s15952_s4 + $0x5e0] ss:$16 sps:$4 sm:$0xff]  }
 0x1c4   :  { %2948 = vmatprep.subr.bf16.mxu0 %v11741_v44  ;;  %2989 = vmatprep.subr.bf16.mxu1 %v11744_v45  ;;  %v3037_v44 = vpack.c.bf16 %v3031_v38, %v3031_v38  ;;  %v11807_v45 = vld [vmem:[%s15952_s4 + $0x10c] ss:$16 sps:$4 sm:$0xff]   ;;  %v11866_v38 = vld [vmem:[%s15952_s4 + $0x7e4] ss:$16 sps:$4 sm:$0xff]  }
 0x1c7   :  { %2949 = vmatpush1.bf16.msra.mxu0 %v11739_v46  ;;  %2990 = vmatpush1.bf16.msra.mxu1 %v11742_v47  ;;  %v11810_v46 = vld [vmem:[%s15952_s4 + $0x30c] ss:$16 sps:$4 sm:$0xff]   ;;  %v11805_v47 = vld [vmem:[%s15952_s4 + $0x108] ss:$16 sps:$4 sm:$0xff]  }
 0x1c8   :  { %2950 = vmatprep.subr.bf16.mxu0 %v11747_v48  ;;  %2991 = vmatprep.subr.bf16.mxu1 %v11750_v49  ;;  %v11808_v48 = vld [vmem:[%s15952_s4 + $0x308] ss:$16 sps:$4 sm:$0xff]   ;;  %v3176_v49 = vshll.u32 %v3035_v43, 16 }
 0x1cb   :  { %2951 = vmatpush1.bf16.msra.mxu0 %v11745_v31  ;;  %2992 = vmatpush1.bf16.msra.mxu1 %v11748_v55  ;;  %v3190_v31 = vshll.u32 %v3037_v44, 16  ;;  %v11813_v55 = vld [vmem:[%s15952_s4 + $0x4e4] ss:$16 sps:$4 sm:$0xff]  }
 0x1cc   :  { %2952 = vmatprep.subr.bf16.mxu0 %v11753_v50  ;;  %2993 = vmatprep.subr.bf16.mxu1 %v11756_v56  ;;  %v11816_v50 = vld [vmem:[%s15952_s4 + $0x6e4] ss:$16 sps:$4 sm:$0xff]   ;;  %v11811_v56 = vld [vmem:[%s15952_s4 + $0x4e0] ss:$16 sps:$4 sm:$0xff]  }
 0x1cf   :  { %2953 = vmatpush1.bf16.msra.mxu0 %v11751_v57  ;;  %2994 = vmatpush1.bf16.msra.mxu1 %v11754_v58  ;;  %v3178_v57 = vrot.slane %v3176_v49, 1  ;;  %v11814_v58 = vld [vmem:[%s15952_s4 + $0x6e0] ss:$16 sps:$4 sm:$0xff]  }
 0x1d0   :  { %2954 = vmatprep.subr.bf16.mxu0 %v11759_v59  ;;  %2995 = vmatprep.subr.bf16.mxu1 %v11762_v60  ;;  %v3192_v59 = vrot.slane %v3190_v31, 1  ;;  %v3174_v60 = vshrl.u32 %v3035_v43, 16  ;;  %v11870_v43 = vld [vmem:[%s15952_s4 + $0x7c0] ss:$16 sps:$4 sm:$0xff]   ;;  %v11884_v31 = vld [vmem:[%s15952_s4 + $0x784] ss:$16 sps:$4 sm:$0xff]  }
 0x1d1   :  { %v11879_v49 = vld [vmem:[%s15952_s4 + $0x580] ss:$16 sps:$4 sm:$0xff]  }
 0x1d3   :  { %2955 = vmatpush1.bf16.msra.mxu0 %v11757_v61  ;;  %2996 = vmatpush1.bf16.msra.mxu1 %v11760_v62  ;;  %v11821_v61 = vld [vmem:[%s15952_s4 + $0x4c4] ss:$16 sps:$4 sm:$0xff]  }
 0x1d4   :  { %2956 = vmatprep.subr.bf16.mxu0 %v11765_v63  ;;  %2997 = vmatprep.subr.bf16.mxu1 %v11768_v0  ;;  %v11824_v62 = vld [vmem:[%s15952_s4 + $0x6c4] ss:$16 sps:$4 sm:$0xff]   ;;  %v3188_v63 = vshrl.u32 %v3037_v44, 16  ;;  %v13757_v0 = vor.u32 %v3178_v57, %v3174_v60  ;;  %v11891_v60 = vld [vmem:[%s15952_s4 + $0x540] ss:$16 sps:$4 sm:$0xff]  }
 0x1d5   :  { %v11875_v44 = vld [vmem:[%s15952_s4 + $0x5a4] ss:$16 sps:$4 sm:$0xff]  }
 0x1d6   :  { %v11890_v57 = vld [vmem:[%s15952_s4 + $0x764] ss:$16 sps:$4 sm:$0xff]  }
 0x1d7   :  { %2957 = vmatpush2.bf16.msra.mxu0 %v11763_v1  ;;  %2998 = vmatpush2.bf16.msra.mxu1 %v11766_v2  ;;  %v13761_v1 = vor.u32 %v3192_v59, %v3188_v63  ;;  %v11819_v2 = vld [vmem:[%s15952_s4 + $0x4c0] ss:$16 sps:$4 sm:$0xff]   ;;  %v11893_v59 = vld [vmem:[%s15952_s4 + $0x544] ss:$16 sps:$4 sm:$0xff]  }
 0x1d8   :  { %2958 = vmatprep.subr.bf16.mxu0 %v11771_v3  ;;  %2999 = vmatprep.subr.bf16.mxu1 %v11774_v4  ;;  %v11822_v3 = vld [vmem:[%s15952_s4 + $0x6c0] ss:$16 sps:$4 sm:$0xff]   ;;  %v11827_v4 = vld [vmem:[%s15952_s4 + $0x4a4] ss:$16 sps:$4 sm:$0xff]  }
 0x1d9   :  { %v11894_v63 = vld [vmem:[%s15952_s4 + $0x740] ss:$16 sps:$4 sm:$0xff]  }
 0x1db   :  { %2959 = vmatpush2.bf16.msra.mxu0 %v11769_v5  ;;  %3000 = vmatpush2.bf16.msra.mxu1 %v11772_v6  ;;  %v11828_v5 = vld [vmem:[%s15952_s4 + $0x6a0] ss:$16 sps:$4 sm:$0xff]   ;;  %v11833_v6 = vld [vmem:[%s15952_s4 + $0x484] ss:$16 sps:$4 sm:$0xff]  }
 0x1dc   :  { %2960 = vmatprep.subr.bf16.mxu0 %v11777_v7  ;;  %3001 = vmatprep.subr.bf16.mxu1 %v11780_v8  ;;  %v13669_v13 = vpop.f32.mrf.mxu0  ;;  %v13671_v15 = vpop.f32.mrf.mxu1  ;;  %v11831_v7 = vld [vmem:[%s15952_s4 + $0x480] ss:$16 sps:$4 sm:$0xff]   ;;  %v11836_v8 = vld [vmem:[%s15952_s4 + $0x684] ss:$16 sps:$4 sm:$0xff]  }
 0x1de   :  { %v13679_v37 = vpop.f32.mrf.mxu0  ;;  %v13681_v17 = vpop.f32.mrf.mxu1 }
 0x1df   :  { %2961 = vmatpush2.bf16.msra.mxu0 %v11775_v9  ;;  %3002 = vmatpush2.bf16.msra.mxu1 %v11778_v10  ;;  %v11834_v9 = vld [vmem:[%s15952_s4 + $0x680] ss:$16 sps:$4 sm:$0xff]   ;;  %v11839_v10 = vld [vmem:[%s15952_s4 + $0x464] ss:$16 sps:$4 sm:$0xff]  }
 0x1e0   :  { %2962 = vmatprep.subr.bf16.mxu0 %v11783_v11  ;;  %3003 = vmatprep.subr.bf16.mxu1 %v11786_v12  ;;  %v2008_v21 = vpop.f32.mrf.mxu0  ;;  %v2049_v14 = vpop.f32.mrf.mxu1  ;;  %v11837_v11 = vld [vmem:[%s15952_s4 + $0x460] ss:$16 sps:$4 sm:$0xff]   ;;  %v11842_v12 = vld [vmem:[%s15952_s4 + $0x664] ss:$16 sps:$4 sm:$0xff]  }
 0x1e1   :  { %v11846_v21 = vld [vmem:[%s15952_s4 + $0x640] ss:$16 sps:$4 sm:$0xff]   ;;  %v11851_v14 = vld [vmem:[%s15952_s4 + $0x424] ss:$16 sps:$4 sm:$0xff]  }
 0x1e2   :  { %v2009_v25 = vpop.f32.mrf.mxu0  ;;  %v2050_v26 = vpop.f32.mrf.mxu1 }
 0x1e3   :  { %2963 = vmatpush2.bf16.msra.mxu0 %v11781_v36  ;;  %3004 = vmatpush2.bf16.msra.mxu1 %v11784_v16  ;;  %v11840_v36 = vld [vmem:[%s15952_s4 + $0x660] ss:$16 sps:$4 sm:$0xff]   ;;  %v11845_v16 = vld [vmem:[%s15952_s4 + $0x444] ss:$16 sps:$4 sm:$0xff]  }
 0x1e4   :  { %2964 = vmatprep.subr.bf16.mxu0 %v11789_v18  ;;  %3005 = vmatprep.subr.bf16.mxu1 %v11792_v19  ;;  %v11843_v18 = vld [vmem:[%s15952_s4 + $0x440] ss:$16 sps:$4 sm:$0xff]   ;;  %v11848_v19 = vld [vmem:[%s15952_s4 + $0x644] ss:$16 sps:$4 sm:$0xff]  }
 0x1e5   :  { %v11852_v25 = vld [vmem:[%s15952_s4 + $0x620] ss:$16 sps:$4 sm:$0xff]   ;;  %v11857_v26 = vld [vmem:[%s15952_s4 + $0x404] ss:$16 sps:$4 sm:$0xff]  }
 0x1e7   :  { %2965 = vmatpush2.bf16.msra.mxu0 %v11787_v22  ;;  %3006 = vmatpush2.bf16.msra.mxu1 %v11790_v23  ;;  %v11849_v22 = vld [vmem:[%s15952_s4 + $0x420] ss:$16 sps:$4 sm:$0xff]   ;;  %v11854_v23 = vld [vmem:[%s15952_s4 + $0x624] ss:$16 sps:$4 sm:$0xff]  }
 0x1e8   :  { %2966 = vmatprep.subr.bf16.mxu0 %v11795_v27  ;;  %3007 = vmatprep.subr.bf16.mxu1 %v11798_v30  ;;  %v11855_v27 = vld [vmem:[%s15952_s4 + $0x400] ss:$16 sps:$4 sm:$0xff]   ;;  %v11860_v30 = vld [vmem:[%s15952_s4 + $0x604] ss:$16 sps:$4 sm:$0xff]  }
 0x1eb   :  { %2967 = vmatpush2.bf16.msra.mxu0 %v11793_v33  ;;  %3008 = vmatpush2.bf16.msra.mxu1 %v11796_v34  ;;  %v11858_v33 = vld [vmem:[%s15952_s4 + $0x600] ss:$16 sps:$4 sm:$0xff]   ;;  %v11863_v34 = vld [vmem:[%s15952_s4 + $0x5e4] ss:$16 sps:$4 sm:$0xff]  }
 0x1ec   :  { %2968 = vmatprep.subr.bf16.mxu0 %v11801_v39  ;;  %3009 = vmatprep.subr.bf16.mxu1 %v11804_v40  ;;  %v11864_v39 = vld [vmem:[%s15952_s4 + $0x7e0] ss:$16 sps:$4 sm:$0xff]   ;;  %v11869_v40 = vld [vmem:[%s15952_s4 + $0x5c4] ss:$16 sps:$4 sm:$0xff]  }
 0x1ef   :  { %2969 = vmatpush2.bf16.msra.mxu0 %v11799_v41  ;;  %3010 = vmatpush2.bf16.msra.mxu1 %v11802_v42  ;;  %v11867_v41 = vld [vmem:[%s15952_s4 + $0x5c0] ss:$16 sps:$4 sm:$0xff]   ;;  %v11872_v42 = vld [vmem:[%s15952_s4 + $0x7c4] ss:$16 sps:$4 sm:$0xff]  }
 0x1f0   :  { %2970 = vmatprep.subr.bf16.mxu0 %v11807_v45  ;;  %3011 = vmatprep.subr.bf16.mxu1 %v11810_v46  ;;  %v11873_v45 = vld [vmem:[%s15952_s4 + $0x5a0] ss:$16 sps:$4 sm:$0xff]   ;;  %v11878_v46 = vld [vmem:[%s15952_s4 + $0x7a4] ss:$16 sps:$4 sm:$0xff]  }
 0x1f3   :  { %2971 = vmatpush2.bf16.msra.mxu0 %v11805_v47  ;;  %3012 = vmatpush2.bf16.msra.mxu1 %v11808_v48  ;;  %v11876_v47 = vld [vmem:[%s15952_s4 + $0x7a0] ss:$16 sps:$4 sm:$0xff]   ;;  %v11881_v48 = vld [vmem:[%s15952_s4 + $0x584] ss:$16 sps:$4 sm:$0xff]  }
 0x1f4   :  { %3838 = vmatprep.subr.bf16.mxu0 %v11813_v55  ;;  %3879 = vmatprep.subr.bf16.mxu1 %v11816_v50  ;;  %v11882_v55 = vld [vmem:[%s15952_s4 + $0x780] ss:$16 sps:$4 sm:$0xff]   ;;  %v11887_v50 = vld [vmem:[%s15952_s4 + $0x564] ss:$16 sps:$4 sm:$0xff]  }
 0x1f6   :  { %2973 = vmatmul.mubr.bf16.vlgmr.msra.gmra.mxu0 %v13543_v28  ;;  %3014 = vmatmul.mubr.bf16.vlgmr.msra.gmra.mxu1 %v13545_v29  ;;  %v11830_v28 = vld [vmem:[%s15952_s4 + $0x6a4] ss:$16 sps:$4 sm:$0xff]   ;;  %v11825_v29 = vld [vmem:[%s15952_s4 + $0x4a0] ss:$16 sps:$4 sm:$0xff]  }
 0x1f7   :  { %3839 = vmatpush1.bf16.msra.mxu0 %v11811_v56  ;;  %3870 = vmatprep.mubr.bf16.mxu0 %v13757_v0  ;;  %v11885_v56 = vld [vmem:[%s15952_s4 + $0x560] ss:$16 sps:$4 sm:$0xff]  }
 0x1f8   :  { %3880 = vmatpush1.bf16.msra.mxu1 %v11814_v58  ;;  %3911 = vmatprep.mubr.bf16.mxu1 %v13761_v1  ;;  %v11888_v58 = vld [vmem:[%s15952_s4 + $0x760] ss:$16 sps:$4 sm:$0xff]  }
 0x1f9   :  { %3840 = vmatprep.subr.bf16.mxu0 %v11821_v61  ;;  %3881 = vmatprep.subr.bf16.mxu1 %v11824_v62  ;;  %v11896_v61 = vld [vmem:[%s15952_s4 + $0x744] ss:$16 sps:$4 sm:$0xff]   ;;  %v3034_v62 = vpack.c.bf16 %v13689_v20, %v13689_v20 }
 0x1fa   :  { %v11902_v20 = vld [vmem:[%s15952_s4 + $0x724] ss:$16 sps:$4 sm:$0xff]  }
 0x1fb   :  { %3841 = vmatpush1.bf16.msra.mxu0 %v11819_v2  ;;  %v11899_v2 = vld [vmem:[%s15952_s4 + $0x524] ss:$16 sps:$4 sm:$0xff]  }
 0x1fc   :  { %3882 = vmatpush1.bf16.msra.mxu1 %v11822_v3  ;;  %3842 = vmatprep.subr.bf16.mxu0 %v11827_v4  ;;  %v3036_v3 = vpack.c.bf16 %v13697_v24, %v13697_v24  ;;  %v11897_v4 = vld [vmem:[%s15952_s4 + $0x520] ss:$16 sps:$4 sm:$0xff]   ;;  %v11905_v24 = vld [vmem:[%s15952_s4 + $0x504] ss:$16 sps:$4 sm:$0xff]  }
 0x1fd   :  { %3883 = vmatprep.subr.bf16.mxu1 %v11830_v28  ;;  %v11900_v28 = vld [vmem:[%s15952_s4 + $0x720] ss:$16 sps:$4 sm:$0xff]  }
 0x1ff   :  { %3843 = vmatpush1.bf16.msra.mxu0 %v11825_v29  ;;  %v3169_v29 = vshll.u32 %v3034_v62, 16 }
 0x200   :  { %3884 = vmatpush1.bf16.msra.mxu1 %v11828_v5  ;;  %3844 = vmatprep.subr.bf16.mxu0 %v11833_v6  ;;  %v11903_v5 = vld [vmem:[%s15952_s4 + $0x500] ss:$16 sps:$4 sm:$0xff]   ;;  %v11908_v6 = vld [vmem:[%s15952_s4 + $0x704] ss:$16 sps:$4 sm:$0xff]  }
 0x201   :  { %3885 = vmatprep.subr.bf16.mxu1 %v11836_v8  ;;  %v11906_v8 = vld [vmem:[%s15952_s4 + $0x700] ss:$16 sps:$4 sm:$0xff]  }
 0x203   :  { %3845 = vmatpush1.bf16.msra.mxu0 %v11831_v7  ;;  %v3183_v7 = vshll.u32 %v3036_v3, 16 }
 0x204   :  { %3886 = vmatpush1.bf16.msra.mxu1 %v11834_v9  ;;  %3846 = vmatprep.subr.bf16.mxu0 %v11839_v10  ;;  %v3171_v9 = vrot.slane %v3169_v29, 1  ;;  %v11911_v10 = vld [vmem:[%s15952_s4 + $0x4ec] ss:$16 sps:$4 sm:$0xff]  }
 0x205   :  { %3887 = vmatprep.subr.bf16.mxu1 %v11842_v12  ;;  %v11909_v12 = vld [vmem:[%s15952_s4 + $0x4e8] ss:$16 sps:$4 sm:$0xff]   ;;  %v11977_v29 = vld [vmem:[%s15952_s4 + $0x58c] ss:$16 sps:$4 sm:$0xff]  }
 0x207   :  { %3847 = vmatpush1.bf16.msra.mxu0 %v11837_v11  ;;  %v3185_v11 = vrot.slane %v3183_v7, 1  ;;  %v11978_v7 = vld [vmem:[%s15952_s4 + $0x788] ss:$16 sps:$4 sm:$0xff]  }
 0x208   :  { %3888 = vmatpush1.bf16.msra.mxu1 %v11840_v36  ;;  %3848 = vmatprep.subr.bf16.mxu0 %v11845_v16  ;;  %v11914_v36 = vld [vmem:[%s15952_s4 + $0x6ec] ss:$16 sps:$4 sm:$0xff]   ;;  %v3167_v16 = vshrl.u32 %v3034_v62, 16 }
 0x209   :  { %3889 = vmatprep.subr.bf16.mxu1 %v11848_v19  ;;  %v3181_v19 = vshrl.u32 %v3036_v3, 16  ;;  %v11965_v62 = vld [vmem:[%s15952_s4 + $0x5cc] ss:$16 sps:$4 sm:$0xff]   ;;  %v11966_v3 = vld [vmem:[%s15952_s4 + $0x7c8] ss:$16 sps:$4 sm:$0xff]  }
 0x20b   :  { %3849 = vmatpush1.bf16.msra.mxu0 %v11843_v18  ;;  %v11912_v18 = vld [vmem:[%s15952_s4 + $0x6e8] ss:$16 sps:$4 sm:$0xff]  }
 0x20c   :  { %3890 = vmatpush1.bf16.msra.mxu1 %v11846_v21  ;;  %3850 = vmatprep.subr.bf16.mxu0 %v11851_v14  ;;  %v11917_v21 = vld [vmem:[%s15952_s4 + $0x4cc] ss:$16 sps:$4 sm:$0xff]   ;;  %v13958_v14 = vor.u32 %v3171_v9, %v3167_v16  ;;  %v11981_v9 = vld [vmem:[%s15952_s4 + $0x568] ss:$16 sps:$4 sm:$0xff]  }
 0x20d   :  { %3891 = vmatprep.subr.bf16.mxu1 %v11854_v23  ;;  %v13963_v23 = vor.u32 %v3185_v11, %v3181_v19  ;;  %v11984_v11 = vld [vmem:[%s15952_s4 + $0x768] ss:$16 sps:$4 sm:$0xff]   ;;  %v11992_v16 = vld [vmem:[%s15952_s4 + $0x74c] ss:$16 sps:$4 sm:$0xff]  }
 0x20e   :  { %v11995_v19 = vld [vmem:[%s15952_s4 + $0x52c] ss:$16 sps:$4 sm:$0xff]  }
 0x20f   :  { %3851 = vmatpush1.bf16.msra.mxu0 %v11849_v22  ;;  %v11920_v22 = vld [vmem:[%s15952_s4 + $0x6cc] ss:$16 sps:$4 sm:$0xff]  }
 0x210   :  { %3892 = vmatpush1.bf16.msra.mxu1 %v11852_v25  ;;  %3852 = vmatprep.subr.bf16.mxu0 %v11857_v26  ;;  %v11915_v25 = vld [vmem:[%s15952_s4 + $0x4c8] ss:$16 sps:$4 sm:$0xff]  }
 0x211   :  { %3893 = vmatprep.subr.bf16.mxu1 %v11860_v30  ;;  %v11918_v26 = vld [vmem:[%s15952_s4 + $0x6c8] ss:$16 sps:$4 sm:$0xff]   ;;  %v11926_v30 = vld [vmem:[%s15952_s4 + $0x6ac] ss:$16 sps:$4 sm:$0xff]  }
 0x213   :  { %3853 = vmatpush1.bf16.msra.mxu0 %v11855_v27  ;;  %v11923_v27 = vld [vmem:[%s15952_s4 + $0x4ac] ss:$16 sps:$4 sm:$0xff]  }
 0x214   :  { %3894 = vmatpush1.bf16.msra.mxu1 %v11858_v33  ;;  %3854 = vmatprep.subr.bf16.mxu0 %v11863_v34  ;;  %v11921_v33 = vld [vmem:[%s15952_s4 + $0x4a8] ss:$16 sps:$4 sm:$0xff]  }
 0x215   :  { %3895 = vmatprep.subr.bf16.mxu1 %v11866_v38  ;;  %v11927_v34 = vld [vmem:[%s15952_s4 + $0x488] ss:$16 sps:$4 sm:$0xff]  }
 0x216   :  { %v11930_v38 = vld [vmem:[%s15952_s4 + $0x688] ss:$16 sps:$4 sm:$0xff]  }
 0x217   :  { %3855 = vmatpush2.bf16.msra.mxu0 %v11861_v35  ;;  %v11932_v35 = vld [vmem:[%s15952_s4 + $0x68c] ss:$16 sps:$4 sm:$0xff]  }
 0x218   :  { %3896 = vmatpush2.bf16.msra.mxu1 %v11864_v39  ;;  %3856 = vmatprep.subr.bf16.mxu0 %v11869_v40  ;;  %v11935_v39 = vld [vmem:[%s15952_s4 + $0x46c] ss:$16 sps:$4 sm:$0xff]   ;;  %v11933_v40 = vld [vmem:[%s15952_s4 + $0x468] ss:$16 sps:$4 sm:$0xff]  }
 0x219   :  { %3897 = vmatprep.subr.bf16.mxu1 %v11872_v42  ;;  %v11936_v42 = vld [vmem:[%s15952_s4 + $0x668] ss:$16 sps:$4 sm:$0xff]  }
 0x21b   :  { %3857 = vmatpush2.bf16.msra.mxu0 %v11867_v41  ;;  %v11938_v41 = vld [vmem:[%s15952_s4 + $0x66c] ss:$16 sps:$4 sm:$0xff]  }
 0x21c   :  { %3898 = vmatpush2.bf16.msra.mxu1 %v11870_v43  ;;  %3858 = vmatprep.subr.bf16.mxu0 %v11875_v44  ;;  %v11941_v43 = vld [vmem:[%s15952_s4 + $0x44c] ss:$16 sps:$4 sm:$0xff]   ;;  %v11939_v44 = vld [vmem:[%s15952_s4 + $0x448] ss:$16 sps:$4 sm:$0xff]  }
 0x21d   :  { %3899 = vmatprep.subr.bf16.mxu1 %v11878_v46  ;;  %v11942_v46 = vld [vmem:[%s15952_s4 + $0x648] ss:$16 sps:$4 sm:$0xff]  }
 0x21f   :  { %3859 = vmatpush2.bf16.msra.mxu0 %v11873_v45  ;;  %v11944_v45 = vld [vmem:[%s15952_s4 + $0x64c] ss:$16 sps:$4 sm:$0xff]  }
 0x220   :  { %3900 = vmatpush2.bf16.msra.mxu1 %v11876_v47  ;;  %3860 = vmatprep.subr.bf16.mxu0 %v11881_v48  ;;  %v11947_v47 = vld [vmem:[%s15952_s4 + $0x42c] ss:$16 sps:$4 sm:$0xff]   ;;  %v11945_v48 = vld [vmem:[%s15952_s4 + $0x428] ss:$16 sps:$4 sm:$0xff]  }
 0x221   :  { %3901 = vmatprep.subr.bf16.mxu1 %v11884_v31  ;;  %v11948_v31 = vld [vmem:[%s15952_s4 + $0x628] ss:$16 sps:$4 sm:$0xff]  }
 0x223   :  { %3861 = vmatpush2.bf16.msra.mxu0 %v11879_v49  ;;  %v11950_v49 = vld [vmem:[%s15952_s4 + $0x62c] ss:$16 sps:$4 sm:$0xff]  }
 0x224   :  { %3902 = vmatpush2.bf16.msra.mxu1 %v11882_v55  ;;  %3862 = vmatprep.subr.bf16.mxu0 %v11887_v50  ;;  %v11953_v55 = vld [vmem:[%s15952_s4 + $0x40c] ss:$16 sps:$4 sm:$0xff]   ;;  %v11951_v50 = vld [vmem:[%s15952_s4 + $0x408] ss:$16 sps:$4 sm:$0xff]  }
 0x225   :  { %3903 = vmatprep.subr.bf16.mxu1 %v11890_v57  ;;  %v11954_v57 = vld [vmem:[%s15952_s4 + $0x608] ss:$16 sps:$4 sm:$0xff]  }
 0x227   :  { %3863 = vmatpush2.bf16.msra.mxu0 %v11885_v56  ;;  %v11956_v56 = vld [vmem:[%s15952_s4 + $0x60c] ss:$16 sps:$4 sm:$0xff]  }
 0x228   :  { %3904 = vmatpush2.bf16.msra.mxu1 %v11888_v58  ;;  %3864 = vmatprep.subr.bf16.mxu0 %v11893_v59  ;;  %v11959_v58 = vld [vmem:[%s15952_s4 + $0x5ec] ss:$16 sps:$4 sm:$0xff]   ;;  %v11957_v59 = vld [vmem:[%s15952_s4 + $0x5e8] ss:$16 sps:$4 sm:$0xff]  }
 0x229   :  { %3905 = vmatprep.subr.bf16.mxu1 %v11896_v61  ;;  %v11960_v61 = vld [vmem:[%s15952_s4 + $0x7e8] ss:$16 sps:$4 sm:$0xff]  }
 0x22b   :  { %3865 = vmatpush2.bf16.msra.mxu0 %v11891_v60  ;;  %v11962_v60 = vld [vmem:[%s15952_s4 + $0x7ec] ss:$16 sps:$4 sm:$0xff]  }
 0x22c   :  { %3906 = vmatpush2.bf16.msra.mxu1 %v11894_v63  ;;  %3866 = vmatprep.subr.bf16.mxu0 %v11899_v2  ;;  %v11963_v63 = vld [vmem:[%s15952_s4 + $0x5c8] ss:$16 sps:$4 sm:$0xff]   ;;  %v11968_v2 = vld [vmem:[%s15952_s4 + $0x7cc] ss:$16 sps:$4 sm:$0xff]  }
 0x22d   :  { %3907 = vmatprep.subr.bf16.mxu1 %v11902_v20  ;;  %v11969_v20 = vld [vmem:[%s15952_s4 + $0x5a8] ss:$16 sps:$4 sm:$0xff]  }
 0x22f   :  { %3867 = vmatpush2.bf16.msra.mxu0 %v11897_v4  ;;  %v11971_v4 = vld [vmem:[%s15952_s4 + $0x5ac] ss:$16 sps:$4 sm:$0xff]  }
 0x230   :  { %3908 = vmatpush2.bf16.msra.mxu1 %v11900_v28  ;;  %3868 = vmatprep.subr.bf16.mxu0 %v11905_v24  ;;  %v11974_v28 = vld [vmem:[%s15952_s4 + $0x7ac] ss:$16 sps:$4 sm:$0xff]   ;;  %v11972_v24 = vld [vmem:[%s15952_s4 + $0x7a8] ss:$16 sps:$4 sm:$0xff]  }
 0x231   :  { %3909 = vmatprep.subr.bf16.mxu1 %v11908_v6  ;;  %v11980_v6 = vld [vmem:[%s15952_s4 + $0x78c] ss:$16 sps:$4 sm:$0xff]  }
 0x233   :  { %3869 = vmatpush2.bf16.msra.mxu0 %v11903_v5  ;;  %v11975_v5 = vld [vmem:[%s15952_s4 + $0x588] ss:$16 sps:$4 sm:$0xff]  }
 0x234   :  { %3910 = vmatpush2.bf16.msra.mxu1 %v11906_v8  ;;  %3920 = vmatprep.subr.bf16.mxu0 %v11911_v10  ;;  %v11983_v8 = vld [vmem:[%s15952_s4 + $0x56c] ss:$16 sps:$4 sm:$0xff]  }
 0x235   :  { %3961 = vmatprep.subr.bf16.mxu1 %v11914_v36  ;;  %v11986_v10 = vld [vmem:[%s15952_s4 + $0x76c] ss:$16 sps:$4 sm:$0xff]   ;;  %v11987_v36 = vld [vmem:[%s15952_s4 + $0x548] ss:$16 sps:$4 sm:$0xff]  }
 0x236   :  { %3871 = vmatmul.mubr.bf16.vlgmr.msra.gmra.mxu0 %v13958_v14 }
 0x237   :  { %3912 = vmatmul.mubr.bf16.vlgmr.msra.gmra.mxu1 %v13963_v23  ;;  %3921 = vmatpush1.bf16.msra.mxu0 %v11909_v12  ;;  %v11989_v12 = vld [vmem:[%s15952_s4 + $0x54c] ss:$16 sps:$4 sm:$0xff]  }
 0x238   :  { %3952 = vmatprep.mubr.bf16.mxu0 %v13757_v0  ;;  %3962 = vmatpush1.bf16.msra.mxu1 %v11912_v18  ;;  %v11924_v0 = vld [vmem:[%s15952_s4 + $0x6a8] ss:$16 sps:$4 sm:$0xff]  }
 0x239   :  { %3993 = vmatprep.mubr.bf16.mxu1 %v13761_v1  ;;  %3922 = vmatprep.subr.bf16.mxu0 %v11917_v21  ;;  %v11929_v1 = vld [vmem:[%s15952_s4 + $0x48c] ss:$16 sps:$4 sm:$0xff]   ;;  %v11990_v18 = vld [vmem:[%s15952_s4 + $0x748] ss:$16 sps:$4 sm:$0xff]  }
 0x23a   :  { %3963 = vmatprep.subr.bf16.mxu1 %v11920_v22  ;;  %v11993_v21 = vld [vmem:[%s15952_s4 + $0x528] ss:$16 sps:$4 sm:$0xff]   ;;  %v11998_v22 = vld [vmem:[%s15952_s4 + $0x72c] ss:$16 sps:$4 sm:$0xff]  }
 0x23b   :  { %3923 = vmatpush1.bf16.msra.mxu0 %v11915_v25  ;;  %v14128_v25 = vld [vmem:[#allocation2] sm:$0xcc] }
 0x23c   :  { %3964 = vmatpush1.bf16.msra.mxu1 %v11918_v26  ;;  %3924 = vmatprep.subr.bf16.mxu0 %v11923_v27  ;;  %v14133_v26 = vld [vmem:[%s15955_s7] sm:$0xf]  ;;  %v11996_v27 = vld [vmem:[%s15952_s4 + $0x728] ss:$16 sps:$4 sm:$0xff]  }
 0x23d   :  { %3965 = vmatprep.subr.bf16.mxu1 %v11926_v30  ;;  %v12001_v30 = vld [vmem:[%s15952_s4 + $0x50c] ss:$16 sps:$4 sm:$0xff]  }
 0x23f   :  { %3925 = vmatpush1.bf16.msra.mxu0 %v11921_v33  ;;  %v14141_v33 = vld [vmem:[#allocation2 + $0x8] sm:$0xcc] }
 0x240   :  { %3966 = vmatpush1.bf16.msra.mxu1 %v11924_v0  ;;  %3926 = vmatprep.subr.bf16.mxu0 %v11929_v1  ;;  %v11999_v0 = vld [vmem:[%s15952_s4 + $0x508] ss:$16 sps:$4 sm:$0xff]   ;;  %v12004_v1 = vld [vmem:[%s15952_s4 + $0x70c] ss:$16 sps:$4 sm:$0xff]  }
 0x241   :  { %3967 = vmatprep.subr.bf16.mxu1 %v11932_v35  ;;  %v1633_v35 = vrot.slane %v14133_v26, %v13511_v52 }
 0x243   :  { %3927 = vmatpush1.bf16.msra.mxu0 %v11927_v34  ;;  %v4010_v34 = vcombine.high %v14128_v25, %v14128_v25 }
 0x244   :  { %3968 = vmatpush1.bf16.msra.mxu1 %v11930_v38  ;;  %3928 = vmatprep.subr.bf16.mxu0 %v11935_v39  ;;  %v4011_v38 = vcombine.high %v14141_v33, %v14141_v33  ;;  %v14158_v39 = vld [vmem:[%s15953_s5] sm:$0xf] }
 0x245   :  { %3969 = vmatprep.subr.bf16.mxu1 %v11938_v41  ;;  %v12007_v41 = vld [vmem:[%s15952_s4 + $0x8e4] ss:$16 sps:$4 sm:$0xff]  }
 0x247   :  { %3929 = vmatpush1.bf16.msra.mxu0 %v11933_v40  ;;  %v12002_v40 = vld [vmem:[%s15952_s4 + $0x708] ss:$16 sps:$4 sm:$0xff]  }
 0x248   :  { %3970 = vmatpush1.bf16.msra.mxu1 %v11936_v42  ;;  %3930 = vmatprep.subr.bf16.mxu0 %v11941_v43  ;;  %v1637_v42 = vrot.slane %v14133_v26, %v13520_v32  ;;  %v12005_v43 = vld [vmem:[%s15952_s4 + $0x8e0] ss:$16 sps:$4 sm:$0xff]  }
 0x249   :  { %3971 = vmatprep.subr.bf16.mxu1 %v11944_v45  ;;  %v12008_v45 = vld [vmem:[%s15952_s4 + $0xae0] ss:$16 sps:$4 sm:$0xff]  }
 0x24b   :  { %3931 = vmatpush1.bf16.msra.mxu0 %v11939_v44  ;;  %v12010_v44 = vld [vmem:[%s15952_s4 + $0xae4] ss:$16 sps:$4 sm:$0xff]  }
 0x24c   :  { %3972 = vmatpush1.bf16.msra.mxu1 %v11942_v46  ;;  %3932 = vmatprep.subr.bf16.mxu0 %v11947_v47  ;;  %v4015_v46 = vpack.c.bf16 %v4010_v34, %v4010_v34  ;;  %v2005_v47 = vadd.f32 %v13669_v13, %v1633_v35  ;;  %v2061_v13 = vrot.slane %v14158_v39, %v13520_v32  ;;  %v12048_v34 = vld [vmem:[%s15952_s4 + $0xa24] ss:$16 sps:$4 sm:$0xff]   ;;  %v12046_v35 = vld [vmem:[%s15952_s4 + $0xa20] ss:$16 sps:$4 sm:$0xff]  }
 0x24d   :  { %3973 = vmatprep.subr.bf16.mxu1 %v11950_v49  ;;  %v4017_v49 = vpack.c.bf16 %v4011_v38, %v4011_v38  ;;  %v12051_v38 = vld [vmem:[%s15952_s4 + $0x804] ss:$16 sps:$4 sm:$0xff]  }
 0x24f   :  { %3933 = vmatpush1.bf16.msra.mxu0 %v11945_v48  ;;  %v2057_v48 = vrot.slane %v14158_v39, %v13511_v52 }
 0x250   :  { %3974 = vmatpush1.bf16.msra.mxu1 %v11948_v31  ;;  %3934 = vmatprep.subr.bf16.mxu0 %v11953_v55  ;;  %v12015_v31 = vld [vmem:[%s15952_s4 + $0x8c4] ss:$16 sps:$4 sm:$0xff]  }
 0x251   :  { %3975 = vmatprep.subr.bf16.mxu1 %v11956_v56  ;;  %v12018_v55 = vld [vmem:[%s15952_s4 + $0xac4] ss:$16 sps:$4 sm:$0xff]   ;;  %v12013_v56 = vld [vmem:[%s15952_s4 + $0x8c0] ss:$16 sps:$4 sm:$0xff]  }
 0x253   :  { %3935 = vmatpush1.bf16.msra.mxu0 %v11951_v50  ;;  %v2007_v50 = vadd.f32 %v13679_v37, %v1637_v42  ;;  %v12021_v37 = vld [vmem:[%s15952_s4 + $0x8a4] ss:$16 sps:$4 sm:$0xff]   ;;  %v12052_v42 = vld [vmem:[%s15952_s4 + $0xa00] ss:$16 sps:$4 sm:$0xff]  }
 0x254   :  { %3976 = vmatpush1.bf16.msra.mxu1 %v11954_v57  ;;  %3936 = vmatprep.subr.bf16.mxu0 %v11959_v58 }
 0x255   :  { %3977 = vmatprep.subr.bf16.mxu1 %v11962_v60  ;;  %v12016_v60 = vld [vmem:[%s15952_s4 + $0xac0] ss:$16 sps:$4 sm:$0xff]  }
 0x257   :  { %3937 = vmatpush2.bf16.msra.mxu0 %v11957_v59  ;;  %v14193_v59 = vrot.slane %v4015_v46, 1  ;;  %v12058_v46 = vld [vmem:[%s15952_s4 + $0xbe0] ss:$16 sps:$4 sm:$0xff]  }
 0x258   :  { %3978 = vmatpush2.bf16.msra.mxu1 %v11960_v61  ;;  %3938 = vmatprep.subr.bf16.mxu0 %v11965_v62  ;;  %v2074_v61 = vadd.f32 %v2057_v48, %v2005_v47  ;;  %v12063_v47 = vld [vmem:[%s15952_s4 + $0x9c4] ss:$16 sps:$4 sm:$0xff]   ;;  %v12061_v48 = vld [vmem:[%s15952_s4 + $0x9c0] ss:$16 sps:$4 sm:$0xff]  }
 0x259   :  { %3979 = vmatprep.subr.bf16.mxu1 %v11968_v2 }
 0x25b   :  { %3939 = vmatpush2.bf16.msra.mxu0 %v11963_v63  ;;  %v14202_v63 = vrot.slane %v4017_v49, 1  ;;  %v12066_v49 = vld [vmem:[%s15952_s4 + $0xbc4] ss:$16 sps:$4 sm:$0xff]  }
 0x25c   :  { %3980 = vmatpush2.bf16.msra.mxu1 %v11966_v3  ;;  %3940 = vmatprep.subr.bf16.mxu0 %v11971_v4  ;;  %v2075_v4 = vadd.f32 %v2061_v13, %v2007_v50  ;;  %v12067_v50 = vld [vmem:[%s15952_s4 + $0x9a0] ss:$16 sps:$4 sm:$0xff]   ;;  %v12072_v13 = vld [vmem:[%s15952_s4 + $0xba4] ss:$16 sps:$4 sm:$0xff]  }
 0x25d   :  { %3981 = vmatprep.subr.bf16.mxu1 %v11974_v28 }
 0x25f   :  { %3941 = vmatpush2.bf16.msra.mxu0 %v11969_v20 }
 0x260   :  { %3982 = vmatpush2.bf16.msra.mxu1 %v11972_v24  ;;  %3942 = vmatprep.subr.bf16.mxu0 %v11977_v29 }
 0x261   :  { %3983 = vmatprep.subr.bf16.mxu1 %v11980_v6 }
 0x263   :  { %3943 = vmatpush2.bf16.msra.mxu0 %v11975_v5  ;;  %v12019_v5 = vld [vmem:[%s15952_s4 + $0x8a0] ss:$16 sps:$4 sm:$0xff]  }
 0x264   :  { %3984 = vmatpush2.bf16.msra.mxu1 %v11978_v7  ;;  %3944 = vmatprep.subr.bf16.mxu0 %v11983_v8  ;;  %v12022_v8 = vld [vmem:[%s15952_s4 + $0xaa0] ss:$16 sps:$4 sm:$0xff]  }
 0x265   :  { %3985 = vmatprep.subr.bf16.mxu1 %v11986_v10  ;;  %v12030_v10 = vld [vmem:[%s15952_s4 + $0xa84] ss:$16 sps:$4 sm:$0xff]  }
 0x267   :  { %3945 = vmatpush2.bf16.msra.mxu0 %v11981_v9  ;;  %v12027_v9 = vld [vmem:[%s15952_s4 + $0x884] ss:$16 sps:$4 sm:$0xff]  }
 0x268   :  { %3986 = vmatpush2.bf16.msra.mxu1 %v11984_v11  ;;  %3946 = vmatprep.subr.bf16.mxu0 %v11989_v12  ;;  %v12025_v11 = vld [vmem:[%s15952_s4 + $0x880] ss:$16 sps:$4 sm:$0xff]  }
 0x269   :  { %3987 = vmatprep.subr.bf16.mxu1 %v11992_v16  ;;  %v12028_v12 = vld [vmem:[%s15952_s4 + $0xa80] ss:$16 sps:$4 sm:$0xff]  }
 0x26a   :  { %v12031_v16 = vld [vmem:[%s15952_s4 + $0x860] ss:$16 sps:$4 sm:$0xff]  }
 0x26b   :  { %3947 = vmatpush2.bf16.msra.mxu0 %v11987_v36  ;;  %v12033_v36 = vld [vmem:[%s15952_s4 + $0x864] ss:$16 sps:$4 sm:$0xff]  }
 0x26c   :  { %3988 = vmatpush2.bf16.msra.mxu1 %v11990_v18  ;;  %3948 = vmatprep.subr.bf16.mxu0 %v11995_v19  ;;  %v12036_v18 = vld [vmem:[%s15952_s4 + $0xa64] ss:$16 sps:$4 sm:$0xff]   ;;  %v12034_v19 = vld [vmem:[%s15952_s4 + $0xa60] ss:$16 sps:$4 sm:$0xff]  }
 0x26d   :  { %3989 = vmatprep.subr.bf16.mxu1 %v11998_v22  ;;  %v12037_v22 = vld [vmem:[%s15952_s4 + $0x840] ss:$16 sps:$4 sm:$0xff]  }
 0x26f   :  { %3949 = vmatpush2.bf16.msra.mxu0 %v11993_v21  ;;  %v12039_v21 = vld [vmem:[%s15952_s4 + $0x844] ss:$16 sps:$4 sm:$0xff]  }
 0x270   :  { %3990 = vmatpush2.bf16.msra.mxu1 %v11996_v27  ;;  %3950 = vmatprep.subr.bf16.mxu0 %v12001_v30  ;;  %v12042_v27 = vld [vmem:[%s15952_s4 + $0xa44] ss:$16 sps:$4 sm:$0xff]   ;;  %v12040_v30 = vld [vmem:[%s15952_s4 + $0xa40] ss:$16 sps:$4 sm:$0xff]  }
 0x271   :  { %3991 = vmatprep.subr.bf16.mxu1 %v12004_v1  ;;  %v12043_v1 = vld [vmem:[%s15952_s4 + $0x820] ss:$16 sps:$4 sm:$0xff]  }
 0x273   :  { %3951 = vmatpush2.bf16.msra.mxu0 %v11999_v0  ;;  %v12045_v0 = vld [vmem:[%s15952_s4 + $0x824] ss:$16 sps:$4 sm:$0xff]  }
 0x274   :  { %3992 = vmatpush2.bf16.msra.mxu1 %v12002_v40  ;;  %4798 = vmatprep.subr.bf16.mxu0 %v12007_v41  ;;  %v12049_v40 = vld [vmem:[%s15952_s4 + $0x800] ss:$16 sps:$4 sm:$0xff]   ;;  %v12054_v41 = vld [vmem:[%s15952_s4 + $0xa04] ss:$16 sps:$4 sm:$0xff]  }
 0x275   :  { %4839 = vmatprep.subr.bf16.mxu1 %v12010_v44  ;;  %v12055_v44 = vld [vmem:[%s15952_s4 + $0x9e0] ss:$16 sps:$4 sm:$0xff]  }
 0x276   :  { %3953 = vmatmul.mubr.bf16.vlgmr.msra.gmra.mxu0 %v13958_v14  ;;  %v2892_v57 = vpop.f32.mrf.mxu0  ;;  %v2933_v58 = vpop.f32.mrf.mxu1  ;;  %v12024_v14 = vld [vmem:[%s15952_s4 + $0xaa4] ss:$16 sps:$4 sm:$0xff]  }
 0x277   :  { %3994 = vmatmul.mubr.bf16.vlgmr.msra.gmra.mxu1 %v13963_v23  ;;  %v2934_v62 = vadd.f32 %v2933_v58, %v2892_v57  ;;  %4799 = vmatpush1.bf16.msra.mxu0 %v12005_v43  ;;  %v12057_v43 = vld [vmem:[%s15952_s4 + $0x9e4] ss:$16 sps:$4 sm:$0xff]   ;;  %v12073_v58 = vld [vmem:[%s15952_s4 + $0x980] ss:$16 sps:$4 sm:$0xff]  }
 0x278   :  { %4830 = vmatprep.mubr.bf16.mxu0 %v14193_v59  ;;  %4840 = vmatpush1.bf16.msra.mxu1 %v12008_v45  ;;  %v2894_v2 = vpop.f32.mrf.mxu0  ;;  %v2935_v3 = vpop.f32.mrf.mxu1  ;;  %v12060_v45 = vld [vmem:[%s15952_s4 + $0xbe4] ss:$16 sps:$4 sm:$0xff]  }
 0x279   :  { %v14208_v20 = vadd.f32 %v2934_v62, %v2074_v61  ;;  %4871 = vmatprep.mubr.bf16.mxu1 %v14202_v63  ;;  %v2936_v28 = vadd.f32 %v2935_v3, %v2894_v2  ;;  %4800 = vmatprep.subr.bf16.mxu0 %v12015_v31  ;;  %v12064_v31 = vld [vmem:[%s15952_s4 + $0xbc0] ss:$16 sps:$4 sm:$0xff]   ;;  %v12075_v57 = vld [vmem:[%s15952_s4 + $0x984] ss:$16 sps:$4 sm:$0xff]  }
 0x27a   :  { %4841 = vmatprep.subr.bf16.mxu1 %v12018_v55  ;;  %v2896_v23 = vpop.f32.mrf.mxu0  ;;  %v2937_v24 = vpop.f32.mrf.mxu1  ;;  %v12069_v55 = vld [vmem:[%s15952_s4 + $0x9a4] ss:$16 sps:$4 sm:$0xff]   ;;  %v12079_v62 = vld [vmem:[%s15952_s4 + $0x960] ss:$16 sps:$4 sm:$0xff]  }
 0x27b   :  { %v14211_v29 = vadd.f32 %v2936_v28, %v2075_v4  ;;  %4801 = vmatpush1.bf16.msra.mxu0 %v12013_v56  ;;  %v12070_v56 = vld [vmem:[%s15952_s4 + $0xba0] ss:$16 sps:$4 sm:$0xff]   ;;  %v12081_v61 = vld [vmem:[%s15952_s4 + $0x964] ss:$16 sps:$4 sm:$0xff]  }
 0x27c   :  { %4842 = vmatpush1.bf16.msra.mxu1 %v12016_v60  ;;  %v2897_v6 = vpop.f32.mrf.mxu0  ;;  %v2938_v7 = vpop.f32.mrf.mxu1  ;;  %4802 = vmatprep.subr.bf16.mxu0 %v12021_v37  ;;  %v12078_v60 = vld [vmem:[%s15952_s4 + $0xb84] ss:$16 sps:$4 sm:$0xff]   ;;  %v12076_v37 = vld [vmem:[%s15952_s4 + $0xb80] ss:$16 sps:$4 sm:$0xff]  }
 0x27d   :  { %4843 = vmatprep.subr.bf16.mxu1 %v12024_v14  ;;  %v12084_v14 = vld [vmem:[%s15952_s4 + $0xb64] ss:$16 sps:$4 sm:$0xff]   ;;  %v12082_v2 = vld [vmem:[%s15952_s4 + $0xb60] ss:$16 sps:$4 sm:$0xff]  }
 0x27e   :  { %v12087_v3 = vld [vmem:[%s15952_s4 + $0x944] ss:$16 sps:$4 sm:$0xff]   ;;  %v12085_v4 = vld [vmem:[%s15952_s4 + $0x940] ss:$16 sps:$4 sm:$0xff]  }
 0x27f   :  { %4803 = vmatpush1.bf16.msra.mxu0 %v12019_v5  ;;  %v12090_v28 = vld [vmem:[%s15952_s4 + $0xb44] ss:$16 sps:$4 sm:$0xff]   ;;  %v12088_v23 = vld [vmem:[%s15952_s4 + $0xb40] ss:$16 sps:$4 sm:$0xff]  }
 0x280   :  { %4844 = vmatpush1.bf16.msra.mxu1 %v12022_v8  ;;  %4804 = vmatprep.subr.bf16.mxu0 %v12027_v9  ;;  %v12093_v24 = vld [vmem:[%s15952_s4 + $0x924] ss:$16 sps:$4 sm:$0xff]   ;;  %v12091_v5 = vld [vmem:[%s15952_s4 + $0x920] ss:$16 sps:$4 sm:$0xff]  }
 0x281   :  { %4845 = vmatprep.subr.bf16.mxu1 %v12030_v10  ;;  %v12096_v6 = vld [vmem:[%s15952_s4 + $0xb24] ss:$16 sps:$4 sm:$0xff]   ;;  %v12094_v7 = vld [vmem:[%s15952_s4 + $0xb20] ss:$16 sps:$4 sm:$0xff]  }
 0x282   :  { %v12099_v8 = vld [vmem:[%s15952_s4 + $0x904] ss:$16 sps:$4 sm:$0xff]   ;;  %v12097_v9 = vld [vmem:[%s15952_s4 + $0x900] ss:$16 sps:$4 sm:$0xff]  }
 0x283   :  { %4805 = vmatpush1.bf16.msra.mxu0 %v12025_v11  ;;  %v12102_v10 = vld [vmem:[%s15952_s4 + $0xb04] ss:$16 sps:$4 sm:$0xff]   ;;  %v1641_v11 = vrot.slane %v14133_v26, %v13514_v53 }
 0x284   :  { %4846 = vmatpush1.bf16.msra.mxu1 %v12028_v12  ;;  %4806 = vmatprep.subr.bf16.mxu0 %v12033_v36  ;;  %v4014_v12 = vpack.c.bf16 %v14128_v25, %v14128_v25  ;;  %v12100_v36 = vld [vmem:[%s15952_s4 + $0xb00] ss:$16 sps:$4 sm:$0xff]   ;;  %v12103_v25 = vld [vmem:[%s15952_s4 + $0x8e8] ss:$16 sps:$4 sm:$0xff]  }
 0x285   :  { %4847 = vmatprep.subr.bf16.mxu1 %v12036_v18  ;;  %v1645_v18 = vrot.slane %v14133_v26, %v13523_v54 }
 0x286   :  { %v14395_v26 = vrot.slane %v4014_v12, 1  ;;  %v12156_v12 = vld [vmem:[%s15952_s4 + $0xbec] ss:$16 sps:$4 sm:$0xff]  }
 0x287   :  { %4807 = vmatpush1.bf16.msra.mxu0 %v12031_v16  ;;  %v12105_v16 = vld [vmem:[%s15952_s4 + $0x8ec] ss:$16 sps:$4 sm:$0xff]  }
 0x288   :  { %4848 = vmatpush1.bf16.msra.mxu1 %v12034_v19  ;;  %4808 = vmatprep.subr.bf16.mxu0 %v12039_v21  ;;  %v4016_v19 = vpack.c.bf16 %v14141_v33, %v14141_v33  ;;  %v12108_v21 = vld [vmem:[%s15952_s4 + $0xaec] ss:$16 sps:$4 sm:$0xff]   ;;  %v12106_v33 = vld [vmem:[%s15952_s4 + $0xae8] ss:$16 sps:$4 sm:$0xff]  }
 0x289   :  { %4849 = vmatprep.subr.bf16.mxu1 %v12042_v27  ;;  %v2065_v27 = vrot.slane %v14158_v39, %v13514_v53 }
 0x28b   :  { %4809 = vmatpush1.bf16.msra.mxu0 %v12037_v22  ;;  %v2046_v22 = vadd.f32 %v13671_v15, %v1641_v11  ;;  %v12111_v15 = vld [vmem:[%s15952_s4 + $0x8cc] ss:$16 sps:$4 sm:$0xff]  }
 0x28c   :  { %4850 = vmatpush1.bf16.msra.mxu1 %v12040_v30  ;;  %4810 = vmatprep.subr.bf16.mxu0 %v12045_v0  ;;  %v2048_v30 = vadd.f32 %v13681_v17, %v1645_v18  ;;  %v2069_v0 = vrot.slane %v14158_v39, %v13523_v54  ;;  %v12109_v39 = vld [vmem:[%s15952_s4 + $0x8c8] ss:$16 sps:$4 sm:$0xff]   ;;  %v12153_v11 = vld [vmem:[%s15952_s4 + $0x9ec] ss:$16 sps:$4 sm:$0xff]  }
 0x28d   :  { %4851 = vmatprep.subr.bf16.mxu1 %v12048_v34  ;;  %v12159_v18 = vld [vmem:[%s15952_s4 + $0x9cc] ss:$16 sps:$4 sm:$0xff]  }
 0x28f   :  { %4811 = vmatpush1.bf16.msra.mxu0 %v12043_v1  ;;  %v14403_v1 = vrot.slane %v4016_v19, 1  ;;  %v12162_v19 = vld [vmem:[%s15952_s4 + $0xbcc] ss:$16 sps:$4 sm:$0xff]  }
 0x290   :  { %4852 = vmatpush1.bf16.msra.mxu1 %v12046_v35  ;;  %4812 = vmatprep.subr.bf16.mxu0 %v12051_v38  ;;  %v12114_v38 = vld [vmem:[%s15952_s4 + $0xacc] ss:$16 sps:$4 sm:$0xff]  }
 0x291   :  { %4853 = vmatprep.subr.bf16.mxu1 %v12054_v41 }
 0x293   :  { %4813 = vmatpush1.bf16.msra.mxu0 %v12049_v40  ;;  %v2076_v40 = vadd.f32 %v2065_v27, %v2046_v22  ;;  %v12165_v22 = vld [vmem:[%s15952_s4 + $0x9ac] ss:$16 sps:$4 sm:$0xff]  }
 0x294   :  { %4854 = vmatpush1.bf16.msra.mxu1 %v12052_v42  ;;  %4814 = vmatprep.subr.bf16.mxu0 %v12057_v43  ;;  %v12112_v43 = vld [vmem:[%s15952_s4 + $0xac8] ss:$16 sps:$4 sm:$0xff]   ;;  %v12168_v27 = vld [vmem:[%s15952_s4 + $0xbac] ss:$16 sps:$4 sm:$0xff]  }
 0x295   :  { %4855 = vmatprep.subr.bf16.mxu1 %v12060_v45  ;;  %v2077_v45 = vadd.f32 %v2069_v0, %v2048_v30  ;;  %v12166_v30 = vld [vmem:[%s15952_s4 + $0xba8] ss:$16 sps:$4 sm:$0xff]   ;;  %v12171_v0 = vld [vmem:[%s15952_s4 + $0x98c] ss:$16 sps:$4 sm:$0xff]  }
 0x297   :  { %4815 = vmatpush2.bf16.msra.mxu0 %v12055_v44  ;;  %v12117_v44 = vld [vmem:[%s15952_s4 + $0x8ac] ss:$16 sps:$4 sm:$0xff]  }
 0x298   :  { %4856 = vmatpush2.bf16.msra.mxu1 %v12058_v46  ;;  %4816 = vmatprep.subr.bf16.mxu0 %v12063_v47 }
 0x299   :  { %4857 = vmatprep.subr.bf16.mxu1 %v12066_v49 }
 0x29b   :  { %4817 = vmatpush2.bf16.msra.mxu0 %v12061_v48 }
 0x29c   :  { %4858 = vmatpush2.bf16.msra.mxu1 %v12064_v31  ;;  %4818 = vmatprep.subr.bf16.mxu0 %v12069_v55  ;;  %v12115_v55 = vld [vmem:[%s15952_s4 + $0x8a8] ss:$16 sps:$4 sm:$0xff]  }
 0x29d   :  { %4859 = vmatprep.subr.bf16.mxu1 %v12072_v13 }
 0x29f   :  { %4819 = vmatpush2.bf16.msra.mxu0 %v12067_v50 }
 0x2a0   :  { %4860 = vmatpush2.bf16.msra.mxu1 %v12070_v56  ;;  %4820 = vmatprep.subr.bf16.mxu0 %v12075_v57  ;;  %v12123_v56 = vld [vmem:[%s15952_s4 + $0x88c] ss:$16 sps:$4 sm:$0xff]  }
 0x2a1   :  { %4861 = vmatprep.subr.bf16.mxu1 %v12078_v60  ;;  %v12126_v57 = vld [vmem:[%s15952_s4 + $0xa8c] ss:$16 sps:$4 sm:$0xff]   ;;  %v12124_v60 = vld [vmem:[%s15952_s4 + $0xa88] ss:$16 sps:$4 sm:$0xff]  }
 0x2a3   :  { %4821 = vmatpush2.bf16.msra.mxu0 %v12073_v58  ;;  %v12121_v58 = vld [vmem:[%s15952_s4 + $0x888] ss:$16 sps:$4 sm:$0xff]  }
 0x2a4   :  { %4862 = vmatpush2.bf16.msra.mxu1 %v12076_v37  ;;  %4822 = vmatprep.subr.bf16.mxu0 %v12081_v61  ;;  %v12129_v37 = vld [vmem:[%s15952_s4 + $0x86c] ss:$16 sps:$4 sm:$0xff]  }
 0x2a5   :  { %4863 = vmatprep.subr.bf16.mxu1 %v12084_v14  ;;  %v12132_v61 = vld [vmem:[%s15952_s4 + $0xa6c] ss:$16 sps:$4 sm:$0xff]   ;;  %v12130_v14 = vld [vmem:[%s15952_s4 + $0xa68] ss:$16 sps:$4 sm:$0xff]  }
 0x2a7   :  { %4823 = vmatpush2.bf16.msra.mxu0 %v12079_v62  ;;  %v12127_v62 = vld [vmem:[%s15952_s4 + $0x868] ss:$16 sps:$4 sm:$0xff]  }
 0x2a8   :  { %4864 = vmatpush2.bf16.msra.mxu1 %v12082_v2  ;;  %4824 = vmatprep.subr.bf16.mxu0 %v12087_v3  ;;  %v12135_v2 = vld [vmem:[%s15952_s4 + $0x84c] ss:$16 sps:$4 sm:$0xff]  }
 0x2a9   :  { %4865 = vmatprep.subr.bf16.mxu1 %v12090_v28  ;;  %v12138_v3 = vld [vmem:[%s15952_s4 + $0xa4c] ss:$16 sps:$4 sm:$0xff]   ;;  %v12136_v28 = vld [vmem:[%s15952_s4 + $0xa48] ss:$16 sps:$4 sm:$0xff]  }
 0x2ab   :  { %4825 = vmatpush2.bf16.msra.mxu0 %v12085_v4  ;;  %v12133_v4 = vld [vmem:[%s15952_s4 + $0x848] ss:$16 sps:$4 sm:$0xff]  }
 0x2ac   :  { %4866 = vmatpush2.bf16.msra.mxu1 %v12088_v23  ;;  %4826 = vmatprep.subr.bf16.mxu0 %v12093_v24  ;;  %v12141_v23 = vld [vmem:[%s15952_s4 + $0x82c] ss:$16 sps:$4 sm:$0xff]  }
 0x2ad   :  { %4867 = vmatprep.subr.bf16.mxu1 %v12096_v6  ;;  %v12144_v24 = vld [vmem:[%s15952_s4 + $0xa2c] ss:$16 sps:$4 sm:$0xff]   ;;  %v12142_v6 = vld [vmem:[%s15952_s4 + $0xa28] ss:$16 sps:$4 sm:$0xff]  }
 0x2af   :  { %4827 = vmatpush2.bf16.msra.mxu0 %v12091_v5  ;;  %v12139_v5 = vld [vmem:[%s15952_s4 + $0x828] ss:$16 sps:$4 sm:$0xff]  }
 0x2b0   :  { %4868 = vmatpush2.bf16.msra.mxu1 %v12094_v7  ;;  %4828 = vmatprep.subr.bf16.mxu0 %v12099_v8  ;;  %v12147_v7 = vld [vmem:[%s15952_s4 + $0x80c] ss:$16 sps:$4 sm:$0xff]  }
 0x2b1   :  { %4869 = vmatprep.subr.bf16.mxu1 %v12102_v10  ;;  %v12150_v8 = vld [vmem:[%s15952_s4 + $0xa0c] ss:$16 sps:$4 sm:$0xff]   ;;  %v12148_v10 = vld [vmem:[%s15952_s4 + $0xa08] ss:$16 sps:$4 sm:$0xff]  }
 0x2b3   :  { %4829 = vmatpush2.bf16.msra.mxu0 %v12097_v9  ;;  %v12145_v9 = vld [vmem:[%s15952_s4 + $0x808] ss:$16 sps:$4 sm:$0xff]  }
 0x2b4   :  { %4870 = vmatpush2.bf16.msra.mxu1 %v12100_v36  ;;  %4880 = vmatprep.subr.bf16.mxu0 %v12105_v16  ;;  %v12151_v36 = vld [vmem:[%s15952_s4 + $0x9e8] ss:$16 sps:$4 sm:$0xff]  }
 0x2b5   :  { %4921 = vmatprep.subr.bf16.mxu1 %v12108_v21  ;;  %v12154_v16 = vld [vmem:[%s15952_s4 + $0xbe8] ss:$16 sps:$4 sm:$0xff]  }
 0x2b6   :  { %v2974_v34 = vpop.f32.mrf.mxu0  ;;  %v3015_v35 = vpop.f32.mrf.mxu1  ;;  %4831 = vmatmul.mubr.bf16.vlgmr.msra.gmra.mxu0 %v14395_v26  ;;  %v12160_v21 = vld [vmem:[%s15952_s4 + $0xbc8] ss:$16 sps:$4 sm:$0xff]  }
 0x2b7   :  { %v3016_v17 = vadd.f32 %v3015_v35, %v2974_v34  ;;  %4872 = vmatmul.mubr.bf16.vlgmr.msra.gmra.mxu1 %v14403_v1  ;;  %4881 = vmatpush1.bf16.msra.mxu0 %v12103_v25  ;;  %v12157_v25 = vld [vmem:[%s15952_s4 + $0x9c8] ss:$16 sps:$4 sm:$0xff]  }
 0x2b8   :  { %4912 = vmatprep.mubr.bf16.mxu0 %v14193_v59  ;;  %4922 = vmatpush1.bf16.msra.mxu1 %v12106_v33  ;;  %v2976_v41 = vpop.f32.mrf.mxu0  ;;  %v3017_v42 = vpop.f32.mrf.mxu1  ;;  %v12120_v59 = vld [vmem:[%s15952_s4 + $0xaac] ss:$16 sps:$4 sm:$0xff]   ;;  %v12163_v33 = vld [vmem:[%s15952_s4 + $0x9a8] ss:$16 sps:$4 sm:$0xff]  }
 0x2b9   :  { %v14423_v46 = vadd.f32 %v3016_v17, %v2076_v40  ;;  %4953 = vmatprep.mubr.bf16.mxu1 %v14202_v63  ;;  %v3018_v47 = vadd.f32 %v3017_v42, %v2976_v41  ;;  %4882 = vmatprep.subr.bf16.mxu0 %v12111_v15  ;;  %v12118_v63 = vld [vmem:[%s15952_s4 + $0xaa8] ss:$16 sps:$4 sm:$0xff]   ;;  %v12174_v15 = vld [vmem:[%s15952_s4 + $0xb8c] ss:$16 sps:$4 sm:$0xff]  }
 0x2ba   :  { %v2978_v48 = vpop.f32.mrf.mxu0  ;;  %v3019_v49 = vpop.f32.mrf.mxu1  ;;  %4923 = vmatprep.subr.bf16.mxu1 %v12114_v38  ;;  %v12169_v34 = vld [vmem:[%s15952_s4 + $0x988] ss:$16 sps:$4 sm:$0xff]   ;;  %v12177_v38 = vld [vmem:[%s15952_s4 + $0x96c] ss:$16 sps:$4 sm:$0xff]  }
 0x2bb   :  { %v14429_v31 = vadd.f32 %v3018_v47, %v2077_v45  ;;  %4883 = vmatpush1.bf16.msra.mxu0 %v12109_v39  ;;  %v12172_v35 = vld [vmem:[%s15952_s4 + $0xb88] ss:$16 sps:$4 sm:$0xff]   ;;  %v12180_v40 = vld [vmem:[%s15952_s4 + $0xb6c] ss:$16 sps:$4 sm:$0xff]  }
 0x2bc   :  { %4924 = vmatpush1.bf16.msra.mxu1 %v12112_v43  ;;  %v2979_v50 = vpop.f32.mrf.mxu0  ;;  %v3020_v13 = vpop.f32.mrf.mxu1  ;;  %4884 = vmatprep.subr.bf16.mxu0 %v12117_v44  ;;  %v12175_v17 = vld [vmem:[%s15952_s4 + $0x968] ss:$16 sps:$4 sm:$0xff]   ;;  %v12183_v41 = vld [vmem:[%s15952_s4 + $0x94c] ss:$16 sps:$4 sm:$0xff]  }
 0x2bd   :  { %4925 = vmatprep.subr.bf16.mxu1 %v12120_v59  ;;  %v12178_v39 = vld [vmem:[%s15952_s4 + $0xb68] ss:$16 sps:$4 sm:$0xff]   ;;  %v12186_v42 = vld [vmem:[%s15952_s4 + $0xb4c] ss:$16 sps:$4 sm:$0xff]  }
 0x2be   :  { %v12181_v43 = vld [vmem:[%s15952_s4 + $0x948] ss:$16 sps:$4 sm:$0xff]   ;;  %v12189_v45 = vld [vmem:[%s15952_s4 + $0x92c] ss:$16 sps:$4 sm:$0xff]  }
 0x2bf   :  { %4885 = vmatpush1.bf16.msra.mxu0 %v12115_v55  ;;  %v12184_v44 = vld [vmem:[%s15952_s4 + $0xb48] ss:$16 sps:$4 sm:$0xff]   ;;  %v12192_v47 = vld [vmem:[%s15952_s4 + $0xb2c] ss:$16 sps:$4 sm:$0xff]  }
 0x2c0   :  { %4926 = vmatpush1.bf16.msra.mxu1 %v12118_v63  ;;  %4886 = vmatprep.subr.bf16.mxu0 %v12123_v56  ;;  %v12187_v59 = vld [vmem:[%s15952_s4 + $0x928] ss:$16 sps:$4 sm:$0xff]   ;;  %v12195_v49 = vld [vmem:[%s15952_s4 + $0x90c] ss:$16 sps:$4 sm:$0xff]   ;;  %v12201_v56 = vld [vmem:[#allocation3 + $0x2e4] ss:$16 sps:$4 sm:$0xff]  }
 0x2c1   :  { %4927 = vmatprep.subr.bf16.mxu1 %v12126_v57  ;;  %v12190_v48 = vld [vmem:[%s15952_s4 + $0xb28] ss:$16 sps:$4 sm:$0xff]   ;;  %v12198_v55 = vld [vmem:[%s15952_s4 + $0xb0c] ss:$16 sps:$4 sm:$0xff]  }
 0x2c2   :  { %v14590_v50 = vld.sshfl [vmem:[%s15949_s1 + $0x4] sm:$0x33 pattern:$0x76325410]  ;;  %v12193_v13 = vld [vmem:[%s15952_s4 + $0x908] ss:$16 sps:$4 sm:$0xff]  }
 0x2c3   :  { %4887 = vmatpush1.bf16.msra.mxu0 %v12121_v58  ;;  %v12196_v63 = vld [vmem:[%s15952_s4 + $0xb08] ss:$16 sps:$4 sm:$0xff]   ;;  %v12204_v57 = vld [vmem:[#allocation3 + $0x2ec] ss:$16 sps:$4 sm:$0xff]   ;;  %v5075_v58 = vcombine.high %v14590_v50, %v14590_v50 }
 0x2c4   :  { %4928 = vmatpush1.bf16.msra.mxu1 %v12124_v60  ;;  %4888 = vmatprep.subr.bf16.mxu0 %v12129_v37  ;;  %v12199_v60 = vld [vmem:[#allocation3 + $0x2e0] ss:$16 sps:$4 sm:$0xff]   ;;  %v12202_v37 = vld [vmem:[#allocation3 + $0x2e8] ss:$16 sps:$4 sm:$0xff]  }
 0x2c5   :  { %4929 = vmatprep.subr.bf16.mxu1 %v12132_v61  ;;  %v12207_v61 = vld [vmem:[#allocation3 + $0x2c4] ss:$16 sps:$4 sm:$0xff]  }
 0x2c7   :  { %4889 = vmatpush1.bf16.msra.mxu0 %v12127_v62  ;;  %v12210_v62 = vld [vmem:[#allocation3 + $0x2cc] ss:$16 sps:$4 sm:$0xff]  }
 0x2c8   :  { %4930 = vmatpush1.bf16.msra.mxu1 %v12130_v14  ;;  %4890 = vmatprep.subr.bf16.mxu0 %v12135_v2  ;;  %v5079_v14 = vpack.c.bf16 %v5075_v58, %v5075_v58  ;;  %v12267_v58 = vld [vmem:[#allocation3 + $0x384] ss:$16 sps:$4 sm:$0xff]  }
 0x2c9   :  { %4931 = vmatprep.subr.bf16.mxu1 %v12138_v3 }
 0x2cb   :  { %4891 = vmatpush1.bf16.msra.mxu0 %v12133_v4  ;;  %v12205_v4 = vld [vmem:[#allocation3 + $0x2c0] ss:$16 sps:$4 sm:$0xff]  }
 0x2cc   :  { %4932 = vmatpush1.bf16.msra.mxu1 %v12136_v28  ;;  %4892 = vmatprep.subr.bf16.mxu0 %v12141_v23 }
 0x2cd   :  { %4933 = vmatprep.subr.bf16.mxu1 %v12144_v24  ;;  %v12208_v24 = vld [vmem:[#allocation3 + $0x2c8] ss:$16 sps:$4 sm:$0xff]  }
 0x2cf   :  { %4893 = vmatpush1.bf16.msra.mxu0 %v12139_v5  ;;  %v12213_v5 = vld [vmem:[#allocation3 + $0x2a4] ss:$16 sps:$4 sm:$0xff]  }
 0x2d0   :  { %4934 = vmatpush1.bf16.msra.mxu1 %v12142_v6  ;;  %4894 = vmatprep.subr.bf16.mxu0 %v12147_v7  ;;  %v12216_v7 = vld [vmem:[#allocation3 + $0x2ac] ss:$16 sps:$4 sm:$0xff]  }
 0x2d1   :  { %4935 = vmatprep.subr.bf16.mxu1 %v12150_v8 }
 0x2d3   :  { %4895 = vmatpush1.bf16.msra.mxu0 %v12145_v9 }
 0x2d4   :  { %4936 = vmatpush1.bf16.msra.mxu1 %v12148_v10  ;;  %4896 = vmatprep.subr.bf16.mxu0 %v12153_v11 }
 0x2d5   :  { %4937 = vmatprep.subr.bf16.mxu1 %v12156_v12 }
 0x2d7   :  { %4897 = vmatpush2.bf16.msra.mxu0 %v12151_v36  ;;  %v12214_v36 = vld [vmem:[#allocation3 + $0x2a8] ss:$16 sps:$4 sm:$0xff]  }
 0x2d8   :  { %4938 = vmatpush2.bf16.msra.mxu1 %v12154_v16  ;;  %4898 = vmatprep.subr.bf16.mxu0 %v12159_v18  ;;  %v12219_v16 = vld [vmem:[#allocation3 + $0x284] ss:$16 sps:$4 sm:$0xff]  }
 0x2d9   :  { %4939 = vmatprep.subr.bf16.mxu1 %v12162_v19  ;;  %v12222_v19 = vld [vmem:[#allocation3 + $0x28c] ss:$16 sps:$4 sm:$0xff]  }
 0x2db   :  { %4899 = vmatpush2.bf16.msra.mxu0 %v12157_v25  ;;  %v12220_v25 = vld [vmem:[#allocation3 + $0x288] ss:$16 sps:$4 sm:$0xff]  }
 0x2dc   :  { %4940 = vmatpush2.bf16.msra.mxu1 %v12160_v21  ;;  %4900 = vmatprep.subr.bf16.mxu0 %v12165_v22  ;;  %v12225_v21 = vld [vmem:[#allocation3 + $0x264] ss:$16 sps:$4 sm:$0xff]   ;;  %v12228_v22 = vld [vmem:[#allocation3 + $0x26c] ss:$16 sps:$4 sm:$0xff]  }
 0x2dd   :  { %4941 = vmatprep.subr.bf16.mxu1 %v12168_v27  ;;  %v12223_v27 = vld [vmem:[#allocation3 + $0x260] ss:$16 sps:$4 sm:$0xff]  }
 0x2df   :  { %4901 = vmatpush2.bf16.msra.mxu0 %v12163_v33  ;;  %v12231_v33 = vld [vmem:[#allocation3 + $0x244] ss:$16 sps:$4 sm:$0xff]  }
 0x2e0   :  { %4942 = vmatpush2.bf16.msra.mxu1 %v12166_v30  ;;  %4902 = vmatprep.subr.bf16.mxu0 %v12171_v0  ;;  %v12234_v30 = vld [vmem:[#allocation3 + $0x24c] ss:$16 sps:$4 sm:$0xff]   ;;  %v12229_v0 = vld [vmem:[#allocation3 + $0x240] ss:$16 sps:$4 sm:$0xff]  }
 0x2e1   :  { %4943 = vmatprep.subr.bf16.mxu1 %v12174_v15  ;;  %v12232_v15 = vld [vmem:[#allocation3 + $0x248] ss:$16 sps:$4 sm:$0xff]  }
 0x2e3   :  { %4903 = vmatpush2.bf16.msra.mxu0 %v12169_v34  ;;  %v12237_v34 = vld [vmem:[#allocation3 + $0x224] ss:$16 sps:$4 sm:$0xff]  }
 0x2e4   :  { %4944 = vmatpush2.bf16.msra.mxu1 %v12172_v35  ;;  %4904 = vmatprep.subr.bf16.mxu0 %v12177_v38  ;;  %v12240_v35 = vld [vmem:[#allocation3 + $0x22c] ss:$16 sps:$4 sm:$0xff]   ;;  %v12235_v38 = vld [vmem:[#allocation3 + $0x220] ss:$16 sps:$4 sm:$0xff]  }
 0x2e5   :  { %4945 = vmatprep.subr.bf16.mxu1 %v12180_v40  ;;  %v12238_v40 = vld [vmem:[#allocation3 + $0x228] ss:$16 sps:$4 sm:$0xff]  }
 0x2e7   :  { %4905 = vmatpush2.bf16.msra.mxu0 %v12175_v17  ;;  %v12243_v17 = vld [vmem:[#allocation3 + $0x204] ss:$16 sps:$4 sm:$0xff]  }
 0x2e8   :  { %4946 = vmatpush2.bf16.msra.mxu1 %v12178_v39  ;;  %4906 = vmatprep.subr.bf16.mxu0 %v12183_v41  ;;  %v12246_v39 = vld [vmem:[#allocation3 + $0x20c] ss:$16 sps:$4 sm:$0xff]   ;;  %v12241_v41 = vld [vmem:[#allocation3 + $0x200] ss:$16 sps:$4 sm:$0xff]  }
 0x2e9   :  { %4947 = vmatprep.subr.bf16.mxu1 %v12186_v42  ;;  %v12244_v42 = vld [vmem:[#allocation3 + $0x208] ss:$16 sps:$4 sm:$0xff]  }
 0x2eb   :  { %4907 = vmatpush2.bf16.msra.mxu0 %v12181_v43  ;;  %v12249_v43 = vld [vmem:[#allocation3 + $0x3e4] ss:$16 sps:$4 sm:$0xff]  }
 0x2ec   :  { %4948 = vmatpush2.bf16.msra.mxu1 %v12184_v44  ;;  %4908 = vmatprep.subr.bf16.mxu0 %v12189_v45  ;;  %v12252_v44 = vld [vmem:[#allocation3 + $0x3ec] ss:$16 sps:$4 sm:$0xff]   ;;  %v12247_v45 = vld [vmem:[#allocation3 + $0x3e0] ss:$16 sps:$4 sm:$0xff]  }
 0x2ed   :  { %4949 = vmatprep.subr.bf16.mxu1 %v12192_v47  ;;  %v12250_v47 = vld [vmem:[#allocation3 + $0x3e8] ss:$16 sps:$4 sm:$0xff]  }
 0x2ef   :  { %4909 = vmatpush2.bf16.msra.mxu0 %v12187_v59  ;;  %v12255_v59 = vld [vmem:[#allocation3 + $0x3c4] ss:$16 sps:$4 sm:$0xff]  }
 0x2f0   :  { %4950 = vmatpush2.bf16.msra.mxu1 %v12190_v48  ;;  %4910 = vmatprep.subr.bf16.mxu0 %v12195_v49  ;;  %v12258_v48 = vld [vmem:[#allocation3 + $0x3cc] ss:$16 sps:$4 sm:$0xff]   ;;  %v12253_v49 = vld [vmem:[#allocation3 + $0x3c0] ss:$16 sps:$4 sm:$0xff]  }
 0x2f1   :  { %4951 = vmatprep.subr.bf16.mxu1 %v12198_v55  ;;  %v12256_v55 = vld [vmem:[#allocation3 + $0x3c8] ss:$16 sps:$4 sm:$0xff]  }
 0x2f3   :  { %4911 = vmatpush2.bf16.msra.mxu0 %v12193_v13  ;;  %v12261_v13 = vld [vmem:[#allocation3 + $0x3a4] ss:$16 sps:$4 sm:$0xff]  }
 0x2f4   :  { %4952 = vmatpush2.bf16.msra.mxu1 %v12196_v63  ;;  %5464 = vmatprep.subr.bf16.mxu0 %v12201_v56  ;;  %v12264_v63 = vld [vmem:[#allocation3 + $0x3ac] ss:$16 sps:$4 sm:$0xff]   ;;  %v12259_v56 = vld [vmem:[#allocation3 + $0x3a0] ss:$16 sps:$4 sm:$0xff]  }
 0x2f5   :  { %5505 = vmatprep.subr.bf16.mxu1 %v12204_v57  ;;  %v12262_v57 = vld [vmem:[#allocation3 + $0x3a8] ss:$16 sps:$4 sm:$0xff]  }
 0x2f6   :  { %v3872_v2 = vpop.f32.mrf.mxu0  ;;  %4913 = vmatmul.mubr.bf16.vlgmr.msra.gmra.mxu0 %v14395_v26 }
 0x2f7   :  { %v3913_v3 = vpop.f32.mrf.mxu1  ;;  %4954 = vmatmul.mubr.bf16.vlgmr.msra.gmra.mxu1 %v14403_v1  ;;  %5465 = vmatpush1.bf16.msra.mxu0 %v12199_v60  ;;  %v12211_v1 = vld [vmem:[#allocation3 + $0x2a0] ss:$16 sps:$4 sm:$0xff]   ;;  %v12270_v60 = vld [vmem:[#allocation3 + $0x38c] ss:$16 sps:$4 sm:$0xff]  }
 0x2f8   :  { %v3914_v28 = vadd.f32 %v3913_v3, %v3872_v2  ;;  %5506 = vmatpush1.bf16.msra.mxu1 %v12202_v37  ;;  %v3874_v23 = vpop.f32.mrf.mxu0  ;;  %5466 = vmatprep.subr.bf16.mxu0 %v12207_v61  ;;  %v12265_v37 = vld [vmem:[#allocation3 + $0x380] ss:$16 sps:$4 sm:$0xff]   ;;  %v12268_v61 = vld [vmem:[#allocation3 + $0x388] ss:$16 sps:$4 sm:$0xff]  }
 0x2f9   :  { %v3915_v6 = vpop.f32.mrf.mxu1  ;;  %5507 = vmatprep.subr.bf16.mxu1 %v12210_v62  ;;  %5496 = vmatprep.mubr.bf16.mxu0 %v5079_v14  ;;  %v12273_v62 = vld [vmem:[#allocation3 + $0x364] ss:$16 sps:$4 sm:$0xff]   ;;  %v12271_v2 = vld [vmem:[#allocation3 + $0x360] ss:$16 sps:$4 sm:$0xff]   ;;  %v12274_v3 = vld [vmem:[#allocation3 + $0x368] ss:$16 sps:$4 sm:$0xff]  }
 0x2fa   :  { %v14603_v8 = vadd.f32 %v3914_v28, %v14208_v20  ;;  %v3916_v9 = vadd.f32 %v3915_v6, %v3874_v23  ;;  %v3876_v26 = vpop.f32.mrf.mxu0  ;;  %5537 = vmatprep.mubr.bf16.mxu1 %v5079_v14  ;;  %v12217_v20 = vld [vmem:[#allocation3 + $0x280] ss:$16 sps:$4 sm:$0xff]   ;;  %v12276_v14 = vld [vmem:[#allocation3 + $0x36c] ss:$16 sps:$4 sm:$0xff]  }
 0x2fb   :  { %v3917_v10 = vpop.f32.mrf.mxu1  ;;  %5467 = vmatpush1.bf16.msra.mxu0 %v12205_v4  ;;  %v12279_v4 = vld [vmem:[#allocation3 + $0x344] ss:$16 sps:$4 sm:$0xff]   ;;  %v12282_v28 = vld [vmem:[#allocation3 + $0x34c] ss:$16 sps:$4 sm:$0xff]   ;;  %v12277_v23 = vld [vmem:[#allocation3 + $0x340] ss:$16 sps:$4 sm:$0xff]  }
 0x2fc   :  { %v14606_v11 = vadd.f32 %v3916_v9, %v14211_v29  ;;  %5508 = vmatpush1.bf16.msra.mxu1 %v12208_v24  ;;  %v3877_v12 = vpop.f32.mrf.mxu0  ;;  %5468 = vmatprep.subr.bf16.mxu0 %v12213_v5  ;;  %v12226_v29 = vld [vmem:[#allocation3 + $0x268] ss:$16 sps:$4 sm:$0xff]   ;;  %v12285_v5 = vld [vmem:[#allocation3 + $0x324] ss:$16 sps:$4 sm:$0xff]   ;;  %v12288_v6 = vld [vmem:[#allocation3 + $0x32c] ss:$16 sps:$4 sm:$0xff]  }
 0x2fd   :  { %v3918_v18 = vpop.f32.mrf.mxu1  ;;  %5509 = vmatprep.subr.bf16.mxu1 %v12216_v7  ;;  %v12280_v24 = vld [vmem:[#allocation3 + $0x348] ss:$16 sps:$4 sm:$0xff]   ;;  %v12283_v7 = vld [vmem:[#allocation3 + $0x320] ss:$16 sps:$4 sm:$0xff]   ;;  %v12291_v26 = vld [vmem:[#allocation3 + $0x304] ss:$16 sps:$4 sm:$0xff]  }
 0x2fe   :  { %v12286_v9 = vld [vmem:[#allocation3 + $0x328] ss:$16 sps:$4 sm:$0xff]   ;;  %v12294_v10 = vld [vmem:[#allocation3 + $0x30c] ss:$16 sps:$4 sm:$0xff]   ;;  %v12289_v12 = vld [vmem:[#allocation3 + $0x300] ss:$16 sps:$4 sm:$0xff]  }
 0x2ff   :  { %5469 = vmatpush1.bf16.msra.mxu0 %v12211_v1  ;;  %v14611_v1 = vld [vmem:[%s15948_s0 + $0x8] sm:$0x33] }
 0x300   :  { %5510 = vmatpush1.bf16.msra.mxu1 %v12214_v36  ;;  %5470 = vmatprep.subr.bf16.mxu0 %v12219_v16  ;;  %v12292_v36 = vld [vmem:[#allocation3 + $0x308] ss:$16 sps:$4 sm:$0xff]   ;;  %v12297_v16 = vld [vmem:[#allocation3 + $0xe4] ss:$16 sps:$4 sm:$0xff]   ;;  %v12300_v18 = vld [vmem:[#allocation3 + $0xec] ss:$16 sps:$4 sm:$0xff]  }
 0x301   :  { %5511 = vmatprep.subr.bf16.mxu1 %v12222_v19  ;;  %v4999_v19 = vcombine.high %v14611_v1, %v14611_v1 }
 0x303   :  { %5471 = vmatpush1.bf16.msra.mxu0 %v12217_v20  ;;  %v5078_v20 = vpack.c.bf16 %v14590_v50, %v14590_v50  ;;  %v12304_v50 = vld [vmem:[#allocation3 + $0xc8] ss:$16 sps:$4 sm:$0xff]  }
 0x304   :  { %5512 = vmatpush1.bf16.msra.mxu1 %v12220_v25  ;;  %5472 = vmatprep.subr.bf16.mxu0 %v12225_v21  ;;  %v12295_v25 = vld [vmem:[#allocation3 + $0xe0] ss:$16 sps:$4 sm:$0xff]   ;;  %v12298_v21 = vld [vmem:[#allocation3 + $0xe8] ss:$16 sps:$4 sm:$0xff]  }
 0x305   :  { %5513 = vmatprep.subr.bf16.mxu1 %v12228_v22  ;;  %v12303_v22 = vld [vmem:[#allocation3 + $0xc4] ss:$16 sps:$4 sm:$0xff]  }
 0x307   :  { %5473 = vmatpush1.bf16.msra.mxu0 %v12223_v27  ;;  %v12306_v27 = vld [vmem:[#allocation3 + $0xcc] ss:$16 sps:$4 sm:$0xff]  }
 0x308   :  { %5514 = vmatpush1.bf16.msra.mxu1 %v12226_v29  ;;  %5474 = vmatprep.subr.bf16.mxu0 %v12231_v33  ;;  %v5002_v29 = vpack.c.bf16 %v4999_v19, %v4999_v19  ;;  %v12358_v19 = vld [vmem:[#allocation3 + $0x1a8] ss:$16 sps:$4 sm:$0xff]  }
 0x309   :  { %5515 = vmatprep.subr.bf16.mxu1 %v12234_v30 }
 0x30b   :  { %5475 = vmatpush1.bf16.msra.mxu0 %v12229_v0  ;;  %v12301_v0 = vld [vmem:[#allocation3 + $0xc0] ss:$16 sps:$4 sm:$0xff]  }
 0x30c   :  { %5516 = vmatpush1.bf16.msra.mxu1 %v12232_v15  ;;  %5476 = vmatprep.subr.bf16.mxu0 %v12237_v34 }
 0x30d   :  { %5517 = vmatprep.subr.bf16.mxu1 %v12240_v35  ;;  %v12309_v35 = vld [vmem:[#allocation3 + $0xa4] ss:$16 sps:$4 sm:$0xff]  }
 0x30f   :  { %5477 = vmatpush1.bf16.msra.mxu0 %v12235_v38 }
 0x310   :  { %5518 = vmatpush1.bf16.msra.mxu1 %v12238_v40  ;;  %5478 = vmatprep.subr.bf16.mxu0 %v12243_v17  ;;  %v12312_v40 = vld [vmem:[#allocation3 + $0xac] ss:$16 sps:$4 sm:$0xff]  }
 0x311   :  { %5519 = vmatprep.subr.bf16.mxu1 %v12246_v39 }
 0x313   :  { %5479 = vmatpush1.bf16.msra.mxu0 %v12241_v41 }
 0x314   :  { %5520 = vmatpush1.bf16.msra.mxu1 %v12244_v42  ;;  %5480 = vmatprep.subr.bf16.mxu0 %v12249_v43  ;;  %v12307_v43 = vld [vmem:[#allocation3 + $0xa0] ss:$16 sps:$4 sm:$0xff]  }
 0x315   :  { %5521 = vmatprep.subr.bf16.mxu1 %v12252_v44 }
 0x317   :  { %5481 = vmatpush2.bf16.msra.mxu0 %v12247_v45 }
 0x318   :  { %5522 = vmatpush2.bf16.msra.mxu1 %v12250_v47  ;;  %5482 = vmatprep.subr.bf16.mxu0 %v12255_v59  ;;  %v12310_v47 = vld [vmem:[#allocation3 + $0xa8] ss:$16 sps:$4 sm:$0xff]   ;;  %v12315_v59 = vld [vmem:[#allocation3 + $0x84] ss:$16 sps:$4 sm:$0xff]  }
 0x319   :  { %5523 = vmatprep.subr.bf16.mxu1 %v12258_v48 }
 0x31b   :  { %5483 = vmatpush2.bf16.msra.mxu0 %v12253_v49  ;;  %v12318_v49 = vld [vmem:[#allocation3 + $0x8c] ss:$16 sps:$4 sm:$0xff]  }
 0x31c   :  { %5524 = vmatpush2.bf16.msra.mxu1 %v12256_v55  ;;  %5484 = vmatprep.subr.bf16.mxu0 %v12261_v13  ;;  %v12316_v55 = vld [vmem:[#allocation3 + $0x88] ss:$16 sps:$4 sm:$0xff]   ;;  %v12321_v13 = vld [vmem:[#allocation3 + $0x64] ss:$16 sps:$4 sm:$0xff]  }
 0x31d   :  { %5525 = vmatprep.subr.bf16.mxu1 %v12264_v63  ;;  %v12324_v63 = vld [vmem:[#allocation3 + $0x6c] ss:$16 sps:$4 sm:$0xff]  }
 0x31f   :  { %5485 = vmatpush2.bf16.msra.mxu0 %v12259_v56  ;;  %v12319_v56 = vld [vmem:[#allocation3 + $0x60] ss:$16 sps:$4 sm:$0xff]  }
 0x320   :  { %5526 = vmatpush2.bf16.msra.mxu1 %v12262_v57  ;;  %5486 = vmatprep.subr.bf16.mxu0 %v12267_v58  ;;  %v12327_v57 = vld [vmem:[#allocation3 + $0x44] ss:$16 sps:$4 sm:$0xff]   ;;  %v12330_v58 = vld [vmem:[#allocation3 + $0x4c] ss:$16 sps:$4 sm:$0xff]  }
 0x321   :  { %5527 = vmatprep.subr.bf16.mxu1 %v12270_v60  ;;  %v12325_v60 = vld [vmem:[#allocation3 + $0x40] ss:$16 sps:$4 sm:$0xff]  }
 0x323   :  { %5487 = vmatpush2.bf16.msra.mxu0 %v12265_v37  ;;  %v12328_v37 = vld [vmem:[#allocation3 + $0x48] ss:$16 sps:$4 sm:$0xff]  }
 0x324   :  { %5528 = vmatpush2.bf16.msra.mxu1 %v12268_v61  ;;  %5488 = vmatprep.subr.bf16.mxu0 %v12273_v62  ;;  %v12333_v61 = vld [vmem:[#allocation3 + $0x24] ss:$16 sps:$4 sm:$0xff]   ;;  %v12336_v62 = vld [vmem:[#allocation3 + $0x2c] ss:$16 sps:$4 sm:$0xff]  }
 0x325   :  { %5529 = vmatprep.subr.bf16.mxu1 %v12276_v14  ;;  %v12331_v14 = vld [vmem:[#allocation3 + $0x20] ss:$16 sps:$4 sm:$0xff]  }
 0x327   :  { %5489 = vmatpush2.bf16.msra.mxu0 %v12271_v2  ;;  %v12334_v2 = vld [vmem:[#allocation3 + $0x28] ss:$16 sps:$4 sm:$0xff]  }
 0x328   :  { %5530 = vmatpush2.bf16.msra.mxu1 %v12274_v3  ;;  %5490 = vmatprep.subr.bf16.mxu0 %v12279_v4  ;;  %v12339_v3 = vld [vmem:[#allocation3 + $0x4] ss:$16 sps:$4 sm:$0xff]   ;;  %v12342_v4 = vld [vmem:[#allocation3 + $0xc] ss:$16 sps:$4 sm:$0xff]  }
 0x329   :  { %5531 = vmatprep.subr.bf16.mxu1 %v12282_v28  ;;  %v12337_v28 = vld [vmem:[#allocation3] ss:$16 sps:$4 sm:$0xff]  }
 0x32b   :  { %5491 = vmatpush2.bf16.msra.mxu0 %v12277_v23  ;;  %v12340_v23 = vld [vmem:[#allocation3 + $0x8] ss:$16 sps:$4 sm:$0xff]  }
 0x32c   :  { %5532 = vmatpush2.bf16.msra.mxu1 %v12280_v24  ;;  %5492 = vmatprep.subr.bf16.mxu0 %v12285_v5  ;;  %v12345_v24 = vld [vmem:[#allocation3 + $0x1e4] ss:$16 sps:$4 sm:$0xff]   ;;  %v12348_v5 = vld [vmem:[#allocation3 + $0x1ec] ss:$16 sps:$4 sm:$0xff]  }
 0x32d   :  { %5533 = vmatprep.subr.bf16.mxu1 %v12288_v6  ;;  %v12343_v6 = vld [vmem:[#allocation3 + $0x1e0] ss:$16 sps:$4 sm:$0xff]  }
 0x32f   :  { %5493 = vmatpush2.bf16.msra.mxu0 %v12283_v7  ;;  %v12346_v7 = vld [vmem:[#allocation3 + $0x1e8] ss:$16 sps:$4 sm:$0xff]  }
 0x330   :  { %5534 = vmatpush2.bf16.msra.mxu1 %v12286_v9  ;;  %5494 = vmatprep.subr.bf16.mxu0 %v12291_v26  ;;  %v12351_v9 = vld [vmem:[#allocation3 + $0x1c4] ss:$16 sps:$4 sm:$0xff]   ;;  %v12354_v26 = vld [vmem:[#allocation3 + $0x1cc] ss:$16 sps:$4 sm:$0xff]  }
 0x331   :  { %5535 = vmatprep.subr.bf16.mxu1 %v12294_v10  ;;  %v12349_v10 = vld [vmem:[#allocation3 + $0x1c0] ss:$16 sps:$4 sm:$0xff]  }
 0x333   :  { %5495 = vmatpush2.bf16.msra.mxu0 %v12289_v12  ;;  %v12352_v12 = vld [vmem:[#allocation3 + $0x1c8] ss:$16 sps:$4 sm:$0xff]  }
 0x334   :  { %5536 = vmatpush2.bf16.msra.mxu1 %v12292_v36  ;;  %5866 = vmatprep.subr.bf16.mxu0 %v12297_v16  ;;  %v12357_v36 = vld [vmem:[#allocation3 + $0x1a4] ss:$16 sps:$4 sm:$0xff]   ;;  %v12360_v16 = vld [vmem:[#allocation3 + $0x1ac] ss:$16 sps:$4 sm:$0xff]  }
 0x335   :  { %5907 = vmatprep.subr.bf16.mxu1 %v12300_v18  ;;  %v12355_v18 = vld [vmem:[#allocation3 + $0x1a0] ss:$16 sps:$4 sm:$0xff]  }
 0x336   :  { %v3954_v33 = vpop.f32.mrf.mxu0  ;;  %5497 = vmatmul.mubr.bf16.vlgmr.msra.gmra.mxu0 %v5078_v20 }
 0x337   :  { %v3995_v30 = vpop.f32.mrf.mxu1  ;;  %5538 = vmatmul.mubr.bf16.vlgmr.msra.gmra.mxu1 %v5078_v20  ;;  %5867 = vmatpush1.bf16.msra.mxu0 %v12295_v25  ;;  %v12363_v20 = vld [vmem:[#allocation3 + $0x184] ss:$16 sps:$4 sm:$0xff]   ;;  %v12366_v25 = vld [vmem:[#allocation3 + $0x18c] ss:$16 sps:$4 sm:$0xff]  }
 0x338   :  { %v3996_v15 = vadd.f32 %v3995_v30, %v3954_v33  ;;  %5908 = vmatpush1.bf16.msra.mxu1 %v12298_v21  ;;  %v3956_v34 = vpop.f32.mrf.mxu0  ;;  %5868 = vmatprep.subr.bf16.mxu0 %v12303_v22  ;;  %v12361_v21 = vld [vmem:[#allocation3 + $0x180] ss:$16 sps:$4 sm:$0xff]   ;;  %v12364_v22 = vld [vmem:[#allocation3 + $0x188] ss:$16 sps:$4 sm:$0xff]  }
 0x339   :  { %v3997_v38 = vpop.f32.mrf.mxu1  ;;  %5909 = vmatprep.subr.bf16.mxu1 %v12306_v27  ;;  %5898 = vmatprep.mubr.bf16.mxu0 %v5002_v29  ;;  %v12369_v27 = vld [vmem:[#allocation3 + $0x164] ss:$16 sps:$4 sm:$0xff]   ;;  %v14626_v33 = vld [vmem:[%s15948_s0 + $0x8] sm:$0x66]  ;;  %v12367_v30 = vld [vmem:[#allocation3 + $0x160] ss:$16 sps:$4 sm:$0xff]  }
 0x33a   :  { %v14618_v17 = vadd.f32 %v3996_v15, %v14423_v46  ;;  %v3998_v39 = vadd.f32 %v3997_v38, %v3956_v34  ;;  %v3958_v41 = vpop.f32.mrf.mxu0  ;;  %5939 = vmatprep.mubr.bf16.mxu1 %v5002_v29  ;;  %v12313_v46 = vld [vmem:[#allocation3 + $0x80] ss:$16 sps:$4 sm:$0xff]   ;;  %v12372_v29 = vld [vmem:[#allocation3 + $0x16c] ss:$16 sps:$4 sm:$0xff]   ;;  %v12375_v15 = vld [vmem:[#allocation3 + $0x144] ss:$16 sps:$4 sm:$0xff]  }
 0x33b   :  { %v3999_v42 = vpop.f32.mrf.mxu1  ;;  %5869 = vmatpush1.bf16.msra.mxu0 %v12301_v0  ;;  %v12370_v0 = vld [vmem:[#allocation3 + $0x168] ss:$16 sps:$4 sm:$0xff]   ;;  %v12378_v34 = vld [vmem:[#allocation3 + $0x14c] ss:$16 sps:$4 sm:$0xff]  }
 0x33c   :  { %v14621_v44 = vadd.f32 %v3998_v39, %v14429_v31  ;;  %5910 = vmatpush1.bf16.msra.mxu1 %v12304_v50  ;;  %v3959_v45 = vpop.f32.mrf.mxu0  ;;  %5870 = vmatprep.subr.bf16.mxu0 %v12309_v35  ;;  %v12322_v31 = vld [vmem:[#allocation3 + $0x68] ss:$16 sps:$4 sm:$0xff]   ;;  %v5949_v50 = vcombine.high %v14626_v33, %v14626_v33  ;;  %v12373_v35 = vld [vmem:[#allocation3 + $0x140] ss:$16 sps:$4 sm:$0xff]   ;;  %v12384_v39 = vld [vmem:[#allocation3 + $0x12c] ss:$16 sps:$4 sm:$0xff]  }
 0x33d   :  { %v4000_v48 = vpop.f32.mrf.mxu1  ;;  %5911 = vmatprep.subr.bf16.mxu1 %v12312_v40  ;;  %v12376_v38 = vld [vmem:[#allocation3 + $0x148] ss:$16 sps:$4 sm:$0xff]   ;;  %v12381_v40 = vld [vmem:[#allocation3 + $0x124] ss:$16 sps:$4 sm:$0xff]   ;;  %v12379_v42 = vld [vmem:[#allocation3 + $0x120] ss:$16 sps:$4 sm:$0xff]  }
 0x33e   :  { %v5952_v41 = vpack.c.bf16 %v5949_v50, %v5949_v50  ;;  %v12387_v45 = vld [vmem:[#allocation3 + $0x104] ss:$16 sps:$4 sm:$0xff]   ;;  %v12385_v48 = vld [vmem:[#allocation3 + $0x100] ss:$16 sps:$4 sm:$0xff]  }
 0x33f   :  { %5871 = vmatpush1.bf16.msra.mxu0 %v12307_v43  ;;  %v12382_v43 = vld [vmem:[#allocation3 + $0x128] ss:$16 sps:$4 sm:$0xff]   ;;  %v12430_v50 = vld [vmem:[#allocation3 + $0x424] ss:$16 sps:$4 sm:$0xff]  }
 0x340   :  { %5912 = vmatpush1.bf16.msra.mxu1 %v12310_v47  ;;  %5872 = vmatprep.subr.bf16.mxu0 %v12315_v59  ;;  %v12390_v47 = vld [vmem:[#allocation3 + $0x10c] ss:$16 sps:$4 sm:$0xff]   ;;  %v6027_v59 = vshll.u32 %v5952_v41, 16 }
 0x341   :  { %5913 = vmatprep.subr.bf16.mxu1 %v12318_v49  ;;  %v12388_v49 = vld [vmem:[#allocation3 + $0x108] ss:$16 sps:$4 sm:$0xff]  }
 0x343   :  { %5873 = vmatpush1.bf16.msra.mxu0 %v12313_v46  ;;  %v12394_v46 = vld [vmem:[#allocation3 + $0x4e4] ss:$16 sps:$4 sm:$0xff]  }
 0x344   :  { %5914 = vmatpush1.bf16.msra.mxu1 %v12316_v55  ;;  %5874 = vmatprep.subr.bf16.mxu0 %v12321_v13  ;;  %v12397_v55 = vld [vmem:[#allocation3 + $0x4ec] ss:$16 sps:$4 sm:$0xff]   ;;  %v6025_v13 = vshrl.u32 %v5952_v41, 16 }
 0x345   :  { %5915 = vmatprep.subr.bf16.mxu1 %v12324_v63  ;;  %v6029_v63 = vrot.slane %v6027_v59, 1  ;;  %v12439_v41 = vld [vmem:[#allocation3 + $0x40c] ss:$16 sps:$4 sm:$0xff]   ;;  %v12440_v59 = vld [vmem:[#allocation3 + $0x5e0] ss:$16 sps:$4 sm:$0xff]  }
 0x347   :  { %5875 = vmatpush1.bf16.msra.mxu0 %v12319_v56  ;;  %v5001_v56 = vpack.c.bf16 %v14611_v1, %v14611_v1  ;;  %v12401_v1 = vld [vmem:[#allocation3 + $0x4c8] ss:$16 sps:$4 sm:$0xff]  }
 0x348   :  { %5916 = vmatpush1.bf16.msra.mxu1 %v12322_v31  ;;  %5876 = vmatprep.subr.bf16.mxu0 %v12327_v57  ;;  %v12392_v31 = vld [vmem:[#allocation3 + $0x4e0] ss:$16 sps:$4 sm:$0xff]   ;;  %v12395_v57 = vld [vmem:[#allocation3 + $0x4e8] ss:$16 sps:$4 sm:$0xff]  }
 0x349   :  { %5917 = vmatprep.subr.bf16.mxu1 %v12330_v58  ;;  %v12400_v58 = vld [vmem:[#allocation3 + $0x4c4] ss:$16 sps:$4 sm:$0xff]  }
 0x34b   :  { %5877 = vmatpush1.bf16.msra.mxu0 %v12325_v60  ;;  %v12403_v60 = vld [vmem:[#allocation3 + $0x4cc] ss:$16 sps:$4 sm:$0xff]  }
 0x34c   :  { %5918 = vmatpush1.bf16.msra.mxu1 %v12328_v37  ;;  %5878 = vmatprep.subr.bf16.mxu0 %v12333_v61  ;;  %v6030_v37 = vor.u32 %v6029_v63, %v6025_v13  ;;  %v12449_v13 = vld [vmem:[#allocation3 + $0x5c8] ss:$16 sps:$4 sm:$0xff]   ;;  %v12454_v63 = vld [vmem:[#allocation3 + $0x5a4] ss:$16 sps:$4 sm:$0xff]  }
 0x34d   :  { %5919 = vmatprep.subr.bf16.mxu1 %v12336_v62 }
 0x34f   :  { %5879 = vmatpush1.bf16.msra.mxu0 %v12331_v14  ;;  %v12398_v14 = vld [vmem:[#allocation3 + $0x4c0] ss:$16 sps:$4 sm:$0xff]  }
 0x350   :  { %5920 = vmatpush1.bf16.msra.mxu1 %v12334_v2  ;;  %5880 = vmatprep.subr.bf16.mxu0 %v12339_v3 }
 0x351   :  { %5921 = vmatprep.subr.bf16.mxu1 %v12342_v4  ;;  %v12406_v4 = vld [vmem:[#allocation3 + $0x4a4] ss:$16 sps:$4 sm:$0xff]  }
 0x353   :  { %5881 = vmatpush1.bf16.msra.mxu0 %v12337_v28 }
 0x354   :  { %5922 = vmatpush1.bf16.msra.mxu1 %v12340_v23  ;;  %5882 = vmatprep.subr.bf16.mxu0 %v12345_v24  ;;  %v12409_v23 = vld [vmem:[#allocation3 + $0x4ac] ss:$16 sps:$4 sm:$0xff]  }
 0x355   :  { %5923 = vmatprep.subr.bf16.mxu1 %v12348_v5 }
 0x357   :  { %5883 = vmatpush2.bf16.msra.mxu0 %v12343_v6 }
 0x358   :  { %5924 = vmatpush2.bf16.msra.mxu1 %v12346_v7  ;;  %5884 = vmatprep.subr.bf16.mxu0 %v12351_v9  ;;  %v12404_v9 = vld [vmem:[#allocation3 + $0x4a0] ss:$16 sps:$4 sm:$0xff]  }
 0x359   :  { %5925 = vmatprep.subr.bf16.mxu1 %v12354_v26 }
 0x35b   :  { %5885 = vmatpush2.bf16.msra.mxu0 %v12349_v10 }
 0x35c   :  { %5926 = vmatpush2.bf16.msra.mxu1 %v12352_v12  ;;  %5886 = vmatprep.subr.bf16.mxu0 %v12357_v36  ;;  %v12407_v12 = vld [vmem:[#allocation3 + $0x4a8] ss:$16 sps:$4 sm:$0xff]   ;;  %v12412_v36 = vld [vmem:[#allocation3 + $0x484] ss:$16 sps:$4 sm:$0xff]  }
 0x35d   :  { %5927 = vmatprep.subr.bf16.mxu1 %v12360_v16 }
 0x35f   :  { %5887 = vmatpush2.bf16.msra.mxu0 %v12355_v18  ;;  %v12415_v18 = vld [vmem:[#allocation3 + $0x48c] ss:$16 sps:$4 sm:$0xff]  }
 0x360   :  { %5928 = vmatpush2.bf16.msra.mxu1 %v12358_v19  ;;  %5888 = vmatprep.subr.bf16.mxu0 %v12363_v20 }
 0x361   :  { %5929 = vmatprep.subr.bf16.mxu1 %v12366_v25 }
 0x363   :  { %5889 = vmatpush2.bf16.msra.mxu0 %v12361_v21  ;;  %v12413_v21 = vld [vmem:[#allocation3 + $0x488] ss:$16 sps:$4 sm:$0xff]  }
 0x364   :  { %5930 = vmatpush2.bf16.msra.mxu1 %v12364_v22  ;;  %5890 = vmatprep.subr.bf16.mxu0 %v12369_v27  ;;  %v12418_v22 = vld [vmem:[#allocation3 + $0x464] ss:$16 sps:$4 sm:$0xff]   ;;  %v12416_v27 = vld [vmem:[#allocation3 + $0x460] ss:$16 sps:$4 sm:$0xff]  }
 0x365   :  { %5931 = vmatprep.subr.bf16.mxu1 %v12372_v29  ;;  %v12419_v29 = vld [vmem:[#allocation3 + $0x468] ss:$16 sps:$4 sm:$0xff]  }
 0x367   :  { %5891 = vmatpush2.bf16.msra.mxu0 %v12367_v30  ;;  %v12424_v30 = vld [vmem:[#allocation3 + $0x444] ss:$16 sps:$4 sm:$0xff]  }
 0x368   :  { %5932 = vmatpush2.bf16.msra.mxu1 %v12370_v0  ;;  %5892 = vmatprep.subr.bf16.mxu0 %v12375_v15  ;;  %v12427_v0 = vld [vmem:[#allocation3 + $0x44c] ss:$16 sps:$4 sm:$0xff]   ;;  %v12422_v15 = vld [vmem:[#allocation3 + $0x440] ss:$16 sps:$4 sm:$0xff]  }
 0x369   :  { %5933 = vmatprep.subr.bf16.mxu1 %v12378_v34  ;;  %v12425_v34 = vld [vmem:[#allocation3 + $0x448] ss:$16 sps:$4 sm:$0xff]  }
 0x36b   :  { %5893 = vmatpush2.bf16.msra.mxu0 %v12373_v35  ;;  %v12433_v35 = vld [vmem:[#allocation3 + $0x42c] ss:$16 sps:$4 sm:$0xff]  }
 0x36c   :  { %5934 = vmatpush2.bf16.msra.mxu1 %v12376_v38  ;;  %5894 = vmatprep.subr.bf16.mxu0 %v12381_v40  ;;  %v12428_v38 = vld [vmem:[#allocation3 + $0x420] ss:$16 sps:$4 sm:$0xff]   ;;  %v12431_v40 = vld [vmem:[#allocation3 + $0x428] ss:$16 sps:$4 sm:$0xff]  }
 0x36d   :  { %5935 = vmatprep.subr.bf16.mxu1 %v12384_v39  ;;  %v12436_v39 = vld [vmem:[#allocation3 + $0x404] ss:$16 sps:$4 sm:$0xff]  }
 0x36f   :  { %5895 = vmatpush2.bf16.msra.mxu0 %v12379_v42  ;;  %v12434_v42 = vld [vmem:[#allocation3 + $0x400] ss:$16 sps:$4 sm:$0xff]  }
 0x370   :  { %5936 = vmatpush2.bf16.msra.mxu1 %v12382_v43  ;;  %5896 = vmatprep.subr.bf16.mxu0 %v12387_v45  ;;  %v12437_v43 = vld [vmem:[#allocation3 + $0x408] ss:$16 sps:$4 sm:$0xff]   ;;  %v12442_v45 = vld [vmem:[#allocation3 + $0x5e4] ss:$16 sps:$4 sm:$0xff]  }
 0x371   :  { %5937 = vmatprep.subr.bf16.mxu1 %v12390_v47  ;;  %v12445_v47 = vld [vmem:[#allocation3 + $0x5ec] ss:$16 sps:$4 sm:$0xff]  }
 0x373   :  { %5897 = vmatpush2.bf16.msra.mxu0 %v12385_v48  ;;  %v12443_v48 = vld [vmem:[#allocation3 + $0x5e8] ss:$16 sps:$4 sm:$0xff]  }
 0x374   :  { %5938 = vmatpush2.bf16.msra.mxu1 %v12388_v49  ;;  %6353 = vmatprep.subr.bf16.mxu0 %v12394_v46  ;;  %v12448_v49 = vld [vmem:[#allocation3 + $0x5c4] ss:$16 sps:$4 sm:$0xff]   ;;  %v12451_v46 = vld [vmem:[#allocation3 + $0x5cc] ss:$16 sps:$4 sm:$0xff]  }
 0x375   :  { %6394 = vmatprep.subr.bf16.mxu1 %v12397_v55  ;;  %v12446_v55 = vld [vmem:[#allocation3 + $0x5c0] ss:$16 sps:$4 sm:$0xff]  }
 0x376   :  { %v4832_v61 = vpop.f32.mrf.mxu0  ;;  %5899 = vmatmul.mubr.bf16.vlgmr.msra.gmra.mxu0 %v5001_v56 }
 0x377   :  { %v4873_v62 = vpop.f32.mrf.mxu1  ;;  %5940 = vmatmul.mubr.bf16.vlgmr.msra.gmra.mxu1 %v5001_v56  ;;  %6354 = vmatpush1.bf16.msra.mxu0 %v12392_v31  ;;  %v12457_v56 = vld [vmem:[#allocation3 + $0x5ac] ss:$16 sps:$4 sm:$0xff]   ;;  %v12452_v31 = vld [vmem:[#allocation3 + $0x5a0] ss:$16 sps:$4 sm:$0xff]  }
 0x378   :  { %v4874_v2 = vadd.f32 %v4873_v62, %v4832_v61  ;;  %6395 = vmatpush1.bf16.msra.mxu1 %v12395_v57  ;;  %v4834_v3 = vpop.f32.mrf.mxu0  ;;  %6355 = vmatprep.subr.bf16.mxu0 %v12400_v58  ;;  %v12455_v57 = vld [vmem:[#allocation3 + $0x5a8] ss:$16 sps:$4 sm:$0xff]   ;;  %v12460_v58 = vld [vmem:[#allocation3 + $0x584] ss:$16 sps:$4 sm:$0xff]  }
 0x379   :  { %v4875_v28 = vpop.f32.mrf.mxu1  ;;  %6396 = vmatprep.subr.bf16.mxu1 %v12403_v60  ;;  %6385 = vmatprep.mubr.bf16.mxu0 %v6030_v37  ;;  %v12463_v60 = vld [vmem:[#allocation3 + $0x58c] ss:$16 sps:$4 sm:$0xff]   ;;  %v12461_v61 = vld [vmem:[#allocation3 + $0x588] ss:$16 sps:$4 sm:$0xff]   ;;  %v12466_v62 = vld [vmem:[#allocation3 + $0x564] ss:$16 sps:$4 sm:$0xff]  }
 0x37a   :  { %v4962_v24 = vadd.f32 %v4874_v2, %v14603_v8  ;;  %v4876_v5 = vadd.f32 %v4875_v28, %v4834_v3  ;;  %v4836_v6 = vpop.f32.mrf.mxu0  ;;  %6426 = vmatprep.mubr.bf16.mxu1 %v6030_v37  ;;  %v12410_v8 = vld [vmem:[#allocation3 + $0x480] ss:$16 sps:$4 sm:$0xff]   ;;  %v12467_v3 = vld [vmem:[#allocation3 + $0x568] ss:$16 sps:$4 sm:$0xff]   ;;  %v5951_v28 = vpack.c.bf16 %v14626_v33, %v14626_v33 }
 0x37b   :  { %v4877_v7 = vpop.f32.mrf.mxu1  ;;  %6356 = vmatpush1.bf16.msra.mxu0 %v12398_v14  ;;  %v12458_v37 = vld [vmem:[#allocation3 + $0x580] ss:$16 sps:$4 sm:$0xff]   ;;  %v12469_v14 = vld [vmem:[#allocation3 + $0x56c] ss:$16 sps:$4 sm:$0xff]  }
 0x37c   :  { %v4963_v26 = vadd.f32 %v4876_v5, %v14606_v11  ;;  %6397 = vmatpush1.bf16.msra.mxu1 %v12401_v1  ;;  %v4837_v10 = vpop.f32.mrf.mxu0  ;;  %6357 = vmatprep.subr.bf16.mxu0 %v12406_v4  ;;  %v4966_v19 = vmax.f32 %v4962_v24, 0.0  ;;  %v12421_v11 = vld [vmem:[#allocation3 + $0x46c] ss:$16 sps:$4 sm:$0xff]   ;;  %v12464_v2 = vld [vmem:[#allocation3 + $0x560] ss:$16 sps:$4 sm:$0xff]   ;;  %v6020_v7 = vshll.u32 %v5951_v28, 16 }
 0x37d   :  { %v4878_v16 = vpop.f32.mrf.mxu1  ;;  %6398 = vmatprep.subr.bf16.mxu1 %v12409_v23  ;;  %v12472_v1 = vld [vmem:[#allocation3 + $0x544] ss:$16 sps:$4 sm:$0xff]   ;;  %v12475_v4 = vld [vmem:[#allocation3 + $0x54c] ss:$16 sps:$4 sm:$0xff]   ;;  %v12470_v23 = vld [vmem:[#allocation3 + $0x540] ss:$16 sps:$4 sm:$0xff]  }
 0x37e   :  { %v4967_v20 = vmax.f32 %v4963_v26, 0.0  ;;  %v12473_v24 = vld [vmem:[#allocation3 + $0x548] ss:$16 sps:$4 sm:$0xff]   ;;  %v12478_v5 = vld [vmem:[#allocation3 + $0x524] ss:$16 sps:$4 sm:$0xff]   ;;  %v6022_v16 = vrot.slane %v6020_v7, 1 }
 0x37f   :  { %6358 = vmatpush1.bf16.msra.mxu0 %v12404_v9  ;;  %v12481_v6 = vld [vmem:[#allocation3 + $0x52c] ss:$16 sps:$4 sm:$0xff]   ;;  %v12476_v9 = vld [vmem:[#allocation3 + $0x520] ss:$16 sps:$4 sm:$0xff]   ;;  %v12479_v26 = vld [vmem:[#allocation3 + $0x528] ss:$16 sps:$4 sm:$0xff]  }
 0x380   :  { %v14634_v25 = vcombine.low %v4966_v19, %v4967_v20  ;;  %6399 = vmatpush1.bf16.msra.mxu1 %v12407_v12  ;;  %6359 = vmatprep.subr.bf16.mxu0 %v12412_v36  ;;  %v12484_v10 = vld [vmem:[#allocation3 + $0x504] ss:$16 sps:$4 sm:$0xff]   ;;  %v12487_v12 = vld [vmem:[#allocation3 + $0x50c] ss:$16 sps:$4 sm:$0xff]   ;;  %v6018_v36 = vshrl.u32 %v5951_v28, 16 }
 0x381   :  { %6400 = vmatprep.subr.bf16.mxu1 %v12415_v18  ;;  %v12482_v33 = vld [vmem:[#allocation3 + $0x500] ss:$16 sps:$4 sm:$0xff]   ;;  %v12485_v18 = vld [vmem:[#allocation3 + $0x508] ss:$16 sps:$4 sm:$0xff]   ;;  %v12491_v19 = vld [vmem:[#allocation5 + $0xe4] ss:$16 sps:$4 sm:$0xff]  }
 0x382   :  { %v12494_v20 = vld [vmem:[#allocation5 + $0xec] ss:$16 sps:$4 sm:$0xff]   ;;  %v12521_v28 = vld [vmem:[#allocation5 + $0x44] ss:$16 sps:$4 sm:$0xff]  }
 0x383   :  { %6360 = vmatpush1.bf16.msra.mxu0 %v12410_v8  ;;  %v6023_v8 = vor.u32 %v6022_v16, %v6018_v36  ;;  %v12530_v7 = vld [vmem:[#allocation5 + $0x2c] ss:$16 sps:$4 sm:$0xff]   ;;  %v12531_v36 = vld [vmem:[#allocation5] ss:$16 sps:$4 sm:$0xff]   ;;  %v12534_v16 = vld [vmem:[#allocation5 + $0x8] ss:$16 sps:$4 sm:$0xff]  }
 0x384   :  { %6401 = vmatpush1.bf16.msra.mxu1 %v12413_v21  ;;  %6361 = vmatprep.subr.bf16.mxu0 %v12418_v22  ;;  %v12489_v21 = vld [vmem:[#allocation5 + $0xe0] ss:$16 sps:$4 sm:$0xff]   ;;  %v12492_v22 = vld [vmem:[#allocation5 + $0xe8] ss:$16 sps:$4 sm:$0xff]  }
 0x385   :  { %6402 = vmatprep.subr.bf16.mxu1 %v12421_v11  ;;  %v12497_v11 = vld [vmem:[#allocation5 + $0xc4] ss:$16 sps:$4 sm:$0xff]  }
 0x387   :  { %6362 = vmatpush1.bf16.msra.mxu0 %v12416_v27  ;;  %v12500_v27 = vld [vmem:[#allocation5 + $0xcc] ss:$16 sps:$4 sm:$0xff]  }
 0x388   :  { %6403 = vmatpush1.bf16.msra.mxu1 %v12419_v29  ;;  %6363 = vmatprep.subr.bf16.mxu0 %v12424_v30  ;;  %v13216_v29 = vmov 1983009808  }
 0x389   :  { %6404 = vmatprep.subr.bf16.mxu1 %v12427_v0  ;;  %v4977_v30 = vunpack.c.l.s4 %v13216_v29  ;;  %v12554_v29 = vld [vmem:[#allocation5 + $0x1ac] ss:$16 sps:$4 sm:$0xff]  }
 0x38b   :  { %6364 = vmatpush1.bf16.msra.mxu0 %v12422_v15 }
 0x38c   :  { %6405 = vmatpush1.bf16.msra.mxu1 %v12425_v34  ;;  %6365 = vmatprep.subr.bf16.mxu0 %v12430_v50  ;;  %v12495_v34 = vld [vmem:[#allocation5 + $0xc0] ss:$16 sps:$4 sm:$0xff]  }
 0x38d   :  { %6406 = vmatprep.subr.bf16.mxu1 %v12433_v35 }
 0x38f   :  { %6366 = vmatpush1.bf16.msra.mxu0 %v12428_v38  ;;  %v12498_v38 = vld [vmem:[#allocation5 + $0xc8] ss:$16 sps:$4 sm:$0xff]  }
 0x390   :  { %6407 = vmatpush1.bf16.msra.mxu1 %v12431_v40  ;;  %6367 = vmatprep.subr.bf16.mxu0 %v12436_v39  ;;  %v12503_v40 = vld [vmem:[#allocation5 + $0xa4] ss:$16 sps:$4 sm:$0xff]  }
 0x391   :  { %6408 = vmatprep.subr.bf16.mxu1 %v12439_v41  ;;  %v12506_v41 = vld [vmem:[#allocation5 + $0xac] ss:$16 sps:$4 sm:$0xff]  }
 0x393   :  { %6368 = vmatpush1.bf16.msra.mxu0 %v12434_v42  ;;  %v4978_v42 = vunpack.c.0.s8 %v4977_v30  ;;  %v12549_v30 = vld [vmem:[#allocation5 + $0x1a0] ss:$16 sps:$4 sm:$0xff]  }
 0x394   :  { %6409 = vmatpush1.bf16.msra.mxu1 %v12437_v43  ;;  %6369 = vmatprep.subr.bf16.mxu0 %v12442_v45 }
 0x395   :  { %6410 = vmatprep.subr.bf16.mxu1 %v12445_v47 }
 0x397   :  { %6370 = vmatpush2.bf16.msra.mxu0 %v12440_v59 }
 0x398   :  { %6411 = vmatpush2.bf16.msra.mxu1 %v12443_v48  ;;  %6371 = vmatprep.subr.bf16.mxu0 %v12448_v49  ;;  %v12501_v48 = vld [vmem:[#allocation5 + $0xa0] ss:$16 sps:$4 sm:$0xff]  }
 0x399   :  { %6412 = vmatprep.subr.bf16.mxu1 %v12451_v46 }
 0x39b   :  { %6372 = vmatpush2.bf16.msra.mxu0 %v12446_v55  ;;  %v12504_v55 = vld [vmem:[#allocation5 + $0xa8] ss:$16 sps:$4 sm:$0xff]  }
 0x39c   :  { %6413 = vmatpush2.bf16.msra.mxu1 %v12449_v13  ;;  %6373 = vmatprep.subr.bf16.mxu0 %v12454_v63  ;;  %v12509_v13 = vld [vmem:[#allocation5 + $0x84] ss:$16 sps:$4 sm:$0xff]  }
 0x39d   :  { %6414 = vmatprep.subr.bf16.mxu1 %v12457_v56  ;;  %v12512_v56 = vld [vmem:[#allocation5 + $0x8c] ss:$16 sps:$4 sm:$0xff]  }
 0x39f   :  { %6374 = vmatpush2.bf16.msra.mxu0 %v12452_v31  ;;  %v14641_v31 = vsub.s32 %v4978_v42, %v13508_v51  ;;  %v12569_v42 = vld [vmem:[#allocation5 + $0x144] ss:$16 sps:$4 sm:$0xff]  }
 0x3a0   :  { %6415 = vmatpush2.bf16.msra.mxu1 %v12455_v57  ;;  %6375 = vmatprep.subr.bf16.mxu0 %v12460_v58  ;;  %v12507_v58 = vld [vmem:[#allocation5 + $0x80] ss:$16 sps:$4 sm:$0xff]  }
 0x3a1   :  { %6416 = vmatprep.subr.bf16.mxu1 %v12463_v60  ;;  %v4982_v51 = vrot.slane %v14634_v25, %v14641_v31  ;;  %v12519_v25 = vld [vmem:[#allocation5 + $0x40] ss:$16 sps:$4 sm:$0xff]  }
 0x3a3   :  { %6376 = vmatpush2.bf16.msra.mxu0 %v12458_v37  ;;  %v12510_v37 = vld [vmem:[#allocation5 + $0x88] ss:$16 sps:$4 sm:$0xff]  }
 0x3a4   :  { %6417 = vmatpush2.bf16.msra.mxu1 %v12461_v61  ;;  %6377 = vmatprep.subr.bf16.mxu0 %v12466_v62  ;;  %v12518_v61 = vld [vmem:[#allocation5 + $0x6c] ss:$16 sps:$4 sm:$0xff]   ;;  %v14646_v62 = vld.sshfl [vmem:[%s15949_s1 + $0x4] sm:$0x33 pattern:$0x76325410] }
 0x3a5   :  { %6418 = vmatprep.subr.bf16.mxu1 %v12469_v14 }
 0x3a7   :  { %6378 = vmatpush2.bf16.msra.mxu0 %v12464_v2  ;;  %v6494_v2 = vcombine.high %v14646_v62, %v14646_v62 }
 0x3a8   :  { %6419 = vmatpush2.bf16.msra.mxu1 %v12467_v3  ;;  %6379 = vmatprep.subr.bf16.mxu0 %v12472_v1  ;;  %v12513_v3 = vld [vmem:[#allocation5 + $0x60] ss:$16 sps:$4 sm:$0xff]  }
 0x3a9   :  { %6420 = vmatprep.subr.bf16.mxu1 %v12475_v4  ;;  %v12516_v4 = vld [vmem:[#allocation5 + $0x68] ss:$16 sps:$4 sm:$0xff]  }
 0x3ab   :  { %6380 = vmatpush2.bf16.msra.mxu0 %v12470_v23  ;;  %v6498_v23 = vpack.c.bf16 %v6494_v2, %v6494_v2 }
 0x3ac   :  { %6421 = vmatpush2.bf16.msra.mxu1 %v12473_v24  ;;  %6381 = vmatprep.subr.bf16.mxu0 %v12478_v5  ;;  %v12524_v24 = vld [vmem:[#allocation5 + $0x4c] ss:$16 sps:$4 sm:$0xff]   ;;  %v12522_v5 = vld [vmem:[#allocation5 + $0x48] ss:$16 sps:$4 sm:$0xff]  }
 0x3ad   :  { %6422 = vmatprep.subr.bf16.mxu1 %v12481_v6  ;;  %v12527_v6 = vld [vmem:[#allocation5 + $0x24] ss:$16 sps:$4 sm:$0xff]  }
 0x3af   :  { %6382 = vmatpush2.bf16.msra.mxu0 %v12476_v9  ;;  %v12525_v9 = vld [vmem:[#allocation5 + $0x20] ss:$16 sps:$4 sm:$0xff]  }
 0x3b0   :  { %6423 = vmatpush2.bf16.msra.mxu1 %v12479_v26  ;;  %6383 = vmatprep.subr.bf16.mxu0 %v12484_v10  ;;  %v12528_v26 = vld [vmem:[#allocation5 + $0x28] ss:$16 sps:$4 sm:$0xff]   ;;  %v12533_v10 = vld [vmem:[#allocation5 + $0x4] ss:$16 sps:$4 sm:$0xff]  }
 0x3b1   :  { %6424 = vmatprep.subr.bf16.mxu1 %v12487_v12  ;;  %v12536_v12 = vld [vmem:[#allocation5 + $0xc] ss:$16 sps:$4 sm:$0xff]  }
 0x3b3   :  { %6384 = vmatpush2.bf16.msra.mxu0 %v12482_v33  ;;  %v12539_v33 = vld [vmem:[#allocation5 + $0x1e4] ss:$16 sps:$4 sm:$0xff]  }
 0x3b4   :  { %6425 = vmatpush2.bf16.msra.mxu1 %v12485_v18  ;;  %6905 = vmatprep.subr.bf16.mxu0 %v12491_v19  ;;  %v12542_v18 = vld [vmem:[#allocation5 + $0x1ec] ss:$16 sps:$4 sm:$0xff]   ;;  %v12537_v19 = vld [vmem:[#allocation5 + $0x1e0] ss:$16 sps:$4 sm:$0xff]  }
 0x3b5   :  { %6946 = vmatprep.subr.bf16.mxu1 %v12494_v20  ;;  %v12540_v20 = vld [vmem:[#allocation5 + $0x1e8] ss:$16 sps:$4 sm:$0xff]  }
 0x3b6   :  { %v4914_v0 = vpop.f32.mrf.mxu0  ;;  %6386 = vmatmul.mubr.bf16.vlgmr.msra.gmra.mxu0 %v6023_v8 }
 0x3b7   :  { %v4955_v15 = vpop.f32.mrf.mxu1  ;;  %6427 = vmatmul.mubr.bf16.vlgmr.msra.gmra.mxu1 %v6023_v8  ;;  %6906 = vmatpush1.bf16.msra.mxu0 %v12489_v21  ;;  %v12545_v8 = vld [vmem:[#allocation5 + $0x1c4] ss:$16 sps:$4 sm:$0xff]   ;;  %v12548_v21 = vld [vmem:[#allocation5 + $0x1cc] ss:$16 sps:$4 sm:$0xff]  }
 0x3b8   :  { %v4956_v50 = vadd.f32 %v4955_v15, %v4914_v0  ;;  %v4916_v35 = vpop.f32.mrf.mxu0  ;;  %6947 = vmatpush1.bf16.msra.mxu1 %v12492_v22  ;;  %6907 = vmatprep.subr.bf16.mxu0 %v12497_v11  ;;  %v12543_v22 = vld [vmem:[#allocation5 + $0x1c0] ss:$16 sps:$4 sm:$0xff]   ;;  %v12546_v11 = vld [vmem:[#allocation5 + $0x1c8] ss:$16 sps:$4 sm:$0xff]   ;;  %v12557_v15 = vld [vmem:[#allocation5 + $0x184] ss:$16 sps:$4 sm:$0xff]  }
 0x3b9   :  { %v4957_v39 = vpop.f32.mrf.mxu1  ;;  %6948 = vmatprep.subr.bf16.mxu1 %v12500_v27  ;;  %6937 = vmatprep.mubr.bf16.mxu0 %v6498_v23  ;;  %v12551_v27 = vld [vmem:[#allocation5 + $0x1a4] ss:$16 sps:$4 sm:$0xff]   ;;  %v12552_v0 = vld [vmem:[#allocation5 + $0x1a8] ss:$16 sps:$4 sm:$0xff]  }
 0x3ba   :  { %v4964_v43 = vadd.f32 %v4956_v50, %v14618_v17  ;;  %v4958_v45 = vadd.f32 %v4957_v39, %v4916_v35  ;;  %v4918_v47 = vpop.f32.mrf.mxu0  ;;  %6978 = vmatprep.mubr.bf16.mxu1 %v6498_v23  ;;  %v12555_v50 = vld [vmem:[#allocation5 + $0x180] ss:$16 sps:$4 sm:$0xff]   ;;  %v12558_v35 = vld [vmem:[#allocation5 + $0x188] ss:$16 sps:$4 sm:$0xff]  }
 0x3bb   :  { %v4959_v59 = vpop.f32.mrf.mxu1  ;;  %6908 = vmatpush1.bf16.msra.mxu0 %v12495_v34  ;;  %v12560_v34 = vld [vmem:[#allocation5 + $0x18c] ss:$16 sps:$4 sm:$0xff]   ;;  %v12561_v39 = vld [vmem:[#allocation5 + $0x160] ss:$16 sps:$4 sm:$0xff]   ;;  %v12570_v47 = vld [vmem:[#allocation5 + $0x148] ss:$16 sps:$4 sm:$0xff]  }
 0x3bc   :  { %v4965_v49 = vadd.f32 %v4958_v45, %v14621_v44  ;;  %v4919_v46 = vpop.f32.mrf.mxu0  ;;  %6949 = vmatpush1.bf16.msra.mxu1 %v12498_v38  ;;  %6909 = vmatprep.subr.bf16.mxu0 %v12503_v40  ;;  %v4968_v57 = vmax.f32 %v4964_v43, 0.0  ;;  %v12515_v44 = vld [vmem:[#allocation5 + $0x64] ss:$16 sps:$4 sm:$0xff]   ;;  %v12566_v40 = vld [vmem:[#allocation5 + $0x16c] ss:$16 sps:$4 sm:$0xff]  }
 0x3bd   :  { %v4960_v63 = vpop.f32.mrf.mxu1  ;;  %6950 = vmatprep.subr.bf16.mxu1 %v12506_v41  ;;  %v12563_v38 = vld [vmem:[#allocation5 + $0x164] ss:$16 sps:$4 sm:$0xff]   ;;  %v12564_v41 = vld [vmem:[#allocation5 + $0x168] ss:$16 sps:$4 sm:$0xff]   ;;  %v12572_v43 = vld [vmem:[#allocation5 + $0x14c] ss:$16 sps:$4 sm:$0xff]  }
 0x3be   :  { %v4969_v17 = vmax.f32 %v4965_v49, 0.0  ;;  %v12567_v45 = vld [vmem:[#allocation5 + $0x140] ss:$16 sps:$4 sm:$0xff]   ;;  %v12575_v59 = vld [vmem:[#allocation5 + $0x124] ss:$16 sps:$4 sm:$0xff]  }
 0x3bf   :  { %6910 = vmatpush1.bf16.msra.mxu0 %v12501_v48  ;;  %v12578_v48 = vld [vmem:[#allocation5 + $0x12c] ss:$16 sps:$4 sm:$0xff]   ;;  %v12573_v49 = vld [vmem:[#allocation5 + $0x120] ss:$16 sps:$4 sm:$0xff]   ;;  %v12576_v46 = vld [vmem:[#allocation5 + $0x128] ss:$16 sps:$4 sm:$0xff]  }
 0x3c0   :  { %v4975_v60 = vcombine.low %v4968_v57, %v4969_v17  ;;  %6951 = vmatpush1.bf16.msra.mxu1 %v12504_v55  ;;  %6911 = vmatprep.subr.bf16.mxu0 %v12509_v13  ;;  %v12581_v55 = vld [vmem:[#allocation5 + $0x104] ss:$16 sps:$4 sm:$0xff]   ;;  %v12584_v13 = vld [vmem:[#allocation5 + $0x10c] ss:$16 sps:$4 sm:$0xff]   ;;  %v12579_v63 = vld [vmem:[#allocation5 + $0x100] ss:$16 sps:$4 sm:$0xff]  }
 0x3c1   :  { %6952 = vmatprep.subr.bf16.mxu1 %v12512_v56  ;;  %v12582_v56 = vld [vmem:[#allocation5 + $0x108] ss:$16 sps:$4 sm:$0xff]   ;;  %v12587_v57 = vld [vmem:[%s15952_s4 + $0xe4] ss:$16 sps:$4 sm:$0xff]  }
 0x3c2   :  { %v4989_v14 = vrot.slane %v4975_v60, %v14641_v31  ;;  %v12590_v17 = vld [vmem:[%s15952_s4 + $0x2e4] ss:$16 sps:$4 sm:$0xff]   ;;  %v12585_v60 = vld [vmem:[%s15952_s4 + $0xe0] ss:$16 sps:$4 sm:$0xff]  }
 0x3c3   :  { %6912 = vmatpush1.bf16.msra.mxu0 %v12507_v58  ;;  %v6497_v58 = vpack.c.bf16 %v14646_v62, %v14646_v62 }
 0x3c4   :  { %v4990_v1 = vcombine.low %v4982_v51, %v4989_v14  ;;  %6953 = vmatpush1.bf16.msra.mxu1 %v12510_v37  ;;  %6913 = vmatprep.subr.bf16.mxu0 %v12515_v44  ;;  %v12588_v37 = vld [vmem:[%s15952_s4 + $0x2e0] ss:$16 sps:$4 sm:$0xff]   ;;  %v12593_v44 = vld [vmem:[%s15952_s4 + $0xc4] ss:$16 sps:$4 sm:$0xff]  }
 0x3c5   :  { %6954 = vmatprep.subr.bf16.mxu1 %v12518_v61  ;;  %v12596_v61 = vld [vmem:[%s15952_s4 + $0x2c4] ss:$16 sps:$4 sm:$0xff]   ;;  %v12591_v14 = vld [vmem:[%s15952_s4 + $0xc0] ss:$16 sps:$4 sm:$0xff]  }
 0x3c6   :  { %4992 = vst [vmem:[%s15956_s8] sm:$0xff] %v4990_v1  ;;  %v12599_v1 = vld [vmem:[%s15952_s4 + $0xa4] ss:$16 sps:$4 sm:$0xff]  }
 0x3c7   :  { %6914 = vmatpush1.bf16.msra.mxu0 %v12513_v3  ;;  %v12594_v3 = vld [vmem:[%s15952_s4 + $0x2c0] ss:$16 sps:$4 sm:$0xff]  }
 0x3c8   :  { %6955 = vmatpush1.bf16.msra.mxu1 %v12516_v4  ;;  %6915 = vmatprep.subr.bf16.mxu0 %v12521_v28  ;;  %v12602_v28 = vld [vmem:[%s15952_s4 + $0x2a4] ss:$16 sps:$4 sm:$0xff]  }
 0x3c9   :  { %6956 = vmatprep.subr.bf16.mxu1 %v12524_v24 }
 0x3cb   :  { %6916 = vmatpush1.bf16.msra.mxu0 %v12519_v25  ;;  %v12597_v25 = vld [vmem:[%s15952_s4 + $0xa0] ss:$16 sps:$4 sm:$0xff]  }
 0x3cc   :  { %6957 = vmatpush1.bf16.msra.mxu1 %v12522_v5  ;;  %6917 = vmatprep.subr.bf16.mxu0 %v12527_v6  ;;  %v12600_v6 = vld [vmem:[%s15952_s4 + $0x2a0] ss:$16 sps:$4 sm:$0xff]  }
 0x3cd   :  { %6958 = vmatprep.subr.bf16.mxu1 %v12530_v7  ;;  %v12605_v7 = vld [vmem:[%s15952_s4 + $0x84] ss:$16 sps:$4 sm:$0xff]  }
 0x3cf   :  { %6918 = vmatpush1.bf16.msra.mxu0 %v12525_v9 }
 0x3d0   :  { %6959 = vmatpush1.bf16.msra.mxu1 %v12528_v26  ;;  %6919 = vmatprep.subr.bf16.mxu0 %v12533_v10  ;;  %v12608_v26 = vld [vmem:[%s15952_s4 + $0x284] ss:$16 sps:$4 sm:$0xff]   ;;  %v12603_v10 = vld [vmem:[%s15952_s4 + $0x80] ss:$16 sps:$4 sm:$0xff]  }
 0x3d1   :  { %6960 = vmatprep.subr.bf16.mxu1 %v12536_v12  ;;  %v12606_v12 = vld [vmem:[%s15952_s4 + $0x280] ss:$16 sps:$4 sm:$0xff]  }
 0x3d3   :  { %6920 = vmatpush1.bf16.msra.mxu0 %v12531_v36  ;;  %v12611_v36 = vld [vmem:[%s15952_s4 + $0x64] ss:$16 sps:$4 sm:$0xff]  }
 0x3d4   :  { %6961 = vmatpush1.bf16.msra.mxu1 %v12534_v16  ;;  %6921 = vmatprep.subr.bf16.mxu0 %v12539_v33  ;;  %v12614_v16 = vld [vmem:[%s15952_s4 + $0x264] ss:$16 sps:$4 sm:$0xff]   ;;  %v12609_v33 = vld [vmem:[%s15952_s4 + $0x60] ss:$16 sps:$4 sm:$0xff]  }
 0x3d5   :  { %6962 = vmatprep.subr.bf16.mxu1 %v12542_v18  ;;  %v12612_v18 = vld [vmem:[%s15952_s4 + $0x260] ss:$16 sps:$4 sm:$0xff]  }
 0x3d7   :  { %6922 = vmatpush2.bf16.msra.mxu0 %v12537_v19  ;;  %v12617_v19 = vld [vmem:[%s15952_s4 + $0x44] ss:$16 sps:$4 sm:$0xff]  }
 0x3d8   :  { %6963 = vmatpush2.bf16.msra.mxu1 %v12540_v20  ;;  %6923 = vmatprep.subr.bf16.mxu0 %v12545_v8  ;;  %v12620_v20 = vld [vmem:[%s15952_s4 + $0x244] ss:$16 sps:$4 sm:$0xff]   ;;  %v12615_v8 = vld [vmem:[%s15952_s4 + $0x40] ss:$16 sps:$4 sm:$0xff]  }
 0x3d9   :  { %6964 = vmatprep.subr.bf16.mxu1 %v12548_v21  ;;  %v12618_v21 = vld [vmem:[%s15952_s4 + $0x240] ss:$16 sps:$4 sm:$0xff]  }
 0x3db   :  { %6924 = vmatpush2.bf16.msra.mxu0 %v12543_v22  ;;  %v12623_v22 = vld [vmem:[%s15952_s4 + $0x24] ss:$16 sps:$4 sm:$0xff]  }
 0x3dc   :  { %6965 = vmatpush2.bf16.msra.mxu1 %v12546_v11  ;;  %6925 = vmatprep.subr.bf16.mxu0 %v12551_v27  ;;  %v12626_v11 = vld [vmem:[%s15952_s4 + $0x224] ss:$16 sps:$4 sm:$0xff]   ;;  %v12621_v27 = vld [vmem:[%s15952_s4 + $0x20] ss:$16 sps:$4 sm:$0xff]  }
 0x3dd   :  { %6966 = vmatprep.subr.bf16.mxu1 %v12554_v29  ;;  %v12624_v29 = vld [vmem:[%s15952_s4 + $0x220] ss:$16 sps:$4 sm:$0xff]  }
 0x3df   :  { %6926 = vmatpush2.bf16.msra.mxu0 %v12549_v30  ;;  %v12629_v30 = vld [vmem:[%s15952_s4 + $0x4] ss:$16 sps:$4 sm:$0xff]  }
 0x3e0   :  { %6967 = vmatpush2.bf16.msra.mxu1 %v12552_v0  ;;  %6927 = vmatprep.subr.bf16.mxu0 %v12557_v15  ;;  %v12632_v0 = vld [vmem:[%s15952_s4 + $0x204] ss:$16 sps:$4 sm:$0xff]   ;;  %v12627_v15 = vld [vmem:[%s15952_s4] ss:$16 sps:$4 sm:$0xff]  }
 0x3e1   :  { %6968 = vmatprep.subr.bf16.mxu1 %v12560_v34  ;;  %v12630_v34 = vld [vmem:[%s15952_s4 + $0x200] ss:$16 sps:$4 sm:$0xff]  }
 0x3e3   :  { %6928 = vmatpush2.bf16.msra.mxu0 %v12555_v50  ;;  %v12635_v50 = vld [vmem:[%s15952_s4 + $0x1e4] ss:$16 sps:$4 sm:$0xff]  }
 0x3e4   :  { %6969 = vmatpush2.bf16.msra.mxu1 %v12558_v35  ;;  %6929 = vmatprep.subr.bf16.mxu0 %v12563_v38  ;;  %v12638_v35 = vld [vmem:[%s15952_s4 + $0x3e4] ss:$16 sps:$4 sm:$0xff]   ;;  %v12633_v38 = vld [vmem:[%s15952_s4 + $0x1e0] ss:$16 sps:$4 sm:$0xff]  }
 0x3e5   :  { %6970 = vmatprep.subr.bf16.mxu1 %v12566_v40  ;;  %v12636_v40 = vld [vmem:[%s15952_s4 + $0x3e0] ss:$16 sps:$4 sm:$0xff]  }
 0x3e7   :  { %6930 = vmatpush2.bf16.msra.mxu0 %v12561_v39  ;;  %v12641_v39 = vld [vmem:[%s15952_s4 + $0x1c4] ss:$16 sps:$4 sm:$0xff]  }
 0x3e8   :  { %6971 = vmatpush2.bf16.msra.mxu1 %v12564_v41  ;;  %6931 = vmatprep.subr.bf16.mxu0 %v12569_v42  ;;  %v12644_v41 = vld [vmem:[%s15952_s4 + $0x3c4] ss:$16 sps:$4 sm:$0xff]   ;;  %v12639_v42 = vld [vmem:[%s15952_s4 + $0x1c0] ss:$16 sps:$4 sm:$0xff]  }
 0x3e9   :  { %6972 = vmatprep.subr.bf16.mxu1 %v12572_v43  ;;  %v12642_v43 = vld [vmem:[%s15952_s4 + $0x3c0] ss:$16 sps:$4 sm:$0xff]  }
 0x3eb   :  { %6932 = vmatpush2.bf16.msra.mxu0 %v12567_v45  ;;  %v12647_v45 = vld [vmem:[%s15952_s4 + $0x1a4] ss:$16 sps:$4 sm:$0xff]  }
 0x3ec   :  { %6973 = vmatpush2.bf16.msra.mxu1 %v12570_v47  ;;  %6933 = vmatprep.subr.bf16.mxu0 %v12575_v59  ;;  %v12650_v47 = vld [vmem:[%s15952_s4 + $0x3a4] ss:$16 sps:$4 sm:$0xff]   ;;  %v12645_v59 = vld [vmem:[%s15952_s4 + $0x1a0] ss:$16 sps:$4 sm:$0xff]  }
 0x3ed   :  { %6974 = vmatprep.subr.bf16.mxu1 %v12578_v48  ;;  %v12648_v48 = vld [vmem:[%s15952_s4 + $0x3a0] ss:$16 sps:$4 sm:$0xff]  }
 0x3ef   :  { %6934 = vmatpush2.bf16.msra.mxu0 %v12573_v49  ;;  %v12653_v49 = vld [vmem:[%s15952_s4 + $0x184] ss:$16 sps:$4 sm:$0xff]  }
 0x3f0   :  { %6975 = vmatpush2.bf16.msra.mxu1 %v12576_v46  ;;  %6935 = vmatprep.subr.bf16.mxu0 %v12581_v55  ;;  %v12656_v46 = vld [vmem:[%s15952_s4 + $0x384] ss:$16 sps:$4 sm:$0xff]   ;;  %v12651_v55 = vld [vmem:[%s15952_s4 + $0x180] ss:$16 sps:$4 sm:$0xff]  }
 0x3f1   :  { %6976 = vmatprep.subr.bf16.mxu1 %v12584_v13  ;;  %v12654_v13 = vld [vmem:[%s15952_s4 + $0x380] ss:$16 sps:$4 sm:$0xff]  }
 0x3f3   :  { %6936 = vmatpush2.bf16.msra.mxu0 %v12579_v63  ;;  %v12659_v63 = vld [vmem:[%s15952_s4 + $0x164] ss:$16 sps:$4 sm:$0xff]  }
 0x3f4   :  { %6977 = vmatpush2.bf16.msra.mxu1 %v12582_v56  ;;  %7793 = vmatprep.subr.bf16.mxu0 %v12587_v57  ;;  %v12662_v56 = vld [vmem:[%s15952_s4 + $0x364] ss:$16 sps:$4 sm:$0xff]   ;;  %v12657_v57 = vld [vmem:[%s15952_s4 + $0x160] ss:$16 sps:$4 sm:$0xff]  }
 0x3f5   :  { %7834 = vmatprep.subr.bf16.mxu1 %v12590_v17  ;;  %v12660_v17 = vld [vmem:[%s15952_s4 + $0x360] ss:$16 sps:$4 sm:$0xff]  }
 0x3f6   :  { %v14676_v62 = vpop.f32.mrf.mxu0  ;;  %6938 = vmatmul.mubr.bf16.vlgmr.msra.gmra.mxu0 %v6497_v58 }
 0x3f7   :  { %v14678_v51 = vpop.f32.mrf.mxu1  ;;  %6979 = vmatmul.mubr.bf16.vlgmr.msra.gmra.mxu1 %v6497_v58  ;;  %7794 = vmatpush1.bf16.msra.mxu0 %v12585_v60  ;;  %v12665_v58 = vld [vmem:[%s15952_s4 + $0x144] ss:$16 sps:$4 sm:$0xff]  }
 0x3f8   :  { %v14683_v2 = vpop.f32.mrf.mxu0  ;;  %7835 = vmatpush1.bf16.msra.mxu1 %v12588_v37  ;;  %7795 = vmatprep.subr.bf16.mxu0 %v12593_v44  ;;  %v12668_v60 = vld [vmem:[%s15952_s4 + $0x344] ss:$16 sps:$4 sm:$0xff]   ;;  %v12663_v37 = vld [vmem:[%s15952_s4 + $0x140] ss:$16 sps:$4 sm:$0xff]  }
 0x3f9   :  { %v14691_v4 = vpop.f32.mrf.mxu1  ;;  %7836 = vmatprep.subr.bf16.mxu1 %v12596_v61  ;;  %v12666_v44 = vld [vmem:[%s15952_s4 + $0x340] ss:$16 sps:$4 sm:$0xff]   ;;  %v12671_v61 = vld [vmem:[%s15952_s4 + $0x124] ss:$16 sps:$4 sm:$0xff]  }
 0x3fa   :  { %v5502_v23 = vpop.f32.mrf.mxu0 }
 0x3fb   :  { %v5543_v24 = vpop.f32.mrf.mxu1  ;;  %7796 = vmatpush1.bf16.msra.mxu0 %v12591_v14  ;;  %v12674_v14 = vld [vmem:[%s15952_s4 + $0x324] ss:$16 sps:$4 sm:$0xff]  }
 0x3fc   :  { %v5503_v5 = vpop.f32.mrf.mxu0  ;;  %7837 = vmatpush1.bf16.msra.mxu1 %v12594_v3  ;;  %7797 = vmatprep.subr.bf16.mxu0 %v12599_v1  ;;  %v12669_v3 = vld [vmem:[%s15952_s4 + $0x120] ss:$16 sps:$4 sm:$0xff]   ;;  %v12680_v23 = vld [vmem:[%s15952_s4 + $0x304] ss:$16 sps:$4 sm:$0xff]  }
 0x3fd   :  { %v5544_v9 = vpop.f32.mrf.mxu1  ;;  %7838 = vmatprep.subr.bf16.mxu1 %v12602_v28  ;;  %v12672_v1 = vld [vmem:[%s15952_s4 + $0x320] ss:$16 sps:$4 sm:$0xff]   ;;  %v12677_v28 = vld [vmem:[%s15952_s4 + $0x104] ss:$16 sps:$4 sm:$0xff]   ;;  %v12685_v5 = vld [vmem:[%s15952_s4 + $0xec] ss:$16 sps:$4 sm:$0xff]  }
 0x3fe   :  { %v12675_v24 = vld [vmem:[%s15952_s4 + $0x100] ss:$16 sps:$4 sm:$0xff]  }
 0x3ff   :  { %7798 = vmatpush1.bf16.msra.mxu0 %v12597_v25  ;;  %v12678_v25 = vld [vmem:[%s15952_s4 + $0x300] ss:$16 sps:$4 sm:$0xff]  }
 0x400   :  { %7839 = vmatpush1.bf16.msra.mxu1 %v12600_v6  ;;  %7799 = vmatprep.subr.bf16.mxu0 %v12605_v7  ;;  %v12688_v6 = vld [vmem:[%s15952_s4 + $0x2ec] ss:$16 sps:$4 sm:$0xff]  }
 0x401   :  { %7840 = vmatprep.subr.bf16.mxu1 %v12608_v26 }
 0x403   :  { %7800 = vmatpush1.bf16.msra.mxu0 %v12603_v10 }
 0x404   :  { %7841 = vmatpush1.bf16.msra.mxu1 %v12606_v12  ;;  %7801 = vmatprep.subr.bf16.mxu0 %v12611_v36 }
 0x405   :  { %7842 = vmatprep.subr.bf16.mxu1 %v12614_v16 }
 0x407   :  { %7802 = vmatpush1.bf16.msra.mxu0 %v12609_v33 }
 0x408   :  { %7843 = vmatpush1.bf16.msra.mxu1 %v12612_v18  ;;  %7803 = vmatprep.subr.bf16.mxu0 %v12617_v19 }
 0x409   :  { %7844 = vmatprep.subr.bf16.mxu1 %v12620_v20  ;;  %v6439_v20 = vld [vmem:[%s15951_s3] sm:$0xf] }
 0x40b   :  { %7804 = vmatpush1.bf16.msra.mxu0 %v12615_v8  ;;  %v6444_v8 = vrot.slane %v6439_v20, %v13511_v52 }
 0x40c   :  { %7845 = vmatpush1.bf16.msra.mxu1 %v12618_v21  ;;  %7805 = vmatprep.subr.bf16.mxu0 %v12623_v22  ;;  %v6452_v22 = vrot.slane %v6439_v20, %v13514_v53 }
 0x40d   :  { %7846 = vmatprep.subr.bf16.mxu1 %v12626_v11 }
 0x40f   :  { %7806 = vmatpush1.bf16.msra.mxu0 %v12621_v27 }
 0x410   :  { %7847 = vmatpush1.bf16.msra.mxu1 %v12624_v29  ;;  %7807 = vmatprep.subr.bf16.mxu0 %v12629_v30 }
 0x411   :  { %7848 = vmatprep.subr.bf16.mxu1 %v12632_v0 }
 0x413   :  { %7808 = vmatpush1.bf16.msra.mxu0 %v12627_v15  ;;  %v6456_v15 = vrot.slane %v6439_v20, %v13523_v54 }
 0x414   :  { %7849 = vmatpush1.bf16.msra.mxu1 %v12630_v34  ;;  %7809 = vmatprep.subr.bf16.mxu0 %v12635_v50 }
 0x415   :  { %7850 = vmatprep.subr.bf16.mxu1 %v12638_v35 }
 0x417   :  { %7810 = vmatpush2.bf16.msra.mxu0 %v12633_v38 }
 0x418   :  { %7851 = vmatpush2.bf16.msra.mxu1 %v12636_v40  ;;  %7811 = vmatprep.subr.bf16.mxu0 %v12641_v39 }
 0x419   :  { %7852 = vmatprep.subr.bf16.mxu1 %v12644_v41 }
 0x41b   :  { %7812 = vmatpush2.bf16.msra.mxu0 %v12639_v42 }
 0x41c   :  { %7853 = vmatpush2.bf16.msra.mxu1 %v12642_v43  ;;  %7813 = vmatprep.subr.bf16.mxu0 %v12647_v45 }
 0x41d   :  { %7854 = vmatprep.subr.bf16.mxu1 %v12650_v47 }
 0x41f   :  { %7814 = vmatpush2.bf16.msra.mxu0 %v12645_v59 }
 0x420   :  { %7855 = vmatpush2.bf16.msra.mxu1 %v12648_v48  ;;  %7815 = vmatprep.subr.bf16.mxu0 %v12653_v49 }
 0x421   :  { %7856 = vmatprep.subr.bf16.mxu1 %v12656_v46 }
 0x423   :  { %7816 = vmatpush2.bf16.msra.mxu0 %v12651_v55 }
 0x424   :  { %7857 = vmatpush2.bf16.msra.mxu1 %v12654_v13  ;;  %7817 = vmatprep.subr.bf16.mxu0 %v12659_v63 }
 0x425   :  { %7858 = vmatprep.subr.bf16.mxu1 %v12662_v56 }
 0x427   :  { %7818 = vmatpush2.bf16.msra.mxu0 %v12657_v57 }
 0x428   :  { %7859 = vmatpush2.bf16.msra.mxu1 %v12660_v17  ;;  %7819 = vmatprep.subr.bf16.mxu0 %v12665_v58 }
 0x429   :  { %7860 = vmatprep.subr.bf16.mxu1 %v12668_v60  ;;  %v12683_v60 = vld [vmem:[%s15952_s4 + $0xe8] ss:$16 sps:$4 sm:$0xff]  }
 0x42b   :  { %7820 = vmatpush2.bf16.msra.mxu0 %v12663_v37 }
 0x42c   :  { %7861 = vmatpush2.bf16.msra.mxu1 %v12666_v44  ;;  %7821 = vmatprep.subr.bf16.mxu0 %v12671_v61  ;;  %v12686_v61 = vld [vmem:[%s15952_s4 + $0x2e8] ss:$16 sps:$4 sm:$0xff]  }
 0x42d   :  { %7862 = vmatprep.subr.bf16.mxu1 %v12674_v14 }
 0x42f   :  { %7822 = vmatpush2.bf16.msra.mxu0 %v12669_v3  ;;  %v12691_v3 = vld [vmem:[%s15952_s4 + $0xcc] ss:$16 sps:$4 sm:$0xff]  }
 0x430   :  { %7863 = vmatpush2.bf16.msra.mxu1 %v12672_v1  ;;  %7823 = vmatprep.subr.bf16.mxu0 %v12677_v28  ;;  %v12694_v1 = vld [vmem:[%s15952_s4 + $0x2cc] ss:$16 sps:$4 sm:$0xff]   ;;  %v12689_v28 = vld [vmem:[%s15952_s4 + $0xc8] ss:$16 sps:$4 sm:$0xff]  }
 0x431   :  { %7864 = vmatprep.subr.bf16.mxu1 %v12680_v23  ;;  %v12692_v23 = vld [vmem:[%s15952_s4 + $0x2c8] ss:$16 sps:$4 sm:$0xff]  }
 0x433   :  { %7824 = vmatpush2.bf16.msra.mxu0 %v12675_v24  ;;  %v12697_v24 = vld [vmem:[%s15952_s4 + $0xac] ss:$16 sps:$4 sm:$0xff]  }
 0x434   :  { %7865 = vmatpush2.bf16.msra.mxu1 %v12678_v25  ;;  %7875 = vmatprep.subr.bf16.mxu0 %v12685_v5  ;;  %v12700_v25 = vld [vmem:[%s15952_s4 + $0x2ac] ss:$16 sps:$4 sm:$0xff]   ;;  %v12695_v5 = vld [vmem:[%s15952_s4 + $0xa8] ss:$16 sps:$4 sm:$0xff]  }
 0x435   :  { %7916 = vmatprep.subr.bf16.mxu1 %v12688_v6  ;;  %v12698_v6 = vld [vmem:[%s15952_s4 + $0x2a8] ss:$16 sps:$4 sm:$0xff]  }
 0x436   :  { %v5900_v7 = vpop.f32.mrf.mxu0 }
 0x437   :  { %v5901_v9 = vadd.f32 %v5900_v7, %v14676_v62  ;;  %v5941_v26 = vpop.f32.mrf.mxu1  ;;  %v12703_v7 = vld [vmem:[%s15952_s4 + $0x8c] ss:$16 sps:$4 sm:$0xff]  }
 0x438   :  { %v5942_v10 = vadd.f32 %v5941_v26, %v14678_v51  ;;  %v5902_v12 = vpop.f32.mrf.mxu0  ;;  %v6448_v51 = vrot.slane %v6439_v20, %v13520_v32  ;;  %v12701_v26 = vld [vmem:[%s15952_s4 + $0x88] ss:$16 sps:$4 sm:$0xff]  }
 0x439   :  { %v5943_v36 = vpop.f32.mrf.mxu1  ;;  %v5903_v62 = vadd.f32 %v5902_v12, %v14683_v2  ;;  %v12709_v12 = vld [vmem:[%s15952_s4 + $0x6c] ss:$16 sps:$4 sm:$0xff]   ;;  %v12713_v20 = vld [vmem:[%s15952_s4 + $0x48] ss:$16 sps:$4 sm:$0xff]  }
 0x43a   :  { %v5904_v16 = vpop.f32.mrf.mxu0  ;;  %v5944_v29 = vadd.f32 %v5943_v36, %v14691_v4  ;;  %v12712_v36 = vld [vmem:[%s15952_s4 + $0x26c] ss:$16 sps:$4 sm:$0xff]  }
 0x43b   :  { %v5945_v33 = vpop.f32.mrf.mxu1  ;;  %v12707_v16 = vld [vmem:[%s15952_s4 + $0x68] ss:$16 sps:$4 sm:$0xff]  }
 0x43c   :  { %v5905_v18 = vpop.f32.mrf.mxu0  ;;  %v12710_v33 = vld [vmem:[%s15952_s4 + $0x268] ss:$16 sps:$4 sm:$0xff]  }
 0x43d   :  { %v5946_v19 = vpop.f32.mrf.mxu1  ;;  %v12715_v18 = vld [vmem:[%s15952_s4 + $0x4c] ss:$16 sps:$4 sm:$0xff]  }
 0x43e   :  { %v12718_v19 = vld [vmem:[%s15952_s4 + $0x24c] ss:$16 sps:$4 sm:$0xff]  }
 0x476   :  { %v6387_v21 = vpop.f32.mrf.mxu0 }
 0x477   :  { %v6435_v11 = vadd.f32 %v6387_v21, %v5901_v9  ;;  %v6428_v27 = vpop.f32.mrf.mxu1  ;;  %v12706_v9 = vld [vmem:[%s15952_s4 + $0x28c] ss:$16 sps:$4 sm:$0xff]  }
 0x478   :  { %v6437_v30 = vadd.f32 %v6428_v27, %v5942_v10  ;;  %v6389_v0 = vpop.f32.mrf.mxu0  ;;  %v12704_v10 = vld [vmem:[%s15952_s4 + $0x288] ss:$16 sps:$4 sm:$0xff]   ;;  %v12721_v21 = vld [vmem:[%s15952_s4 + $0x2c] ss:$16 sps:$4 sm:$0xff]  }
 0x479   :  { %v6461_v34 = vadd.f32 %v6444_v8, %v6435_v11  ;;  %v6436_v50 = vadd.f32 %v6389_v0, %v5903_v62  ;;  %v6430_v35 = vpop.f32.mrf.mxu1  ;;  %v12716_v8 = vld [vmem:[%s15952_s4 + $0x248] ss:$16 sps:$4 sm:$0xff]   ;;  %v12727_v27 = vld [vmem:[%s15952_s4 + $0xc] ss:$16 sps:$4 sm:$0xff]  }
 0x47a   :  { %v6463_v38 = vadd.f32 %v6452_v22, %v6437_v30  ;;  %v6438_v40 = vadd.f32 %v6430_v35, %v5944_v29  ;;  %v6391_v39 = vpop.f32.mrf.mxu0  ;;  %v12724_v22 = vld [vmem:[%s15952_s4 + $0x22c] ss:$16 sps:$4 sm:$0xff]   ;;  %v12719_v62 = vld [vmem:[%s15952_s4 + $0x28] ss:$16 sps:$4 sm:$0xff]  }
 0x47b   :  { %v6462_v41 = vadd.f32 %v6448_v51, %v6436_v50  ;;  %v6432_v42 = vpop.f32.mrf.mxu1  ;;  %v6465_v45 = vmax.f32 %v6461_v34, 0.0  ;;  %v12722_v11 = vld [vmem:[%s15952_s4 + $0x228] ss:$16 sps:$4 sm:$0xff]   ;;  %v12730_v51 = vld [vmem:[%s15952_s4 + $0x20c] ss:$16 sps:$4 sm:$0xff]  }
 0x47c   :  { %v6464_v43 = vadd.f32 %v6456_v15, %v6438_v40  ;;  %v6392_v2 = vpop.f32.mrf.mxu0  ;;  %v6467_v48 = vmax.f32 %v6463_v38, 0.0  ;;  %v12725_v29 = vld [vmem:[%s15952_s4 + $0x8] ss:$16 sps:$4 sm:$0xff]   ;;  %v12733_v0 = vld [vmem:[%s15952_s4 + $0x1ec] ss:$16 sps:$4 sm:$0xff]  }
 0x47d   :  { %v6466_v47 = vmax.f32 %v6462_v41, 0.0  ;;  %v6433_v59 = vpop.f32.mrf.mxu1  ;;  %v12728_v30 = vld [vmem:[%s15952_s4 + $0x208] ss:$16 sps:$4 sm:$0xff]   ;;  %v12736_v15 = vld [vmem:[%s15952_s4 + $0x3ec] ss:$16 sps:$4 sm:$0xff]  }
 0x47e   :  { %v6468_v49 = vmax.f32 %v6464_v43, 0.0  ;;  %v12731_v34 = vld [vmem:[%s15952_s4 + $0x1e8] ss:$16 sps:$4 sm:$0xff]   ;;  %v12739_v35 = vld [vmem:[%s15952_s4 + $0x1cc] ss:$16 sps:$4 sm:$0xff]  }
 0x47f   :  { %v6477_v4 = vcombine.low %v6465_v45, %v6466_v47  ;;  %v12734_v50 = vld [vmem:[%s15952_s4 + $0x3e8] ss:$16 sps:$4 sm:$0xff]   ;;  %v12742_v38 = vld [vmem:[%s15952_s4 + $0x3cc] ss:$16 sps:$4 sm:$0xff]  }
 0x480   :  { %v6478_v46 = vcombine.low %v6467_v48, %v6468_v49  ;;  %v12737_v40 = vld [vmem:[%s15952_s4 + $0x1c8] ss:$16 sps:$4 sm:$0xff]   ;;  %v12745_v41 = vld [vmem:[%s15952_s4 + $0x1ac] ss:$16 sps:$4 sm:$0xff]  }
 0x481   :  { %v6479_v55 = vrot.slane %v6477_v4, 7  ;;  %v12740_v39 = vld [vmem:[%s15952_s4 + $0x3c8] ss:$16 sps:$4 sm:$0xff]   ;;  %v12748_v42 = vld [vmem:[%s15952_s4 + $0x3ac] ss:$16 sps:$4 sm:$0xff]  }
 0x482   :  { %v6480_v13 = vrot.slane %v6478_v46, 7  ;;  %v12743_v43 = vld [vmem:[%s15952_s4 + $0x1a8] ss:$16 sps:$4 sm:$0xff]   ;;  %v12751_v45 = vld [vmem:[%s15952_s4 + $0x18c] ss:$16 sps:$4 sm:$0xff]  }
 0x483   :  { %6483 = vst [vmem:[#allocation2 + $0x10] sm:$0x66] %v6479_v55  ;;  %v12746_v2 = vld [vmem:[%s15952_s4 + $0x3a8] ss:$16 sps:$4 sm:$0xff]   ;;  %v12754_v59 = vld [vmem:[%s15952_s4 + $0x38c] ss:$16 sps:$4 sm:$0xff]  }
 0x484   :  { %6484 = vst [vmem:[#allocation2 + $0x18] sm:$0x66] %v6480_v13  ;;  %v12749_v4 = vld [vmem:[%s15952_s4 + $0x188] ss:$16 sps:$4 sm:$0xff]   ;;  %v12757_v13 = vld [vmem:[%s15952_s4 + $0x16c] ss:$16 sps:$4 sm:$0xff]  }
 0x485   :  { %v12752_v55 = vld [vmem:[%s15952_s4 + $0x388] ss:$16 sps:$4 sm:$0xff]  }
 0x48a   :  { %v7013_v63 = vld [vmem:[#allocation2 + $0x10] sm:$0x33] }
 0x48b   :  { %v7017_v56 = vcombine.high %v7013_v63, %v7013_v63  ;;  %v7014_v57 = vld [vmem:[#allocation2 + $0x18] sm:$0x33]  ;;  %v14878_v37 = vpack.c.bf16 %v7013_v63, %v7013_v63 }
 0x48c   :  { %v7018_v17 = vcombine.high %v7014_v57, %v7014_v57  ;;  %v14883_v14 = vpack.c.bf16 %v7014_v57, %v7014_v57 }
 0x48d   :  { %v7022_v58 = vpack.c.bf16 %v7017_v56, %v7017_v56  ;;  %v12760_v56 = vld [vmem:[%s15952_s4 + $0x36c] ss:$16 sps:$4 sm:$0xff]  }
 0x48e   :  { %v7024_v44 = vpack.c.bf16 %v7018_v17, %v7018_v17 }
 0x48f   :  { %7825 = vmatprep.mubr.bf16.mxu0 %v7022_v58 }
 0x490   :  { %7866 = vmatprep.mubr.bf16.mxu1 %v7024_v44  ;;  %7826 = vmatmul.mubr.bf16.vlgmr.msra.gmra.mxu0 %v14878_v37 }
 0x491   :  { %7867 = vmatmul.mubr.bf16.vlgmr.msra.gmra.mxu1 %v14883_v14  ;;  %7876 = vmatpush1.bf16.msra.mxu0 %v12683_v60  ;;  %v15036_v60 = vld [vmem:[#allocation2 + $0x10] sm:$0x66] }
 0x492   :  { %7917 = vmatpush1.bf16.msra.mxu1 %v12686_v61  ;;  %7907 = vmatprep.mubr.bf16.mxu0 %v7022_v58  ;;  %v12755_v58 = vld [vmem:[%s15952_s4 + $0x168] ss:$16 sps:$4 sm:$0xff]  }
 0x493   :  { %7948 = vmatprep.mubr.bf16.mxu1 %v7024_v44  ;;  %7877 = vmatprep.subr.bf16.mxu0 %v12691_v3  ;;  %v12758_v61 = vld [vmem:[%s15952_s4 + $0x368] ss:$16 sps:$4 sm:$0xff]   ;;  %v12763_v3 = vld [vmem:[%s15952_s4 + $0x14c] ss:$16 sps:$4 sm:$0xff]  }
 0x494   :  { %7918 = vmatprep.subr.bf16.mxu1 %v12694_v1  ;;  %v15044_v1 = vld [vmem:[#allocation2 + $0x18] sm:$0x66] }
 0x495   :  { %7878 = vmatpush1.bf16.msra.mxu0 %v12689_v28  ;;  %v12766_v28 = vld [vmem:[%s15952_s4 + $0x34c] ss:$16 sps:$4 sm:$0xff]  }
 0x496   :  { %7919 = vmatpush1.bf16.msra.mxu1 %v12692_v23  ;;  %7879 = vmatprep.subr.bf16.mxu0 %v12697_v24  ;;  %v7965_v23 = vcombine.high %v15036_v60, %v15036_v60  ;;  %v12761_v24 = vld [vmem:[%s15952_s4 + $0x148] ss:$16 sps:$4 sm:$0xff]  }
 0x497   :  { %7920 = vmatprep.subr.bf16.mxu1 %v12700_v25  ;;  %v7966_v25 = vcombine.high %v15044_v1, %v15044_v1 }
 0x499   :  { %7880 = vmatpush1.bf16.msra.mxu0 %v12695_v5  ;;  %v12764_v5 = vld [vmem:[%s15952_s4 + $0x348] ss:$16 sps:$4 sm:$0xff]  }
 0x49a   :  { %7921 = vmatpush1.bf16.msra.mxu1 %v12698_v6  ;;  %7881 = vmatprep.subr.bf16.mxu0 %v12703_v7  ;;  %v12769_v6 = vld [vmem:[%s15952_s4 + $0x12c] ss:$16 sps:$4 sm:$0xff]  }
 0x49b   :  { %7922 = vmatprep.subr.bf16.mxu1 %v12706_v9  ;;  %v12772_v7 = vld [vmem:[%s15952_s4 + $0x32c] ss:$16 sps:$4 sm:$0xff]   ;;  %v7970_v9 = vpack.c.bf16 %v7965_v23, %v7965_v23  ;;  %v12826_v23 = vld [vmem:[%s15952_s4 + $0x600] ss:$16 sps:$4 sm:$0xff]  }
 0x49d   :  { %7882 = vmatpush1.bf16.msra.mxu0 %v12701_v26  ;;  %v12767_v26 = vld [vmem:[%s15952_s4 + $0x128] ss:$16 sps:$4 sm:$0xff]  }
 0x49e   :  { %7923 = vmatpush1.bf16.msra.mxu1 %v12704_v10  ;;  %7883 = vmatprep.subr.bf16.mxu0 %v12709_v12  ;;  %v7972_v10 = vpack.c.bf16 %v7966_v25, %v7966_v25  ;;  %v12770_v12 = vld [vmem:[%s15952_s4 + $0x328] ss:$16 sps:$4 sm:$0xff]   ;;  %v12834_v25 = vld [vmem:[%s15952_s4 + $0x7e4] ss:$16 sps:$4 sm:$0xff]  }
 0x49f   :  { %7924 = vmatprep.subr.bf16.mxu1 %v12712_v36  ;;  %v12775_v36 = vld [vmem:[%s15952_s4 + $0x10c] ss:$16 sps:$4 sm:$0xff]  }
 0x4a1   :  { %7884 = vmatpush1.bf16.msra.mxu0 %v12707_v16  ;;  %v12778_v16 = vld [vmem:[%s15952_s4 + $0x30c] ss:$16 sps:$4 sm:$0xff]  }
 0x4a2   :  { %7925 = vmatpush1.bf16.msra.mxu1 %v12710_v33  ;;  %7885 = vmatprep.subr.bf16.mxu0 %v12715_v18  ;;  %v8111_v33 = vshll.u32 %v7970_v9, 16  ;;  %v12773_v18 = vld [vmem:[%s15952_s4 + $0x108] ss:$16 sps:$4 sm:$0xff]  }
 0x4a3   :  { %7926 = vmatprep.subr.bf16.mxu1 %v12718_v19  ;;  %v8125_v19 = vshll.u32 %v7972_v10, 16 }
 0x4a5   :  { %7886 = vmatpush1.bf16.msra.mxu0 %v12713_v20  ;;  %v12776_v20 = vld [vmem:[%s15952_s4 + $0x308] ss:$16 sps:$4 sm:$0xff]  }
 0x4a6   :  { %7927 = vmatpush1.bf16.msra.mxu1 %v12716_v8  ;;  %7887 = vmatprep.subr.bf16.mxu0 %v12721_v21  ;;  %v12781_v8 = vld [vmem:[%s15952_s4 + $0x4e4] ss:$16 sps:$4 sm:$0xff]  }
 0x4a7   :  { %7928 = vmatprep.subr.bf16.mxu1 %v12724_v22  ;;  %v12784_v21 = vld [vmem:[%s15952_s4 + $0x6e4] ss:$16 sps:$4 sm:$0xff]   ;;  %v8113_v22 = vrot.slane %v8111_v33, 1  ;;  %v12844_v33 = vld [vmem:[%s15952_s4 + $0x7a0] ss:$16 sps:$4 sm:$0xff]  }
 0x4a9   :  { %7888 = vmatpush1.bf16.msra.mxu0 %v12719_v62  ;;  %v12779_v62 = vld [vmem:[%s15952_s4 + $0x4e0] ss:$16 sps:$4 sm:$0xff]  }
 0x4aa   :  { %7929 = vmatpush1.bf16.msra.mxu1 %v12722_v11  ;;  %7889 = vmatprep.subr.bf16.mxu0 %v12727_v27  ;;  %v8127_v11 = vrot.slane %v8125_v19, 1  ;;  %v12782_v27 = vld [vmem:[%s15952_s4 + $0x6e0] ss:$16 sps:$4 sm:$0xff]   ;;  %v12852_v19 = vld [vmem:[%s15952_s4 + $0x784] ss:$16 sps:$4 sm:$0xff]  }
 0x4ab   :  { %7930 = vmatprep.subr.bf16.mxu1 %v12730_v51  ;;  %v8109_v51 = vshrl.u32 %v7970_v9, 16  ;;  %v12840_v9 = vld [vmem:[%s15952_s4 + $0x7c4] ss:$16 sps:$4 sm:$0xff]  }
 0x4ad   :  { %7890 = vmatpush1.bf16.msra.mxu0 %v12725_v29  ;;  %v8123_v29 = vshrl.u32 %v7972_v10, 16  ;;  %v12838_v10 = vld [vmem:[%s15952_s4 + $0x7c0] ss:$16 sps:$4 sm:$0xff]  }
 0x4ae   :  { %7931 = vmatpush1.bf16.msra.mxu1 %v12728_v30  ;;  %7891 = vmatprep.subr.bf16.mxu0 %v12733_v0  ;;  %v12789_v30 = vld [vmem:[%s15952_s4 + $0x4c4] ss:$16 sps:$4 sm:$0xff]   ;;  %v15099_v0 = vor.u32 %v8113_v22, %v8109_v51 }
 0x4af   :  { %7932 = vmatprep.subr.bf16.mxu1 %v12736_v15  ;;  %v12792_v15 = vld [vmem:[%s15952_s4 + $0x6c4] ss:$16 sps:$4 sm:$0xff]  }
 0x4b0   :  { %v12858_v22 = vld [vmem:[%s15952_s4 + $0x764] ss:$16 sps:$4 sm:$0xff]  }
 0x4b1   :  { %7892 = vmatpush2.bf16.msra.mxu0 %v12731_v34  ;;  %v15105_v34 = vor.u32 %v8127_v11, %v8123_v29  ;;  %v12856_v11 = vld [vmem:[%s15952_s4 + $0x760] ss:$16 sps:$4 sm:$0xff]   ;;  %v12864_v51 = vld [vmem:[%s15952_s4 + $0x744] ss:$16 sps:$4 sm:$0xff]  }
 0x4b2   :  { %7933 = vmatpush2.bf16.msra.mxu1 %v12734_v50  ;;  %7893 = vmatprep.subr.bf16.mxu0 %v12739_v35  ;;  %v12787_v50 = vld [vmem:[%s15952_s4 + $0x4c0] ss:$16 sps:$4 sm:$0xff]   ;;  %v12795_v35 = vld [vmem:[%s15952_s4 + $0x4a4] ss:$16 sps:$4 sm:$0xff]  }
 0x4b3   :  { %7934 = vmatprep.subr.bf16.mxu1 %v12742_v38  ;;  %v12793_v38 = vld [vmem:[%s15952_s4 + $0x4a0] ss:$16 sps:$4 sm:$0xff]  }
 0x4b4   :  { %v12859_v29 = vld [vmem:[%s15952_s4 + $0x540] ss:$16 sps:$4 sm:$0xff]  }
 0x4b5   :  { %7894 = vmatpush2.bf16.msra.mxu0 %v12737_v40  ;;  %v12796_v40 = vld [vmem:[%s15952_s4 + $0x6a0] ss:$16 sps:$4 sm:$0xff]  }
 0x4b6   :  { %7935 = vmatpush2.bf16.msra.mxu1 %v12740_v39  ;;  %7895 = vmatprep.subr.bf16.mxu0 %v12745_v41  ;;  %v15010_v47 = vpop.f32.mrf.mxu0  ;;  %v12801_v39 = vld [vmem:[%s15952_s4 + $0x484] ss:$16 sps:$4 sm:$0xff]  }
 0x4b7   :  { %7936 = vmatprep.subr.bf16.mxu1 %v12748_v42  ;;  %v15015_v48 = vpop.f32.mrf.mxu1  ;;  %v12804_v41 = vld [vmem:[%s15952_s4 + $0x684] ss:$16 sps:$4 sm:$0xff]   ;;  %v12799_v42 = vld [vmem:[%s15952_s4 + $0x480] ss:$16 sps:$4 sm:$0xff]  }
 0x4b8   :  { %v15017_v49 = vpop.f32.mrf.mxu0 }
 0x4b9   :  { %7896 = vmatpush2.bf16.msra.mxu0 %v12743_v43  ;;  %v15022_v46 = vpop.f32.mrf.mxu1  ;;  %v12802_v43 = vld [vmem:[%s15952_s4 + $0x680] ss:$16 sps:$4 sm:$0xff]  }
 0x4ba   :  { %7937 = vmatpush2.bf16.msra.mxu1 %v12746_v2  ;;  %7897 = vmatprep.subr.bf16.mxu0 %v12751_v45  ;;  %v6943_v63 = vpop.f32.mrf.mxu0  ;;  %v12807_v2 = vld [vmem:[%s15952_s4 + $0x464] ss:$16 sps:$4 sm:$0xff]  }
 0x4bb   :  { %7938 = vmatprep.subr.bf16.mxu1 %v12754_v59  ;;  %v6984_v57 = vpop.f32.mrf.mxu1  ;;  %v12810_v45 = vld [vmem:[%s15952_s4 + $0x664] ss:$16 sps:$4 sm:$0xff]   ;;  %v12805_v59 = vld [vmem:[%s15952_s4 + $0x460] ss:$16 sps:$4 sm:$0xff]  }
 0x4bc   :  { %v6944_v17 = vpop.f32.mrf.mxu0  ;;  %v12811_v63 = vld [vmem:[%s15952_s4 + $0x440] ss:$16 sps:$4 sm:$0xff]   ;;  %v12819_v57 = vld [vmem:[%s15952_s4 + $0x424] ss:$16 sps:$4 sm:$0xff]  }
 0x4bd   :  { %7898 = vmatpush2.bf16.msra.mxu0 %v12749_v4  ;;  %v6985_v44 = vpop.f32.mrf.mxu1  ;;  %v12808_v4 = vld [vmem:[%s15952_s4 + $0x660] ss:$16 sps:$4 sm:$0xff]   ;;  %v12822_v17 = vld [vmem:[%s15952_s4 + $0x624] ss:$16 sps:$4 sm:$0xff]  }
 0x4be   :  { %7939 = vmatpush2.bf16.msra.mxu1 %v12752_v55  ;;  %7899 = vmatprep.subr.bf16.mxu0 %v12757_v13  ;;  %v12813_v55 = vld [vmem:[%s15952_s4 + $0x444] ss:$16 sps:$4 sm:$0xff]   ;;  %v12820_v44 = vld [vmem:[%s15952_s4 + $0x620] ss:$16 sps:$4 sm:$0xff]  }
 0x4bf   :  { %7940 = vmatprep.subr.bf16.mxu1 %v12760_v56  ;;  %v12816_v13 = vld [vmem:[%s15952_s4 + $0x644] ss:$16 sps:$4 sm:$0xff]   ;;  %v12814_v56 = vld [vmem:[%s15952_s4 + $0x640] ss:$16 sps:$4 sm:$0xff]  }
 0x4c1   :  { %7900 = vmatpush2.bf16.msra.mxu0 %v12755_v58  ;;  %v12817_v58 = vld [vmem:[%s15952_s4 + $0x420] ss:$16 sps:$4 sm:$0xff]  }
 0x4c2   :  { %7941 = vmatpush2.bf16.msra.mxu1 %v12758_v61  ;;  %7901 = vmatprep.subr.bf16.mxu0 %v12763_v3  ;;  %v12825_v61 = vld [vmem:[%s15952_s4 + $0x404] ss:$16 sps:$4 sm:$0xff]  }
 0x4c3   :  { %7942 = vmatprep.subr.bf16.mxu1 %v12766_v28  ;;  %v12828_v3 = vld [vmem:[%s15952_s4 + $0x604] ss:$16 sps:$4 sm:$0xff]   ;;  %v12823_v28 = vld [vmem:[%s15952_s4 + $0x400] ss:$16 sps:$4 sm:$0xff]  }
 0x4c5   :  { %7902 = vmatpush2.bf16.msra.mxu0 %v12761_v24  ;;  %v12831_v24 = vld [vmem:[%s15952_s4 + $0x5e4] ss:$16 sps:$4 sm:$0xff]  }
 0x4c6   :  { %7943 = vmatpush2.bf16.msra.mxu1 %v12764_v5  ;;  %7903 = vmatprep.subr.bf16.mxu0 %v12769_v6  ;;  %v12829_v5 = vld [vmem:[%s15952_s4 + $0x5e0] ss:$16 sps:$4 sm:$0xff]  }
 0x4c7   :  { %7944 = vmatprep.subr.bf16.mxu1 %v12772_v7  ;;  %v12832_v6 = vld [vmem:[%s15952_s4 + $0x7e0] ss:$16 sps:$4 sm:$0xff]   ;;  %v12837_v7 = vld [vmem:[%s15952_s4 + $0x5c4] ss:$16 sps:$4 sm:$0xff]  }
 0x4c9   :  { %7904 = vmatpush2.bf16.msra.mxu0 %v12767_v26  ;;  %v12835_v26 = vld [vmem:[%s15952_s4 + $0x5c0] ss:$16 sps:$4 sm:$0xff]  }
 0x4ca   :  { %7945 = vmatpush2.bf16.msra.mxu1 %v12770_v12  ;;  %7905 = vmatprep.subr.bf16.mxu0 %v12775_v36  ;;  %v12843_v12 = vld [vmem:[%s15952_s4 + $0x5a4] ss:$16 sps:$4 sm:$0xff]  }
 0x4cb   :  { %7946 = vmatprep.subr.bf16.mxu1 %v12778_v16  ;;  %v12846_v36 = vld [vmem:[%s15952_s4 + $0x7a4] ss:$16 sps:$4 sm:$0xff]   ;;  %v12841_v16 = vld [vmem:[%s15952_s4 + $0x5a0] ss:$16 sps:$4 sm:$0xff]  }
 0x4cd   :  { %7906 = vmatpush2.bf16.msra.mxu0 %v12773_v18  ;;  %v12849_v18 = vld [vmem:[%s15952_s4 + $0x584] ss:$16 sps:$4 sm:$0xff]  }
 0x4ce   :  { %7947 = vmatpush2.bf16.msra.mxu1 %v12776_v20  ;;  %8773 = vmatprep.subr.bf16.mxu0 %v12781_v8  ;;  %v12847_v20 = vld [vmem:[%s15952_s4 + $0x580] ss:$16 sps:$4 sm:$0xff]  }
 0x4cf   :  { %8814 = vmatprep.subr.bf16.mxu1 %v12784_v21  ;;  %v12850_v8 = vld [vmem:[%s15952_s4 + $0x780] ss:$16 sps:$4 sm:$0xff]   ;;  %v12855_v21 = vld [vmem:[%s15952_s4 + $0x564] ss:$16 sps:$4 sm:$0xff]  }
 0x4d0   :  { %7908 = vmatmul.mubr.bf16.vlgmr.msra.gmra.mxu0 %v14878_v37  ;;  %v12790_v37 = vld [vmem:[%s15952_s4 + $0x6c0] ss:$16 sps:$4 sm:$0xff]  }
 0x4d1   :  { %7949 = vmatmul.mubr.bf16.vlgmr.msra.gmra.mxu1 %v14883_v14  ;;  %8774 = vmatpush1.bf16.msra.mxu0 %v12779_v62  ;;  %v12798_v14 = vld [vmem:[%s15952_s4 + $0x6a4] ss:$16 sps:$4 sm:$0xff]   ;;  %v12853_v62 = vld [vmem:[%s15952_s4 + $0x560] ss:$16 sps:$4 sm:$0xff]  }
 0x4d2   :  { %8805 = vmatprep.mubr.bf16.mxu0 %v15099_v0  ;;  %8815 = vmatpush1.bf16.msra.mxu1 %v12782_v27  ;;  %v12861_v27 = vld [vmem:[%s15952_s4 + $0x544] ss:$16 sps:$4 sm:$0xff]  }
 0x4d3   :  { %8846 = vmatprep.mubr.bf16.mxu1 %v15105_v34  ;;  %8775 = vmatprep.subr.bf16.mxu0 %v12789_v30  ;;  %v7969_v30 = vpack.c.bf16 %v15036_v60, %v15036_v60  ;;  %v12865_v60 = vld [vmem:[%s15952_s4 + $0x520] ss:$16 sps:$4 sm:$0xff]  }
 0x4d4   :  { %8816 = vmatprep.subr.bf16.mxu1 %v12792_v15  ;;  %v12862_v15 = vld [vmem:[%s15952_s4 + $0x740] ss:$16 sps:$4 sm:$0xff]  }
 0x4d5   :  { %8776 = vmatpush1.bf16.msra.mxu0 %v12787_v50  ;;  %v12867_v50 = vld [vmem:[%s15952_s4 + $0x524] ss:$16 sps:$4 sm:$0xff]  }
 0x4d6   :  { %8817 = vmatpush1.bf16.msra.mxu1 %v12790_v37  ;;  %8777 = vmatprep.subr.bf16.mxu0 %v12795_v35  ;;  %v7971_v37 = vpack.c.bf16 %v15044_v1, %v15044_v1  ;;  %v12870_v35 = vld [vmem:[%s15952_s4 + $0x724] ss:$16 sps:$4 sm:$0xff]  }
 0x4d7   :  { %8818 = vmatprep.subr.bf16.mxu1 %v12798_v14  ;;  %v12868_v14 = vld [vmem:[%s15952_s4 + $0x720] ss:$16 sps:$4 sm:$0xff]   ;;  %v12873_v1 = vld [vmem:[%s15952_s4 + $0x504] ss:$16 sps:$4 sm:$0xff]  }
 0x4d9   :  { %8778 = vmatpush1.bf16.msra.mxu0 %v12793_v38  ;;  %v8104_v38 = vshll.u32 %v7969_v30, 16 }
 0x4da   :  { %8819 = vmatpush1.bf16.msra.mxu1 %v12796_v40  ;;  %8779 = vmatprep.subr.bf16.mxu0 %v12801_v39  ;;  %v12876_v40 = vld [vmem:[%s15952_s4 + $0x704] ss:$16 sps:$4 sm:$0xff]   ;;  %v8118_v39 = vshll.u32 %v7971_v37, 16 }
 0x4db   :  { %8820 = vmatprep.subr.bf16.mxu1 %v12804_v41  ;;  %v12871_v41 = vld [vmem:[%s15952_s4 + $0x500] ss:$16 sps:$4 sm:$0xff]  }
 0x4dd   :  { %8780 = vmatpush1.bf16.msra.mxu0 %v12799_v42  ;;  %v12874_v42 = vld [vmem:[%s15952_s4 + $0x700] ss:$16 sps:$4 sm:$0xff]  }
 0x4de   :  { %8821 = vmatpush1.bf16.msra.mxu1 %v12802_v43  ;;  %8781 = vmatprep.subr.bf16.mxu0 %v12807_v2  ;;  %v8106_v43 = vrot.slane %v8104_v38, 1  ;;  %v12879_v2 = vld [vmem:[%s15952_s4 + $0x4ec] ss:$16 sps:$4 sm:$0xff]  }
 0x4df   :  { %8822 = vmatprep.subr.bf16.mxu1 %v12810_v45  ;;  %v8120_v45 = vrot.slane %v8118_v39, 1  ;;  %v12945_v38 = vld [vmem:[%s15952_s4 + $0x58c] ss:$16 sps:$4 sm:$0xff]   ;;  %v12943_v39 = vld [vmem:[%s15952_s4 + $0x588] ss:$16 sps:$4 sm:$0xff]  }
 0x4e1   :  { %8782 = vmatpush1.bf16.msra.mxu0 %v12805_v59  ;;  %v12882_v59 = vld [vmem:[%s15952_s4 + $0x6ec] ss:$16 sps:$4 sm:$0xff]  }
 0x4e2   :  { %8823 = vmatpush1.bf16.msra.mxu1 %v12808_v4  ;;  %8783 = vmatprep.subr.bf16.mxu0 %v12813_v55  ;;  %v8102_v4 = vshrl.u32 %v7969_v30, 16  ;;  %v8116_v55 = vshrl.u32 %v7971_v37, 16  ;;  %v12933_v30 = vld [vmem:[%s15952_s4 + $0x5cc] ss:$16 sps:$4 sm:$0xff]   ;;  %v12934_v37 = vld [vmem:[%s15952_s4 + $0x7c8] ss:$16 sps:$4 sm:$0xff]  }
 0x4e3   :  { %8824 = vmatprep.subr.bf16.mxu1 %v12816_v13  ;;  %v12877_v13 = vld [vmem:[%s15952_s4 + $0x4e8] ss:$16 sps:$4 sm:$0xff]  }
 0x4e5   :  { %8784 = vmatpush1.bf16.msra.mxu0 %v12811_v63  ;;  %v15296_v63 = vor.u32 %v8106_v43, %v8102_v4  ;;  %v12954_v43 = vld [vmem:[%s15952_s4 + $0x76c] ss:$16 sps:$4 sm:$0xff]  }
 0x4e6   :  { %8825 = vmatpush1.bf16.msra.mxu1 %v12814_v56  ;;  %8785 = vmatprep.subr.bf16.mxu0 %v12819_v57  ;;  %v12880_v56 = vld [vmem:[%s15952_s4 + $0x6e8] ss:$16 sps:$4 sm:$0xff]   ;;  %v15301_v57 = vor.u32 %v8120_v45, %v8116_v55  ;;  %v12960_v4 = vld [vmem:[%s15952_s4 + $0x74c] ss:$16 sps:$4 sm:$0xff]  }
 0x4e7   :  { %8826 = vmatprep.subr.bf16.mxu1 %v12822_v17  ;;  %v12885_v17 = vld [vmem:[%s15952_s4 + $0x4cc] ss:$16 sps:$4 sm:$0xff]   ;;  %v12952_v45 = vld [vmem:[%s15952_s4 + $0x768] ss:$16 sps:$4 sm:$0xff]  }
 0x4e8   :  { %v12955_v55 = vld [vmem:[%s15952_s4 + $0x548] ss:$16 sps:$4 sm:$0xff]  }
 0x4e9   :  { %8786 = vmatpush1.bf16.msra.mxu0 %v12817_v58  ;;  %v12888_v58 = vld [vmem:[%s15952_s4 + $0x6cc] ss:$16 sps:$4 sm:$0xff]  }
 0x4ea   :  { %8827 = vmatpush1.bf16.msra.mxu1 %v12820_v44  ;;  %8787 = vmatprep.subr.bf16.mxu0 %v12825_v61  ;;  %v12883_v44 = vld [vmem:[%s15952_s4 + $0x4c8] ss:$16 sps:$4 sm:$0xff]  }
 0x4eb   :  { %8828 = vmatprep.subr.bf16.mxu1 %v12828_v3  ;;  %v12886_v61 = vld [vmem:[%s15952_s4 + $0x6c8] ss:$16 sps:$4 sm:$0xff]   ;;  %v12891_v3 = vld [vmem:[%s15952_s4 + $0x4ac] ss:$16 sps:$4 sm:$0xff]  }
 0x4ed   :  { %8788 = vmatpush1.bf16.msra.mxu0 %v12823_v28  ;;  %v12894_v28 = vld [vmem:[%s15952_s4 + $0x6ac] ss:$16 sps:$4 sm:$0xff]  }
 0x4ee   :  { %8829 = vmatpush1.bf16.msra.mxu1 %v12826_v23  ;;  %8789 = vmatprep.subr.bf16.mxu0 %v12831_v24  ;;  %v12892_v23 = vld [vmem:[%s15952_s4 + $0x6a8] ss:$16 sps:$4 sm:$0xff]   ;;  %v12900_v24 = vld [vmem:[%s15952_s4 + $0x68c] ss:$16 sps:$4 sm:$0xff]  }
 0x4ef   :  { %8830 = vmatprep.subr.bf16.mxu1 %v12834_v25  ;;  %v12895_v25 = vld [vmem:[%s15952_s4 + $0x488] ss:$16 sps:$4 sm:$0xff]  }
 0x4f1   :  { %8790 = vmatpush2.bf16.msra.mxu0 %v12829_v5  ;;  %v12898_v5 = vld [vmem:[%s15952_s4 + $0x688] ss:$16 sps:$4 sm:$0xff]  }
 0x4f2   :  { %8831 = vmatpush2.bf16.msra.mxu1 %v12832_v6  ;;  %8791 = vmatprep.subr.bf16.mxu0 %v12837_v7  ;;  %v12903_v6 = vld [vmem:[%s15952_s4 + $0x46c] ss:$16 sps:$4 sm:$0xff]  }
 0x4f3   :  { %8832 = vmatprep.subr.bf16.mxu1 %v12840_v9  ;;  %v12906_v7 = vld [vmem:[%s15952_s4 + $0x66c] ss:$16 sps:$4 sm:$0xff]   ;;  %v12901_v9 = vld [vmem:[%s15952_s4 + $0x468] ss:$16 sps:$4 sm:$0xff]  }
 0x4f5   :  { %8792 = vmatpush2.bf16.msra.mxu0 %v12835_v26  ;;  %v12904_v26 = vld [vmem:[%s15952_s4 + $0x668] ss:$16 sps:$4 sm:$0xff]  }
 0x4f6   :  { %8833 = vmatpush2.bf16.msra.mxu1 %v12838_v10  ;;  %8793 = vmatprep.subr.bf16.mxu0 %v12843_v12  ;;  %v12909_v10 = vld [vmem:[%s15952_s4 + $0x44c] ss:$16 sps:$4 sm:$0xff]  }
 0x4f7   :  { %8834 = vmatprep.subr.bf16.mxu1 %v12846_v36  ;;  %v12912_v12 = vld [vmem:[%s15952_s4 + $0x64c] ss:$16 sps:$4 sm:$0xff]   ;;  %v12907_v36 = vld [vmem:[%s15952_s4 + $0x448] ss:$16 sps:$4 sm:$0xff]  }
 0x4f9   :  { %8794 = vmatpush2.bf16.msra.mxu0 %v12841_v16  ;;  %v12910_v16 = vld [vmem:[%s15952_s4 + $0x648] ss:$16 sps:$4 sm:$0xff]  }
 0x4fa   :  { %8835 = vmatpush2.bf16.msra.mxu1 %v12844_v33  ;;  %8795 = vmatprep.subr.bf16.mxu0 %v12849_v18  ;;  %v12915_v33 = vld [vmem:[%s15952_s4 + $0x42c] ss:$16 sps:$4 sm:$0xff]  }
 0x4fb   :  { %8836 = vmatprep.subr.bf16.mxu1 %v12852_v19  ;;  %v12918_v18 = vld [vmem:[%s15952_s4 + $0x62c] ss:$16 sps:$4 sm:$0xff]   ;;  %v12913_v19 = vld [vmem:[%s15952_s4 + $0x428] ss:$16 sps:$4 sm:$0xff]  }
 0x4fd   :  { %8796 = vmatpush2.bf16.msra.mxu0 %v12847_v20  ;;  %v12916_v20 = vld [vmem:[%s15952_s4 + $0x628] ss:$16 sps:$4 sm:$0xff]  }
 0x4fe   :  { %8837 = vmatpush2.bf16.msra.mxu1 %v12850_v8  ;;  %8797 = vmatprep.subr.bf16.mxu0 %v12855_v21  ;;  %v12921_v8 = vld [vmem:[%s15952_s4 + $0x40c] ss:$16 sps:$4 sm:$0xff]  }
 0x4ff   :  { %8838 = vmatprep.subr.bf16.mxu1 %v12858_v22  ;;  %v12924_v21 = vld [vmem:[%s15952_s4 + $0x60c] ss:$16 sps:$4 sm:$0xff]   ;;  %v12919_v22 = vld [vmem:[%s15952_s4 + $0x408] ss:$16 sps:$4 sm:$0xff]  }
 0x501   :  { %8798 = vmatpush2.bf16.msra.mxu0 %v12853_v62  ;;  %v12922_v62 = vld [vmem:[%s15952_s4 + $0x608] ss:$16 sps:$4 sm:$0xff]  }
 0x502   :  { %8839 = vmatpush2.bf16.msra.mxu1 %v12856_v11  ;;  %8799 = vmatprep.subr.bf16.mxu0 %v12861_v27  ;;  %v12927_v11 = vld [vmem:[%s15952_s4 + $0x5ec] ss:$16 sps:$4 sm:$0xff]  }
 0x503   :  { %8840 = vmatprep.subr.bf16.mxu1 %v12864_v51  ;;  %v12930_v27 = vld [vmem:[%s15952_s4 + $0x7ec] ss:$16 sps:$4 sm:$0xff]   ;;  %v12925_v51 = vld [vmem:[%s15952_s4 + $0x5e8] ss:$16 sps:$4 sm:$0xff]  }
 0x505   :  { %8800 = vmatpush2.bf16.msra.mxu0 %v12859_v29  ;;  %v12928_v29 = vld [vmem:[%s15952_s4 + $0x7e8] ss:$16 sps:$4 sm:$0xff]  }
 0x506   :  { %8841 = vmatpush2.bf16.msra.mxu1 %v12862_v15  ;;  %8801 = vmatprep.subr.bf16.mxu0 %v12867_v50  ;;  %v12936_v15 = vld [vmem:[%s15952_s4 + $0x7cc] ss:$16 sps:$4 sm:$0xff]   ;;  %v12931_v50 = vld [vmem:[%s15952_s4 + $0x5c8] ss:$16 sps:$4 sm:$0xff]  }
 0x507   :  { %8842 = vmatprep.subr.bf16.mxu1 %v12870_v35  ;;  %v12939_v35 = vld [vmem:[%s15952_s4 + $0x5ac] ss:$16 sps:$4 sm:$0xff]  }
 0x509   :  { %8802 = vmatpush2.bf16.msra.mxu0 %v12865_v60  ;;  %v12942_v60 = vld [vmem:[%s15952_s4 + $0x7ac] ss:$16 sps:$4 sm:$0xff]  }
 0x50a   :  { %8843 = vmatpush2.bf16.msra.mxu1 %v12868_v14  ;;  %8803 = vmatprep.subr.bf16.mxu0 %v12873_v1  ;;  %v12937_v14 = vld [vmem:[%s15952_s4 + $0x5a8] ss:$16 sps:$4 sm:$0xff]  }
 0x50b   :  { %8844 = vmatprep.subr.bf16.mxu1 %v12876_v40  ;;  %v12940_v1 = vld [vmem:[%s15952_s4 + $0x7a8] ss:$16 sps:$4 sm:$0xff]   ;;  %v12948_v40 = vld [vmem:[%s15952_s4 + $0x78c] ss:$16 sps:$4 sm:$0xff]  }
 0x50d   :  { %8804 = vmatpush2.bf16.msra.mxu0 %v12871_v41  ;;  %v12946_v41 = vld [vmem:[%s15952_s4 + $0x788] ss:$16 sps:$4 sm:$0xff]  }
 0x50e   :  { %8845 = vmatpush2.bf16.msra.mxu1 %v12874_v42  ;;  %8855 = vmatprep.subr.bf16.mxu0 %v12879_v2  ;;  %v12951_v42 = vld [vmem:[%s15952_s4 + $0x56c] ss:$16 sps:$4 sm:$0xff]   ;;  %v12949_v2 = vld [vmem:[%s15952_s4 + $0x568] ss:$16 sps:$4 sm:$0xff]  }
 0x50f   :  { %8896 = vmatprep.subr.bf16.mxu1 %v12882_v59  ;;  %v12957_v59 = vld [vmem:[%s15952_s4 + $0x54c] ss:$16 sps:$4 sm:$0xff]  }
 0x510   :  { %8806 = vmatmul.mubr.bf16.vlgmr.msra.gmra.mxu0 %v15296_v63 }
 0x511   :  { %8847 = vmatmul.mubr.bf16.vlgmr.msra.gmra.mxu1 %v15301_v57  ;;  %8856 = vmatpush1.bf16.msra.mxu0 %v12877_v13  ;;  %v12958_v13 = vld [vmem:[%s15952_s4 + $0x748] ss:$16 sps:$4 sm:$0xff]  }
 0x512   :  { %8887 = vmatprep.mubr.bf16.mxu0 %v15099_v0  ;;  %8897 = vmatpush1.bf16.msra.mxu1 %v12880_v56  ;;  %v12889_v0 = vld [vmem:[%s15952_s4 + $0x4a8] ss:$16 sps:$4 sm:$0xff]   ;;  %v12963_v56 = vld [vmem:[%s15952_s4 + $0x52c] ss:$16 sps:$4 sm:$0xff]  }
 0x513   :  { %8928 = vmatprep.mubr.bf16.mxu1 %v15105_v34  ;;  %8857 = vmatprep.subr.bf16.mxu0 %v12885_v17  ;;  %v12897_v34 = vld [vmem:[%s15952_s4 + $0x48c] ss:$16 sps:$4 sm:$0xff]  }
 0x514   :  { %8898 = vmatprep.subr.bf16.mxu1 %v12888_v58  ;;  %v12966_v17 = vld [vmem:[%s15952_s4 + $0x72c] ss:$16 sps:$4 sm:$0xff]   ;;  %v12961_v58 = vld [vmem:[%s15952_s4 + $0x528] ss:$16 sps:$4 sm:$0xff]  }
 0x515   :  { %8858 = vmatpush1.bf16.msra.mxu0 %v12883_v44  ;;  %v15472_v44 = vld [vmem:[#allocation2 + $0x10] sm:$0xcc] }
 0x516   :  { %8899 = vmatpush1.bf16.msra.mxu1 %v12886_v61  ;;  %8859 = vmatprep.subr.bf16.mxu0 %v12891_v3  ;;  %v12964_v61 = vld [vmem:[%s15952_s4 + $0x728] ss:$16 sps:$4 sm:$0xff]   ;;  %v12969_v3 = vld [vmem:[%s15952_s4 + $0x50c] ss:$16 sps:$4 sm:$0xff]  }
 0x517   :  { %8900 = vmatprep.subr.bf16.mxu1 %v12894_v28  ;;  %v15480_v28 = vld [vmem:[#allocation2 + $0x18] sm:$0xcc] }
 0x519   :  { %8860 = vmatpush1.bf16.msra.mxu0 %v12889_v0  ;;  %v15485_v0 = vld [vmem:[%s15955_s7] sm:$0xf] }
 0x51a   :  { %8901 = vmatpush1.bf16.msra.mxu1 %v12892_v23  ;;  %8861 = vmatprep.subr.bf16.mxu0 %v12897_v34  ;;  %v12972_v23 = vld [vmem:[%s15952_s4 + $0x70c] ss:$16 sps:$4 sm:$0xff]   ;;  %v8945_v34 = vcombine.high %v15472_v44, %v15472_v44 }
 0x51b   :  { %8902 = vmatprep.subr.bf16.mxu1 %v12900_v24  ;;  %v12967_v24 = vld [vmem:[%s15952_s4 + $0x508] ss:$16 sps:$4 sm:$0xff]  }
 0x51d   :  { %8862 = vmatpush1.bf16.msra.mxu0 %v12895_v25  ;;  %v8946_v25 = vcombine.high %v15480_v28, %v15480_v28 }
 0x51e   :  { %8903 = vmatpush1.bf16.msra.mxu1 %v12898_v5  ;;  %8863 = vmatprep.subr.bf16.mxu0 %v12903_v6  ;;  %v6568_v5 = vrot.slane %v15485_v0, %v13511_v52  ;;  %v12970_v6 = vld [vmem:[%s15952_s4 + $0x708] ss:$16 sps:$4 sm:$0xff]  }
 0x51f   :  { %8904 = vmatprep.subr.bf16.mxu1 %v12906_v7  ;;  %v12975_v7 = vld [vmem:[%s15952_s4 + $0x8e4] ss:$16 sps:$4 sm:$0xff]  }
 0x521   :  { %8864 = vmatpush1.bf16.msra.mxu0 %v12901_v9  ;;  %v15508_v9 = vld [vmem:[%s15953_s5] sm:$0xf] }
 0x522   :  { %8905 = vmatpush1.bf16.msra.mxu1 %v12904_v26  ;;  %8865 = vmatprep.subr.bf16.mxu0 %v12909_v10  ;;  %v12978_v26 = vld [vmem:[%s15952_s4 + $0xae4] ss:$16 sps:$4 sm:$0xff]   ;;  %v6572_v10 = vrot.slane %v15485_v0, %v13520_v32 }
 0x523   :  { %8906 = vmatprep.subr.bf16.mxu1 %v12912_v12  ;;  %v8950_v12 = vpack.c.bf16 %v8945_v34, %v8945_v34  ;;  %v13014_v34 = vld [vmem:[%s15952_s4 + $0xa20] ss:$16 sps:$4 sm:$0xff]  }
 0x525   :  { %8866 = vmatpush1.bf16.msra.mxu0 %v12907_v36  ;;  %v12973_v36 = vld [vmem:[%s15952_s4 + $0x8e0] ss:$16 sps:$4 sm:$0xff]  }
 0x526   :  { %8907 = vmatpush1.bf16.msra.mxu1 %v12910_v16  ;;  %8867 = vmatprep.subr.bf16.mxu0 %v12915_v33  ;;  %v8952_v16 = vpack.c.bf16 %v8946_v25, %v8946_v25  ;;  %v6940_v33 = vadd.f32 %v15010_v47, %v6568_v5  ;;  %v13022_v25 = vld [vmem:[%s15952_s4 + $0xa04] ss:$16 sps:$4 sm:$0xff]   ;;  %v13017_v5 = vld [vmem:[%s15952_s4 + $0x800] ss:$16 sps:$4 sm:$0xff]  }
 0x527   :  { %8908 = vmatprep.subr.bf16.mxu1 %v12918_v18  ;;  %v6992_v18 = vrot.slane %v15508_v9, %v13511_v52  ;;  %v15531_v52 = vrot.slane %v8950_v12, 1  ;;  %v13026_v12 = vld [vmem:[%s15952_s4 + $0xbe0] ss:$16 sps:$4 sm:$0xff]  }
 0x529   :  { %8868 = vmatpush1.bf16.msra.mxu0 %v12913_v19  ;;  %v12976_v19 = vld [vmem:[%s15952_s4 + $0xae0] ss:$16 sps:$4 sm:$0xff]  }
 0x52a   :  { %8909 = vmatpush1.bf16.msra.mxu1 %v12916_v20  ;;  %8869 = vmatprep.subr.bf16.mxu0 %v12921_v8  ;;  %v12983_v20 = vld [vmem:[%s15952_s4 + $0x8c4] ss:$16 sps:$4 sm:$0xff]   ;;  %v6942_v8 = vadd.f32 %v15017_v49, %v6572_v10  ;;  %v12981_v49 = vld [vmem:[%s15952_s4 + $0x8c0] ss:$16 sps:$4 sm:$0xff]  }
 0x52b   :  { %8910 = vmatprep.subr.bf16.mxu1 %v12924_v21  ;;  %v6996_v21 = vrot.slane %v15508_v9, %v13520_v32  ;;  %v7009_v32 = vadd.f32 %v6992_v18, %v6940_v33  ;;  %v13023_v10 = vld [vmem:[%s15952_s4 + $0x9e0] ss:$16 sps:$4 sm:$0xff]  }
 0x52c   :  { %v13029_v33 = vld [vmem:[%s15952_s4 + $0x9c0] ss:$16 sps:$4 sm:$0xff]  }
 0x52d   :  { %8870 = vmatpush1.bf16.msra.mxu0 %v12919_v22  ;;  %v12986_v22 = vld [vmem:[%s15952_s4 + $0xac4] ss:$16 sps:$4 sm:$0xff]   ;;  %v13032_v18 = vld [vmem:[%s15952_s4 + $0xbc0] ss:$16 sps:$4 sm:$0xff]  }
 0x52e   :  { %8911 = vmatpush1.bf16.msra.mxu1 %v12922_v62  ;;  %8871 = vmatprep.subr.bf16.mxu0 %v12927_v11  ;;  %v15537_v11 = vrot.slane %v8952_v16, 1  ;;  %v13034_v16 = vld [vmem:[%s15952_s4 + $0xbc4] ss:$16 sps:$4 sm:$0xff]  }
 0x52f   :  { %8912 = vmatprep.subr.bf16.mxu1 %v12930_v27 }
 0x531   :  { %8872 = vmatpush2.bf16.msra.mxu0 %v12925_v51  ;;  %v12984_v51 = vld [vmem:[%s15952_s4 + $0xac0] ss:$16 sps:$4 sm:$0xff]  }
 0x532   :  { %8913 = vmatpush2.bf16.msra.mxu1 %v12928_v29  ;;  %8873 = vmatprep.subr.bf16.mxu0 %v12933_v30  ;;  %v12992_v30 = vld [vmem:[%s15952_s4 + $0xaa4] ss:$16 sps:$4 sm:$0xff]  }
 0x533   :  { %8914 = vmatprep.subr.bf16.mxu1 %v12936_v15  ;;  %v7010_v15 = vadd.f32 %v6996_v21, %v6942_v8  ;;  %v13035_v8 = vld [vmem:[%s15952_s4 + $0x9a0] ss:$16 sps:$4 sm:$0xff]  }
 0x534   :  { %v13038_v21 = vld [vmem:[%s15952_s4 + $0xba0] ss:$16 sps:$4 sm:$0xff]  }
 0x535   :  { %8874 = vmatpush2.bf16.msra.mxu0 %v12931_v50 }
 0x536   :  { %8915 = vmatpush2.bf16.msra.mxu1 %v12934_v37  ;;  %8875 = vmatprep.subr.bf16.mxu0 %v12939_v35 }
 0x537   :  { %8916 = vmatprep.subr.bf16.mxu1 %v12942_v60 }
 0x539   :  { %8876 = vmatpush2.bf16.msra.mxu0 %v12937_v14  ;;  %v12987_v14 = vld [vmem:[%s15952_s4 + $0x8a0] ss:$16 sps:$4 sm:$0xff]  }
 0x53a   :  { %8917 = vmatpush2.bf16.msra.mxu1 %v12940_v1  ;;  %8877 = vmatprep.subr.bf16.mxu0 %v12945_v38 }
 0x53b   :  { %8918 = vmatprep.subr.bf16.mxu1 %v12948_v40  ;;  %v12990_v40 = vld [vmem:[%s15952_s4 + $0xaa0] ss:$16 sps:$4 sm:$0xff]  }
 0x53d   :  { %8878 = vmatpush2.bf16.msra.mxu0 %v12943_v39  ;;  %v12995_v39 = vld [vmem:[%s15952_s4 + $0x884] ss:$16 sps:$4 sm:$0xff]  }
 0x53e   :  { %8919 = vmatpush2.bf16.msra.mxu1 %v12946_v41  ;;  %8879 = vmatprep.subr.bf16.mxu0 %v12951_v42  ;;  %v12998_v42 = vld [vmem:[%s15952_s4 + $0xa84] ss:$16 sps:$4 sm:$0xff]  }
 0x53f   :  { %8920 = vmatprep.subr.bf16.mxu1 %v12954_v43  ;;  %v12993_v43 = vld [vmem:[%s15952_s4 + $0x880] ss:$16 sps:$4 sm:$0xff]  }
 0x541   :  { %8880 = vmatpush2.bf16.msra.mxu0 %v12949_v2  ;;  %v12996_v2 = vld [vmem:[%s15952_s4 + $0xa80] ss:$16 sps:$4 sm:$0xff]  }
 0x542   :  { %8921 = vmatpush2.bf16.msra.mxu1 %v12952_v45  ;;  %8881 = vmatprep.subr.bf16.mxu0 %v12957_v59  ;;  %v13001_v45 = vld [vmem:[%s15952_s4 + $0x864] ss:$16 sps:$4 sm:$0xff]  }
 0x543   :  { %8922 = vmatprep.subr.bf16.mxu1 %v12960_v4  ;;  %v13004_v59 = vld [vmem:[%s15952_s4 + $0xa64] ss:$16 sps:$4 sm:$0xff]   ;;  %v12999_v4 = vld [vmem:[%s15952_s4 + $0x860] ss:$16 sps:$4 sm:$0xff]  }
 0x545   :  { %8882 = vmatpush2.bf16.msra.mxu0 %v12955_v55  ;;  %v13002_v55 = vld [vmem:[%s15952_s4 + $0xa60] ss:$16 sps:$4 sm:$0xff]  }
 0x546   :  { %8923 = vmatpush2.bf16.msra.mxu1 %v12958_v13  ;;  %8883 = vmatprep.subr.bf16.mxu0 %v12963_v56  ;;  %v13007_v13 = vld [vmem:[%s15952_s4 + $0x844] ss:$16 sps:$4 sm:$0xff]  }
 0x547   :  { %8924 = vmatprep.subr.bf16.mxu1 %v12966_v17  ;;  %v13010_v56 = vld [vmem:[%s15952_s4 + $0xa44] ss:$16 sps:$4 sm:$0xff]   ;;  %v13005_v17 = vld [vmem:[%s15952_s4 + $0x840] ss:$16 sps:$4 sm:$0xff]  }
 0x549   :  { %8884 = vmatpush2.bf16.msra.mxu0 %v12961_v58  ;;  %v13008_v58 = vld [vmem:[%s15952_s4 + $0xa40] ss:$16 sps:$4 sm:$0xff]  }
 0x54a   :  { %8925 = vmatpush2.bf16.msra.mxu1 %v12964_v61  ;;  %8885 = vmatprep.subr.bf16.mxu0 %v12969_v3  ;;  %v13013_v61 = vld [vmem:[%s15952_s4 + $0x824] ss:$16 sps:$4 sm:$0xff]  }
 0x54b   :  { %8926 = vmatprep.subr.bf16.mxu1 %v12972_v23  ;;  %v13016_v3 = vld [vmem:[%s15952_s4 + $0xa24] ss:$16 sps:$4 sm:$0xff]   ;;  %v13011_v23 = vld [vmem:[%s15952_s4 + $0x820] ss:$16 sps:$4 sm:$0xff]  }
 0x54d   :  { %8886 = vmatpush2.bf16.msra.mxu0 %v12967_v24  ;;  %v13019_v24 = vld [vmem:[%s15952_s4 + $0x804] ss:$16 sps:$4 sm:$0xff]  }
 0x54e   :  { %8927 = vmatpush2.bf16.msra.mxu1 %v12970_v6  ;;  %9733 = vmatprep.subr.bf16.mxu0 %v12975_v7  ;;  %v13020_v6 = vld [vmem:[%s15952_s4 + $0xa00] ss:$16 sps:$4 sm:$0xff]   ;;  %v13025_v7 = vld [vmem:[%s15952_s4 + $0x9e4] ss:$16 sps:$4 sm:$0xff]  }
 0x54f   :  { %9774 = vmatprep.subr.bf16.mxu1 %v12978_v26  ;;  %v13028_v26 = vld [vmem:[%s15952_s4 + $0xbe4] ss:$16 sps:$4 sm:$0xff]  }
 0x550   :  { %8888 = vmatmul.mubr.bf16.vlgmr.msra.gmra.mxu0 %v15296_v63  ;;  %v7827_v47 = vpop.f32.mrf.mxu0 }
 0x551   :  { %8929 = vmatmul.mubr.bf16.vlgmr.msra.gmra.mxu1 %v15301_v57  ;;  %v7868_v62 = vpop.f32.mrf.mxu1  ;;  %9734 = vmatpush1.bf16.msra.mxu0 %v12973_v36  ;;  %v12989_v57 = vld [vmem:[%s15952_s4 + $0x8a4] ss:$16 sps:$4 sm:$0xff]  }
 0x552   :  { %v7869_v27 = vadd.f32 %v7868_v62, %v7827_v47  ;;  %9765 = vmatprep.mubr.bf16.mxu0 %v15531_v52  ;;  %9775 = vmatpush1.bf16.msra.mxu1 %v12976_v19  ;;  %v7829_v63 = vpop.f32.mrf.mxu0  ;;  %v13031_v36 = vld [vmem:[%s15952_s4 + $0x9c4] ss:$16 sps:$4 sm:$0xff]   ;;  %v13041_v62 = vld [vmem:[%s15952_s4 + $0x980] ss:$16 sps:$4 sm:$0xff]  }
 0x553   :  { %9806 = vmatprep.mubr.bf16.mxu1 %v15537_v11  ;;  %v7870_v29 = vpop.f32.mrf.mxu1  ;;  %9735 = vmatprep.subr.bf16.mxu0 %v12983_v20  ;;  %v13037_v19 = vld [vmem:[%s15952_s4 + $0x9a4] ss:$16 sps:$4 sm:$0xff]  }
 0x554   :  { %v15553_v50 = vadd.f32 %v7869_v27, %v7009_v32  ;;  %v7871_v37 = vadd.f32 %v7870_v29, %v7829_v63  ;;  %9776 = vmatprep.subr.bf16.mxu1 %v12986_v22  ;;  %v7831_v35 = vpop.f32.mrf.mxu0  ;;  %v13040_v20 = vld [vmem:[%s15952_s4 + $0xba4] ss:$16 sps:$4 sm:$0xff]   ;;  %v13047_v63 = vld [vmem:[%s15952_s4 + $0x960] ss:$16 sps:$4 sm:$0xff]  }
 0x555   :  { %v7872_v60 = vpop.f32.mrf.mxu1  ;;  %9736 = vmatpush1.bf16.msra.mxu0 %v12981_v49  ;;  %v13043_v47 = vld [vmem:[%s15952_s4 + $0x984] ss:$16 sps:$4 sm:$0xff]   ;;  %v13044_v49 = vld [vmem:[%s15952_s4 + $0xb80] ss:$16 sps:$4 sm:$0xff]  }
 0x556   :  { %v15558_v1 = vadd.f32 %v7871_v37, %v7010_v15  ;;  %9777 = vmatpush1.bf16.msra.mxu1 %v12984_v51  ;;  %v7832_v38 = vpop.f32.mrf.mxu0  ;;  %9737 = vmatprep.subr.bf16.mxu0 %v12989_v57  ;;  %v13046_v22 = vld [vmem:[%s15952_s4 + $0xb84] ss:$16 sps:$4 sm:$0xff]   ;;  %v13050_v51 = vld [vmem:[%s15952_s4 + $0xb60] ss:$16 sps:$4 sm:$0xff]  }
 0x557   :  { %v7873_v41 = vpop.f32.mrf.mxu1  ;;  %9778 = vmatprep.subr.bf16.mxu1 %v12992_v30  ;;  %v13049_v32 = vld [vmem:[%s15952_s4 + $0x964] ss:$16 sps:$4 sm:$0xff]   ;;  %v13053_v30 = vld [vmem:[%s15952_s4 + $0x940] ss:$16 sps:$4 sm:$0xff]  }
 0x558   :  { %v13052_v27 = vld [vmem:[%s15952_s4 + $0xb64] ss:$16 sps:$4 sm:$0xff]   ;;  %v13056_v15 = vld [vmem:[%s15952_s4 + $0xb40] ss:$16 sps:$4 sm:$0xff]   ;;  %v6576_v41 = vrot.slane %v15485_v0, %v13514_v53 }
 0x559   :  { %9738 = vmatpush1.bf16.msra.mxu0 %v12987_v14  ;;  %v13055_v57 = vld [vmem:[%s15952_s4 + $0x944] ss:$16 sps:$4 sm:$0xff]   ;;  %v13059_v60 = vld [vmem:[%s15952_s4 + $0x920] ss:$16 sps:$4 sm:$0xff]  }
 0x55a   :  { %9779 = vmatpush1.bf16.msra.mxu1 %v12990_v40  ;;  %9739 = vmatprep.subr.bf16.mxu0 %v12995_v39  ;;  %v13058_v29 = vld [vmem:[%s15952_s4 + $0xb44] ss:$16 sps:$4 sm:$0xff]   ;;  %v13062_v14 = vld [vmem:[%s15952_s4 + $0xb20] ss:$16 sps:$4 sm:$0xff]  }
 0x55b   :  { %9780 = vmatprep.subr.bf16.mxu1 %v12998_v42  ;;  %v13061_v37 = vld [vmem:[%s15952_s4 + $0x924] ss:$16 sps:$4 sm:$0xff]   ;;  %v13065_v39 = vld [vmem:[%s15952_s4 + $0x900] ss:$16 sps:$4 sm:$0xff]   ;;  %v8949_v42 = vpack.c.bf16 %v15472_v44, %v15472_v44  ;;  %v6580_v44 = vrot.slane %v15485_v0, %v13523_v54  ;;  %v13079_v0 = vld [vmem:[%s15952_s4 + $0x8cc] ss:$16 sps:$4 sm:$0xff]  }
 0x55c   :  { %v13064_v35 = vld [vmem:[%s15952_s4 + $0xb24] ss:$16 sps:$4 sm:$0xff]  }
 0x55d   :  { %9740 = vmatpush1.bf16.msra.mxu0 %v12993_v43  ;;  %v13067_v38 = vld [vmem:[%s15952_s4 + $0x904] ss:$16 sps:$4 sm:$0xff]   ;;  %v13068_v43 = vld [vmem:[%s15952_s4 + $0xb00] ss:$16 sps:$4 sm:$0xff]  }
 0x55e   :  { %9781 = vmatpush1.bf16.msra.mxu1 %v12996_v2  ;;  %9741 = vmatprep.subr.bf16.mxu0 %v13001_v45  ;;  %v13070_v40 = vld [vmem:[%s15952_s4 + $0xb04] ss:$16 sps:$4 sm:$0xff]   ;;  %v13073_v2 = vld [vmem:[%s15952_s4 + $0x8ec] ss:$16 sps:$4 sm:$0xff]   ;;  %v8951_v45 = vpack.c.bf16 %v15480_v28, %v15480_v28  ;;  %v15739_v28 = vrot.slane %v8949_v42, 1 }
 0x55f   :  { %9782 = vmatprep.subr.bf16.mxu1 %v13004_v59  ;;  %v13076_v59 = vld [vmem:[%s15952_s4 + $0xaec] ss:$16 sps:$4 sm:$0xff]  }
 0x560   :  { %v13130_v42 = vld [vmem:[%s15952_s4 + $0xbcc] ss:$16 sps:$4 sm:$0xff]  }
 0x561   :  { %9742 = vmatpush1.bf16.msra.mxu0 %v12999_v4  ;;  %v13071_v4 = vld [vmem:[%s15952_s4 + $0x8e8] ss:$16 sps:$4 sm:$0xff]  }
 0x562   :  { %9783 = vmatpush1.bf16.msra.mxu1 %v13002_v55  ;;  %9743 = vmatprep.subr.bf16.mxu0 %v13007_v13  ;;  %v6981_v55 = vadd.f32 %v15015_v48, %v6576_v41  ;;  %v7000_v13 = vrot.slane %v15508_v9, %v13514_v53  ;;  %v6983_v48 = vadd.f32 %v15022_v46, %v6580_v44  ;;  %v13127_v41 = vld [vmem:[%s15952_s4 + $0x9cc] ss:$16 sps:$4 sm:$0xff]   ;;  %v13131_v44 = vld [vmem:[%s15952_s4 + $0x9a8] ss:$16 sps:$4 sm:$0xff]  }
 0x563   :  { %9784 = vmatprep.subr.bf16.mxu1 %v13010_v56  ;;  %v13074_v56 = vld [vmem:[%s15952_s4 + $0xae8] ss:$16 sps:$4 sm:$0xff]   ;;  %v7004_v53 = vrot.slane %v15508_v9, %v13523_v54 }
 0x564   :  { %v13080_v9 = vld [vmem:[%s15952_s4 + $0xac8] ss:$16 sps:$4 sm:$0xff]  }
 0x565   :  { %9744 = vmatpush1.bf16.msra.mxu0 %v13005_v17  ;;  %v15744_v17 = vrot.slane %v8951_v45, 1  ;;  %v13133_v45 = vld [vmem:[%s15952_s4 + $0x9ac] ss:$16 sps:$4 sm:$0xff]  }
 0x566   :  { %9785 = vmatpush1.bf16.msra.mxu1 %v13008_v58  ;;  %9745 = vmatprep.subr.bf16.mxu0 %v13013_v61  ;;  %v13082_v61 = vld [vmem:[%s15952_s4 + $0xacc] ss:$16 sps:$4 sm:$0xff]  }
 0x567   :  { %9786 = vmatprep.subr.bf16.mxu1 %v13016_v3 }
 0x569   :  { %9746 = vmatpush1.bf16.msra.mxu0 %v13011_v23  ;;  %v13077_v23 = vld [vmem:[%s15952_s4 + $0x8c8] ss:$16 sps:$4 sm:$0xff]  }
 0x56a   :  { %9787 = vmatpush1.bf16.msra.mxu1 %v13014_v34  ;;  %9747 = vmatprep.subr.bf16.mxu0 %v13019_v24  ;;  %v7011_v34 = vadd.f32 %v7000_v13, %v6981_v55  ;;  %v13085_v24 = vld [vmem:[%s15952_s4 + $0x8ac] ss:$16 sps:$4 sm:$0xff]  }
 0x56b   :  { %9788 = vmatprep.subr.bf16.mxu1 %v13022_v25  ;;  %v13139_v55 = vld [vmem:[%s15952_s4 + $0x98c] ss:$16 sps:$4 sm:$0xff]  }
 0x56c   :  { %v13142_v13 = vld [vmem:[%s15952_s4 + $0xb8c] ss:$16 sps:$4 sm:$0xff]  }
 0x56d   :  { %9748 = vmatpush1.bf16.msra.mxu0 %v13017_v5  ;;  %v13088_v5 = vld [vmem:[%s15952_s4 + $0xaac] ss:$16 sps:$4 sm:$0xff]  }
 0x56e   :  { %9789 = vmatpush1.bf16.msra.mxu1 %v13020_v6  ;;  %9749 = vmatprep.subr.bf16.mxu0 %v13025_v7  ;;  %v7012_v6 = vadd.f32 %v7004_v53, %v6983_v48  ;;  %v13145_v48 = vld [vmem:[%s15952_s4 + $0x96c] ss:$16 sps:$4 sm:$0xff]  }
 0x56f   :  { %9790 = vmatprep.subr.bf16.mxu1 %v13028_v26  ;;  %v13148_v53 = vld [vmem:[%s15952_s4 + $0xb6c] ss:$16 sps:$4 sm:$0xff]  }
 0x571   :  { %9750 = vmatpush2.bf16.msra.mxu0 %v13023_v10 }
 0x572   :  { %9791 = vmatpush2.bf16.msra.mxu1 %v13026_v12  ;;  %9751 = vmatprep.subr.bf16.mxu0 %v13031_v36  ;;  %v13083_v12 = vld [vmem:[%s15952_s4 + $0x8a8] ss:$16 sps:$4 sm:$0xff]  }
 0x573   :  { %9792 = vmatprep.subr.bf16.mxu1 %v13034_v16  ;;  %v13086_v16 = vld [vmem:[%s15952_s4 + $0xaa8] ss:$16 sps:$4 sm:$0xff]  }
 0x575   :  { %9752 = vmatpush2.bf16.msra.mxu0 %v13029_v33  ;;  %v13091_v33 = vld [vmem:[%s15952_s4 + $0x88c] ss:$16 sps:$4 sm:$0xff]  }
 0x576   :  { %9793 = vmatpush2.bf16.msra.mxu1 %v13032_v18  ;;  %9753 = vmatprep.subr.bf16.mxu0 %v13037_v19  ;;  %v13094_v19 = vld [vmem:[%s15952_s4 + $0xa8c] ss:$16 sps:$4 sm:$0xff]  }
 0x577   :  { %9794 = vmatprep.subr.bf16.mxu1 %v13040_v20  ;;  %v13089_v20 = vld [vmem:[%s15952_s4 + $0x888] ss:$16 sps:$4 sm:$0xff]  }
 0x579   :  { %9754 = vmatpush2.bf16.msra.mxu0 %v13035_v8  ;;  %v13092_v8 = vld [vmem:[%s15952_s4 + $0xa88] ss:$16 sps:$4 sm:$0xff]  }
 0x57a   :  { %9795 = vmatpush2.bf16.msra.mxu1 %v13038_v21  ;;  %9755 = vmatprep.subr.bf16.mxu0 %v13043_v47  ;;  %v13097_v21 = vld [vmem:[%s15952_s4 + $0x86c] ss:$16 sps:$4 sm:$0xff]  }
 0x57b   :  { %9796 = vmatprep.subr.bf16.mxu1 %v13046_v22  ;;  %v13100_v47 = vld [vmem:[%s15952_s4 + $0xa6c] ss:$16 sps:$4 sm:$0xff]   ;;  %v13095_v22 = vld [vmem:[%s15952_s4 + $0x868] ss:$16 sps:$4 sm:$0xff]  }
 0x57d   :  { %9756 = vmatpush2.bf16.msra.mxu0 %v13041_v62  ;;  %v13098_v62 = vld [vmem:[%s15952_s4 + $0xa68] ss:$16 sps:$4 sm:$0xff]  }
 0x57e   :  { %9797 = vmatpush2.bf16.msra.mxu1 %v13044_v49  ;;  %9757 = vmatprep.subr.bf16.mxu0 %v13049_v32  ;;  %v13103_v49 = vld [vmem:[%s15952_s4 + $0x84c] ss:$16 sps:$4 sm:$0xff]  }
 0x57f   :  { %9798 = vmatprep.subr.bf16.mxu1 %v13052_v27  ;;  %v13106_v32 = vld [vmem:[%s15952_s4 + $0xa4c] ss:$16 sps:$4 sm:$0xff]   ;;  %v13101_v27 = vld [vmem:[%s15952_s4 + $0x848] ss:$16 sps:$4 sm:$0xff]  }
 0x581   :  { %9758 = vmatpush2.bf16.msra.mxu0 %v13047_v63  ;;  %v13104_v63 = vld [vmem:[%s15952_s4 + $0xa48] ss:$16 sps:$4 sm:$0xff]  }
 0x582   :  { %9799 = vmatpush2.bf16.msra.mxu1 %v13050_v51  ;;  %9759 = vmatprep.subr.bf16.mxu0 %v13055_v57  ;;  %v13109_v51 = vld [vmem:[%s15952_s4 + $0x82c] ss:$16 sps:$4 sm:$0xff]  }
 0x583   :  { %9800 = vmatprep.subr.bf16.mxu1 %v13058_v29  ;;  %v13112_v57 = vld [vmem:[%s15952_s4 + $0xa2c] ss:$16 sps:$4 sm:$0xff]   ;;  %v13107_v29 = vld [vmem:[%s15952_s4 + $0x828] ss:$16 sps:$4 sm:$0xff]  }
 0x585   :  { %9760 = vmatpush2.bf16.msra.mxu0 %v13053_v30  ;;  %v13110_v30 = vld [vmem:[%s15952_s4 + $0xa28] ss:$16 sps:$4 sm:$0xff]  }
 0x586   :  { %9801 = vmatpush2.bf16.msra.mxu1 %v13056_v15  ;;  %9761 = vmatprep.subr.bf16.mxu0 %v13061_v37  ;;  %v13115_v15 = vld [vmem:[%s15952_s4 + $0x80c] ss:$16 sps:$4 sm:$0xff]  }
 0x587   :  { %9802 = vmatprep.subr.bf16.mxu1 %v13064_v35  ;;  %v13118_v37 = vld [vmem:[%s15952_s4 + $0xa0c] ss:$16 sps:$4 sm:$0xff]   ;;  %v13113_v35 = vld [vmem:[%s15952_s4 + $0x808] ss:$16 sps:$4 sm:$0xff]  }
 0x589   :  { %9762 = vmatpush2.bf16.msra.mxu0 %v13059_v60  ;;  %v13116_v60 = vld [vmem:[%s15952_s4 + $0xa08] ss:$16 sps:$4 sm:$0xff]  }
 0x58a   :  { %9803 = vmatpush2.bf16.msra.mxu1 %v13062_v14  ;;  %9763 = vmatprep.subr.bf16.mxu0 %v13067_v38  ;;  %v13121_v14 = vld [vmem:[%s15952_s4 + $0x9ec] ss:$16 sps:$4 sm:$0xff]  }
 0x58b   :  { %9804 = vmatprep.subr.bf16.mxu1 %v13070_v40  ;;  %v13124_v38 = vld [vmem:[%s15952_s4 + $0xbec] ss:$16 sps:$4 sm:$0xff]   ;;  %v13119_v40 = vld [vmem:[%s15952_s4 + $0x9e8] ss:$16 sps:$4 sm:$0xff]  }
 0x58d   :  { %9764 = vmatpush2.bf16.msra.mxu0 %v13065_v39  ;;  %v13122_v39 = vld [vmem:[%s15952_s4 + $0xbe8] ss:$16 sps:$4 sm:$0xff]  }
 0x58e   :  { %9805 = vmatpush2.bf16.msra.mxu1 %v13068_v43  ;;  %9815 = vmatprep.subr.bf16.mxu0 %v13073_v2  ;;  %v13125_v43 = vld [vmem:[%s15952_s4 + $0x9c8] ss:$16 sps:$4 sm:$0xff]  }
 0x58f   :  { %9856 = vmatprep.subr.bf16.mxu1 %v13076_v59  ;;  %v13128_v2 = vld [vmem:[%s15952_s4 + $0xbc8] ss:$16 sps:$4 sm:$0xff]   ;;  %v13136_v59 = vld [vmem:[%s15952_s4 + $0xbac] ss:$16 sps:$4 sm:$0xff]  }
 0x590   :  { %v7909_v58 = vpop.f32.mrf.mxu0  ;;  %9766 = vmatmul.mubr.bf16.vlgmr.msra.gmra.mxu0 %v15739_v28 }
 0x591   :  { %v7950_v3 = vpop.f32.mrf.mxu1  ;;  %9807 = vmatmul.mubr.bf16.vlgmr.msra.gmra.mxu1 %v15744_v17  ;;  %9816 = vmatpush1.bf16.msra.mxu0 %v13071_v4  ;;  %v13134_v4 = vld [vmem:[%s15952_s4 + $0xba8] ss:$16 sps:$4 sm:$0xff]  }
 0x592   :  { %v7951_v46 = vadd.f32 %v7950_v3, %v7909_v58  ;;  %9847 = vmatprep.mubr.bf16.mxu0 %v15531_v52  ;;  %9857 = vmatpush1.bf16.msra.mxu1 %v13074_v56  ;;  %v7911_v54 = vpop.f32.mrf.mxu0  ;;  %v13137_v56 = vld [vmem:[%s15952_s4 + $0x988] ss:$16 sps:$4 sm:$0xff]   ;;  %v13151_v3 = vld [vmem:[%s15952_s4 + $0x94c] ss:$16 sps:$4 sm:$0xff]  }
 0x593   :  { %9888 = vmatprep.mubr.bf16.mxu1 %v15537_v11  ;;  %v7952_v25 = vpop.f32.mrf.mxu1  ;;  %9817 = vmatprep.subr.bf16.mxu0 %v13079_v0  ;;  %v13140_v0 = vld [vmem:[%s15952_s4 + $0xb88] ss:$16 sps:$4 sm:$0xff]  }
 0x594   :  { %v15771_v52 = vadd.f32 %v7951_v46, %v7011_v34  ;;  %v7953_v7 = vadd.f32 %v7952_v25, %v7911_v54  ;;  %v7913_v26 = vpop.f32.mrf.mxu0  ;;  %9858 = vmatprep.subr.bf16.mxu1 %v13082_v61  ;;  %v13143_v58 = vld [vmem:[%s15952_s4 + $0x968] ss:$16 sps:$4 sm:$0xff]   ;;  %v13157_v54 = vld [vmem:[%s15952_s4 + $0x92c] ss:$16 sps:$4 sm:$0xff]  }
 0x595   :  { %v7954_v10 = vpop.f32.mrf.mxu1  ;;  %9818 = vmatpush1.bf16.msra.mxu0 %v13077_v23  ;;  %v13146_v61 = vld [vmem:[%s15952_s4 + $0xb68] ss:$16 sps:$4 sm:$0xff]   ;;  %v13154_v23 = vld [vmem:[%s15952_s4 + $0xb4c] ss:$16 sps:$4 sm:$0xff]  }
 0x596   :  { %v15776_v36 = vadd.f32 %v7953_v7, %v7012_v6  ;;  %9859 = vmatpush1.bf16.msra.mxu1 %v13080_v9  ;;  %v7914_v11 = vpop.f32.mrf.mxu0  ;;  %9819 = vmatprep.subr.bf16.mxu0 %v13085_v24  ;;  %v13149_v34 = vld [vmem:[%s15952_s4 + $0x948] ss:$16 sps:$4 sm:$0xff]   ;;  %v13160_v9 = vld [vmem:[%s15952_s4 + $0xb2c] ss:$16 sps:$4 sm:$0xff]  }
 0x597   :  { %v7955_v18 = vpop.f32.mrf.mxu1  ;;  %9860 = vmatprep.subr.bf16.mxu1 %v13088_v5  ;;  %v13152_v46 = vld [vmem:[%s15952_s4 + $0xb48] ss:$16 sps:$4 sm:$0xff]   ;;  %v13163_v5 = vld [vmem:[%s15952_s4 + $0x90c] ss:$16 sps:$4 sm:$0xff]  }
 0x598   :  { %v13155_v24 = vld [vmem:[%s15952_s4 + $0x928] ss:$16 sps:$4 sm:$0xff]   ;;  %v13166_v6 = vld [vmem:[%s15952_s4 + $0xb0c] ss:$16 sps:$4 sm:$0xff]  }
 0x599   :  { %9820 = vmatpush1.bf16.msra.mxu0 %v13083_v12  ;;  %v13158_v25 = vld [vmem:[%s15952_s4 + $0xb28] ss:$16 sps:$4 sm:$0xff]  }
 0x59a   :  { %9861 = vmatpush1.bf16.msra.mxu1 %v13086_v16  ;;  %9821 = vmatprep.subr.bf16.mxu0 %v13091_v33  ;;  %v13161_v7 = vld [vmem:[%s15952_s4 + $0x908] ss:$16 sps:$4 sm:$0xff]  }
 0x59b   :  { %9862 = vmatprep.subr.bf16.mxu1 %v13094_v19  ;;  %v13164_v26 = vld [vmem:[%s15952_s4 + $0xb08] ss:$16 sps:$4 sm:$0xff]  }
 0x59d   :  { %9822 = vmatpush1.bf16.msra.mxu0 %v13089_v20 }
 0x59e   :  { %9863 = vmatpush1.bf16.msra.mxu1 %v13092_v8  ;;  %9823 = vmatprep.subr.bf16.mxu0 %v13097_v21 }
 0x59f   :  { %9864 = vmatprep.subr.bf16.mxu1 %v13100_v47 }
 0x5a1   :  { %9824 = vmatpush1.bf16.msra.mxu0 %v13095_v22 }
 0x5a2   :  { %9865 = vmatpush1.bf16.msra.mxu1 %v13098_v62  ;;  %9825 = vmatprep.subr.bf16.mxu0 %v13103_v49 }
 0x5a3   :  { %9866 = vmatprep.subr.bf16.mxu1 %v13106_v32 }
 0x5a5   :  { %9826 = vmatpush1.bf16.msra.mxu0 %v13101_v27 }
 0x5a6   :  { %9867 = vmatpush1.bf16.msra.mxu1 %v13104_v63  ;;  %9827 = vmatprep.subr.bf16.mxu0 %v13109_v51 }
 0x5a7   :  { %9868 = vmatprep.subr.bf16.mxu1 %v13112_v57 }
 0x5a9   :  { %9828 = vmatpush1.bf16.msra.mxu0 %v13107_v29 }
 0x5aa   :  { %9869 = vmatpush1.bf16.msra.mxu1 %v13110_v30  ;;  %9829 = vmatprep.subr.bf16.mxu0 %v13115_v15 }
 0x5ab   :  { %9870 = vmatprep.subr.bf16.mxu1 %v13118_v37 }
 0x5ad   :  { %9830 = vmatpush1.bf16.msra.mxu0 %v13113_v35 }
 0x5ae   :  { %9871 = vmatpush1.bf16.msra.mxu1 %v13116_v60  ;;  %9831 = vmatprep.subr.bf16.mxu0 %v13121_v14 }
 0x5af   :  { %9872 = vmatprep.subr.bf16.mxu1 %v13124_v38 }
 0x5b1   :  { %9832 = vmatpush2.bf16.msra.mxu0 %v13119_v40 }
 0x5b2   :  { %9873 = vmatpush2.bf16.msra.mxu1 %v13122_v39  ;;  %9833 = vmatprep.subr.bf16.mxu0 %v13127_v41 }
 0x5b3   :  { %9874 = vmatprep.subr.bf16.mxu1 %v13130_v42 }
 0x5b5   :  { %9834 = vmatpush2.bf16.msra.mxu0 %v13125_v43 }
 0x5b6   :  { %9875 = vmatpush2.bf16.msra.mxu1 %v13128_v2  ;;  %9835 = vmatprep.subr.bf16.mxu0 %v13133_v45 }
 0x5b7   :  { %9876 = vmatprep.subr.bf16.mxu1 %v13136_v59 }
 0x5b9   :  { %9836 = vmatpush2.bf16.msra.mxu0 %v13131_v44 }
 0x5ba   :  { %9877 = vmatpush2.bf16.msra.mxu1 %v13134_v4  ;;  %9837 = vmatprep.subr.bf16.mxu0 %v13139_v55 }
 0x5bb   :  { %9878 = vmatprep.subr.bf16.mxu1 %v13142_v13 }
 0x5bd   :  { %9838 = vmatpush2.bf16.msra.mxu0 %v13137_v56 }
 0x5be   :  { %9879 = vmatpush2.bf16.msra.mxu1 %v13140_v0  ;;  %9839 = vmatprep.subr.bf16.mxu0 %v13145_v48 }
 0x5bf   :  { %9880 = vmatprep.subr.bf16.mxu1 %v13148_v53 }
 0x5c1   :  { %9840 = vmatpush2.bf16.msra.mxu0 %v13143_v58 }
 0x5c2   :  { %9881 = vmatpush2.bf16.msra.mxu1 %v13146_v61  ;;  %9841 = vmatprep.subr.bf16.mxu0 %v13151_v3 }
 0x5c3   :  { %9882 = vmatprep.subr.bf16.mxu1 %v13154_v23 }
 0x5c5   :  { %9842 = vmatpush2.bf16.msra.mxu0 %v13149_v34 }
 0x5c6   :  { %9883 = vmatpush2.bf16.msra.mxu1 %v13152_v46  ;;  %9843 = vmatprep.subr.bf16.mxu0 %v13157_v54 }
 0x5c7   :  { %9884 = vmatprep.subr.bf16.mxu1 %v13160_v9 }
 0x5c9   :  { %9844 = vmatpush2.bf16.msra.mxu0 %v13155_v24 }
 0x5ca   :  { %9885 = vmatpush2.bf16.msra.mxu1 %v13158_v25  ;;  %9845 = vmatprep.subr.bf16.mxu0 %v13163_v5 }
 0x5cb   :  { %9886 = vmatprep.subr.bf16.mxu1 %v13166_v6 }
 0x5cd   :  { %9846 = vmatpush2.bf16.msra.mxu0 %v13161_v7 }
 0x5ce   :  { %9887 = vmatpush2.bf16.msra.mxu1 %v13164_v26 }
 0x5d0   :  { %v8807_v10 = vpop.f32.mrf.mxu0  ;;  %9848 = vmatmul.mubr.bf16.vlgmr.msra.gmra.mxu0 %v15739_v28 }
 0x5d1   :  { %v8848_v12 = vpop.f32.mrf.mxu1  ;;  %9889 = vmatmul.mubr.bf16.vlgmr.msra.gmra.mxu1 %v15744_v17 }
 0x5d2   :  { %v8849_v11 = vadd.f32 %v8848_v12, %v8807_v10  ;;  %v8809_v16 = vpop.f32.mrf.mxu0 }
 0x5d3   :  { %v8850_v33 = vpop.f32.mrf.mxu1 }
 0x5d4   :  { %v8937_v18 = vadd.f32 %v8849_v11, %v15553_v50  ;;  %v8851_v19 = vadd.f32 %v8850_v33, %v8809_v16  ;;  %v8811_v20 = vpop.f32.mrf.mxu0 }
 0x5d5   :  { %v8852_v8 = vpop.f32.mrf.mxu1 }
 0x5d6   :  { %v8938_v21 = vadd.f32 %v8851_v19, %v15558_v1  ;;  %v8812_v47 = vpop.f32.mrf.mxu0 }
 0x5d7   :  { %v8853_v22 = vpop.f32.mrf.mxu1 }
 0x610   :  { %v8889_v62 = vpop.f32.mrf.mxu0 }
 0x611   :  { %v8930_v49 = vpop.f32.mrf.mxu1 }
 0x612   :  { %v8931_v32 = vadd.f32 %v8930_v49, %v8889_v62  ;;  %v8891_v27 = vpop.f32.mrf.mxu0 }
 0x613   :  { %v8932_v28 = vpop.f32.mrf.mxu1 }
 0x614   :  { %v8939_v63 = vadd.f32 %v8931_v32, %v15771_v52  ;;  %v8933_v17 = vadd.f32 %v8932_v28, %v8891_v27  ;;  %v8893_v51 = vpop.f32.mrf.mxu0 }
 0x615   :  { %v8934_v57 = vpop.f32.mrf.mxu1 }
 0x616   :  { %v8940_v29 = vadd.f32 %v8933_v17, %v15776_v36  ;;  %v8894_v50 = vpop.f32.mrf.mxu0 }
 0x617   :  { %v8935_v30 = vpop.f32.mrf.mxu1 }
 0x650   :  { %v9767_v15 = vpop.f32.mrf.mxu0 }
 0x651   :  { %v9808_v37 = vpop.f32.mrf.mxu1 }
 0x652   :  { %v9809_v35 = vadd.f32 %v9808_v37, %v9767_v15  ;;  %v9769_v1 = vpop.f32.mrf.mxu0 }
 0x653   :  { %v9810_v60 = vpop.f32.mrf.mxu1 }
 0x654   :  { %v9897_v14 = vadd.f32 %v9809_v35, %v8937_v18  ;;  %v9811_v38 = vadd.f32 %v9810_v60, %v9769_v1  ;;  %v9771_v40 = vpop.f32.mrf.mxu0 }
 0x655   :  { %v9812_v39 = vpop.f32.mrf.mxu1 }
 0x656   :  { %v9898_v41 = vadd.f32 %v9811_v38, %v8938_v21  ;;  %v9772_v42 = vpop.f32.mrf.mxu0  ;;  %v9901_v52 = vmax.f32 %v9897_v14, 0.0 }
 0x657   :  { %v9813_v43 = vpop.f32.mrf.mxu1 }
 0x658   :  { %v9902_v2 = vmax.f32 %v9898_v41, 0.0 }
 0x65a   :  { %v9909_v45 = vcombine.low %v9901_v52, %v9902_v2 }
 0x65c   :  { %v9917_v46 = vrot.slane %v9909_v45, %v14641_v31 }
 0x690   :  { %v9849_v59 = vpop.f32.mrf.mxu0 }
 0x691   :  { %v9890_v44 = vpop.f32.mrf.mxu1 }
 0x692   :  { %v9891_v36 = vadd.f32 %v9890_v44, %v9849_v59  ;;  %v9851_v4 = vpop.f32.mrf.mxu0 }
 0x693   :  { %v9892_v55 = vpop.f32.mrf.mxu1 }
 0x694   :  { %v9899_v13 = vadd.f32 %v9891_v36, %v8939_v63  ;;  %v9893_v56 = vadd.f32 %v9892_v55, %v9851_v4  ;;  %v9853_v0 = vpop.f32.mrf.mxu0 }
 0x695   :  { %v9894_v48 = vpop.f32.mrf.mxu1 }
 0x696   :  { %v9900_v53 = vadd.f32 %v9893_v56, %v8940_v29  ;;  %v9854_v58 = vpop.f32.mrf.mxu0  ;;  %v9903_v3 = vmax.f32 %v9899_v13, 0.0 }
 0x697   :  { %v9895_v61 = vpop.f32.mrf.mxu1 }
 0x698   :  { %v9904_v23 = vmax.f32 %v9900_v53, 0.0 }
 0x69a   :  { %v9910_v34 = vcombine.low %v9903_v3, %v9904_v23 }
 0x69c   :  { %v9924_v54 = vrot.slane %v9910_v34, %v14641_v31 }
 0x69e   :  { %v9925_v9 = vcombine.low %v9917_v46, %v9924_v54 }
 0x6a0   :  { %11224 = vst [vmem:[%s15956_s8 + $0x8] sm:$0xff] %v9925_v9 }
 0x6a1   :  { %9933 = vsyncpa [#allocation4], 1 }
 0x6a2   :  { %9934 = vsyncpa [#allocation6], 1 }

</bundles_post_ra>
